<compile_context>
chip_gen: v5e
topology: v5e:2x2
jax: 0.10.0
libtpu: 0.0.40
codegen_flags: <defaults>
</compile_context>

<pallas_src>
import functools

import jax
import jax.numpy as jnp
from jax.experimental import pallas as pl
from jax.experimental.pallas import tpu as pltpu

_BN_EPS = 1e-5
_MM_DTYPE = jnp.bfloat16      # MXU operand dtype
_ACT_DTYPE = jnp.bfloat16     # inter-layer activation storage dtype
_VMEM_LIMIT = 40 * 1024 * 1024


def _round_up(x, m):
    return (x + m - 1) // m * m


def _pick_m(m):
    """Pad M to a multiple of 8 and pick the largest tile that divides it."""
    m_pad = max(_round_up(m, 8), 8)
    for tm in (512, 256, 128, 64, 32, 16, 8):
        if m_pad % tm == 0:
            return m_pad, tm
    return m_pad, 8   # unreachable (m_pad % 8 == 0)


def _pick_k(k, tm):
    """K tile: multiples of 128 when possible (larger when M is small -> weight stream)."""
    if k % 128 == 0:
        cands = (1024, 512, 256, 128) if tm >= 256 else (2048, 1024, 512, 256, 128)
        for tk in cands:
            if k % tk == 0:
                return tk
    return k          # block == full K dim (always legal)


def _pick_n(n):
    """N tile: 256 fills the v6e/v7x MXU and keeps >=2 parallel tiles for N=512;
    otherwise emit the true N (block last dim == full array dim)."""
    if n % 128 == 0:
        return 256 if n % 256 == 0 else 128
    return n


def _choose_div_tile(dim, candidates):
    for c in candidates:
        if dim >= c and dim % c == 0:
            return c
    return dim


def _apply_act(y, act):
    if act == "leaky_relu":
        return jnp.where(y >= 0, y, y * 0.2)
    if act == "relu":
        return jnp.maximum(y, 0)
    if act == "tanh":
        return jnp.tanh(y)
    return y  # None


# ---------------------------------------------------------------------------
# Pallas kernels
# ---------------------------------------------------------------------------

def _matmul_kernel(a_ref, b_ref, bias_ref, *refs, pre_act, post_act, compute_stats):
    """post_act((pre_act(A) @ B) + bias) with optional fused BN partial statistics.

    Blocks: A (1, tm, tk) bf16, B (1, tk, tn) bf16, bias (1, tn) f32,
            out (1, tm, tn) bf16, stats (1, 1, 8, tn) f32 (row 0 holds the sums),
            f32 VMEM accumulator, reduction (K) axis last in the grid.
    """
    if compute_stats:
        o_ref, s1_ref, s2_ref, acc_ref = refs
    else:
        o_ref, acc_ref = refs

    k = pl.program_id(3)

    @pl.when(k == 0)
    def _():
        acc_ref[...] = jnp.zeros_like(acc_ref)

    a = _apply_act(a_ref[0], pre_act)
    acc_ref[...] += jnp.dot(a, b_ref[0], preferred_element_type=jnp.float32)

    @pl.when(k == pl.num_programs(3) - 1)
    def _():
        y = _apply_act(acc_ref[...] + bias_ref[...], post_act)
        o_ref[0] = y.astype(o_ref.dtype)
        if compute_stats:
            s1 = jnp.sum(y, axis=0, keepdims=True)
            s2 = jnp.sum(y * y, axis=0, keepdims=True)
            s1_ref[0, 0] = jnp.broadcast_to(s1, s1_ref.shape[2:])
            s2_ref[0, 0] = jnp.broadcast_to(s2, s2_ref.shape[2:])


def _affine_kernel(x_ref, scale_ref, shift_ref, o_ref):
    y = x_ref[...].astype(jnp.float32) * scale_ref[...] + shift_ref[...]
    o_ref[...] = y.astype(o_ref.dtype)


# ---------------------------------------------------------------------------
# Kernel wrappers
# ---------------------------------------------------------------------------

def matmul_fused(a, w, bias, pre_act=None, post_act=None, compute_stats=False):
    """Batched-over-phase matmul: (P, M, K) @ (P, K, N) + bias, fused activations.

    bf16 operands, f32 accumulation. Optionally also returns per-(phase, M-tile)
    partial sum / sum-of-squares of the output (for fused BatchNorm statistics).
    """
    P, M, K = a.shape
    P2, K2, N = w.shape
    assert P == P2 and K == K2
    # Fused stats rely on zero-padded M rows contributing 0 (true when bias is None,
    # which holds for every BatchNorm'd conv in this network: use_bias=False).
    assert not (compute_stats and bias is not None)

    a = a if a.dtype == _MM_DTYPE else a.astype(_MM_DTYPE)
    w = w if w.dtype == _MM_DTYPE else w.astype(_MM_DTYPE)

    m_pad, tm = _pick_m(M)
    if m_pad != M:
        a = jnp.pad(a, ((0, 0), (0, m_pad - M), (0, 0)))
    tk = _pick_k(K, tm)
    tn = _pick_n(N)
    gm, gn, gk = m_pad // tm, N // tn, K // tk

    if bias is None:
        bias2 = jnp.zeros((1, N), jnp.float32)
    else:
        bias2 = bias.astype(jnp.float32).reshape(1, N)

    out_shapes = [jax.ShapeDtypeStruct((P, m_pad, N), _ACT_DTYPE)]
    out_specs = [pl.BlockSpec((1, tm, tn), lambda p, i, j, k: (p, i, j))]
    if compute_stats:
        stat_shape = jax.ShapeDtypeStruct((P, gm, 8, N), jnp.float32)
        stat_spec = pl.BlockSpec((1, 1, 8, tn), lambda p, i, j, k: (p, i, 0, j))
        out_shapes += [stat_shape, stat_shape]
        out_specs += [stat_spec, stat_spec]

    kernel = functools.partial(_matmul_kernel, pre_act=pre_act, post_act=post_act,
                               compute_stats=compute_stats)
    res = pl.pallas_call(
        kernel,
        out_shape=tuple(out_shapes) if compute_stats else out_shapes[0],
        grid=(P, gm, gn, gk),
        in_specs=[
            pl.BlockSpec((1, tm, tk), lambda p, i, j, k: (p, i, k)),
            pl.BlockSpec((1, tk, tn), lambda p, i, j, k: (p, k, j)),
            pl.BlockSpec((1, tn), lambda p, i, j, k: (0, j)),
        ],
        out_specs=tuple(out_specs) if compute_stats else out_specs[0],
        scratch_shapes=[pltpu.VMEM((tm, tn), jnp.float32)],
        compiler_params=pltpu.CompilerParams(
            dimension_semantics=("parallel", "parallel", "parallel", "arbitrary"),
            vmem_limit_bytes=_VMEM_LIMIT),
    )(a, w, bias2)

    if compute_stats:
        out, s1p, s2p = res
    else:
        out = res
    if m_pad != M:
        out = out[:, :M, :]
    return (out, s1p, s2p) if compute_stats else out


def affine_2d(x2d, scale, shift):
    """y = x * scale + shift (per-channel); bf16 in/out, f32 compute."""
    m, c = x2d.shape
    m_pad = max(_round_up(m, 8), 8)
    if m_pad != m:
        x2d = jnp.pad(x2d, ((0, m_pad - m), (0, 0)))
    tm = _choose_div_tile(m_pad, (1024, 512, 256, 128, 64, 32, 16, 8))
    out = pl.pallas_call(
        _affine_kernel,
        out_shape=jax.ShapeDtypeStruct((m_pad, c), _ACT_DTYPE),
        grid=(m_pad // tm,),
        in_specs=[
            pl.BlockSpec((tm, c), lambda i: (i, 0)),
            pl.BlockSpec((1, c), lambda i: (0, 0)),
            pl.BlockSpec((1, c), lambda i: (0, 0)),
        ],
        out_specs=pl.BlockSpec((tm, c), lambda i: (i, 0)),
        compiler_params=pltpu.CompilerParams(
            dimension_semantics=("parallel",), vmem_limit_bytes=_VMEM_LIMIT),
    )(x2d, scale.reshape(1, c).astype(jnp.float32),
      shift.reshape(1, c).astype(jnp.float32))
    return out[:m] if m_pad != m else out


def _bn_affine(y2d, s1p, s2p, count, gamma, beta):
    """Finish BatchNorm from the fused per-tile partial sums (training mode, biased var)."""
    s1 = jnp.sum(s1p[:, :, 0, :], axis=(0, 1))
    s2 = jnp.sum(s2p[:, :, 0, :], axis=(0, 1))
    mean = s1 / count
    var = jnp.maximum(s2 / count - mean * mean, 0.0)
    scale = gamma * jax.lax.rsqrt(var + _BN_EPS)
    shift = beta - mean * scale
    return affine_2d(y2d, scale, shift)


# ---------------------------------------------------------------------------
# Conv / ConvTranspose built on the kernels (layout glue only in XLA)
# ---------------------------------------------------------------------------

def _im2col(x_nhwc, k, stride, pad):
    n, h, w, c = x_nhwc.shape
    xp = x_nhwc if x_nhwc.dtype == _MM_DTYPE else x_nhwc.astype(_MM_DTYPE)
    xp = jnp.pad(xp, ((0, 0), (pad, pad), (pad, pad), (0, 0)))
    ho = (h + 2 * pad - k) // stride + 1
    wo = (w + 2 * pad - k) // stride + 1
    cols = []
    for kh in range(k):
        for kw in range(k):
            cols.append(xp[:, kh:kh + stride * (ho - 1) + 1:stride,
                           kw:kw + stride * (wo - 1) + 1:stride, :])
    patches = jnp.stack(cols, axis=3)                       # (N, Ho, Wo, k*k, C)
    return patches.reshape(n * ho * wo, k * k * c), (n, ho, wo)


def conv2d(x_nhwc, weight_oikk, bias, stride, pad, pre_act=None, post_act=None, bn=None):
    """torch Conv2d (Cout, Cin, kh, kw); pre/post activations + BN stats fused in the matmul."""
    cout, cin, k, _ = weight_oikk.shape
    cols, (n, ho, wo) = _im2col(x_nhwc, k, stride, pad)
    w_mat = jnp.transpose(weight_oikk, (2, 3, 1, 0)).reshape(k * k * cin, cout)
    res = matmul_fused(cols[None], w_mat[None].astype(_MM_DTYPE), bias,
                       pre_act=pre_act, post_act=post_act, compute_stats=bn is not None)
    if bn is None:
        return res[0].reshape(n, ho, wo, cout)
    out, s1p, s2p = res
    m = n * ho * wo
    gamma, beta = bn
    y2d = _bn_affine(out.reshape(m, cout), s1p, s2p, m, gamma, beta)
    return y2d.reshape(n, ho, wo, cout)


def conv_transpose2d(x_nhwc, weight_iokk, bias, pre_act=None, post_act=None, bn=None):
    """torch ConvTranspose2d(k=4, s=2, p=1), weight (Cin, Cout, kh, kw).

    4-phase sub-pixel decomposition: output (2u+r, 2v+s) is a 2x2 stride-1 conv of the
    1-padded input with the (r, s) sub-kernel of the flipped/transposed weight.
    All 4 phases run in ONE pallas_call (leading 'parallel' phase grid axis)."""
    n, h, w, cin = x_nhwc.shape
    cout = weight_iokk.shape[1]
    # wf[a, b, cin, cout] = W[cin, cout, 3-a, 3-b]  (flip + in/out swap)
    wf = jnp.transpose(weight_iokk[:, :, ::-1, ::-1], (2, 3, 0, 1)).astype(_MM_DTYPE)
    xp = x_nhwc if x_nhwc.dtype == _MM_DTYPE else x_nhwc.astype(_MM_DTYPE)
    xp = jnp.pad(xp, ((0, 0), (1, 1), (1, 1), (0, 0)))

    a_phases, w_phases = [], []
    for r in range(2):
        for s in range(2):
            taps = [xp[:, r + da:r + da + h, s + db:s + db + w, :]
                    for da in range(2) for db in range(2)]
            a_phases.append(jnp.stack(taps, axis=3).reshape(n * h * w, 4 * cin))
            w_phases.append(wf[r::2, s::2].reshape(4 * cin, cout))
    a_all = jnp.stack(a_phases, axis=0)     # (4, M, 4*Cin)
    w_all = jnp.stack(w_phases, axis=0)     # (4, 4*Cin, Cout)

    res = matmul_fused(a_all, w_all, bias, pre_act=pre_act, post_act=post_act,
                       compute_stats=bn is not None)
    m = n * h * w
    if bn is None:
        y = res
    else:
        y, s1p, s2p = res
        gamma, beta = bn
        y = _bn_affine(y.reshape(4 * m, cout), s1p, s2p, 4 * m, gamma, beta)
        y = y.reshape(4, m, cout)

    # interleave the 4 phases back to NHWC (single XLA transpose)
    y = y.reshape(2, 2, n, h, w, cout)
    y = jnp.transpose(y, (2, 3, 0, 4, 1, 5)).reshape(n, 2 * h, 2 * w, cout)
    return y


# ---------------------------------------------------------------------------
# UnetGenerator parameters and forward
# ---------------------------------------------------------------------------

def _init_block(key, outer_nc, inner_nc, input_nc=None, submodule=None,
                outermost=False, innermost=False):
    if input_nc is None:
        input_nc = outer_nc
    k1, k2, k3 = jax.random.split(key, 3)
    p = {"outermost": outermost, "innermost": innermost, "sub": submodule}
    # norm_layer == BatchNorm2d -> use_bias = False on down/up convs (except outermost up).
    p["down_w"] = 0.05 * jax.random.normal(k1, (inner_nc, input_nc, 4, 4), jnp.float32)
    if outermost:
        p["up_w"] = 0.05 * jax.random.normal(k2, (inner_nc * 2, outer_nc, 4, 4), jnp.float32)
        p["up_b"] = 0.01 * jax.random.normal(k3, (outer_nc,), jnp.float32)
    elif innermost:
        p["up_w"] = 0.05 * jax.random.normal(k2, (inner_nc, outer_nc, 4, 4), jnp.float32)
        p["up_b"] = None
        p["bn_out"] = (jnp.ones((outer_nc,), jnp.float32), jnp.zeros((outer_nc,), jnp.float32))
    else:
        p["up_w"] = 0.05 * jax.random.normal(k2, (inner_nc * 2, outer_nc, 4, 4), jnp.float32)
        p["up_b"] = None
        p["bn_in"] = (jnp.ones((inner_nc,), jnp.float32), jnp.zeros((inner_nc,), jnp.float32))
        p["bn_out"] = (jnp.ones((outer_nc,), jnp.float32), jnp.zeros((outer_nc,), jnp.float32))
    return p


def init_unet_generator(key, input_nc, output_nc, num_downs, ngf=64):
    keys = jax.random.split(key, num_downs)
    blk = _init_block(keys[0], ngf * 8, ngf * 8, innermost=True)
    idx = 1
    for _ in range(num_downs - 5):
        blk = _init_block(keys[idx], ngf * 8, ngf * 8, submodule=blk); idx += 1
    blk = _init_block(keys[idx], ngf * 4, ngf * 8, submodule=blk); idx += 1
    blk = _init_block(keys[idx], ngf * 2, ngf * 4, submodule=blk); idx += 1
    blk = _init_block(keys[idx], ngf, ngf * 2, submodule=blk); idx += 1
    blk = _init_block(keys[idx], output_nc, ngf, input_nc=input_nc,
                      submodule=blk, outermost=True)
    return blk


def _block_forward(p, x):
    if p["outermost"]:
        # down = [downconv]; up = [ReLU, upconv(+bias), Tanh]
        h = conv2d(x, p["down_w"], None, stride=2, pad=1)
        h = _block_forward(p["sub"], h)
        return conv_transpose2d(h, p["up_w"], p["up_b"], pre_act="relu", post_act="tanh")
    if p["innermost"]:
        # down = [LeakyReLU, downconv]; up = [ReLU, upconv, BN]; return cat([x, .])
        h = conv2d(x, p["down_w"], None, stride=2, pad=1,
                   pre_act="leaky_relu", post_act="relu")
        y = conv_transpose2d(h, p["up_w"], None, bn=p["bn_out"])
        return jnp.concatenate([x, y], axis=-1)
    # middle: down = [LeakyReLU, downconv, BN]; up = [ReLU, upconv, BN]; cat
    h = conv2d(x, p["down_w"], None, stride=2, pad=1, pre_act="leaky_relu", bn=p["bn_in"])
    h = _block_forward(p["sub"], h)
    y = conv_transpose2d(h, p["up_w"], None, pre_act="relu", bn=p["bn_out"])
    return jnp.concatenate([x, y], axis=-1)   # skip connection along channels


def unet_generator_forward(params, x_nchw):
    x = jnp.transpose(x_nchw, (0, 2, 3, 1)).astype(_ACT_DTYPE)   # NCHW -> NHWC bf16
    y = _block_forward(params, x)
    return jnp.transpose(y, (0, 3, 1, 2)).astype(jnp.float32)    # NHWC -> NCHW f32


# ---------------------------------------------------------------------------

if __name__ == "__main__":
    INPUT_NC, OUTPUT_NC, NUM_DOWNS, NGF = 4, 3, 5, 8
    key = jax.random.PRNGKey(0)
    k_x, k_p = jax.random.split(key)
    # spatial must be divisible by 2**num_downs (32 for num_downs=5)
    x = jax.random.normal(k_x, (2, INPUT_NC, 32, 32), jnp.float32)

    params = init_unet_generator(k_p, INPUT_NC, OUTPUT_NC, NUM_DOWNS, NGF)
    fwd = jax.jit(functools.partial(unet_generator_forward, params))
    out = jax.block_until_ready(fwd(x))

    assert out.shape == (2, OUTPUT_NC, 32, 32), out.shape
    assert bool(jnp.all(jnp.isfinite(out)))
    print("KERNEL_OK")
</pallas_src>

<mosaic_0001>
module attributes {stable_mosaic.version = 11 : i64} {
  func.func @_matmul_kernel(%arg0: i32, %arg1: i32, %arg2: i32, %arg3: i32, %arg4: memref<1x512x64xbf16, #tpu.memory_space<vmem>>, %arg5: memref<1x64x8xbf16, #tpu.memory_space<vmem>>, %arg6: memref<1x8xf32, #tpu.memory_space<vmem>>, %arg7: memref<1x512x8xbf16, #tpu.memory_space<vmem>>, %arg8: memref<512x8xf32, #tpu.memory_space<vmem>>) attributes {dimension_semantics = [#tpu.dimension_semantics<parallel>, #tpu.dimension_semantics<parallel>, #tpu.dimension_semantics<parallel>, #tpu.dimension_semantics<arbitrary>], iteration_bounds = array<i64: 1, 1, 1, 1>, scalar_prefetch = 0 : i64, scratch_operands = 1 : i64, tpu.core_type = #tpu.core_type<tc>, window_params = [{transform_indices = @transform_0, window_bounds = array<i64: 1, 512, 64>}, {transform_indices = @transform_1, window_bounds = array<i64: 1, 64, 8>}, {transform_indices = @transform_2, window_bounds = array<i64: 1, 8>}, {transform_indices = @transform_3, window_bounds = array<i64: 1, 512, 8>}]} {
    %c0_i32 = arith.constant 0 : i32
    %0 = arith.cmpi eq, %arg3, %c0_i32 : i32
    %1 = arith.extui %0 : i1 to i32
    %c0_i32_0 = arith.constant 0 : i32
    %2 = arith.cmpi ne, %1, %c0_i32_0 : i32
    scf.if %2 {
      %cst_12 = arith.constant 0.000000e+00 : f32
      %14 = vector.broadcast %cst_12 : f32 to vector<512x8xf32>
      %c0_13 = arith.constant 0 : index
      %c0_14 = arith.constant 0 : index
      %15 = vector.load %arg8[%c0_13, %c0_14] : memref<512x8xf32, #tpu.memory_space<vmem>>, vector<512x8xf32>
      tpu.vector_store %arg8[%c0_13, %c0_14], %14 {strides = array<i32>} : memref<512x8xf32, #tpu.memory_space<vmem>>, vector<512x8xf32>,
    } else {
    }
    %c0 = arith.constant 0 : index
    %c0_1 = arith.constant 0 : index
    %c0_2 = arith.constant 0 : index
    %3 = vector.load %arg4[%c0, %c0_1, %c0_2] : memref<1x512x64xbf16, #tpu.memory_space<vmem>>, vector<1x512x64xbf16>
    %4 = vector.shape_cast %3 : vector<1x512x64xbf16> to vector<512x64xbf16>
    %c0_3 = arith.constant 0 : index
    %c0_4 = arith.constant 0 : index
    %5 = vector.load %arg8[%c0_3, %c0_4] : memref<512x8xf32, #tpu.memory_space<vmem>>, vector<512x8xf32>
    %c0_5 = arith.constant 0 : index
    %c0_6 = arith.constant 0 : index
    %c0_7 = arith.constant 0 : index
    %6 = vector.load %arg5[%c0_5, %c0_6, %c0_7] : memref<1x64x8xbf16, #tpu.memory_space<vmem>>, vector<1x64x8xbf16>
    %7 = vector.shape_cast %6 : vector<1x64x8xbf16> to vector<64x8xbf16>
    %cst = arith.constant dense<0.000000e+00> : vector<512x8xf32>
    %8 = tpu.matmul %4, %7, %cst {dimension_numbers = #tpu.dot_dimension_numbers<[1], [0], [0], [1], [0, 0, 1, 1], [], []>} : vector<512x64xbf16>, vector<64x8xbf16>, vector<512x8xf32> -> vector<512x8xf32>
    %9 = arith.addf %5, %8 : vector<512x8xf32>
    %c0_8 = arith.constant 0 : index
    %c0_9 = arith.constant 0 : index
    %10 = vector.load %arg8[%c0_8, %c0_9] : memref<512x8xf32, #tpu.memory_space<vmem>>, vector<512x8xf32>
    tpu.vector_store %arg8[%c0_8, %c0_9], %9 {strides = array<i32>} : memref<512x8xf32, #tpu.memory_space<vmem>>, vector<512x8xf32>,
    %c0_i32_10 = arith.constant 0 : i32
    %11 = arith.cmpi eq, %arg3, %c0_i32_10 : i32
    %12 = arith.extui %11 : i1 to i32
    %c0_i32_11 = arith.constant 0 : i32
    %13 = arith.cmpi ne, %12, %c0_i32_11 : i32
    scf.if %13 {
      %c0_12 = arith.constant 0 : index
      %c0_13 = arith.constant 0 : index
      %14 = vector.load %arg8[%c0_12, %c0_13] : memref<512x8xf32, #tpu.memory_space<vmem>>, vector<512x8xf32>
      %c0_14 = arith.constant 0 : index
      %c0_15 = arith.constant 0 : index
      %15 = vector.load %arg6[%c0_14, %c0_15] : memref<1x8xf32, #tpu.memory_space<vmem>>, vector<1x8xf32>
      %16 = vector.broadcast %15 : vector<1x8xf32> to vector<512x8xf32>
      %17 = arith.addf %14, %16 : vector<512x8xf32>
      %18 = arith.truncf %17 : vector<512x8xf32> to vector<512x8xbf16>
      %c0_16 = arith.constant 0 : index
      %c0_17 = arith.constant 0 : index
      %c0_18 = arith.constant 0 : index
      %19 = vector.load %arg7[%c0_16, %c0_17, %c0_18] : memref<1x512x8xbf16, #tpu.memory_space<vmem>>, vector<1x512x8xbf16>
      %20 = vector.shape_cast %19 : vector<1x512x8xbf16> to vector<512x8xbf16>
      %21 = vector.shape_cast %18 : vector<512x8xbf16> to vector<1x512x8xbf16>
      tpu.vector_store %arg7[%c0_16, %c0_17, %c0_18], %21 {strides = array<i32>} : memref<1x512x8xbf16, #tpu.memory_space<vmem>>, vector<1x512x8xbf16>,
    } else {
    }
    return
  }
  func.func @transform_0(%arg0: i32, %arg1: i32, %arg2: i32, %arg3: i32) -> (i32, i32, i32) {
    %c0_i32 = arith.constant 0 : i32
    return %arg0, %arg1, %arg3 : i32, i32, i32
  }
  func.func @transform_1(%arg0: i32, %arg1: i32, %arg2: i32, %arg3: i32) -> (i32, i32, i32) {
    %c0_i32 = arith.constant 0 : i32
    return %arg0, %arg3, %arg2 : i32, i32, i32
  }
  func.func @transform_2(%arg0: i32, %arg1: i32, %arg2: i32, %arg3: i32) -> (i32, i32) {
    %c0_i32 = arith.constant 0 : i32
    %c0_i32_0 = arith.constant 0 : i32
    return %c0_i32, %arg2 : i32, i32
  }
  func.func @transform_3(%arg0: i32, %arg1: i32, %arg2: i32, %arg3: i32) -> (i32, i32, i32) {
    %c0_i32 = arith.constant 0 : i32
    return %arg0, %arg1, %arg2 : i32, i32, i32
  }
}

module attributes {stable_mosaic.version = 11 : i64} {
  func.func @_matmul_kernel(%arg0: i32, %arg1: i32, %arg2: i32, %arg3: i32, %arg4: memref<1x128x128xbf16, #tpu.memory_space<vmem>>, %arg5: memref<1x128x16xbf16, #tpu.memory_space<vmem>>, %arg6: memref<1x16xf32, #tpu.memory_space<vmem>>, %arg7: memref<1x128x16xbf16, #tpu.memory_space<vmem>>, %arg8: memref<1x1x8x16xf32, #tpu.memory_space<vmem>>, %arg9: memref<1x1x8x16xf32, #tpu.memory_space<vmem>>, %arg10: memref<128x16xf32, #tpu.memory_space<vmem>>) attributes {dimension_semantics = [#tpu.dimension_semantics<parallel>, #tpu.dimension_semantics<parallel>, #tpu.dimension_semantics<parallel>, #tpu.dimension_semantics<arbitrary>], iteration_bounds = array<i64: 1, 1, 1, 1>, scalar_prefetch = 0 : i64, scratch_operands = 1 : i64, tpu.core_type = #tpu.core_type<tc>, window_params = [{transform_indices = @transform_0, window_bounds = array<i64: 1, 128, 128>}, {transform_indices = @transform_1, window_bounds = array<i64: 1, 128, 16>}, {transform_indices = @transform_2, window_bounds = array<i64: 1, 16>}, {transform_indices = @transform_3, window_bounds = array<i64: 1, 128, 16>}, {transform_indices = @transform_4, window_bounds = array<i64: 1, 1, 8, 16>}, {transform_indices = @transform_5, window_bounds = array<i64: 1, 1, 8, 16>}]} {
    %c0_i32 = arith.constant 0 : i32
    %0 = arith.cmpi eq, %arg3, %c0_i32 : i32
    %1 = arith.extui %0 : i1 to i32
    %c0_i32_0 = arith.constant 0 : i32
    %2 = arith.cmpi ne, %1, %c0_i32_0 : i32
    scf.if %2 {
      %cst_14 = arith.constant 0.000000e+00 : f32
      %19 = vector.broadcast %cst_14 : f32 to vector<128x16xf32>
      %c0_15 = arith.constant 0 : index
      %c0_16 = arith.constant 0 : index
      %20 = vector.load %arg10[%c0_15, %c0_16] : memref<128x16xf32, #tpu.memory_space<vmem>>, vector<128x16xf32>
      tpu.vector_store %arg10[%c0_15, %c0_16], %19 {strides = array<i32>} : memref<128x16xf32, #tpu.memory_space<vmem>>, vector<128x16xf32>,
    } else {
    }
    %c0 = arith.constant 0 : index
    %c0_1 = arith.constant 0 : index
    %c0_2 = arith.constant 0 : index
    %3 = vector.load %arg4[%c0, %c0_1, %c0_2] : memref<1x128x128xbf16, #tpu.memory_space<vmem>>, vector<1x128x128xbf16>
    %4 = vector.shape_cast %3 : vector<1x128x128xbf16> to vector<128x128xbf16>
    %cst = arith.constant 0.000000e+00 : bf16
    %5 = vector.broadcast %cst : bf16 to vector<128x128xbf16>
    %6 = arith.cmpf oge, %4, %5 : vector<128x128xbf16>
    %cst_3 = arith.constant 2.001950e-01 : bf16
    %7 = vector.broadcast %cst_3 : bf16 to vector<128x128xbf16>
    %8 = arith.mulf %4, %7 : vector<128x128xbf16>
    %9 = arith.select %6, %4, %8 : vector<128x128xi1>, vector<128x128xbf16>
    %c0_4 = arith.constant 0 : index
    %c0_5 = arith.constant 0 : index
    %10 = vector.load %arg10[%c0_4, %c0_5] : memref<128x16xf32, #tpu.memory_space<vmem>>, vector<128x16xf32>
    %c0_6 = arith.constant 0 : index
    %c0_7 = arith.constant 0 : index
    %c0_8 = arith.constant 0 : index
    %11 = vector.load %arg5[%c0_6, %c0_7, %c0_8] : memref<1x128x16xbf16, #tpu.memory_space<vmem>>, vector<1x128x16xbf16>
    %12 = vector.shape_cast %11 : vector<1x128x16xbf16> to vector<128x16xbf16>
    %cst_9 = arith.constant dense<0.000000e+00> : vector<128x16xf32>
    %13 = tpu.matmul %9, %12, %cst_9 {dimension_numbers = #tpu.dot_dimension_numbers<[1], [0], [0], [1], [0, 0, 1, 1], [], []>} : vector<128x128xbf16>, vector<128x16xbf16>, vector<128x16xf32> -> vector<128x16xf32>
    %14 = arith.addf %10, %13 : vector<128x16xf32>
    %c0_10 = arith.constant 0 : index
    %c0_11 = arith.constant 0 : index
    %15 = vector.load %arg10[%c0_10, %c0_11] : memref<128x16xf32, #tpu.memory_space<vmem>>, vector<128x16xf32>
    tpu.vector_store %arg10[%c0_10, %c0_11], %14 {strides = array<i32>} : memref<128x16xf32, #tpu.memory_space<vmem>>, vector<128x16xf32>,
    %c0_i32_12 = arith.constant 0 : i32
    %16 = arith.cmpi eq, %arg3, %c0_i32_12 : i32
    %17 = arith.extui %16 : i1 to i32
    %c0_i32_13 = arith.constant 0 : i32
    %18 = arith.cmpi ne, %17, %c0_i32_13 : i32
    scf.if %18 {
      %c0_14 = arith.constant 0 : index
      %c0_15 = arith.constant 0 : index
      %19 = vector.load %arg10[%c0_14, %c0_15] : memref<128x16xf32, #tpu.memory_space<vmem>>, vector<128x16xf32>
      %c0_16 = arith.constant 0 : index
      %c0_17 = arith.constant 0 : index
      %20 = vector.load %arg6[%c0_16, %c0_17] : memref<1x16xf32, #tpu.memory_space<vmem>>, vector<1x16xf32>
      %21 = vector.broadcast %20 : vector<1x16xf32> to vector<128x16xf32>
      %22 = arith.addf %19, %21 : vector<128x16xf32>
      %23 = arith.truncf %22 : vector<128x16xf32> to vector<128x16xbf16>
      %c0_18 = arith.constant 0 : index
      %c0_19 = arith.constant 0 : index
      %c0_20 = arith.constant 0 : index
      %24 = vector.load %arg7[%c0_18, %c0_19, %c0_20] : memref<1x128x16xbf16, #tpu.memory_space<vmem>>, vector<1x128x16xbf16>
      %25 = vector.shape_cast %24 : vector<1x128x16xbf16> to vector<128x16xbf16>
      %26 = vector.shape_cast %23 : vector<128x16xbf16> to vector<1x128x16xbf16>
      tpu.vector_store %arg7[%c0_18, %c0_19, %c0_20], %26 {strides = array<i32>} : memref<1x128x16xbf16, #tpu.memory_space<vmem>>, vector<1x128x16xbf16>,
      %cst_21 = arith.constant dense<0.000000e+00> : vector<16xf32>
      %27 = vector.multi_reduction <add>, %22, %cst_21 [0] : vector<128x16xf32> to vector<16xf32>
      %28 = vector.shape_cast %27 : vector<16xf32> to vector<1x16xf32>
      %29 = arith.mulf %22, %22 : vector<128x16xf32>
      %cst_22 = arith.constant dense<0.000000e+00> : vector<16xf32>
      %30 = vector.multi_reduction <add>, %29, %cst_22 [0] : vector<128x16xf32> to vector<16xf32>
      %31 = vector.shape_cast %30 : vector<16xf32> to vector<1x16xf32>
      %32 = vector.shape_cast %28 : vector<1x16xf32> to vector<1x16xf32>
      %33 = vector.broadcast %32 : vector<1x16xf32> to vector<8x16xf32>
      %c0_23 = arith.constant 0 : index
      %c0_24 = arith.constant 0 : index
      %c0_25 = arith.constant 0 : index
      %c0_26 = arith.constant 0 : index
      %34 = vector.load %arg8[%c0_23, %c0_24, %c0_25, %c0_26] : memref<1x1x8x16xf32, #tpu.memory_space<vmem>>, vector<1x1x8x16xf32>
      %35 = vector.shape_cast %34 : vector<1x1x8x16xf32> to vector<8x16xf32>
      %36 = vector.shape_cast %33 : vector<8x16xf32> to vector<1x1x8x16xf32>
      tpu.vector_store %arg8[%c0_23, %c0_24, %c0_25, %c0_26], %36 {strides = array<i32>} : memref<1x1x8x16xf32, #tpu.memory_space<vmem>>, vector<1x1x8x16xf32>,
      %37 = vector.shape_cast %31 : vector<1x16xf32> to vector<1x16xf32>
      %38 = vector.broadcast %37 : vector<1x16xf32> to vector<8x16xf32>
      %c0_27 = arith.constant 0 : index
      %c0_28 = arith.constant 0 : index
      %c0_29 = arith.constant 0 : index
      %c0_30 = arith.constant 0 : index
      %39 = vector.load %arg9[%c0_27, %c0_28, %c0_29, %c0_30] : memref<1x1x8x16xf32, #tpu.memory_space<vmem>>, vector<1x1x8x16xf32>
      %40 = vector.shape_cast %39 : vector<1x1x8x16xf32> to vector<8x16xf32>
      %41 = vector.shape_cast %38 : vector<8x16xf32> to vector<1x1x8x16xf32>
      tpu.vector_store %arg9[%c0_27, %c0_28, %c0_29, %c0_30], %41 {strides = array<i32>} : memref<1x1x8x16xf32, #tpu.memory_space<vmem>>, vector<1x1x8x16xf32>,
    } else {
    }
    return
  }
  func.func @transform_0(%arg0: i32, %arg1: i32, %arg2: i32, %arg3: i32) -> (i32, i32, i32) {
    %c0_i32 = arith.constant 0 : i32
    return %arg0, %arg1, %arg3 : i32, i32, i32
  }
  func.func @transform_1(%arg0: i32, %arg1: i32, %arg2: i32, %arg3: i32) -> (i32, i32, i32) {
    %c0_i32 = arith.constant 0 : i32
    return %arg0, %arg3, %arg2 : i32, i32, i32
  }
  func.func @transform_2(%arg0: i32, %arg1: i32, %arg2: i32, %arg3: i32) -> (i32, i32) {
    %c0_i32 = arith.constant 0 : i32
    %c0_i32_0 = arith.constant 0 : i32
    return %c0_i32, %arg2 : i32, i32
  }
  func.func @transform_3(%arg0: i32, %arg1: i32, %arg2: i32, %arg3: i32) -> (i32, i32, i32) {
    %c0_i32 = arith.constant 0 : i32
    return %arg0, %arg1, %arg2 : i32, i32, i32
  }
  func.func @transform_4(%arg0: i32, %arg1: i32, %arg2: i32, %arg3: i32) -> (i32, i32, i32, i32) {
    %c0_i32 = arith.constant 0 : i32
    %c0_i32_0 = arith.constant 0 : i32
    return %arg0, %arg1, %c0_i32, %arg2 : i32, i32, i32, i32
  }
  func.func @transform_5(%arg0: i32, %arg1: i32, %arg2: i32, %arg3: i32) -> (i32, i32, i32, i32) {
    %c0_i32 = arith.constant 0 : i32
    %c0_i32_0 = arith.constant 0 : i32
    return %arg0, %arg1, %c0_i32, %arg2 : i32, i32, i32, i32
  }
}

module attributes {stable_mosaic.version = 11 : i64} {
  func.func @_affine_kernel(%arg0: i32, %arg1: memref<128x16xbf16, #tpu.memory_space<vmem>>, %arg2: memref<1x16xf32, #tpu.memory_space<vmem>>, %arg3: memref<1x16xf32, #tpu.memory_space<vmem>>, %arg4: memref<128x16xbf16, #tpu.memory_space<vmem>>) attributes {dimension_semantics = [#tpu.dimension_semantics<parallel>], iteration_bounds = array<i64: 1>, scalar_prefetch = 0 : i64, scratch_operands = 0 : i64, tpu.core_type = #tpu.core_type<tc>, window_params = [{transform_indices = @transform_0, window_bounds = array<i64: 128, 16>}, {pipeline_mode = #tpu.pipeline_mode<synchronous>, transform_indices = @transform_1, window_bounds = array<i64: 1, 16>}, {pipeline_mode = #tpu.pipeline_mode<synchronous>, transform_indices = @transform_2, window_bounds = array<i64: 1, 16>}, {transform_indices = @transform_3, window_bounds = array<i64: 128, 16>}]} {
    %c0 = arith.constant 0 : index
    %c0_0 = arith.constant 0 : index
    %0 = vector.load %arg1[%c0, %c0_0] : memref<128x16xbf16, #tpu.memory_space<vmem>>, vector<128x16xbf16>
    %1 = arith.extf %0 : vector<128x16xbf16> to vector<128x16xf32>
    %c0_1 = arith.constant 0 : index
    %c0_2 = arith.constant 0 : index
    %2 = vector.load %arg2[%c0_1, %c0_2] : memref<1x16xf32, #tpu.memory_space<vmem>>, vector<1x16xf32>
    %3 = vector.broadcast %2 : vector<1x16xf32> to vector<128x16xf32>
    %4 = arith.mulf %1, %3 : vector<128x16xf32>
    %c0_3 = arith.constant 0 : index
    %c0_4 = arith.constant 0 : index
    %5 = vector.load %arg3[%c0_3, %c0_4] : memref<1x16xf32, #tpu.memory_space<vmem>>, vector<1x16xf32>
    %6 = vector.broadcast %5 : vector<1x16xf32> to vector<128x16xf32>
    %7 = arith.addf %4, %6 : vector<128x16xf32>
    %8 = arith.truncf %7 : vector<128x16xf32> to vector<128x16xbf16>
    %c0_5 = arith.constant 0 : index
    %c0_6 = arith.constant 0 : index
    %9 = vector.load %arg4[%c0_5, %c0_6] : memref<128x16xbf16, #tpu.memory_space<vmem>>, vector<128x16xbf16>
    tpu.vector_store %arg4[%c0_5, %c0_6], %8 {strides = array<i32>} : memref<128x16xbf16, #tpu.memory_space<vmem>>, vector<128x16xbf16>,
    return
  }
  func.func @transform_0(%arg0: i32) -> (i32, i32) {
    %c0_i32 = arith.constant 0 : i32
    %c0_i32_0 = arith.constant 0 : i32
    return %arg0, %c0_i32 : i32, i32
  }
  func.func @transform_1(%arg0: i32) -> (i32, i32) {
    %c0_i32 = arith.constant 0 : i32
    %c0_i32_0 = arith.constant 0 : i32
    %c0_i32_1 = arith.constant 0 : i32
    return %c0_i32, %c0_i32_0 : i32, i32
  }
  func.func @transform_2(%arg0: i32) -> (i32, i32) {
    %c0_i32 = arith.constant 0 : i32
    %c0_i32_0 = arith.constant 0 : i32
    %c0_i32_1 = arith.constant 0 : i32
    return %c0_i32, %c0_i32_0 : i32, i32
  }
  func.func @transform_3(%arg0: i32) -> (i32, i32) {
    %c0_i32 = arith.constant 0 : i32
    %c0_i32_0 = arith.constant 0 : i32
    return %arg0, %c0_i32 : i32, i32
  }
}

module attributes {stable_mosaic.version = 11 : i64} {
  func.func @_matmul_kernel(%arg0: i32, %arg1: i32, %arg2: i32, %arg3: i32, %arg4: memref<1x32x256xbf16, #tpu.memory_space<vmem>>, %arg5: memref<1x256x32xbf16, #tpu.memory_space<vmem>>, %arg6: memref<1x32xf32, #tpu.memory_space<vmem>>, %arg7: memref<1x32x32xbf16, #tpu.memory_space<vmem>>, %arg8: memref<1x1x8x32xf32, #tpu.memory_space<vmem>>, %arg9: memref<1x1x8x32xf32, #tpu.memory_space<vmem>>, %arg10: memref<32x32xf32, #tpu.memory_space<vmem>>) attributes {dimension_semantics = [#tpu.dimension_semantics<parallel>, #tpu.dimension_semantics<parallel>, #tpu.dimension_semantics<parallel>, #tpu.dimension_semantics<arbitrary>], iteration_bounds = array<i64: 1, 1, 1, 1>, scalar_prefetch = 0 : i64, scratch_operands = 1 : i64, tpu.core_type = #tpu.core_type<tc>, window_params = [{transform_indices = @transform_0, window_bounds = array<i64: 1, 32, 256>}, {transform_indices = @transform_1, window_bounds = array<i64: 1, 256, 32>}, {transform_indices = @transform_2, window_bounds = array<i64: 1, 32>}, {transform_indices = @transform_3, window_bounds = array<i64: 1, 32, 32>}, {transform_indices = @transform_4, window_bounds = array<i64: 1, 1, 8, 32>}, {transform_indices = @transform_5, window_bounds = array<i64: 1, 1, 8, 32>}]} {
    %c0_i32 = arith.constant 0 : i32
    %0 = arith.cmpi eq, %arg3, %c0_i32 : i32
    %1 = arith.extui %0 : i1 to i32
    %c0_i32_0 = arith.constant 0 : i32
    %2 = arith.cmpi ne, %1, %c0_i32_0 : i32
    scf.if %2 {
      %cst_14 = arith.constant 0.000000e+00 : f32
      %19 = vector.broadcast %cst_14 : f32 to vector<32x32xf32>
      %c0_15 = arith.constant 0 : index
      %c0_16 = arith.constant 0 : index
      %20 = vector.load %arg10[%c0_15, %c0_16] : memref<32x32xf32, #tpu.memory_space<vmem>>, vector<32x32xf32>
      tpu.vector_store %arg10[%c0_15, %c0_16], %19 {strides = array<i32>} : memref<32x32xf32, #tpu.memory_space<vmem>>, vector<32x32xf32>,
    } else {
    }
    %c0 = arith.constant 0 : index
    %c0_1 = arith.constant 0 : index
    %c0_2 = arith.constant 0 : index
    %3 = vector.load %arg4[%c0, %c0_1, %c0_2] : memref<1x32x256xbf16, #tpu.memory_space<vmem>>, vector<1x32x256xbf16>
    %4 = vector.shape_cast %3 : vector<1x32x256xbf16> to vector<32x256xbf16>
    %cst = arith.constant 0.000000e+00 : bf16
    %5 = vector.broadcast %cst : bf16 to vector<32x256xbf16>
    %6 = arith.cmpf oge, %4, %5 : vector<32x256xbf16>
    %cst_3 = arith.constant 2.001950e-01 : bf16
    %7 = vector.broadcast %cst_3 : bf16 to vector<32x256xbf16>
    %8 = arith.mulf %4, %7 : vector<32x256xbf16>
    %9 = arith.select %6, %4, %8 : vector<32x256xi1>, vector<32x256xbf16>
    %c0_4 = arith.constant 0 : index
    %c0_5 = arith.constant 0 : index
    %10 = vector.load %arg10[%c0_4, %c0_5] : memref<32x32xf32, #tpu.memory_space<vmem>>, vector<32x32xf32>
    %c0_6 = arith.constant 0 : index
    %c0_7 = arith.constant 0 : index
    %c0_8 = arith.constant 0 : index
    %11 = vector.load %arg5[%c0_6, %c0_7, %c0_8] : memref<1x256x32xbf16, #tpu.memory_space<vmem>>, vector<1x256x32xbf16>
    %12 = vector.shape_cast %11 : vector<1x256x32xbf16> to vector<256x32xbf16>
    %cst_9 = arith.constant dense<0.000000e+00> : vector<32x32xf32>
    %13 = tpu.matmul %9, %12, %cst_9 {dimension_numbers = #tpu.dot_dimension_numbers<[1], [0], [0], [1], [0, 0, 1, 1], [], []>} : vector<32x256xbf16>, vector<256x32xbf16>, vector<32x32xf32> -> vector<32x32xf32>
    %14 = arith.addf %10, %13 : vector<32x32xf32>
    %c0_10 = arith.constant 0 : index
    %c0_11 = arith.constant 0 : index
    %15 = vector.load %arg10[%c0_10, %c0_11] : memref<32x32xf32, #tpu.memory_space<vmem>>, vector<32x32xf32>
    tpu.vector_store %arg10[%c0_10, %c0_11], %14 {strides = array<i32>} : memref<32x32xf32, #tpu.memory_space<vmem>>, vector<32x32xf32>,
    %c0_i32_12 = arith.constant 0 : i32
    %16 = arith.cmpi eq, %arg3, %c0_i32_12 : i32
    %17 = arith.extui %16 : i1 to i32
    %c0_i32_13 = arith.constant 0 : i32
    %18 = arith.cmpi ne, %17, %c0_i32_13 : i32
    scf.if %18 {
      %c0_14 = arith.constant 0 : index
      %c0_15 = arith.constant 0 : index
      %19 = vector.load %arg10[%c0_14, %c0_15] : memref<32x32xf32, #tpu.memory_space<vmem>>, vector<32x32xf32>
      %c0_16 = arith.constant 0 : index
      %c0_17 = arith.constant 0 : index
      %20 = vector.load %arg6[%c0_16, %c0_17] : memref<1x32xf32, #tpu.memory_space<vmem>>, vector<1x32xf32>
      %21 = vector.broadcast %20 : vector<1x32xf32> to vector<32x32xf32>
      %22 = arith.addf %19, %21 : vector<32x32xf32>
      %23 = arith.truncf %22 : vector<32x32xf32> to vector<32x32xbf16>
      %c0_18 = arith.constant 0 : index
      %c0_19 = arith.constant 0 : index
      %c0_20 = arith.constant 0 : index
      %24 = vector.load %arg7[%c0_18, %c0_19, %c0_20] : memref<1x32x32xbf16, #tpu.memory_space<vmem>>, vector<1x32x32xbf16>
      %25 = vector.shape_cast %24 : vector<1x32x32xbf16> to vector<32x32xbf16>
      %26 = vector.shape_cast %23 : vector<32x32xbf16> to vector<1x32x32xbf16>
      tpu.vector_store %arg7[%c0_18, %c0_19, %c0_20], %26 {strides = array<i32>} : memref<1x32x32xbf16, #tpu.memory_space<vmem>>, vector<1x32x32xbf16>,
      %cst_21 = arith.constant dense<0.000000e+00> : vector<32xf32>
      %27 = vector.multi_reduction <add>, %22, %cst_21 [0] : vector<32x32xf32> to vector<32xf32>
      %28 = vector.shape_cast %27 : vector<32xf32> to vector<1x32xf32>
      %29 = arith.mulf %22, %22 : vector<32x32xf32>
      %cst_22 = arith.constant dense<0.000000e+00> : vector<32xf32>
      %30 = vector.multi_reduction <add>, %29, %cst_22 [0] : vector<32x32xf32> to vector<32xf32>
      %31 = vector.shape_cast %30 : vector<32xf32> to vector<1x32xf32>
      %32 = vector.shape_cast %28 : vector<1x32xf32> to vector<1x32xf32>
      %33 = vector.broadcast %32 : vector<1x32xf32> to vector<8x32xf32>
      %c0_23 = arith.constant 0 : index
      %c0_24 = arith.constant 0 : index
      %c0_25 = arith.constant 0 : index
      %c0_26 = arith.constant 0 : index
      %34 = vector.load %arg8[%c0_23, %c0_24, %c0_25, %c0_26] : memref<1x1x8x32xf32, #tpu.memory_space<vmem>>, vector<1x1x8x32xf32>
      %35 = vector.shape_cast %34 : vector<1x1x8x32xf32> to vector<8x32xf32>
      %36 = vector.shape_cast %33 : vector<8x32xf32> to vector<1x1x8x32xf32>
      tpu.vector_store %arg8[%c0_23, %c0_24, %c0_25, %c0_26], %36 {strides = array<i32>} : memref<1x1x8x32xf32, #tpu.memory_space<vmem>>, vector<1x1x8x32xf32>,
      %37 = vector.shape_cast %31 : vector<1x32xf32> to vector<1x32xf32>
      %38 = vector.broadcast %37 : vector<1x32xf32> to vector<8x32xf32>
      %c0_27 = arith.constant 0 : index
      %c0_28 = arith.constant 0 : index
      %c0_29 = arith.constant 0 : index
      %c0_30 = arith.constant 0 : index
      %39 = vector.load %arg9[%c0_27, %c0_28, %c0_29, %c0_30] : memref<1x1x8x32xf32, #tpu.memory_space<vmem>>, vector<1x1x8x32xf32>
      %40 = vector.shape_cast %39 : vector<1x1x8x32xf32> to vector<8x32xf32>
      %41 = vector.shape_cast %38 : vector<8x32xf32> to vector<1x1x8x32xf32>
      tpu.vector_store %arg9[%c0_27, %c0_28, %c0_29, %c0_30], %41 {strides = array<i32>} : memref<1x1x8x32xf32, #tpu.memory_space<vmem>>, vector<1x1x8x32xf32>,
    } else {
    }
    return
  }
  func.func @transform_0(%arg0: i32, %arg1: i32, %arg2: i32, %arg3: i32) -> (i32, i32, i32) {
    %c0_i32 = arith.constant 0 : i32
    return %arg0, %arg1, %arg3 : i32, i32, i32
  }
  func.func @transform_1(%arg0: i32, %arg1: i32, %arg2: i32, %arg3: i32) -> (i32, i32, i32) {
    %c0_i32 = arith.constant 0 : i32
    return %arg0, %arg3, %arg2 : i32, i32, i32
  }
  func.func @transform_2(%arg0: i32, %arg1: i32, %arg2: i32, %arg3: i32) -> (i32, i32) {
    %c0_i32 = arith.constant 0 : i32
    %c0_i32_0 = arith.constant 0 : i32
    return %c0_i32, %arg2 : i32, i32
  }
  func.func @transform_3(%arg0: i32, %arg1: i32, %arg2: i32, %arg3: i32) -> (i32, i32, i32) {
    %c0_i32 = arith.constant 0 : i32
    return %arg0, %arg1, %arg2 : i32, i32, i32
  }
  func.func @transform_4(%arg0: i32, %arg1: i32, %arg2: i32, %arg3: i32) -> (i32, i32, i32, i32) {
    %c0_i32 = arith.constant 0 : i32
    %c0_i32_0 = arith.constant 0 : i32
    return %arg0, %arg1, %c0_i32, %arg2 : i32, i32, i32, i32
  }
  func.func @transform_5(%arg0: i32, %arg1: i32, %arg2: i32, %arg3: i32) -> (i32, i32, i32, i32) {
    %c0_i32 = arith.constant 0 : i32
    %c0_i32_0 = arith.constant 0 : i32
    return %arg0, %arg1, %c0_i32, %arg2 : i32, i32, i32, i32
  }
}

module attributes {stable_mosaic.version = 11 : i64} {
  func.func @_affine_kernel(%arg0: i32, %arg1: memref<32x32xbf16, #tpu.memory_space<vmem>>, %arg2: memref<1x32xf32, #tpu.memory_space<vmem>>, %arg3: memref<1x32xf32, #tpu.memory_space<vmem>>, %arg4: memref<32x32xbf16, #tpu.memory_space<vmem>>) attributes {dimension_semantics = [#tpu.dimension_semantics<parallel>], iteration_bounds = array<i64: 1>, scalar_prefetch = 0 : i64, scratch_operands = 0 : i64, tpu.core_type = #tpu.core_type<tc>, window_params = [{transform_indices = @transform_0, window_bounds = array<i64: 32, 32>}, {pipeline_mode = #tpu.pipeline_mode<synchronous>, transform_indices = @transform_1, window_bounds = array<i64: 1, 32>}, {pipeline_mode = #tpu.pipeline_mode<synchronous>, transform_indices = @transform_2, window_bounds = array<i64: 1, 32>}, {transform_indices = @transform_3, window_bounds = array<i64: 32, 32>}]} {
    %c0 = arith.constant 0 : index
    %c0_0 = arith.constant 0 : index
    %0 = vector.load %arg1[%c0, %c0_0] : memref<32x32xbf16, #tpu.memory_space<vmem>>, vector<32x32xbf16>
    %1 = arith.extf %0 : vector<32x32xbf16> to vector<32x32xf32>
    %c0_1 = arith.constant 0 : index
    %c0_2 = arith.constant 0 : index
    %2 = vector.load %arg2[%c0_1, %c0_2] : memref<1x32xf32, #tpu.memory_space<vmem>>, vector<1x32xf32>
    %3 = vector.broadcast %2 : vector<1x32xf32> to vector<32x32xf32>
    %4 = arith.mulf %1, %3 : vector<32x32xf32>
    %c0_3 = arith.constant 0 : index
    %c0_4 = arith.constant 0 : index
    %5 = vector.load %arg3[%c0_3, %c0_4] : memref<1x32xf32, #tpu.memory_space<vmem>>, vector<1x32xf32>
    %6 = vector.broadcast %5 : vector<1x32xf32> to vector<32x32xf32>
    %7 = arith.addf %4, %6 : vector<32x32xf32>
    %8 = arith.truncf %7 : vector<32x32xf32> to vector<32x32xbf16>
    %c0_5 = arith.constant 0 : index
    %c0_6 = arith.constant 0 : index
    %9 = vector.load %arg4[%c0_5, %c0_6] : memref<32x32xbf16, #tpu.memory_space<vmem>>, vector<32x32xbf16>
    tpu.vector_store %arg4[%c0_5, %c0_6], %8 {strides = array<i32>} : memref<32x32xbf16, #tpu.memory_space<vmem>>, vector<32x32xbf16>,
    return
  }
  func.func @transform_0(%arg0: i32) -> (i32, i32) {
    %c0_i32 = arith.constant 0 : i32
    %c0_i32_0 = arith.constant 0 : i32
    return %arg0, %c0_i32 : i32, i32
  }
  func.func @transform_1(%arg0: i32) -> (i32, i32) {
    %c0_i32 = arith.constant 0 : i32
    %c0_i32_0 = arith.constant 0 : i32
    %c0_i32_1 = arith.constant 0 : i32
    return %c0_i32, %c0_i32_0 : i32, i32
  }
  func.func @transform_2(%arg0: i32) -> (i32, i32) {
    %c0_i32 = arith.constant 0 : i32
    %c0_i32_0 = arith.constant 0 : i32
    %c0_i32_1 = arith.constant 0 : i32
    return %c0_i32, %c0_i32_0 : i32, i32
  }
  func.func @transform_3(%arg0: i32) -> (i32, i32) {
    %c0_i32 = arith.constant 0 : i32
    %c0_i32_0 = arith.constant 0 : i32
    return %arg0, %c0_i32 : i32, i32
  }
}

module attributes {stable_mosaic.version = 11 : i64} {
  func.func @_affine_kernel(%arg0: i32, %arg1: memref<8x64xbf16, #tpu.memory_space<vmem>>, %arg2: memref<1x64xf32, #tpu.memory_space<vmem>>, %arg3: memref<1x64xf32, #tpu.memory_space<vmem>>, %arg4: memref<8x64xbf16, #tpu.memory_space<vmem>>) attributes {dimension_semantics = [#tpu.dimension_semantics<parallel>], iteration_bounds = array<i64: 1>, scalar_prefetch = 0 : i64, scratch_operands = 0 : i64, tpu.core_type = #tpu.core_type<tc>, window_params = [{transform_indices = @transform_0, window_bounds = array<i64: 8, 64>}, {pipeline_mode = #tpu.pipeline_mode<synchronous>, transform_indices = @transform_1, window_bounds = array<i64: 1, 64>}, {pipeline_mode = #tpu.pipeline_mode<synchronous>, transform_indices = @transform_2, window_bounds = array<i64: 1, 64>}, {transform_indices = @transform_3, window_bounds = array<i64: 8, 64>}]} {
    %c0 = arith.constant 0 : index
    %c0_0 = arith.constant 0 : index
    %0 = vector.load %arg1[%c0, %c0_0] : memref<8x64xbf16, #tpu.memory_space<vmem>>, vector<8x64xbf16>
    %1 = arith.extf %0 : vector<8x64xbf16> to vector<8x64xf32>
    %c0_1 = arith.constant 0 : index
    %c0_2 = arith.constant 0 : index
    %2 = vector.load %arg2[%c0_1, %c0_2] : memref<1x64xf32, #tpu.memory_space<vmem>>, vector<1x64xf32>
    %3 = vector.broadcast %2 : vector<1x64xf32> to vector<8x64xf32>
    %4 = arith.mulf %1, %3 : vector<8x64xf32>
    %c0_3 = arith.constant 0 : index
    %c0_4 = arith.constant 0 : index
    %5 = vector.load %arg3[%c0_3, %c0_4] : memref<1x64xf32, #tpu.memory_space<vmem>>, vector<1x64xf32>
    %6 = vector.broadcast %5 : vector<1x64xf32> to vector<8x64xf32>
    %7 = arith.addf %4, %6 : vector<8x64xf32>
    %8 = arith.truncf %7 : vector<8x64xf32> to vector<8x64xbf16>
    %c0_5 = arith.constant 0 : index
    %c0_6 = arith.constant 0 : index
    %9 = vector.load %arg4[%c0_5, %c0_6] : memref<8x64xbf16, #tpu.memory_space<vmem>>, vector<8x64xbf16>
    tpu.vector_store %arg4[%c0_5, %c0_6], %8 {strides = array<i32>} : memref<8x64xbf16, #tpu.memory_space<vmem>>, vector<8x64xbf16>,
    return
  }
  func.func @transform_0(%arg0: i32) -> (i32, i32) {
    %c0_i32 = arith.constant 0 : i32
    %c0_i32_0 = arith.constant 0 : i32
    return %arg0, %c0_i32 : i32, i32
  }
  func.func @transform_1(%arg0: i32) -> (i32, i32) {
    %c0_i32 = arith.constant 0 : i32
    %c0_i32_0 = arith.constant 0 : i32
    %c0_i32_1 = arith.constant 0 : i32
    return %c0_i32, %c0_i32_0 : i32, i32
  }
  func.func @transform_2(%arg0: i32) -> (i32, i32) {
    %c0_i32 = arith.constant 0 : i32
    %c0_i32_0 = arith.constant 0 : i32
    %c0_i32_1 = arith.constant 0 : i32
    return %c0_i32, %c0_i32_0 : i32, i32
  }
  func.func @transform_3(%arg0: i32) -> (i32, i32) {
    %c0_i32 = arith.constant 0 : i32
    %c0_i32_0 = arith.constant 0 : i32
    return %arg0, %c0_i32 : i32, i32
  }
}

module attributes {stable_mosaic.version = 11 : i64} {
  func.func @_matmul_kernel(%arg0: i32, %arg1: i32, %arg2: i32, %arg3: i32, %arg4: memref<1x8x512xbf16, #tpu.memory_space<vmem>>, %arg5: memref<1x512x64xbf16, #tpu.memory_space<vmem>>, %arg6: memref<1x64xf32, #tpu.memory_space<vmem>>, %arg7: memref<1x8x64xbf16, #tpu.memory_space<vmem>>, %arg8: memref<1x1x8x64xf32, #tpu.memory_space<vmem>>, %arg9: memref<1x1x8x64xf32, #tpu.memory_space<vmem>>, %arg10: memref<8x64xf32, #tpu.memory_space<vmem>>) attributes {dimension_semantics = [#tpu.dimension_semantics<parallel>, #tpu.dimension_semantics<parallel>, #tpu.dimension_semantics<parallel>, #tpu.dimension_semantics<arbitrary>], iteration_bounds = array<i64: 1, 1, 1, 1>, scalar_prefetch = 0 : i64, scratch_operands = 1 : i64, tpu.core_type = #tpu.core_type<tc>, window_params = [{transform_indices = @transform_0, window_bounds = array<i64: 1, 8, 512>}, {transform_indices = @transform_1, window_bounds = array<i64: 1, 512, 64>}, {transform_indices = @transform_2, window_bounds = array<i64: 1, 64>}, {transform_indices = @transform_3, window_bounds = array<i64: 1, 8, 64>}, {transform_indices = @transform_4, window_bounds = array<i64: 1, 1, 8, 64>}, {transform_indices = @transform_5, window_bounds = array<i64: 1, 1, 8, 64>}]} {
    %c0_i32 = arith.constant 0 : i32
    %0 = arith.cmpi eq, %arg3, %c0_i32 : i32
    %1 = arith.extui %0 : i1 to i32
    %c0_i32_0 = arith.constant 0 : i32
    %2 = arith.cmpi ne, %1, %c0_i32_0 : i32
    scf.if %2 {
      %cst_14 = arith.constant 0.000000e+00 : f32
      %19 = vector.broadcast %cst_14 : f32 to vector<8x64xf32>
      %c0_15 = arith.constant 0 : index
      %c0_16 = arith.constant 0 : index
      %20 = vector.load %arg10[%c0_15, %c0_16] : memref<8x64xf32, #tpu.memory_space<vmem>>, vector<8x64xf32>
      tpu.vector_store %arg10[%c0_15, %c0_16], %19 {strides = array<i32>} : memref<8x64xf32, #tpu.memory_space<vmem>>, vector<8x64xf32>,
    } else {
    }
    %c0 = arith.constant 0 : index
    %c0_1 = arith.constant 0 : index
    %c0_2 = arith.constant 0 : index
    %3 = vector.load %arg4[%c0, %c0_1, %c0_2] : memref<1x8x512xbf16, #tpu.memory_space<vmem>>, vector<1x8x512xbf16>
    %4 = vector.shape_cast %3 : vector<1x8x512xbf16> to vector<8x512xbf16>
    %cst = arith.constant 0.000000e+00 : bf16
    %5 = vector.broadcast %cst : bf16 to vector<8x512xbf16>
    %6 = arith.cmpf oge, %4, %5 : vector<8x512xbf16>
    %cst_3 = arith.constant 2.001950e-01 : bf16
    %7 = vector.broadcast %cst_3 : bf16 to vector<8x512xbf16>
    %8 = arith.mulf %4, %7 : vector<8x512xbf16>
    %9 = arith.select %6, %4, %8 : vector<8x512xi1>, vector<8x512xbf16>
    %c0_4 = arith.constant 0 : index
    %c0_5 = arith.constant 0 : index
    %10 = vector.load %arg10[%c0_4, %c0_5] : memref<8x64xf32, #tpu.memory_space<vmem>>, vector<8x64xf32>
    %c0_6 = arith.constant 0 : index
    %c0_7 = arith.constant 0 : index
    %c0_8 = arith.constant 0 : index
    %11 = vector.load %arg5[%c0_6, %c0_7, %c0_8] : memref<1x512x64xbf16, #tpu.memory_space<vmem>>, vector<1x512x64xbf16>
    %12 = vector.shape_cast %11 : vector<1x512x64xbf16> to vector<512x64xbf16>
    %cst_9 = arith.constant dense<0.000000e+00> : vector<8x64xf32>
    %13 = tpu.matmul %9, %12, %cst_9 {dimension_numbers = #tpu.dot_dimension_numbers<[1], [0], [0], [1], [0, 0, 1, 1], [], []>} : vector<8x512xbf16>, vector<512x64xbf16>, vector<8x64xf32> -> vector<8x64xf32>
    %14 = arith.addf %10, %13 : vector<8x64xf32>
    %c0_10 = arith.constant 0 : index
    %c0_11 = arith.constant 0 : index
    %15 = vector.load %arg10[%c0_10, %c0_11] : memref<8x64xf32, #tpu.memory_space<vmem>>, vector<8x64xf32>
    tpu.vector_store %arg10[%c0_10, %c0_11], %14 {strides = array<i32>} : memref<8x64xf32, #tpu.memory_space<vmem>>, vector<8x64xf32>,
    %c0_i32_12 = arith.constant 0 : i32
    %16 = arith.cmpi eq, %arg3, %c0_i32_12 : i32
    %17 = arith.extui %16 : i1 to i32
    %c0_i32_13 = arith.constant 0 : i32
    %18 = arith.cmpi ne, %17, %c0_i32_13 : i32
    scf.if %18 {
      %c0_14 = arith.constant 0 : index
      %c0_15 = arith.constant 0 : index
      %19 = vector.load %arg10[%c0_14, %c0_15] : memref<8x64xf32, #tpu.memory_space<vmem>>, vector<8x64xf32>
      %c0_16 = arith.constant 0 : index
      %c0_17 = arith.constant 0 : index
      %20 = vector.load %arg6[%c0_16, %c0_17] : memref<1x64xf32, #tpu.memory_space<vmem>>, vector<1x64xf32>
      %21 = vector.broadcast %20 : vector<1x64xf32> to vector<8x64xf32>
      %22 = arith.addf %19, %21 : vector<8x64xf32>
      %23 = arith.truncf %22 : vector<8x64xf32> to vector<8x64xbf16>
      %c0_18 = arith.constant 0 : index
      %c0_19 = arith.constant 0 : index
      %c0_20 = arith.constant 0 : index
      %24 = vector.load %arg7[%c0_18, %c0_19, %c0_20] : memref<1x8x64xbf16, #tpu.memory_space<vmem>>, vector<1x8x64xbf16>
      %25 = vector.shape_cast %24 : vector<1x8x64xbf16> to vector<8x64xbf16>
      %26 = vector.shape_cast %23 : vector<8x64xbf16> to vector<1x8x64xbf16>
      tpu.vector_store %arg7[%c0_18, %c0_19, %c0_20], %26 {strides = array<i32>} : memref<1x8x64xbf16, #tpu.memory_space<vmem>>, vector<1x8x64xbf16>,
      %cst_21 = arith.constant dense<0.000000e+00> : vector<64xf32>
      %27 = vector.multi_reduction <add>, %22, %cst_21 [0] : vector<8x64xf32> to vector<64xf32>
      %28 = vector.shape_cast %27 : vector<64xf32> to vector<1x64xf32>
      %29 = arith.mulf %22, %22 : vector<8x64xf32>
      %cst_22 = arith.constant dense<0.000000e+00> : vector<64xf32>
      %30 = vector.multi_reduction <add>, %29, %cst_22 [0] : vector<8x64xf32> to vector<64xf32>
      %31 = vector.shape_cast %30 : vector<64xf32> to vector<1x64xf32>
      %32 = vector.shape_cast %28 : vector<1x64xf32> to vector<1x64xf32>
      %33 = vector.broadcast %32 : vector<1x64xf32> to vector<8x64xf32>
      %c0_23 = arith.constant 0 : index
      %c0_24 = arith.constant 0 : index
      %c0_25 = arith.constant 0 : index
      %c0_26 = arith.constant 0 : index
      %34 = vector.load %arg8[%c0_23, %c0_24, %c0_25, %c0_26] : memref<1x1x8x64xf32, #tpu.memory_space<vmem>>, vector<1x1x8x64xf32>
      %35 = vector.shape_cast %34 : vector<1x1x8x64xf32> to vector<8x64xf32>
      %36 = vector.shape_cast %33 : vector<8x64xf32> to vector<1x1x8x64xf32>
      tpu.vector_store %arg8[%c0_23, %c0_24, %c0_25, %c0_26], %36 {strides = array<i32>} : memref<1x1x8x64xf32, #tpu.memory_space<vmem>>, vector<1x1x8x64xf32>,
      %37 = vector.shape_cast %31 : vector<1x64xf32> to vector<1x64xf32>
      %38 = vector.broadcast %37 : vector<1x64xf32> to vector<8x64xf32>
      %c0_27 = arith.constant 0 : index
      %c0_28 = arith.constant 0 : index
      %c0_29 = arith.constant 0 : index
      %c0_30 = arith.constant 0 : index
      %39 = vector.load %arg9[%c0_27, %c0_28, %c0_29, %c0_30] : memref<1x1x8x64xf32, #tpu.memory_space<vmem>>, vector<1x1x8x64xf32>
      %40 = vector.shape_cast %39 : vector<1x1x8x64xf32> to vector<8x64xf32>
      %41 = vector.shape_cast %38 : vector<8x64xf32> to vector<1x1x8x64xf32>
      tpu.vector_store %arg9[%c0_27, %c0_28, %c0_29, %c0_30], %41 {strides = array<i32>} : memref<1x1x8x64xf32, #tpu.memory_space<vmem>>, vector<1x1x8x64xf32>,
    } else {
    }
    return
  }
  func.func @transform_0(%arg0: i32, %arg1: i32, %arg2: i32, %arg3: i32) -> (i32, i32, i32) {
    %c0_i32 = arith.constant 0 : i32
    return %arg0, %arg1, %arg3 : i32, i32, i32
  }
  func.func @transform_1(%arg0: i32, %arg1: i32, %arg2: i32, %arg3: i32) -> (i32, i32, i32) {
    %c0_i32 = arith.constant 0 : i32
    return %arg0, %arg3, %arg2 : i32, i32, i32
  }
  func.func @transform_2(%arg0: i32, %arg1: i32, %arg2: i32, %arg3: i32) -> (i32, i32) {
    %c0_i32 = arith.constant 0 : i32
    %c0_i32_0 = arith.constant 0 : i32
    return %c0_i32, %arg2 : i32, i32
  }
  func.func @transform_3(%arg0: i32, %arg1: i32, %arg2: i32, %arg3: i32) -> (i32, i32, i32) {
    %c0_i32 = arith.constant 0 : i32
    return %arg0, %arg1, %arg2 : i32, i32, i32
  }
  func.func @transform_4(%arg0: i32, %arg1: i32, %arg2: i32, %arg3: i32) -> (i32, i32, i32, i32) {
    %c0_i32 = arith.constant 0 : i32
    %c0_i32_0 = arith.constant 0 : i32
    return %arg0, %arg1, %c0_i32, %arg2 : i32, i32, i32, i32
  }
  func.func @transform_5(%arg0: i32, %arg1: i32, %arg2: i32, %arg3: i32) -> (i32, i32, i32, i32) {
    %c0_i32 = arith.constant 0 : i32
    %c0_i32_0 = arith.constant 0 : i32
    return %arg0, %arg1, %c0_i32, %arg2 : i32, i32, i32, i32
  }
}

module attributes {stable_mosaic.version = 11 : i64} {
  func.func @_matmul_kernel(%arg0: i32, %arg1: i32, %arg2: i32, %arg3: i32, %arg4: memref<1x8x256xbf16, #tpu.memory_space<vmem>>, %arg5: memref<1x256x64xbf16, #tpu.memory_space<vmem>>, %arg6: memref<1x64xf32, #tpu.memory_space<vmem>>, %arg7: memref<1x8x64xbf16, #tpu.memory_space<vmem>>, %arg8: memref<1x1x8x64xf32, #tpu.memory_space<vmem>>, %arg9: memref<1x1x8x64xf32, #tpu.memory_space<vmem>>, %arg10: memref<8x64xf32, #tpu.memory_space<vmem>>) attributes {dimension_semantics = [#tpu.dimension_semantics<parallel>, #tpu.dimension_semantics<parallel>, #tpu.dimension_semantics<parallel>, #tpu.dimension_semantics<arbitrary>], iteration_bounds = array<i64: 4, 1, 1, 1>, scalar_prefetch = 0 : i64, scratch_operands = 1 : i64, tpu.core_type = #tpu.core_type<tc>, window_params = [{transform_indices = @transform_0, window_bounds = array<i64: 1, 8, 256>}, {transform_indices = @transform_1, window_bounds = array<i64: 1, 256, 64>}, {transform_indices = @transform_2, window_bounds = array<i64: 1, 64>}, {transform_indices = @transform_3, window_bounds = array<i64: 1, 8, 64>}, {transform_indices = @transform_4, window_bounds = array<i64: 1, 1, 8, 64>}, {transform_indices = @transform_5, window_bounds = array<i64: 1, 1, 8, 64>}]} {
    %c0_i32 = arith.constant 0 : i32
    %0 = arith.cmpi eq, %arg3, %c0_i32 : i32
    %1 = arith.extui %0 : i1 to i32
    %c0_i32_0 = arith.constant 0 : i32
    %2 = arith.cmpi ne, %1, %c0_i32_0 : i32
    scf.if %2 {
      %cst_12 = arith.constant 0.000000e+00 : f32
      %14 = vector.broadcast %cst_12 : f32 to vector<8x64xf32>
      %c0_13 = arith.constant 0 : index
      %c0_14 = arith.constant 0 : index
      %15 = vector.load %arg10[%c0_13, %c0_14] : memref<8x64xf32, #tpu.memory_space<vmem>>, vector<8x64xf32>
      tpu.vector_store %arg10[%c0_13, %c0_14], %14 {strides = array<i32>} : memref<8x64xf32, #tpu.memory_space<vmem>>, vector<8x64xf32>,
    } else {
    }
    %c0 = arith.constant 0 : index
    %c0_1 = arith.constant 0 : index
    %c0_2 = arith.constant 0 : index
    %3 = vector.load %arg4[%c0, %c0_1, %c0_2] : memref<1x8x256xbf16, #tpu.memory_space<vmem>>, vector<1x8x256xbf16>
    %4 = vector.shape_cast %3 : vector<1x8x256xbf16> to vector<8x256xbf16>
    %c0_3 = arith.constant 0 : index
    %c0_4 = arith.constant 0 : index
    %5 = vector.load %arg10[%c0_3, %c0_4] : memref<8x64xf32, #tpu.memory_space<vmem>>, vector<8x64xf32>
    %c0_5 = arith.constant 0 : index
    %c0_6 = arith.constant 0 : index
    %c0_7 = arith.constant 0 : index
    %6 = vector.load %arg5[%c0_5, %c0_6, %c0_7] : memref<1x256x64xbf16, #tpu.memory_space<vmem>>, vector<1x256x64xbf16>
    %7 = vector.shape_cast %6 : vector<1x256x64xbf16> to vector<256x64xbf16>
    %cst = arith.constant dense<0.000000e+00> : vector<8x64xf32>
    %8 = tpu.matmul %4, %7, %cst {dimension_numbers = #tpu.dot_dimension_numbers<[1], [0], [0], [1], [0, 0, 1, 1], [], []>} : vector<8x256xbf16>, vector<256x64xbf16>, vector<8x64xf32> -> vector<8x64xf32>
    %9 = arith.addf %5, %8 : vector<8x64xf32>
    %c0_8 = arith.constant 0 : index
    %c0_9 = arith.constant 0 : index
    %10 = vector.load %arg10[%c0_8, %c0_9] : memref<8x64xf32, #tpu.memory_space<vmem>>, vector<8x64xf32>
    tpu.vector_store %arg10[%c0_8, %c0_9], %9 {strides = array<i32>} : memref<8x64xf32, #tpu.memory_space<vmem>>, vector<8x64xf32>,
    %c0_i32_10 = arith.constant 0 : i32
    %11 = arith.cmpi eq, %arg3, %c0_i32_10 : i32
    %12 = arith.extui %11 : i1 to i32
    %c0_i32_11 = arith.constant 0 : i32
    %13 = arith.cmpi ne, %12, %c0_i32_11 : i32
    scf.if %13 {
      %c0_12 = arith.constant 0 : index
      %c0_13 = arith.constant 0 : index
      %14 = vector.load %arg10[%c0_12, %c0_13] : memref<8x64xf32, #tpu.memory_space<vmem>>, vector<8x64xf32>
      %c0_14 = arith.constant 0 : index
      %c0_15 = arith.constant 0 : index
      %15 = vector.load %arg6[%c0_14, %c0_15] : memref<1x64xf32, #tpu.memory_space<vmem>>, vector<1x64xf32>
      %16 = vector.broadcast %15 : vector<1x64xf32> to vector<8x64xf32>
      %17 = arith.addf %14, %16 : vector<8x64xf32>
      %18 = arith.truncf %17 : vector<8x64xf32> to vector<8x64xbf16>
      %c0_16 = arith.constant 0 : index
      %c0_17 = arith.constant 0 : index
      %c0_18 = arith.constant 0 : index
      %19 = vector.load %arg7[%c0_16, %c0_17, %c0_18] : memref<1x8x64xbf16, #tpu.memory_space<vmem>>, vector<1x8x64xbf16>
      %20 = vector.shape_cast %19 : vector<1x8x64xbf16> to vector<8x64xbf16>
      %21 = vector.shape_cast %18 : vector<8x64xbf16> to vector<1x8x64xbf16>
      tpu.vector_store %arg7[%c0_16, %c0_17, %c0_18], %21 {strides = array<i32>} : memref<1x8x64xbf16, #tpu.memory_space<vmem>>, vector<1x8x64xbf16>,
      %cst_19 = arith.constant dense<0.000000e+00> : vector<64xf32>
      %22 = vector.multi_reduction <add>, %17, %cst_19 [0] : vector<8x64xf32> to vector<64xf32>
      %23 = vector.shape_cast %22 : vector<64xf32> to vector<1x64xf32>
      %24 = arith.mulf %17, %17 : vector<8x64xf32>
      %cst_20 = arith.constant dense<0.000000e+00> : vector<64xf32>
      %25 = vector.multi_reduction <add>, %24, %cst_20 [0] : vector<8x64xf32> to vector<64xf32>
      %26 = vector.shape_cast %25 : vector<64xf32> to vector<1x64xf32>
      %27 = vector.shape_cast %23 : vector<1x64xf32> to vector<1x64xf32>
      %28 = vector.broadcast %27 : vector<1x64xf32> to vector<8x64xf32>
      %c0_21 = arith.constant 0 : index
      %c0_22 = arith.constant 0 : index
      %c0_23 = arith.constant 0 : index
      %c0_24 = arith.constant 0 : index
      %29 = vector.load %arg8[%c0_21, %c0_22, %c0_23, %c0_24] : memref<1x1x8x64xf32, #tpu.memory_space<vmem>>, vector<1x1x8x64xf32>
      %30 = vector.shape_cast %29 : vector<1x1x8x64xf32> to vector<8x64xf32>
      %31 = vector.shape_cast %28 : vector<8x64xf32> to vector<1x1x8x64xf32>
      tpu.vector_store %arg8[%c0_21, %c0_22, %c0_23, %c0_24], %31 {strides = array<i32>} : memref<1x1x8x64xf32, #tpu.memory_space<vmem>>, vector<1x1x8x64xf32>,
      %32 = vector.shape_cast %26 : vector<1x64xf32> to vector<1x64xf32>
      %33 = vector.broadcast %32 : vector<1x64xf32> to vector<8x64xf32>
      %c0_25 = arith.constant 0 : index
      %c0_26 = arith.constant 0 : index
      %c0_27 = arith.constant 0 : index
      %c0_28 = arith.constant 0 : index
      %34 = vector.load %arg9[%c0_25, %c0_26, %c0_27, %c0_28] : memref<1x1x8x64xf32, #tpu.memory_space<vmem>>, vector<1x1x8x64xf32>
      %35 = vector.shape_cast %34 : vector<1x1x8x64xf32> to vector<8x64xf32>
      %36 = vector.shape_cast %33 : vector<8x64xf32> to vector<1x1x8x64xf32>
      tpu.vector_store %arg9[%c0_25, %c0_26, %c0_27, %c0_28], %36 {strides = array<i32>} : memref<1x1x8x64xf32, #tpu.memory_space<vmem>>, vector<1x1x8x64xf32>,
    } else {
    }
    return
  }
  func.func @transform_0(%arg0: i32, %arg1: i32, %arg2: i32, %arg3: i32) -> (i32, i32, i32) {
    %c0_i32 = arith.constant 0 : i32
    return %arg0, %arg1, %arg3 : i32, i32, i32
  }
  func.func @transform_1(%arg0: i32, %arg1: i32, %arg2: i32, %arg3: i32) -> (i32, i32, i32) {
    %c0_i32 = arith.constant 0 : i32
    return %arg0, %arg3, %arg2 : i32, i32, i32
  }
  func.func @transform_2(%arg0: i32, %arg1: i32, %arg2: i32, %arg3: i32) -> (i32, i32) {
    %c0_i32 = arith.constant 0 : i32
    %c0_i32_0 = arith.constant 0 : i32
    return %c0_i32, %arg2 : i32, i32
  }
  func.func @transform_3(%arg0: i32, %arg1: i32, %arg2: i32, %arg3: i32) -> (i32, i32, i32) {
    %c0_i32 = arith.constant 0 : i32
    return %arg0, %arg1, %arg2 : i32, i32, i32
  }
  func.func @transform_4(%arg0: i32, %arg1: i32, %arg2: i32, %arg3: i32) -> (i32, i32, i32, i32) {
    %c0_i32 = arith.constant 0 : i32
    %c0_i32_0 = arith.constant 0 : i32
    return %arg0, %arg1, %c0_i32, %arg2 : i32, i32, i32, i32
  }
  func.func @transform_5(%arg0: i32, %arg1: i32, %arg2: i32, %arg3: i32) -> (i32, i32, i32, i32) {
    %c0_i32 = arith.constant 0 : i32
    %c0_i32_0 = arith.constant 0 : i32
    return %arg0, %arg1, %c0_i32, %arg2 : i32, i32, i32, i32
  }
}

module attributes {stable_mosaic.version = 11 : i64} {
  func.func @_matmul_kernel(%arg0: i32, %arg1: i32, %arg2: i32, %arg3: i32, %arg4: memref<1x8x1024xbf16, #tpu.memory_space<vmem>>, %arg5: memref<1x1024x64xbf16, #tpu.memory_space<vmem>>, %arg6: memref<1x64xf32, #tpu.memory_space<vmem>>, %arg7: memref<1x8x64xbf16, #tpu.memory_space<vmem>>, %arg8: memref<8x64xf32, #tpu.memory_space<vmem>>) attributes {dimension_semantics = [#tpu.dimension_semantics<parallel>, #tpu.dimension_semantics<parallel>, #tpu.dimension_semantics<parallel>, #tpu.dimension_semantics<arbitrary>], iteration_bounds = array<i64: 1, 1, 1, 1>, scalar_prefetch = 0 : i64, scratch_operands = 1 : i64, tpu.core_type = #tpu.core_type<tc>, window_params = [{transform_indices = @transform_0, window_bounds = array<i64: 1, 8, 1024>}, {transform_indices = @transform_1, window_bounds = array<i64: 1, 1024, 64>}, {transform_indices = @transform_2, window_bounds = array<i64: 1, 64>}, {transform_indices = @transform_3, window_bounds = array<i64: 1, 8, 64>}]} {
    %c0_i32 = arith.constant 0 : i32
    %0 = arith.cmpi eq, %arg3, %c0_i32 : i32
    %1 = arith.extui %0 : i1 to i32
    %c0_i32_0 = arith.constant 0 : i32
    %2 = arith.cmpi ne, %1, %c0_i32_0 : i32
    scf.if %2 {
      %cst_14 = arith.constant 0.000000e+00 : f32
      %19 = vector.broadcast %cst_14 : f32 to vector<8x64xf32>
      %c0_15 = arith.constant 0 : index
      %c0_16 = arith.constant 0 : index
      %20 = vector.load %arg8[%c0_15, %c0_16] : memref<8x64xf32, #tpu.memory_space<vmem>>, vector<8x64xf32>
      tpu.vector_store %arg8[%c0_15, %c0_16], %19 {strides = array<i32>} : memref<8x64xf32, #tpu.memory_space<vmem>>, vector<8x64xf32>,
    } else {
    }
    %c0 = arith.constant 0 : index
    %c0_1 = arith.constant 0 : index
    %c0_2 = arith.constant 0 : index
    %3 = vector.load %arg4[%c0, %c0_1, %c0_2] : memref<1x8x1024xbf16, #tpu.memory_space<vmem>>, vector<1x8x1024xbf16>
    %4 = vector.shape_cast %3 : vector<1x8x1024xbf16> to vector<8x1024xbf16>
    %cst = arith.constant 0.000000e+00 : bf16
    %5 = vector.broadcast %cst : bf16 to vector<8x1024xbf16>
    %6 = arith.cmpf oge, %4, %5 : vector<8x1024xbf16>
    %cst_3 = arith.constant 2.001950e-01 : bf16
    %7 = vector.broadcast %cst_3 : bf16 to vector<8x1024xbf16>
    %8 = arith.mulf %4, %7 : vector<8x1024xbf16>
    %9 = arith.select %6, %4, %8 : vector<8x1024xi1>, vector<8x1024xbf16>
    %c0_4 = arith.constant 0 : index
    %c0_5 = arith.constant 0 : index
    %10 = vector.load %arg8[%c0_4, %c0_5] : memref<8x64xf32, #tpu.memory_space<vmem>>, vector<8x64xf32>
    %c0_6 = arith.constant 0 : index
    %c0_7 = arith.constant 0 : index
    %c0_8 = arith.constant 0 : index
    %11 = vector.load %arg5[%c0_6, %c0_7, %c0_8] : memref<1x1024x64xbf16, #tpu.memory_space<vmem>>, vector<1x1024x64xbf16>
    %12 = vector.shape_cast %11 : vector<1x1024x64xbf16> to vector<1024x64xbf16>
    %cst_9 = arith.constant dense<0.000000e+00> : vector<8x64xf32>
    %13 = tpu.matmul %9, %12, %cst_9 {dimension_numbers = #tpu.dot_dimension_numbers<[1], [0], [0], [1], [0, 0, 1, 1], [], []>} : vector<8x1024xbf16>, vector<1024x64xbf16>, vector<8x64xf32> -> vector<8x64xf32>
    %14 = arith.addf %10, %13 : vector<8x64xf32>
    %c0_10 = arith.constant 0 : index
    %c0_11 = arith.constant 0 : index
    %15 = vector.load %arg8[%c0_10, %c0_11] : memref<8x64xf32, #tpu.memory_space<vmem>>, vector<8x64xf32>
    tpu.vector_store %arg8[%c0_10, %c0_11], %14 {strides = array<i32>} : memref<8x64xf32, #tpu.memory_space<vmem>>, vector<8x64xf32>,
    %c0_i32_12 = arith.constant 0 : i32
    %16 = arith.cmpi eq, %arg3, %c0_i32_12 : i32
    %17 = arith.extui %16 : i1 to i32
    %c0_i32_13 = arith.constant 0 : i32
    %18 = arith.cmpi ne, %17, %c0_i32_13 : i32
    scf.if %18 {
      %c0_14 = arith.constant 0 : index
      %c0_15 = arith.constant 0 : index
      %19 = vector.load %arg8[%c0_14, %c0_15] : memref<8x64xf32, #tpu.memory_space<vmem>>, vector<8x64xf32>
      %c0_16 = arith.constant 0 : index
      %c0_17 = arith.constant 0 : index
      %20 = vector.load %arg6[%c0_16, %c0_17] : memref<1x64xf32, #tpu.memory_space<vmem>>, vector<1x64xf32>
      %21 = vector.broadcast %20 : vector<1x64xf32> to vector<8x64xf32>
      %22 = arith.addf %19, %21 : vector<8x64xf32>
      %cst_18 = arith.constant 0.000000e+00 : f32
      %23 = vector.broadcast %cst_18 : f32 to vector<8x64xf32>
      %24 = arith.maximumf %22, %23 : vector<8x64xf32>
      %25 = arith.truncf %24 : vector<8x64xf32> to vector<8x64xbf16>
      %c0_19 = arith.constant 0 : index
      %c0_20 = arith.constant 0 : index
      %c0_21 = arith.constant 0 : index
      %26 = vector.load %arg7[%c0_19, %c0_20, %c0_21] : memref<1x8x64xbf16, #tpu.memory_space<vmem>>, vector<1x8x64xbf16>
      %27 = vector.shape_cast %26 : vector<1x8x64xbf16> to vector<8x64xbf16>
      %28 = vector.shape_cast %25 : vector<8x64xbf16> to vector<1x8x64xbf16>
      tpu.vector_store %arg7[%c0_19, %c0_20, %c0_21], %28 {strides = array<i32>} : memref<1x8x64xbf16, #tpu.memory_space<vmem>>, vector<1x8x64xbf16>,
    } else {
    }
    return
  }
  func.func @transform_0(%arg0: i32, %arg1: i32, %arg2: i32, %arg3: i32) -> (i32, i32, i32) {
    %c0_i32 = arith.constant 0 : i32
    return %arg0, %arg1, %arg3 : i32, i32, i32
  }
  func.func @transform_1(%arg0: i32, %arg1: i32, %arg2: i32, %arg3: i32) -> (i32, i32, i32) {
    %c0_i32 = arith.constant 0 : i32
    return %arg0, %arg3, %arg2 : i32, i32, i32
  }
  func.func @transform_2(%arg0: i32, %arg1: i32, %arg2: i32, %arg3: i32) -> (i32, i32) {
    %c0_i32 = arith.constant 0 : i32
    %c0_i32_0 = arith.constant 0 : i32
    return %c0_i32, %arg2 : i32, i32
  }
  func.func @transform_3(%arg0: i32, %arg1: i32, %arg2: i32, %arg3: i32) -> (i32, i32, i32) {
    %c0_i32 = arith.constant 0 : i32
    return %arg0, %arg1, %arg2 : i32, i32, i32
  }
}

module attributes {stable_mosaic.version = 11 : i64} {
  func.func @_matmul_kernel(%arg0: i32, %arg1: i32, %arg2: i32, %arg3: i32, %arg4: memref<1x8x512xbf16, #tpu.memory_space<vmem>>, %arg5: memref<1x512x32xbf16, #tpu.memory_space<vmem>>, %arg6: memref<1x32xf32, #tpu.memory_space<vmem>>, %arg7: memref<1x8x32xbf16, #tpu.memory_space<vmem>>, %arg8: memref<1x1x8x32xf32, #tpu.memory_space<vmem>>, %arg9: memref<1x1x8x32xf32, #tpu.memory_space<vmem>>, %arg10: memref<8x32xf32, #tpu.memory_space<vmem>>) attributes {dimension_semantics = [#tpu.dimension_semantics<parallel>, #tpu.dimension_semantics<parallel>, #tpu.dimension_semantics<parallel>, #tpu.dimension_semantics<arbitrary>], iteration_bounds = array<i64: 4, 1, 1, 1>, scalar_prefetch = 0 : i64, scratch_operands = 1 : i64, tpu.core_type = #tpu.core_type<tc>, window_params = [{transform_indices = @transform_0, window_bounds = array<i64: 1, 8, 512>}, {transform_indices = @transform_1, window_bounds = array<i64: 1, 512, 32>}, {transform_indices = @transform_2, window_bounds = array<i64: 1, 32>}, {transform_indices = @transform_3, window_bounds = array<i64: 1, 8, 32>}, {transform_indices = @transform_4, window_bounds = array<i64: 1, 1, 8, 32>}, {transform_indices = @transform_5, window_bounds = array<i64: 1, 1, 8, 32>}]} {
    %c0_i32 = arith.constant 0 : i32
    %0 = arith.cmpi eq, %arg3, %c0_i32 : i32
    %1 = arith.extui %0 : i1 to i32
    %c0_i32_0 = arith.constant 0 : i32
    %2 = arith.cmpi ne, %1, %c0_i32_0 : i32
    scf.if %2 {
      %cst_13 = arith.constant 0.000000e+00 : f32
      %16 = vector.broadcast %cst_13 : f32 to vector<8x32xf32>
      %c0_14 = arith.constant 0 : index
      %c0_15 = arith.constant 0 : index
      %17 = vector.load %arg10[%c0_14, %c0_15] : memref<8x32xf32, #tpu.memory_space<vmem>>, vector<8x32xf32>
      tpu.vector_store %arg10[%c0_14, %c0_15], %16 {strides = array<i32>} : memref<8x32xf32, #tpu.memory_space<vmem>>, vector<8x32xf32>,
    } else {
    }
    %c0 = arith.constant 0 : index
    %c0_1 = arith.constant 0 : index
    %c0_2 = arith.constant 0 : index
    %3 = vector.load %arg4[%c0, %c0_1, %c0_2] : memref<1x8x512xbf16, #tpu.memory_space<vmem>>, vector<1x8x512xbf16>
    %4 = vector.shape_cast %3 : vector<1x8x512xbf16> to vector<8x512xbf16>
    %cst = arith.constant 0.000000e+00 : bf16
    %5 = vector.broadcast %cst : bf16 to vector<8x512xbf16>
    %6 = arith.maximumf %4, %5 : vector<8x512xbf16>
    %c0_3 = arith.constant 0 : index
    %c0_4 = arith.constant 0 : index
    %7 = vector.load %arg10[%c0_3, %c0_4] : memref<8x32xf32, #tpu.memory_space<vmem>>, vector<8x32xf32>
    %c0_5 = arith.constant 0 : index
    %c0_6 = arith.constant 0 : index
    %c0_7 = arith.constant 0 : index
    %8 = vector.load %arg5[%c0_5, %c0_6, %c0_7] : memref<1x512x32xbf16, #tpu.memory_space<vmem>>, vector<1x512x32xbf16>
    %9 = vector.shape_cast %8 : vector<1x512x32xbf16> to vector<512x32xbf16>
    %cst_8 = arith.constant dense<0.000000e+00> : vector<8x32xf32>
    %10 = tpu.matmul %6, %9, %cst_8 {dimension_numbers = #tpu.dot_dimension_numbers<[1], [0], [0], [1], [0, 0, 1, 1], [], []>} : vector<8x512xbf16>, vector<512x32xbf16>, vector<8x32xf32> -> vector<8x32xf32>
    %11 = arith.addf %7, %10 : vector<8x32xf32>
    %c0_9 = arith.constant 0 : index
    %c0_10 = arith.constant 0 : index
    %12 = vector.load %arg10[%c0_9, %c0_10] : memref<8x32xf32, #tpu.memory_space<vmem>>, vector<8x32xf32>
    tpu.vector_store %arg10[%c0_9, %c0_10], %11 {strides = array<i32>} : memref<8x32xf32, #tpu.memory_space<vmem>>, vector<8x32xf32>,
    %c0_i32_11 = arith.constant 0 : i32
    %13 = arith.cmpi eq, %arg3, %c0_i32_11 : i32
    %14 = arith.extui %13 : i1 to i32
    %c0_i32_12 = arith.constant 0 : i32
    %15 = arith.cmpi ne, %14, %c0_i32_12 : i32
    scf.if %15 {
      %c0_13 = arith.constant 0 : index
      %c0_14 = arith.constant 0 : index
      %16 = vector.load %arg10[%c0_13, %c0_14] : memref<8x32xf32, #tpu.memory_space<vmem>>, vector<8x32xf32>
      %c0_15 = arith.constant 0 : index
      %c0_16 = arith.constant 0 : index
      %17 = vector.load %arg6[%c0_15, %c0_16] : memref<1x32xf32, #tpu.memory_space<vmem>>, vector<1x32xf32>
      %18 = vector.broadcast %17 : vector<1x32xf32> to vector<8x32xf32>
      %19 = arith.addf %16, %18 : vector<8x32xf32>
      %20 = arith.truncf %19 : vector<8x32xf32> to vector<8x32xbf16>
      %c0_17 = arith.constant 0 : index
      %c0_18 = arith.constant 0 : index
      %c0_19 = arith.constant 0 : index
      %21 = vector.load %arg7[%c0_17, %c0_18, %c0_19] : memref<1x8x32xbf16, #tpu.memory_space<vmem>>, vector<1x8x32xbf16>
      %22 = vector.shape_cast %21 : vector<1x8x32xbf16> to vector<8x32xbf16>
      %23 = vector.shape_cast %20 : vector<8x32xbf16> to vector<1x8x32xbf16>
      tpu.vector_store %arg7[%c0_17, %c0_18, %c0_19], %23 {strides = array<i32>} : memref<1x8x32xbf16, #tpu.memory_space<vmem>>, vector<1x8x32xbf16>,
      %cst_20 = arith.constant dense<0.000000e+00> : vector<32xf32>
      %24 = vector.multi_reduction <add>, %19, %cst_20 [0] : vector<8x32xf32> to vector<32xf32>
      %25 = vector.shape_cast %24 : vector<32xf32> to vector<1x32xf32>
      %26 = arith.mulf %19, %19 : vector<8x32xf32>
      %cst_21 = arith.constant dense<0.000000e+00> : vector<32xf32>
      %27 = vector.multi_reduction <add>, %26, %cst_21 [0] : vector<8x32xf32> to vector<32xf32>
      %28 = vector.shape_cast %27 : vector<32xf32> to vector<1x32xf32>
      %29 = vector.shape_cast %25 : vector<1x32xf32> to vector<1x32xf32>
      %30 = vector.broadcast %29 : vector<1x32xf32> to vector<8x32xf32>
      %c0_22 = arith.constant 0 : index
      %c0_23 = arith.constant 0 : index
      %c0_24 = arith.constant 0 : index
      %c0_25 = arith.constant 0 : index
      %31 = vector.load %arg8[%c0_22, %c0_23, %c0_24, %c0_25] : memref<1x1x8x32xf32, #tpu.memory_space<vmem>>, vector<1x1x8x32xf32>
      %32 = vector.shape_cast %31 : vector<1x1x8x32xf32> to vector<8x32xf32>
      %33 = vector.shape_cast %30 : vector<8x32xf32> to vector<1x1x8x32xf32>
      tpu.vector_store %arg8[%c0_22, %c0_23, %c0_24, %c0_25], %33 {strides = array<i32>} : memref<1x1x8x32xf32, #tpu.memory_space<vmem>>, vector<1x1x8x32xf32>,
      %34 = vector.shape_cast %28 : vector<1x32xf32> to vector<1x32xf32>
      %35 = vector.broadcast %34 : vector<1x32xf32> to vector<8x32xf32>
      %c0_26 = arith.constant 0 : index
      %c0_27 = arith.constant 0 : index
      %c0_28 = arith.constant 0 : index
      %c0_29 = arith.constant 0 : index
      %36 = vector.load %arg9[%c0_26, %c0_27, %c0_28, %c0_29] : memref<1x1x8x32xf32, #tpu.memory_space<vmem>>, vector<1x1x8x32xf32>
      %37 = vector.shape_cast %36 : vector<1x1x8x32xf32> to vector<8x32xf32>
      %38 = vector.shape_cast %35 : vector<8x32xf32> to vector<1x1x8x32xf32>
      tpu.vector_store %arg9[%c0_26, %c0_27, %c0_28, %c0_29], %38 {strides = array<i32>} : memref<1x1x8x32xf32, #tpu.memory_space<vmem>>, vector<1x1x8x32xf32>,
    } else {
    }
    return
  }
  func.func @transform_0(%arg0: i32, %arg1: i32, %arg2: i32, %arg3: i32) -> (i32, i32, i32) {
    %c0_i32 = arith.constant 0 : i32
    return %arg0, %arg1, %arg3 : i32, i32, i32
  }
  func.func @transform_1(%arg0: i32, %arg1: i32, %arg2: i32, %arg3: i32) -> (i32, i32, i32) {
    %c0_i32 = arith.constant 0 : i32
    return %arg0, %arg3, %arg2 : i32, i32, i32
  }
  func.func @transform_2(%arg0: i32, %arg1: i32, %arg2: i32, %arg3: i32) -> (i32, i32) {
    %c0_i32 = arith.constant 0 : i32
    %c0_i32_0 = arith.constant 0 : i32
    return %c0_i32, %arg2 : i32, i32
  }
  func.func @transform_3(%arg0: i32, %arg1: i32, %arg2: i32, %arg3: i32) -> (i32, i32, i32) {
    %c0_i32 = arith.constant 0 : i32
    return %arg0, %arg1, %arg2 : i32, i32, i32
  }
  func.func @transform_4(%arg0: i32, %arg1: i32, %arg2: i32, %arg3: i32) -> (i32, i32, i32, i32) {
    %c0_i32 = arith.constant 0 : i32
    %c0_i32_0 = arith.constant 0 : i32
    return %arg0, %arg1, %c0_i32, %arg2 : i32, i32, i32, i32
  }
  func.func @transform_5(%arg0: i32, %arg1: i32, %arg2: i32, %arg3: i32) -> (i32, i32, i32, i32) {
    %c0_i32 = arith.constant 0 : i32
    %c0_i32_0 = arith.constant 0 : i32
    return %arg0, %arg1, %c0_i32, %arg2 : i32, i32, i32, i32
  }
}

module attributes {stable_mosaic.version = 11 : i64} {
  func.func @_matmul_kernel(%arg0: i32, %arg1: i32, %arg2: i32, %arg3: i32, %arg4: memref<1x32x256xbf16, #tpu.memory_space<vmem>>, %arg5: memref<1x256x16xbf16, #tpu.memory_space<vmem>>, %arg6: memref<1x16xf32, #tpu.memory_space<vmem>>, %arg7: memref<1x32x16xbf16, #tpu.memory_space<vmem>>, %arg8: memref<1x1x8x16xf32, #tpu.memory_space<vmem>>, %arg9: memref<1x1x8x16xf32, #tpu.memory_space<vmem>>, %arg10: memref<32x16xf32, #tpu.memory_space<vmem>>) attributes {dimension_semantics = [#tpu.dimension_semantics<parallel>, #tpu.dimension_semantics<parallel>, #tpu.dimension_semantics<parallel>, #tpu.dimension_semantics<arbitrary>], iteration_bounds = array<i64: 4, 1, 1, 1>, scalar_prefetch = 0 : i64, scratch_operands = 1 : i64, tpu.core_type = #tpu.core_type<tc>, window_params = [{transform_indices = @transform_0, window_bounds = array<i64: 1, 32, 256>}, {transform_indices = @transform_1, window_bounds = array<i64: 1, 256, 16>}, {transform_indices = @transform_2, window_bounds = array<i64: 1, 16>}, {transform_indices = @transform_3, window_bounds = array<i64: 1, 32, 16>}, {transform_indices = @transform_4, window_bounds = array<i64: 1, 1, 8, 16>}, {transform_indices = @transform_5, window_bounds = array<i64: 1, 1, 8, 16>}]} {
    %c0_i32 = arith.constant 0 : i32
    %0 = arith.cmpi eq, %arg3, %c0_i32 : i32
    %1 = arith.extui %0 : i1 to i32
    %c0_i32_0 = arith.constant 0 : i32
    %2 = arith.cmpi ne, %1, %c0_i32_0 : i32
    scf.if %2 {
      %cst_13 = arith.constant 0.000000e+00 : f32
      %16 = vector.broadcast %cst_13 : f32 to vector<32x16xf32>
      %c0_14 = arith.constant 0 : index
      %c0_15 = arith.constant 0 : index
      %17 = vector.load %arg10[%c0_14, %c0_15] : memref<32x16xf32, #tpu.memory_space<vmem>>, vector<32x16xf32>
      tpu.vector_store %arg10[%c0_14, %c0_15], %16 {strides = array<i32>} : memref<32x16xf32, #tpu.memory_space<vmem>>, vector<32x16xf32>,
    } else {
    }
    %c0 = arith.constant 0 : index
    %c0_1 = arith.constant 0 : index
    %c0_2 = arith.constant 0 : index
    %3 = vector.load %arg4[%c0, %c0_1, %c0_2] : memref<1x32x256xbf16, #tpu.memory_space<vmem>>, vector<1x32x256xbf16>
    %4 = vector.shape_cast %3 : vector<1x32x256xbf16> to vector<32x256xbf16>
    %cst = arith.constant 0.000000e+00 : bf16
    %5 = vector.broadcast %cst : bf16 to vector<32x256xbf16>
    %6 = arith.maximumf %4, %5 : vector<32x256xbf16>
    %c0_3 = arith.constant 0 : index
    %c0_4 = arith.constant 0 : index
    %7 = vector.load %arg10[%c0_3, %c0_4] : memref<32x16xf32, #tpu.memory_space<vmem>>, vector<32x16xf32>
    %c0_5 = arith.constant 0 : index
    %c0_6 = arith.constant 0 : index
    %c0_7 = arith.constant 0 : index
    %8 = vector.load %arg5[%c0_5, %c0_6, %c0_7] : memref<1x256x16xbf16, #tpu.memory_space<vmem>>, vector<1x256x16xbf16>
    %9 = vector.shape_cast %8 : vector<1x256x16xbf16> to vector<256x16xbf16>
    %cst_8 = arith.constant dense<0.000000e+00> : vector<32x16xf32>
    %10 = tpu.matmul %6, %9, %cst_8 {dimension_numbers = #tpu.dot_dimension_numbers<[1], [0], [0], [1], [0, 0, 1, 1], [], []>} : vector<32x256xbf16>, vector<256x16xbf16>, vector<32x16xf32> -> vector<32x16xf32>
    %11 = arith.addf %7, %10 : vector<32x16xf32>
    %c0_9 = arith.constant 0 : index
    %c0_10 = arith.constant 0 : index
    %12 = vector.load %arg10[%c0_9, %c0_10] : memref<32x16xf32, #tpu.memory_space<vmem>>, vector<32x16xf32>
    tpu.vector_store %arg10[%c0_9, %c0_10], %11 {strides = array<i32>} : memref<32x16xf32, #tpu.memory_space<vmem>>, vector<32x16xf32>,
    %c0_i32_11 = arith.constant 0 : i32
    %13 = arith.cmpi eq, %arg3, %c0_i32_11 : i32
    %14 = arith.extui %13 : i1 to i32
    %c0_i32_12 = arith.constant 0 : i32
    %15 = arith.cmpi ne, %14, %c0_i32_12 : i32
    scf.if %15 {
      %c0_13 = arith.constant 0 : index
      %c0_14 = arith.constant 0 : index
      %16 = vector.load %arg10[%c0_13, %c0_14] : memref<32x16xf32, #tpu.memory_space<vmem>>, vector<32x16xf32>
      %c0_15 = arith.constant 0 : index
      %c0_16 = arith.constant 0 : index
      %17 = vector.load %arg6[%c0_15, %c0_16] : memref<1x16xf32, #tpu.memory_space<vmem>>, vector<1x16xf32>
      %18 = vector.broadcast %17 : vector<1x16xf32> to vector<32x16xf32>
      %19 = arith.addf %16, %18 : vector<32x16xf32>
      %20 = arith.truncf %19 : vector<32x16xf32> to vector<32x16xbf16>
      %c0_17 = arith.constant 0 : index
      %c0_18 = arith.constant 0 : index
      %c0_19 = arith.constant 0 : index
      %21 = vector.load %arg7[%c0_17, %c0_18, %c0_19] : memref<1x32x16xbf16, #tpu.memory_space<vmem>>, vector<1x32x16xbf16>
      %22 = vector.shape_cast %21 : vector<1x32x16xbf16> to vector<32x16xbf16>
      %23 = vector.shape_cast %20 : vector<32x16xbf16> to vector<1x32x16xbf16>
      tpu.vector_store %arg7[%c0_17, %c0_18, %c0_19], %23 {strides = array<i32>} : memref<1x32x16xbf16, #tpu.memory_space<vmem>>, vector<1x32x16xbf16>,
      %cst_20 = arith.constant dense<0.000000e+00> : vector<16xf32>
      %24 = vector.multi_reduction <add>, %19, %cst_20 [0] : vector<32x16xf32> to vector<16xf32>
      %25 = vector.shape_cast %24 : vector<16xf32> to vector<1x16xf32>
      %26 = arith.mulf %19, %19 : vector<32x16xf32>
      %cst_21 = arith.constant dense<0.000000e+00> : vector<16xf32>
      %27 = vector.multi_reduction <add>, %26, %cst_21 [0] : vector<32x16xf32> to vector<16xf32>
      %28 = vector.shape_cast %27 : vector<16xf32> to vector<1x16xf32>
      %29 = vector.shape_cast %25 : vector<1x16xf32> to vector<1x16xf32>
      %30 = vector.broadcast %29 : vector<1x16xf32> to vector<8x16xf32>
      %c0_22 = arith.constant 0 : index
      %c0_23 = arith.constant 0 : index
      %c0_24 = arith.constant 0 : index
      %c0_25 = arith.constant 0 : index
      %31 = vector.load %arg8[%c0_22, %c0_23, %c0_24, %c0_25] : memref<1x1x8x16xf32, #tpu.memory_space<vmem>>, vector<1x1x8x16xf32>
      %32 = vector.shape_cast %31 : vector<1x1x8x16xf32> to vector<8x16xf32>
      %33 = vector.shape_cast %30 : vector<8x16xf32> to vector<1x1x8x16xf32>
      tpu.vector_store %arg8[%c0_22, %c0_23, %c0_24, %c0_25], %33 {strides = array<i32>} : memref<1x1x8x16xf32, #tpu.memory_space<vmem>>, vector<1x1x8x16xf32>,
      %34 = vector.shape_cast %28 : vector<1x16xf32> to vector<1x16xf32>
      %35 = vector.broadcast %34 : vector<1x16xf32> to vector<8x16xf32>
      %c0_26 = arith.constant 0 : index
      %c0_27 = arith.constant 0 : index
      %c0_28 = arith.constant 0 : index
      %c0_29 = arith.constant 0 : index
      %36 = vector.load %arg9[%c0_26, %c0_27, %c0_28, %c0_29] : memref<1x1x8x16xf32, #tpu.memory_space<vmem>>, vector<1x1x8x16xf32>
      %37 = vector.shape_cast %36 : vector<1x1x8x16xf32> to vector<8x16xf32>
      %38 = vector.shape_cast %35 : vector<8x16xf32> to vector<1x1x8x16xf32>
      tpu.vector_store %arg9[%c0_26, %c0_27, %c0_28, %c0_29], %38 {strides = array<i32>} : memref<1x1x8x16xf32, #tpu.memory_space<vmem>>, vector<1x1x8x16xf32>,
    } else {
    }
    return
  }
  func.func @transform_0(%arg0: i32, %arg1: i32, %arg2: i32, %arg3: i32) -> (i32, i32, i32) {
    %c0_i32 = arith.constant 0 : i32
    return %arg0, %arg1, %arg3 : i32, i32, i32
  }
  func.func @transform_1(%arg0: i32, %arg1: i32, %arg2: i32, %arg3: i32) -> (i32, i32, i32) {
    %c0_i32 = arith.constant 0 : i32
    return %arg0, %arg3, %arg2 : i32, i32, i32
  }
  func.func @transform_2(%arg0: i32, %arg1: i32, %arg2: i32, %arg3: i32) -> (i32, i32) {
    %c0_i32 = arith.constant 0 : i32
    %c0_i32_0 = arith.constant 0 : i32
    return %c0_i32, %arg2 : i32, i32
  }
  func.func @transform_3(%arg0: i32, %arg1: i32, %arg2: i32, %arg3: i32) -> (i32, i32, i32) {
    %c0_i32 = arith.constant 0 : i32
    return %arg0, %arg1, %arg2 : i32, i32, i32
  }
  func.func @transform_4(%arg0: i32, %arg1: i32, %arg2: i32, %arg3: i32) -> (i32, i32, i32, i32) {
    %c0_i32 = arith.constant 0 : i32
    %c0_i32_0 = arith.constant 0 : i32
    return %arg0, %arg1, %c0_i32, %arg2 : i32, i32, i32, i32
  }
  func.func @transform_5(%arg0: i32, %arg1: i32, %arg2: i32, %arg3: i32) -> (i32, i32, i32, i32) {
    %c0_i32 = arith.constant 0 : i32
    %c0_i32_0 = arith.constant 0 : i32
    return %arg0, %arg1, %c0_i32, %arg2 : i32, i32, i32, i32
  }
}

module attributes {stable_mosaic.version = 11 : i64} {
  func.func @_matmul_kernel(%arg0: i32, %arg1: i32, %arg2: i32, %arg3: i32, %arg4: memref<1x128x128xbf16, #tpu.memory_space<vmem>>, %arg5: memref<1x128x8xbf16, #tpu.memory_space<vmem>>, %arg6: memref<1x8xf32, #tpu.memory_space<vmem>>, %arg7: memref<1x128x8xbf16, #tpu.memory_space<vmem>>, %arg8: memref<1x1x8x8xf32, #tpu.memory_space<vmem>>, %arg9: memref<1x1x8x8xf32, #tpu.memory_space<vmem>>, %arg10: memref<128x8xf32, #tpu.memory_space<vmem>>) attributes {dimension_semantics = [#tpu.dimension_semantics<parallel>, #tpu.dimension_semantics<parallel>, #tpu.dimension_semantics<parallel>, #tpu.dimension_semantics<arbitrary>], iteration_bounds = array<i64: 4, 1, 1, 1>, scalar_prefetch = 0 : i64, scratch_operands = 1 : i64, tpu.core_type = #tpu.core_type<tc>, window_params = [{transform_indices = @transform_0, window_bounds = array<i64: 1, 128, 128>}, {transform_indices = @transform_1, window_bounds = array<i64: 1, 128, 8>}, {transform_indices = @transform_2, window_bounds = array<i64: 1, 8>}, {transform_indices = @transform_3, window_bounds = array<i64: 1, 128, 8>}, {transform_indices = @transform_4, window_bounds = array<i64: 1, 1, 8, 8>}, {transform_indices = @transform_5, window_bounds = array<i64: 1, 1, 8, 8>}]} {
    %c0_i32 = arith.constant 0 : i32
    %0 = arith.cmpi eq, %arg3, %c0_i32 : i32
    %1 = arith.extui %0 : i1 to i32
    %c0_i32_0 = arith.constant 0 : i32
    %2 = arith.cmpi ne, %1, %c0_i32_0 : i32
    scf.if %2 {
      %cst_13 = arith.constant 0.000000e+00 : f32
      %16 = vector.broadcast %cst_13 : f32 to vector<128x8xf32>
      %c0_14 = arith.constant 0 : index
      %c0_15 = arith.constant 0 : index
      %17 = vector.load %arg10[%c0_14, %c0_15] : memref<128x8xf32, #tpu.memory_space<vmem>>, vector<128x8xf32>
      tpu.vector_store %arg10[%c0_14, %c0_15], %16 {strides = array<i32>} : memref<128x8xf32, #tpu.memory_space<vmem>>, vector<128x8xf32>,
    } else {
    }
    %c0 = arith.constant 0 : index
    %c0_1 = arith.constant 0 : index
    %c0_2 = arith.constant 0 : index
    %3 = vector.load %arg4[%c0, %c0_1, %c0_2] : memref<1x128x128xbf16, #tpu.memory_space<vmem>>, vector<1x128x128xbf16>
    %4 = vector.shape_cast %3 : vector<1x128x128xbf16> to vector<128x128xbf16>
    %cst = arith.constant 0.000000e+00 : bf16
    %5 = vector.broadcast %cst : bf16 to vector<128x128xbf16>
    %6 = arith.maximumf %4, %5 : vector<128x128xbf16>
    %c0_3 = arith.constant 0 : index
    %c0_4 = arith.constant 0 : index
    %7 = vector.load %arg10[%c0_3, %c0_4] : memref<128x8xf32, #tpu.memory_space<vmem>>, vector<128x8xf32>
    %c0_5 = arith.constant 0 : index
    %c0_6 = arith.constant 0 : index
    %c0_7 = arith.constant 0 : index
    %8 = vector.load %arg5[%c0_5, %c0_6, %c0_7] : memref<1x128x8xbf16, #tpu.memory_space<vmem>>, vector<1x128x8xbf16>
    %9 = vector.shape_cast %8 : vector<1x128x8xbf16> to vector<128x8xbf16>
    %cst_8 = arith.constant dense<0.000000e+00> : vector<128x8xf32>
    %10 = tpu.matmul %6, %9, %cst_8 {dimension_numbers = #tpu.dot_dimension_numbers<[1], [0], [0], [1], [0, 0, 1, 1], [], []>} : vector<128x128xbf16>, vector<128x8xbf16>, vector<128x8xf32> -> vector<128x8xf32>
    %11 = arith.addf %7, %10 : vector<128x8xf32>
    %c0_9 = arith.constant 0 : index
    %c0_10 = arith.constant 0 : index
    %12 = vector.load %arg10[%c0_9, %c0_10] : memref<128x8xf32, #tpu.memory_space<vmem>>, vector<128x8xf32>
    tpu.vector_store %arg10[%c0_9, %c0_10], %11 {strides = array<i32>} : memref<128x8xf32, #tpu.memory_space<vmem>>, vector<128x8xf32>,
    %c0_i32_11 = arith.constant 0 : i32
    %13 = arith.cmpi eq, %arg3, %c0_i32_11 : i32
    %14 = arith.extui %13 : i1 to i32
    %c0_i32_12 = arith.constant 0 : i32
    %15 = arith.cmpi ne, %14, %c0_i32_12 : i32
    scf.if %15 {
      %c0_13 = arith.constant 0 : index
      %c0_14 = arith.constant 0 : index
      %16 = vector.load %arg10[%c0_13, %c0_14] : memref<128x8xf32, #tpu.memory_space<vmem>>, vector<128x8xf32>
      %c0_15 = arith.constant 0 : index
      %c0_16 = arith.constant 0 : index
      %17 = vector.load %arg6[%c0_15, %c0_16] : memref<1x8xf32, #tpu.memory_space<vmem>>, vector<1x8xf32>
      %18 = vector.broadcast %17 : vector<1x8xf32> to vector<128x8xf32>
      %19 = arith.addf %16, %18 : vector<128x8xf32>
      %20 = arith.truncf %19 : vector<128x8xf32> to vector<128x8xbf16>
      %c0_17 = arith.constant 0 : index
      %c0_18 = arith.constant 0 : index
      %c0_19 = arith.constant 0 : index
      %21 = vector.load %arg7[%c0_17, %c0_18, %c0_19] : memref<1x128x8xbf16, #tpu.memory_space<vmem>>, vector<1x128x8xbf16>
      %22 = vector.shape_cast %21 : vector<1x128x8xbf16> to vector<128x8xbf16>
      %23 = vector.shape_cast %20 : vector<128x8xbf16> to vector<1x128x8xbf16>
      tpu.vector_store %arg7[%c0_17, %c0_18, %c0_19], %23 {strides = array<i32>} : memref<1x128x8xbf16, #tpu.memory_space<vmem>>, vector<1x128x8xbf16>,
      %cst_20 = arith.constant dense<0.000000e+00> : vector<8xf32>
      %24 = vector.multi_reduction <add>, %19, %cst_20 [0] : vector<128x8xf32> to vector<8xf32>
      %25 = vector.shape_cast %24 : vector<8xf32> to vector<1x8xf32>
      %26 = arith.mulf %19, %19 : vector<128x8xf32>
      %cst_21 = arith.constant dense<0.000000e+00> : vector<8xf32>
      %27 = vector.multi_reduction <add>, %26, %cst_21 [0] : vector<128x8xf32> to vector<8xf32>
      %28 = vector.shape_cast %27 : vector<8xf32> to vector<1x8xf32>
      %29 = vector.shape_cast %25 : vector<1x8xf32> to vector<1x8xf32>
      %30 = vector.broadcast %29 : vector<1x8xf32> to vector<8x8xf32>
      %c0_22 = arith.constant 0 : index
      %c0_23 = arith.constant 0 : index
      %c0_24 = arith.constant 0 : index
      %c0_25 = arith.constant 0 : index
      %31 = vector.load %arg8[%c0_22, %c0_23, %c0_24, %c0_25] : memref<1x1x8x8xf32, #tpu.memory_space<vmem>>, vector<1x1x8x8xf32>
      %32 = vector.shape_cast %31 : vector<1x1x8x8xf32> to vector<8x8xf32>
      %33 = vector.shape_cast %30 : vector<8x8xf32> to vector<1x1x8x8xf32>
      tpu.vector_store %arg8[%c0_22, %c0_23, %c0_24, %c0_25], %33 {strides = array<i32>} : memref<1x1x8x8xf32, #tpu.memory_space<vmem>>, vector<1x1x8x8xf32>,
      %34 = vector.shape_cast %28 : vector<1x8xf32> to vector<1x8xf32>
      %35 = vector.broadcast %34 : vector<1x8xf32> to vector<8x8xf32>
      %c0_26 = arith.constant 0 : index
      %c0_27 = arith.constant 0 : index
      %c0_28 = arith.constant 0 : index
      %c0_29 = arith.constant 0 : index
      %36 = vector.load %arg9[%c0_26, %c0_27, %c0_28, %c0_29] : memref<1x1x8x8xf32, #tpu.memory_space<vmem>>, vector<1x1x8x8xf32>
      %37 = vector.shape_cast %36 : vector<1x1x8x8xf32> to vector<8x8xf32>
      %38 = vector.shape_cast %35 : vector<8x8xf32> to vector<1x1x8x8xf32>
      tpu.vector_store %arg9[%c0_26, %c0_27, %c0_28, %c0_29], %38 {strides = array<i32>} : memref<1x1x8x8xf32, #tpu.memory_space<vmem>>, vector<1x1x8x8xf32>,
    } else {
    }
    return
  }
  func.func @transform_0(%arg0: i32, %arg1: i32, %arg2: i32, %arg3: i32) -> (i32, i32, i32) {
    %c0_i32 = arith.constant 0 : i32
    return %arg0, %arg1, %arg3 : i32, i32, i32
  }
  func.func @transform_1(%arg0: i32, %arg1: i32, %arg2: i32, %arg3: i32) -> (i32, i32, i32) {
    %c0_i32 = arith.constant 0 : i32
    return %arg0, %arg3, %arg2 : i32, i32, i32
  }
  func.func @transform_2(%arg0: i32, %arg1: i32, %arg2: i32, %arg3: i32) -> (i32, i32) {
    %c0_i32 = arith.constant 0 : i32
    %c0_i32_0 = arith.constant 0 : i32
    return %c0_i32, %arg2 : i32, i32
  }
  func.func @transform_3(%arg0: i32, %arg1: i32, %arg2: i32, %arg3: i32) -> (i32, i32, i32) {
    %c0_i32 = arith.constant 0 : i32
    return %arg0, %arg1, %arg2 : i32, i32, i32
  }
  func.func @transform_4(%arg0: i32, %arg1: i32, %arg2: i32, %arg3: i32) -> (i32, i32, i32, i32) {
    %c0_i32 = arith.constant 0 : i32
    %c0_i32_0 = arith.constant 0 : i32
    return %arg0, %arg1, %c0_i32, %arg2 : i32, i32, i32, i32
  }
  func.func @transform_5(%arg0: i32, %arg1: i32, %arg2: i32, %arg3: i32) -> (i32, i32, i32, i32) {
    %c0_i32 = arith.constant 0 : i32
    %c0_i32_0 = arith.constant 0 : i32
    return %arg0, %arg1, %c0_i32, %arg2 : i32, i32, i32, i32
  }
}

module attributes {stable_mosaic.version = 11 : i64} {
  func.func @_affine_kernel(%arg0: i32, %arg1: memref<512x8xbf16, #tpu.memory_space<vmem>>, %arg2: memref<1x8xf32, #tpu.memory_space<vmem>>, %arg3: memref<1x8xf32, #tpu.memory_space<vmem>>, %arg4: memref<512x8xbf16, #tpu.memory_space<vmem>>) attributes {dimension_semantics = [#tpu.dimension_semantics<parallel>], iteration_bounds = array<i64: 1>, scalar_prefetch = 0 : i64, scratch_operands = 0 : i64, tpu.core_type = #tpu.core_type<tc>, window_params = [{transform_indices = @transform_0, window_bounds = array<i64: 512, 8>}, {pipeline_mode = #tpu.pipeline_mode<synchronous>, transform_indices = @transform_1, window_bounds = array<i64: 1, 8>}, {pipeline_mode = #tpu.pipeline_mode<synchronous>, transform_indices = @transform_2, window_bounds = array<i64: 1, 8>}, {transform_indices = @transform_3, window_bounds = array<i64: 512, 8>}]} {
    %c0 = arith.constant 0 : index
    %c0_0 = arith.constant 0 : index
    %0 = vector.load %arg1[%c0, %c0_0] : memref<512x8xbf16, #tpu.memory_space<vmem>>, vector<512x8xbf16>
    %1 = arith.extf %0 : vector<512x8xbf16> to vector<512x8xf32>
    %c0_1 = arith.constant 0 : index
    %c0_2 = arith.constant 0 : index
    %2 = vector.load %arg2[%c0_1, %c0_2] : memref<1x8xf32, #tpu.memory_space<vmem>>, vector<1x8xf32>
    %3 = vector.broadcast %2 : vector<1x8xf32> to vector<512x8xf32>
    %4 = arith.mulf %1, %3 : vector<512x8xf32>
    %c0_3 = arith.constant 0 : index
    %c0_4 = arith.constant 0 : index
    %5 = vector.load %arg3[%c0_3, %c0_4] : memref<1x8xf32, #tpu.memory_space<vmem>>, vector<1x8xf32>
    %6 = vector.broadcast %5 : vector<1x8xf32> to vector<512x8xf32>
    %7 = arith.addf %4, %6 : vector<512x8xf32>
    %8 = arith.truncf %7 : vector<512x8xf32> to vector<512x8xbf16>
    %c0_5 = arith.constant 0 : index
    %c0_6 = arith.constant 0 : index
    %9 = vector.load %arg4[%c0_5, %c0_6] : memref<512x8xbf16, #tpu.memory_space<vmem>>, vector<512x8xbf16>
    tpu.vector_store %arg4[%c0_5, %c0_6], %8 {strides = array<i32>} : memref<512x8xbf16, #tpu.memory_space<vmem>>, vector<512x8xbf16>,
    return
  }
  func.func @transform_0(%arg0: i32) -> (i32, i32) {
    %c0_i32 = arith.constant 0 : i32
    %c0_i32_0 = arith.constant 0 : i32
    return %arg0, %c0_i32 : i32, i32
  }
  func.func @transform_1(%arg0: i32) -> (i32, i32) {
    %c0_i32 = arith.constant 0 : i32
    %c0_i32_0 = arith.constant 0 : i32
    %c0_i32_1 = arith.constant 0 : i32
    return %c0_i32, %c0_i32_0 : i32, i32
  }
  func.func @transform_2(%arg0: i32) -> (i32, i32) {
    %c0_i32 = arith.constant 0 : i32
    %c0_i32_0 = arith.constant 0 : i32
    %c0_i32_1 = arith.constant 0 : i32
    return %c0_i32, %c0_i32_0 : i32, i32
  }
  func.func @transform_3(%arg0: i32) -> (i32, i32) {
    %c0_i32 = arith.constant 0 : i32
    %c0_i32_0 = arith.constant 0 : i32
    return %arg0, %c0_i32 : i32, i32
  }
}

module attributes {stable_mosaic.version = 11 : i64} {
  func.func @_matmul_kernel(%arg0: i32, %arg1: i32, %arg2: i32, %arg3: i32, %arg4: memref<1x512x64xbf16, #tpu.memory_space<vmem>>, %arg5: memref<1x64x3xbf16, #tpu.memory_space<vmem>>, %arg6: memref<1x3xf32, #tpu.memory_space<vmem>>, %arg7: memref<1x512x3xbf16, #tpu.memory_space<vmem>>, %arg8: memref<512x3xf32, #tpu.memory_space<vmem>>) attributes {dimension_semantics = [#tpu.dimension_semantics<parallel>, #tpu.dimension_semantics<parallel>, #tpu.dimension_semantics<parallel>, #tpu.dimension_semantics<arbitrary>], iteration_bounds = array<i64: 4, 1, 1, 1>, scalar_prefetch = 0 : i64, scratch_operands = 1 : i64, tpu.core_type = #tpu.core_type<tc>, window_params = [{transform_indices = @transform_0, window_bounds = array<i64: 1, 512, 64>}, {transform_indices = @transform_1, window_bounds = array<i64: 1, 64, 3>}, {transform_indices = @transform_2, window_bounds = array<i64: 1, 3>}, {transform_indices = @transform_3, window_bounds = array<i64: 1, 512, 3>}]} {
    %c0_i32 = arith.constant 0 : i32
    %0 = arith.cmpi eq, %arg3, %c0_i32 : i32
    %1 = arith.extui %0 : i1 to i32
    %c0_i32_0 = arith.constant 0 : i32
    %2 = arith.cmpi ne, %1, %c0_i32_0 : i32
    scf.if %2 {
      %cst_13 = arith.constant 0.000000e+00 : f32
      %16 = vector.broadcast %cst_13 : f32 to vector<512x3xf32>
      %c0_14 = arith.constant 0 : index
      %c0_15 = arith.constant 0 : index
      %17 = vector.load %arg8[%c0_14, %c0_15] : memref<512x3xf32, #tpu.memory_space<vmem>>, vector<512x3xf32>
      tpu.vector_store %arg8[%c0_14, %c0_15], %16 {strides = array<i32>} : memref<512x3xf32, #tpu.memory_space<vmem>>, vector<512x3xf32>,
    } else {
    }
    %c0 = arith.constant 0 : index
    %c0_1 = arith.constant 0 : index
    %c0_2 = arith.constant 0 : index
    %3 = vector.load %arg4[%c0, %c0_1, %c0_2] : memref<1x512x64xbf16, #tpu.memory_space<vmem>>, vector<1x512x64xbf16>
    %4 = vector.shape_cast %3 : vector<1x512x64xbf16> to vector<512x64xbf16>
    %cst = arith.constant 0.000000e+00 : bf16
    %5 = vector.broadcast %cst : bf16 to vector<512x64xbf16>
    %6 = arith.maximumf %4, %5 : vector<512x64xbf16>
    %c0_3 = arith.constant 0 : index
    %c0_4 = arith.constant 0 : index
    %7 = vector.load %arg8[%c0_3, %c0_4] : memref<512x3xf32, #tpu.memory_space<vmem>>, vector<512x3xf32>
    %c0_5 = arith.constant 0 : index
    %c0_6 = arith.constant 0 : index
    %c0_7 = arith.constant 0 : index
    %8 = vector.load %arg5[%c0_5, %c0_6, %c0_7] : memref<1x64x3xbf16, #tpu.memory_space<vmem>>, vector<1x64x3xbf16>
    %9 = vector.shape_cast %8 : vector<1x64x3xbf16> to vector<64x3xbf16>
    %cst_8 = arith.constant dense<0.000000e+00> : vector<512x3xf32>
    %10 = tpu.matmul %6, %9, %cst_8 {dimension_numbers = #tpu.dot_dimension_numbers<[1], [0], [0], [1], [0, 0, 1, 1], [], []>} : vector<512x64xbf16>, vector<64x3xbf16>, vector<512x3xf32> -> vector<512x3xf32>
    %11 = arith.addf %7, %10 : vector<512x3xf32>
    %c0_9 = arith.constant 0 : index
    %c0_10 = arith.constant 0 : index
    %12 = vector.load %arg8[%c0_9, %c0_10] : memref<512x3xf32, #tpu.memory_space<vmem>>, vector<512x3xf32>
    tpu.vector_store %arg8[%c0_9, %c0_10], %11 {strides = array<i32>} : memref<512x3xf32, #tpu.memory_space<vmem>>, vector<512x3xf32>,
    %c0_i32_11 = arith.constant 0 : i32
    %13 = arith.cmpi eq, %arg3, %c0_i32_11 : i32
    %14 = arith.extui %13 : i1 to i32
    %c0_i32_12 = arith.constant 0 : i32
    %15 = arith.cmpi ne, %14, %c0_i32_12 : i32
    scf.if %15 {
      %c0_13 = arith.constant 0 : index
      %c0_14 = arith.constant 0 : index
      %16 = vector.load %arg8[%c0_13, %c0_14] : memref<512x3xf32, #tpu.memory_space<vmem>>, vector<512x3xf32>
      %c0_15 = arith.constant 0 : index
      %c0_16 = arith.constant 0 : index
      %17 = vector.load %arg6[%c0_15, %c0_16] : memref<1x3xf32, #tpu.memory_space<vmem>>, vector<1x3xf32>
      %18 = vector.broadcast %17 : vector<1x3xf32> to vector<512x3xf32>
      %19 = arith.addf %16, %18 : vector<512x3xf32>
      %20 = math.tanh %19 : vector<512x3xf32>
      %21 = arith.truncf %20 : vector<512x3xf32> to vector<512x3xbf16>
      %c0_17 = arith.constant 0 : index
      %c0_18 = arith.constant 0 : index
      %c0_19 = arith.constant 0 : index
      %22 = vector.load %arg7[%c0_17, %c0_18, %c0_19] : memref<1x512x3xbf16, #tpu.memory_space<vmem>>, vector<1x512x3xbf16>
      %23 = vector.shape_cast %22 : vector<1x512x3xbf16> to vector<512x3xbf16>
      %24 = vector.shape_cast %21 : vector<512x3xbf16> to vector<1x512x3xbf16>
      tpu.vector_store %arg7[%c0_17, %c0_18, %c0_19], %24 {strides = array<i32>} : memref<1x512x3xbf16, #tpu.memory_space<vmem>>, vector<1x512x3xbf16>,
    } else {
    }
    return
  }
  func.func @transform_0(%arg0: i32, %arg1: i32, %arg2: i32, %arg3: i32) -> (i32, i32, i32) {
    %c0_i32 = arith.constant 0 : i32
    return %arg0, %arg1, %arg3 : i32, i32, i32
  }
  func.func @transform_1(%arg0: i32, %arg1: i32, %arg2: i32, %arg3: i32) -> (i32, i32, i32) {
    %c0_i32 = arith.constant 0 : i32
    return %arg0, %arg3, %arg2 : i32, i32, i32
  }
  func.func @transform_2(%arg0: i32, %arg1: i32, %arg2: i32, %arg3: i32) -> (i32, i32) {
    %c0_i32 = arith.constant 0 : i32
    %c0_i32_0 = arith.constant 0 : i32
    return %c0_i32, %arg2 : i32, i32
  }
  func.func @transform_3(%arg0: i32, %arg1: i32, %arg2: i32, %arg3: i32) -> (i32, i32, i32) {
    %c0_i32 = arith.constant 0 : i32
    return %arg0, %arg1, %arg2 : i32, i32, i32
  }
}

</mosaic_0001>

<bundles_post_ra>
// kernel: unet_generator_forward.17
= control target key start
LH: loop header
LB: loop body
LE: loop exit
PB: predicated region body
PF: predicated region fallthrough
CT: control target
= control target key end

     0   :  { %vm404_vm0 = vcmask 523264   ;;  %vm19_vm1 = vcmask 64512   ;;  %v1294_v28 = vmov 0.0   ;;  %vm998_vm2 = vcmask 60416   ;;  %s1981_s1 = inlined_call_operand.vmem [shape: bf16[1,64,8], index: 1, kind: input, shape index: {}]   ;;  %s1982_s2 = inlined_call_operand.vmem [shape: f32[1,8], index: 2, kind: input, shape index: {}]   ;;  %s1983_s0 = inlined_call_operand.vmem [shape: bf16[1,512,64], index: 0, kind: input, shape index: {}]   ;;  %s1984_s3 = inlined_call_operand.vmem [shape: bf16[1,512,8], index: 3, kind: output, shape index: {}]  }
   0x1   :  { %v1278_v0 = vld [vmem:[%s1981_s1 + $0x18] sm:$0xff]  ;;  %v1277_v1 = vld [vmem:[%s1981_s1 + $0x10] sm:$0xff]  ;;  %v1276_v2 = vld [vmem:[%s1981_s1 + $0x8] sm:$0xff]  ;;  %20 = vst.msk [vmem:[#allocation2] sm:$0xff] %vm19_vm1, %v1294_v28 }
   0x2   :  { %505 = vmatpush.bf16.msra.mxu0 %v1278_v0  ;;  %1279 = vmatpush.bf16.msra.mxu1 %v1278_v0  ;;  %v1275_v3 = vld [vmem:[%s1981_s1] sm:$0xff]  ;;  %v1244_v8 = vld [vmem:[%s1983_s0 + $0x8] sm:$0xff]  ;;  %v1245_v12 = vld [vmem:[%s1983_s0 + $0x10] sm:$0xff]  ;;  %21 = vst.msk [vmem:[#allocation2 + $0x8] sm:$0xff] %vm19_vm1, %v1294_v28 }
   0x3   :  { %1280 = vmatpush.bf16.msra.mxu2 %v1278_v0  ;;  %1281 = vmatpush.bf16.msra.mxu3 %v1278_v0  ;;  %v1243_v4 = vld [vmem:[%s1983_s0] sm:$0xff]  ;;  %v1252_v9 = vld [vmem:[%s1983_s0 + $0x48] sm:$0xff]  ;;  %v1253_v13 = vld [vmem:[%s1983_s0 + $0x50] sm:$0xff]  ;;  %22 = vst.msk [vmem:[#allocation2 + $0x10] sm:$0xff] %vm19_vm1, %v1294_v28 }
   0x4   :  { %v1251_v5 = vld [vmem:[%s1983_s0 + $0x40] sm:$0xff]  ;;  %v1260_v10 = vld [vmem:[%s1983_s0 + $0x88] sm:$0xff]  ;;  %v1261_v14 = vld [vmem:[%s1983_s0 + $0x90] sm:$0xff]  ;;  %23 = vst.msk [vmem:[#allocation2 + $0x18] sm:$0xff] %vm19_vm1, %v1294_v28 }
   0x5   :  { %v1259_v6 = vld [vmem:[%s1983_s0 + $0x80] sm:$0xff]  ;;  %v1268_v11 = vld [vmem:[%s1983_s0 + $0xc8] sm:$0xff]  ;;  %v1269_v15 = vld [vmem:[%s1983_s0 + $0xd0] sm:$0xff]  ;;  %24 = vst.msk [vmem:[#allocation2 + $0x20] sm:$0xff] %vm19_vm1, %v1294_v28 }
   0x6   :  { %506 = vmatpush.bf16.msra.mxu0 %v1277_v1  ;;  %1282 = vmatpush.bf16.msra.mxu1 %v1277_v1  ;;  %v1267_v7 = vld [vmem:[%s1983_s0 + $0xc0] sm:$0xff]  ;;  %v1246_v16 = vld [vmem:[%s1983_s0 + $0x18] sm:$0xff]  ;;  %v1248_v24 = vld [vmem:[%s1983_s0 + $0x28] sm:$0xff]  ;;  %25 = vst.msk [vmem:[#allocation2 + $0x28] sm:$0xff] %vm19_vm1, %v1294_v28 }
   0x7   :  { %1283 = vmatpush.bf16.msra.mxu2 %v1277_v1  ;;  %1284 = vmatpush.bf16.msra.mxu3 %v1277_v1  ;;  %v1254_v17 = vld [vmem:[%s1983_s0 + $0x58] sm:$0xff]  ;;  %v1247_v20 = vld [vmem:[%s1983_s0 + $0x20] sm:$0xff]  ;;  %v1256_v25 = vld [vmem:[%s1983_s0 + $0x68] sm:$0xff]  ;;  %26 = vst.msk [vmem:[#allocation2 + $0x30] sm:$0xff] %vm19_vm1, %v1294_v28 }
   0x8   :  { %v1262_v18 = vld [vmem:[%s1983_s0 + $0x98] sm:$0xff]  ;;  %v1255_v21 = vld [vmem:[%s1983_s0 + $0x60] sm:$0xff]  ;;  %v1264_v26 = vld [vmem:[%s1983_s0 + $0xa8] sm:$0xff]  ;;  %27 = vst.msk [vmem:[#allocation2 + $0x38] sm:$0xff] %vm19_vm1, %v1294_v28 }
   0x9   :  { %v1270_v19 = vld [vmem:[%s1983_s0 + $0xd8] sm:$0xff]  ;;  %v1263_v22 = vld [vmem:[%s1983_s0 + $0xa0] sm:$0xff]  ;;  %v1272_v27 = vld [vmem:[%s1983_s0 + $0xe8] sm:$0xff]  ;;  %28 = vst.msk [vmem:[#allocation2 + $0x40] sm:$0xff] %vm19_vm1, %v1294_v28 }
   0xa   :  { %507 = vmatpush.bf16.msra.mxu0 %v1276_v2  ;;  %1285 = vmatpush.bf16.msra.mxu1 %v1276_v2  ;;  %v1271_v23 = vld [vmem:[%s1983_s0 + $0xe0] sm:$0xff]  ;;  %29 = vst.msk [vmem:[#allocation2 + $0x48] sm:$0xff] %vm19_vm1, %v1294_v28  ;;  %v1249_v29 = vld [vmem:[%s1983_s0 + $0x30] sm:$0xff]  ;;  %v1250_v33 = vld [vmem:[%s1983_s0 + $0x38] sm:$0xff] }
   0xb   :  { %1286 = vmatpush.bf16.msra.mxu2 %v1276_v2  ;;  %1287 = vmatpush.bf16.msra.mxu3 %v1276_v2  ;;  %v1257_v30 = vld [vmem:[%s1983_s0 + $0x70] sm:$0xff]  ;;  %30 = vst.msk [vmem:[#allocation2 + $0x50] sm:$0xff] %vm19_vm1, %v1294_v28  ;;  %v1258_v34 = vld [vmem:[%s1983_s0 + $0x78] sm:$0xff]  ;;  %v148_v37 = vld [vmem:[#allocation2] sm:$0xff] }
   0xc   :  { %v1265_v31 = vld [vmem:[%s1983_s0 + $0xb0] sm:$0xff]  ;;  %31 = vst.msk [vmem:[#allocation2 + $0x58] sm:$0xff] %vm19_vm1, %v1294_v28  ;;  %v1266_v35 = vld [vmem:[%s1983_s0 + $0xb8] sm:$0xff]  ;;  %v1557_v41 = vld [vmem:[%s1982_s2] ss:$0 sm:$0xff] }
   0xd   :  { %v1273_v32 = vld [vmem:[%s1983_s0 + $0xf0] sm:$0xff]  ;;  %32 = vst.msk [vmem:[#allocation2 + $0x60] sm:$0xff] %vm19_vm1, %v1294_v28  ;;  %v1274_v36 = vld [vmem:[%s1983_s0 + $0xf8] sm:$0xff]  ;;  %v149_v57 = vld [vmem:[#allocation2 + $0x8] sm:$0xff] }
   0xe   :  { %508 = vmatpush.bf16.msra.mxu0 %v1275_v3  ;;  %1288 = vmatpush.bf16.msra.mxu1 %v1275_v3  ;;  %33 = vst.msk [vmem:[#allocation2 + $0x68] sm:$0xff] %vm19_vm1, %v1294_v28  ;;  %v150_v1 = vld [vmem:[#allocation2 + $0x10] sm:$0xff] }
   0xf   :  { %1289 = vmatpush.bf16.msra.mxu2 %v1275_v3  ;;  %1290 = vmatpush.bf16.msra.mxu3 %v1275_v3  ;;  %34 = vst.msk [vmem:[#allocation2 + $0x70] sm:$0xff] %vm19_vm1, %v1294_v28 }
  0x10   :  { %35 = vst.msk [vmem:[#allocation2 + $0x78] sm:$0xff] %vm19_vm1, %v1294_v28 }
  0x11   :  { %1211 = vmatmul.msk.bf16.vlgmr.msra.gmra.mxu0 %vm404_vm0, %v1243_v4  ;;  %1219 = vmatmul.msk.bf16.vlgmr.msra.gmra.mxu1 %vm404_vm0, %v1251_v5  ;;  %36 = vst.msk [vmem:[#allocation2 + $0x80] sm:$0xff] %vm19_vm1, %v1294_v28 }
  0x12   :  { %1227 = vmatmul.msk.bf16.vlgmr.msra.gmra.mxu2 %vm404_vm0, %v1259_v6  ;;  %1235 = vmatmul.msk.bf16.vlgmr.msra.gmra.mxu3 %vm404_vm0, %v1267_v7  ;;  %37 = vst.msk [vmem:[#allocation2 + $0x88] sm:$0xff] %vm19_vm1, %v1294_v28 }
  0x13   :  { %38 = vst.msk [vmem:[#allocation2 + $0x90] sm:$0xff] %vm19_vm1, %v1294_v28 }
  0x14   :  { %39 = vst.msk [vmem:[#allocation2 + $0x98] sm:$0xff] %vm19_vm1, %v1294_v28 }
  0x15   :  { %40 = vst.msk [vmem:[#allocation2 + $0xa0] sm:$0xff] %vm19_vm1, %v1294_v28 }
  0x16   :  { %41 = vst.msk [vmem:[#allocation2 + $0xa8] sm:$0xff] %vm19_vm1, %v1294_v28 }
  0x17   :  { %42 = vst.msk [vmem:[#allocation2 + $0xb0] sm:$0xff] %vm19_vm1, %v1294_v28 }
  0x18   :  { %43 = vst.msk [vmem:[#allocation2 + $0xb8] sm:$0xff] %vm19_vm1, %v1294_v28  ;;  %v164_v51 = vld [vmem:[#allocation2 + $0x80] sm:$0xff] }
  0x19   :  { %44 = vst.msk [vmem:[#allocation2 + $0xc0] sm:$0xff] %vm19_vm1, %v1294_v28  ;;  %v165_v59 = vld [vmem:[#allocation2 + $0x88] sm:$0xff] }
  0x1a   :  { %45 = vst.msk [vmem:[#allocation2 + $0xc8] sm:$0xff] %vm19_vm1, %v1294_v28  ;;  %v166_v5 = vld [vmem:[#allocation2 + $0x90] sm:$0xff] }
  0x1b   :  { %46 = vst.msk [vmem:[#allocation2 + $0xd0] sm:$0xff] %vm19_vm1, %v1294_v28 }
  0x1c   :  { %47 = vst.msk [vmem:[#allocation2 + $0xd8] sm:$0xff] %vm19_vm1, %v1294_v28 }
  0x1d   :  { %48 = vst.msk [vmem:[#allocation2 + $0xe0] sm:$0xff] %vm19_vm1, %v1294_v28 }
  0x1e   :  { %49 = vst.msk [vmem:[#allocation2 + $0xe8] sm:$0xff] %vm19_vm1, %v1294_v28 }
  0x1f   :  { %50 = vst.msk [vmem:[#allocation2 + $0xf0] sm:$0xff] %vm19_vm1, %v1294_v28 }
  0x20   :  { %51 = vst.msk [vmem:[#allocation2 + $0xf8] sm:$0xff] %vm19_vm1, %v1294_v28 }
  0x21   :  { %1212 = vmatmul.msk.bf16.gmra.mxu0 %vm404_vm0, %v1244_v8  ;;  %1220 = vmatmul.msk.bf16.gmra.mxu1 %vm404_vm0, %v1252_v9  ;;  %52 = vst.msk [vmem:[#allocation2 + $0x100] sm:$0xff] %vm19_vm1, %v1294_v28 }
  0x22   :  { %1228 = vmatmul.msk.bf16.gmra.mxu2 %vm404_vm0, %v1260_v10  ;;  %1236 = vmatmul.msk.bf16.gmra.mxu3 %vm404_vm0, %v1268_v11  ;;  %53 = vst.msk [vmem:[#allocation2 + $0x108] sm:$0xff] %vm19_vm1, %v1294_v28 }
  0x23   :  { %54 = vst.msk [vmem:[#allocation2 + $0x110] sm:$0xff] %vm19_vm1, %v1294_v28 }
  0x24   :  { %55 = vst.msk [vmem:[#allocation2 + $0x118] sm:$0xff] %vm19_vm1, %v1294_v28 }
  0x25   :  { %56 = vst.msk [vmem:[#allocation2 + $0x120] sm:$0xff] %vm19_vm1, %v1294_v28 }
  0x26   :  { %57 = vst.msk [vmem:[#allocation2 + $0x128] sm:$0xff] %vm19_vm1, %v1294_v28 }
  0x27   :  { %58 = vst.msk [vmem:[#allocation2 + $0x130] sm:$0xff] %vm19_vm1, %v1294_v28 }
  0x28   :  { %59 = vst.msk [vmem:[#allocation2 + $0x138] sm:$0xff] %vm19_vm1, %v1294_v28  ;;  %v180_v54 = vld [vmem:[#allocation2 + $0x100] sm:$0xff] }
  0x29   :  { %60 = vst.msk [vmem:[#allocation2 + $0x140] sm:$0xff] %vm19_vm1, %v1294_v28  ;;  %v181_v61 = vld [vmem:[#allocation2 + $0x108] sm:$0xff] }
  0x2a   :  { %61 = vst.msk [vmem:[#allocation2 + $0x148] sm:$0xff] %vm19_vm1, %v1294_v28  ;;  %v182_v9 = vld [vmem:[#allocation2 + $0x110] sm:$0xff] }
  0x2b   :  { %62 = vst.msk [vmem:[#allocation2 + $0x150] sm:$0xff] %vm19_vm1, %v1294_v28 }
  0x2c   :  { %63 = vst.msk [vmem:[#allocation2 + $0x158] sm:$0xff] %vm19_vm1, %v1294_v28 }
  0x2d   :  { %64 = vst.msk [vmem:[#allocation2 + $0x160] sm:$0xff] %vm19_vm1, %v1294_v28 }
  0x2e   :  { %65 = vst.msk [vmem:[#allocation2 + $0x168] sm:$0xff] %vm19_vm1, %v1294_v28 }
  0x2f   :  { %66 = vst.msk [vmem:[#allocation2 + $0x170] sm:$0xff] %vm19_vm1, %v1294_v28 }
  0x30   :  { %67 = vst.msk [vmem:[#allocation2 + $0x178] sm:$0xff] %vm19_vm1, %v1294_v28 }
  0x31   :  { %1213 = vmatmul.msk.bf16.gmra.mxu0 %vm404_vm0, %v1245_v12  ;;  %1221 = vmatmul.msk.bf16.gmra.mxu1 %vm404_vm0, %v1253_v13  ;;  %68 = vst.msk [vmem:[#allocation2 + $0x180] sm:$0xff] %vm19_vm1, %v1294_v28  ;;  %v151_v13 = vld [vmem:[#allocation2 + $0x18] sm:$0xff] }
  0x32   :  { %1229 = vmatmul.msk.bf16.gmra.mxu2 %vm404_vm0, %v1261_v14  ;;  %1237 = vmatmul.msk.bf16.gmra.mxu3 %vm404_vm0, %v1269_v15  ;;  %69 = vst.msk [vmem:[#allocation2 + $0x188] sm:$0xff] %vm19_vm1, %v1294_v28 }
  0x33   :  { %70 = vst.msk [vmem:[#allocation2 + $0x190] sm:$0xff] %vm19_vm1, %v1294_v28 }
  0x34   :  { %71 = vst.msk [vmem:[#allocation2 + $0x198] sm:$0xff] %vm19_vm1, %v1294_v28 }
  0x35   :  { %72 = vst.msk [vmem:[#allocation2 + $0x1a0] sm:$0xff] %vm19_vm1, %v1294_v28 }
  0x36   :  { %73 = vst.msk [vmem:[#allocation2 + $0x1a8] sm:$0xff] %vm19_vm1, %v1294_v28 }
  0x37   :  { %74 = vst.msk [vmem:[#allocation2 + $0x1b0] sm:$0xff] %vm19_vm1, %v1294_v28 }
  0x38   :  { %75 = vst.msk [vmem:[#allocation2 + $0x1b8] sm:$0xff] %vm19_vm1, %v1294_v28  ;;  %v196_v55 = vld [vmem:[#allocation2 + $0x180] sm:$0xff] }
  0x39   :  { %76 = vst.msk [vmem:[#allocation2 + $0x1c0] sm:$0xff] %vm19_vm1, %v1294_v28  ;;  %v197_v63 = vld [vmem:[#allocation2 + $0x188] sm:$0xff] }
  0x3a   :  { %77 = vst.msk [vmem:[#allocation2 + $0x1c8] sm:$0xff] %vm19_vm1, %v1294_v28  ;;  %v198_v11 = vld [vmem:[#allocation2 + $0x190] sm:$0xff] }
  0x3b   :  { %78 = vst.msk [vmem:[#allocation2 + $0x1d0] sm:$0xff] %vm19_vm1, %v1294_v28 }
  0x3c   :  { %79 = vst.msk [vmem:[#allocation2 + $0x1d8] sm:$0xff] %vm19_vm1, %v1294_v28 }
  0x3d   :  { %80 = vst.msk [vmem:[#allocation2 + $0x1e0] sm:$0xff] %vm19_vm1, %v1294_v28 }
  0x3e   :  { %81 = vst.msk [vmem:[#allocation2 + $0x1e8] sm:$0xff] %vm19_vm1, %v1294_v28 }
  0x3f   :  { %82 = vst.msk [vmem:[#allocation2 + $0x1f0] sm:$0xff] %vm19_vm1, %v1294_v28 }
  0x40   :  { %83 = vst.msk [vmem:[#allocation2 + $0x1f8] sm:$0xff] %vm19_vm1, %v1294_v28 }
  0x41   :  { %1214 = vmatmul.msk.bf16.gmra.mxu0 %vm404_vm0, %v1246_v16  ;;  %1222 = vmatmul.msk.bf16.gmra.mxu1 %vm404_vm0, %v1254_v17 }
  0x42   :  { %1230 = vmatmul.msk.bf16.gmra.mxu2 %vm404_vm0, %v1262_v18  ;;  %1238 = vmatmul.msk.bf16.gmra.mxu3 %vm404_vm0, %v1270_v19 }
  0x51   :  { %1215 = vmatmul.msk.bf16.gmra.mxu0 %vm404_vm0, %v1247_v20  ;;  %1223 = vmatmul.msk.bf16.gmra.mxu1 %vm404_vm0, %v1255_v21 }
  0x52   :  { %1231 = vmatmul.msk.bf16.gmra.mxu2 %vm404_vm0, %v1263_v22  ;;  %1239 = vmatmul.msk.bf16.gmra.mxu3 %vm404_vm0, %v1271_v23 }
  0x61   :  { %1216 = vmatmul.msk.bf16.gmra.mxu0 %vm404_vm0, %v1248_v24  ;;  %1224 = vmatmul.msk.bf16.gmra.mxu1 %vm404_vm0, %v1256_v25 }
  0x62   :  { %1232 = vmatmul.msk.bf16.gmra.mxu2 %vm404_vm0, %v1264_v26  ;;  %1240 = vmatmul.msk.bf16.gmra.mxu3 %vm404_vm0, %v1272_v27 }
  0x71   :  { %1217 = vmatmul.msk.bf16.gmra.mxu0 %vm404_vm0, %v1249_v29  ;;  %1225 = vmatmul.msk.bf16.gmra.mxu1 %vm404_vm0, %v1257_v30 }
  0x72   :  { %1233 = vmatmul.msk.bf16.gmra.mxu2 %vm404_vm0, %v1265_v31  ;;  %1241 = vmatmul.msk.bf16.gmra.mxu3 %vm404_vm0, %v1273_v32 }
  0x81   :  { %1218 = vmatmul.msk.bf16.gmra.mxu0 %vm404_vm0, %v1250_v33  ;;  %1226 = vmatmul.msk.bf16.gmra.mxu1 %vm404_vm0, %v1258_v34 }
  0x82   :  { %1234 = vmatmul.msk.bf16.gmra.mxu2 %vm404_vm0, %v1266_v35  ;;  %1242 = vmatmul.msk.bf16.gmra.mxu3 %vm404_vm0, %v1274_v36 }
  0x8e   :  { %v510_v38 = vpop.f32.mrf.mxu0  ;;  %v550_v39 = vpop.f32.mrf.mxu1 }
  0x8f   :  { %v670_v40 = vadd.f32 %v510_v38, %v148_v37  ;;  %v686_v56 = vadd.f32 %v550_v39, %v164_v51 }
  0x91   :  { %735 = vst.msk [vmem:[#allocation2] sm:$0xff] %vm19_vm1, %v670_v40 }
  0x92   :  { %751 = vst.msk [vmem:[#allocation2 + $0x80] sm:$0xff] %vm19_vm1, %v686_v56 }
  0x95   :  { %v590_v42 = vpop.f32.mrf.mxu2  ;;  %v630_v43 = vpop.f32.mrf.mxu3 }
  0x96   :  { %v512_v44 = vpop.f32.mrf.mxu0  ;;  %v552_v45 = vpop.f32.mrf.mxu1  ;;  %v702_v58 = vadd.f32 %v590_v42, %v180_v54  ;;  %v718_v60 = vadd.f32 %v630_v43, %v196_v55 }
  0x97   :  { %v671_v62 = vadd.f32 %v512_v44, %v149_v57  ;;  %v687_v0 = vadd.f32 %v552_v45, %v165_v59  ;;  %v183_v59 = vld [vmem:[#allocation2 + $0x118] sm:$0xff] }
  0x98   :  { %v802_v46 = vld [vmem:[#allocation2] sm:$0xff]  ;;  %767 = vst.msk [vmem:[#allocation2 + $0x100] sm:$0xff] %vm19_vm1, %v702_v58 }
  0x99   :  { %v870_v47 = vadd.f32 %v1557_v41, %v802_v46  ;;  %783 = vst.msk [vmem:[#allocation2 + $0x180] sm:$0xff] %vm19_vm1, %v718_v60  ;;  %v818_v16 = vld [vmem:[#allocation2 + $0x80] sm:$0xff] }
  0x9a   :  { %736 = vst.msk [vmem:[#allocation2 + $0x8] sm:$0xff] %vm19_vm1, %v671_v62  ;;  %v886_v18 = vadd.f32 %v1557_v41, %v818_v16  ;;  %v199_v62 = vld [vmem:[#allocation2 + $0x198] sm:$0xff] }
  0x9b   :  { %v934_v48 = vpack.c.bf16 %v870_v47, %v870_v47  ;;  %752 = vst.msk [vmem:[#allocation2 + $0x88] sm:$0xff] %vm19_vm1, %v687_v0 }
  0x9c   :  { %v950_v26 = vpack.c.bf16 %v886_v18, %v886_v18  ;;  %v185_v18 = vld [vmem:[#allocation2 + $0x128] sm:$0xff] }
  0x9d   :  { %999 = vst.msk [vmem:[%s1984_s3] sm:$0xf] %vm998_vm2, %v934_v48  ;;  %v592_v49 = vpop.f32.mrf.mxu2  ;;  %v632_v50 = vpop.f32.mrf.mxu3 }
  0x9e   :  { %v515_v52 = vpop.f32.mrf.mxu0  ;;  %v555_v53 = vpop.f32.mrf.mxu1  ;;  %v703_v4 = vadd.f32 %v592_v49, %v181_v61  ;;  %v719_v8 = vadd.f32 %v632_v50, %v197_v63  ;;  %1015 = vst.msk [vmem:[%s1984_s3 + $0x40] sm:$0xf] %vm998_vm2, %v950_v26 }
  0x9f   :  { %v672_v10 = vadd.f32 %v515_v52, %v150_v1  ;;  %v688_v12 = vadd.f32 %v555_v53, %v166_v5  ;;  %v834_v19 = vld [vmem:[#allocation2 + $0x100] sm:$0xff]  ;;  %v167_v53 = vld [vmem:[#allocation2 + $0x98] sm:$0xff] }
  0xa0   :  { %768 = vst.msk [vmem:[#allocation2 + $0x108] sm:$0xff] %vm19_vm1, %v703_v4  ;;  %v902_v22 = vadd.f32 %v1557_v41, %v834_v19  ;;  %v850_v23 = vld [vmem:[#allocation2 + $0x180] sm:$0xff] }
  0xa1   :  { %784 = vst.msk [vmem:[#allocation2 + $0x188] sm:$0xff] %vm19_vm1, %v719_v8  ;;  %v918_v27 = vadd.f32 %v1557_v41, %v850_v23  ;;  %v803_v28 = vld [vmem:[#allocation2 + $0x8] sm:$0xff]  ;;  %v152_v1 = vld [vmem:[#allocation2 + $0x20] sm:$0xff] }
  0xa2   :  { %737 = vst.msk [vmem:[#allocation2 + $0x10] sm:$0xff] %vm19_vm1, %v672_v10  ;;  %v966_v29 = vpack.c.bf16 %v902_v22, %v902_v22  ;;  %v871_v30 = vadd.f32 %v1557_v41, %v803_v28  ;;  %v819_v31 = vld [vmem:[#allocation2 + $0x88] sm:$0xff]  ;;  %v168_v4 = vld [vmem:[#allocation2 + $0xa0] sm:$0xff]  ;;  %v154_v22 = vld [vmem:[#allocation2 + $0x30] sm:$0xff] }
  0xa3   :  { %753 = vst.msk [vmem:[#allocation2 + $0x90] sm:$0xff] %vm19_vm1, %v688_v12  ;;  %v982_v32 = vpack.c.bf16 %v918_v27, %v918_v27  ;;  %v887_v33 = vadd.f32 %v1557_v41, %v819_v31  ;;  %v200_v8 = vld [vmem:[#allocation2 + $0x1a0] sm:$0xff]  ;;  %v153_v10 = vld [vmem:[#allocation2 + $0x28] sm:$0xff] }
  0xa4   :  { %1031 = vst.msk [vmem:[%s1984_s3 + $0x80] sm:$0xf] %vm998_vm2, %v966_v29  ;;  %v935_v35 = vpack.c.bf16 %v871_v30, %v871_v30 }
  0xa5   :  { %v595_v2 = vpop.f32.mrf.mxu2  ;;  %v635_v3 = vpop.f32.mrf.mxu3  ;;  %1047 = vst.msk [vmem:[%s1984_s3 + $0xc0] sm:$0xf] %vm998_vm2, %v982_v32  ;;  %v951_v38 = vpack.c.bf16 %v887_v33, %v887_v33 }
  0xa6   :  { %v517_v6 = vpop.f32.mrf.mxu0  ;;  %v1596_v7 = vpop.f32.mrf.mxu1  ;;  %v704_v14 = vadd.f32 %v595_v2, %v182_v9  ;;  %v720_v15 = vadd.f32 %v635_v3, %v198_v11  ;;  %1000 = vst.msk [vmem:[%s1984_s3 + $0x4] sm:$0xf] %vm998_vm2, %v935_v35 }
  0xa7   :  { %v673_v17 = vadd.f32 %v517_v6, %v151_v13  ;;  %v835_v34 = vld [vmem:[#allocation2 + $0x108] sm:$0xff]  ;;  %1016 = vst.msk [vmem:[%s1984_s3 + $0x44] sm:$0xf] %vm998_vm2, %v951_v38  ;;  %v689_v0 = vadd.f32 %v1596_v7, %v167_v53  ;;  %v184_v6 = vld [vmem:[#allocation2 + $0x120] sm:$0xff] }
  0xa8   :  { %769 = vst.msk [vmem:[#allocation2 + $0x110] sm:$0xff] %vm19_vm1, %v704_v14  ;;  %v903_v36 = vadd.f32 %v1557_v41, %v835_v34  ;;  %v851_v37 = vld [vmem:[#allocation2 + $0x188] sm:$0xff] }
  0xa9   :  { %785 = vst.msk [vmem:[#allocation2 + $0x190] sm:$0xff] %vm19_vm1, %v720_v15  ;;  %v919_v39 = vadd.f32 %v1557_v41, %v851_v37  ;;  %v804_v40 = vld [vmem:[#allocation2 + $0x10] sm:$0xff]  ;;  %v169_v14 = vld [vmem:[#allocation2 + $0xa8] sm:$0xff] }
  0xaa   :  { %738 = vst.msk [vmem:[#allocation2 + $0x18] sm:$0xff] %vm19_vm1, %v673_v17  ;;  %v967_v42 = vpack.c.bf16 %v903_v36, %v903_v36  ;;  %v872_v43 = vadd.f32 %v1557_v41, %v804_v40  ;;  %v820_v44 = vld [vmem:[#allocation2 + $0x90] sm:$0xff] }
  0xab   :  { %v983_v45 = vpack.c.bf16 %v919_v39, %v919_v39  ;;  %v888_v46 = vadd.f32 %v1557_v41, %v820_v44  ;;  %754 = vst.msk [vmem:[#allocation2 + $0x98] sm:$0xff] %vm19_vm1, %v689_v0 }
  0xac   :  { %1032 = vst.msk [vmem:[%s1984_s3 + $0x84] sm:$0xf] %vm998_vm2, %v967_v42  ;;  %v936_v50 = vpack.c.bf16 %v872_v43, %v872_v43 }
  0xad   :  { %v597_v20 = vpop.f32.mrf.mxu2  ;;  %v637_v21 = vpop.f32.mrf.mxu3  ;;  %1048 = vst.msk [vmem:[%s1984_s3 + $0xc4] sm:$0xf] %vm998_vm2, %v983_v45  ;;  %v952_v56 = vpack.c.bf16 %v888_v46, %v888_v46 }
  0xae   :  { %v520_v24 = vpop.f32.mrf.mxu0  ;;  %v560_v25 = vpop.f32.mrf.mxu1  ;;  %1001 = vst.msk [vmem:[%s1984_s3 + $0x8] sm:$0xf] %vm998_vm2, %v936_v50  ;;  %v705_v3 = vadd.f32 %v597_v20, %v183_v59  ;;  %v721_v5 = vadd.f32 %v637_v21, %v199_v62  ;;  %v201_v20 = vld [vmem:[#allocation2 + $0x1a8] sm:$0xff]  ;;  %v170_v62 = vld [vmem:[#allocation2 + $0xb0] sm:$0xff] }
  0xaf   :  { %v836_v47 = vld [vmem:[#allocation2 + $0x110] sm:$0xff]  ;;  %1017 = vst.msk [vmem:[%s1984_s3 + $0x48] sm:$0xf] %vm998_vm2, %v952_v56  ;;  %v674_v7 = vadd.f32 %v520_v24, %v152_v1  ;;  %v690_v9 = vadd.f32 %v560_v25, %v168_v4 }
  0xb0   :  { %v904_v51 = vadd.f32 %v1557_v41, %v836_v47  ;;  %v852_v52 = vld [vmem:[#allocation2 + $0x190] sm:$0xff]  ;;  %770 = vst.msk [vmem:[#allocation2 + $0x118] sm:$0xff] %vm19_vm1, %v705_v3 }
  0xb1   :  { %v920_v57 = vadd.f32 %v1557_v41, %v852_v52  ;;  %v805_v58 = vld [vmem:[#allocation2 + $0x18] sm:$0xff]  ;;  %786 = vst.msk [vmem:[#allocation2 + $0x198] sm:$0xff] %vm19_vm1, %v721_v5  ;;  %v186_v4 = vld [vmem:[#allocation2 + $0x130] sm:$0xff] }
  0xb2   :  { %v968_v60 = vpack.c.bf16 %v904_v51, %v904_v51  ;;  %v873_v61 = vadd.f32 %v1557_v41, %v805_v58  ;;  %739 = vst.msk [vmem:[#allocation2 + $0x20] sm:$0xff] %vm19_vm1, %v674_v7  ;;  %v821_v25 = vld [vmem:[#allocation2 + $0x98] sm:$0xff]  ;;  %v202_v7 = vld [vmem:[#allocation2 + $0x1b0] sm:$0xff] }
  0xb3   :  { %v984_v63 = vpack.c.bf16 %v920_v57, %v920_v57  ;;  %755 = vst.msk [vmem:[#allocation2 + $0xa0] sm:$0xff] %vm19_vm1, %v690_v9  ;;  %v889_v27 = vadd.f32 %v1557_v41, %v821_v25 }
  0xb4   :  { %1033 = vst.msk [vmem:[%s1984_s3 + $0x88] sm:$0xf] %vm998_vm2, %v968_v60  ;;  %v937_v2 = vpack.c.bf16 %v873_v61, %v873_v61 }
  0xb5   :  { %v600_v48 = vpop.f32.mrf.mxu2  ;;  %v640_v49 = vpop.f32.mrf.mxu3  ;;  %1049 = vst.msk [vmem:[%s1984_s3 + $0xc8] sm:$0xf] %vm998_vm2, %v984_v63  ;;  %v953_v35 = vpack.c.bf16 %v889_v27, %v889_v27  ;;  %v188_v27 = vld [vmem:[#allocation2 + $0x140] sm:$0xff] }
  0xb6   :  { %v522_v54 = vpop.f32.mrf.mxu0  ;;  %v562_v55 = vpop.f32.mrf.mxu1  ;;  %1002 = vst.msk [vmem:[%s1984_s3 + $0xc] sm:$0xf] %vm998_vm2, %v937_v2  ;;  %v706_v13 = vadd.f32 %v600_v48, %v184_v6  ;;  %v722_v17 = vadd.f32 %v640_v49, %v200_v8 }
  0xb7   :  { %v675_v19 = vadd.f32 %v522_v54, %v153_v10  ;;  %v691_v21 = vadd.f32 %v562_v55, %v169_v14  ;;  %v837_v28 = vld [vmem:[#allocation2 + $0x118] sm:$0xff]  ;;  %1018 = vst.msk [vmem:[%s1984_s3 + $0x4c] sm:$0xf] %vm998_vm2, %v953_v35 }
  0xb8   :  { %771 = vst.msk [vmem:[#allocation2 + $0x120] sm:$0xff] %vm19_vm1, %v706_v13  ;;  %v905_v31 = vadd.f32 %v1557_v41, %v837_v28  ;;  %v853_v32 = vld [vmem:[#allocation2 + $0x198] sm:$0xff] }
  0xb9   :  { %787 = vst.msk [vmem:[#allocation2 + $0x1a0] sm:$0xff] %vm19_vm1, %v722_v17  ;;  %v921_v36 = vadd.f32 %v1557_v41, %v853_v32  ;;  %v806_v37 = vld [vmem:[#allocation2 + $0x20] sm:$0xff]  ;;  %v155_v10 = vld [vmem:[#allocation2 + $0x38] sm:$0xff] }
  0xba   :  { %740 = vst.msk [vmem:[#allocation2 + $0x28] sm:$0xff] %vm19_vm1, %v675_v19  ;;  %v969_v38 = vpack.c.bf16 %v905_v31, %v905_v31  ;;  %v874_v39 = vadd.f32 %v1557_v41, %v806_v37  ;;  %v822_v40 = vld [vmem:[#allocation2 + $0xa0] sm:$0xff]  ;;  %v171_v13 = vld [vmem:[#allocation2 + $0xb8] sm:$0xff]  ;;  %v157_v31 = vld [vmem:[#allocation2 + $0x48] sm:$0xff] }
  0xbb   :  { %756 = vst.msk [vmem:[#allocation2 + $0xa8] sm:$0xff] %vm19_vm1, %v691_v21  ;;  %v985_v42 = vpack.c.bf16 %v921_v36, %v921_v36  ;;  %v890_v43 = vadd.f32 %v1557_v41, %v822_v40  ;;  %v203_v17 = vld [vmem:[#allocation2 + $0x1b8] sm:$0xff]  ;;  %v156_v19 = vld [vmem:[#allocation2 + $0x40] sm:$0xff] }
  0xbc   :  { %1034 = vst.msk [vmem:[%s1984_s3 + $0x8c] sm:$0xf] %vm998_vm2, %v969_v38  ;;  %v938_v45 = vpack.c.bf16 %v874_v39, %v874_v39 }
  0xbd   :  { %v602_v11 = vpop.f32.mrf.mxu2  ;;  %v642_v12 = vpop.f32.mrf.mxu3  ;;  %1050 = vst.msk [vmem:[%s1984_s3 + $0xcc] sm:$0xf] %vm998_vm2, %v985_v42  ;;  %v954_v48 = vpack.c.bf16 %v890_v43, %v890_v43 }
  0xbe   :  { %v525_v15 = vpop.f32.mrf.mxu0  ;;  %v1671_v16 = vpop.f32.mrf.mxu1  ;;  %v707_v23 = vadd.f32 %v602_v11, %v185_v18  ;;  %v723_v24 = vadd.f32 %v642_v12, %v201_v20  ;;  %1003 = vst.msk [vmem:[%s1984_s3 + $0x10] sm:$0xf] %vm998_vm2, %v938_v45 }
  0xbf   :  { %v676_v26 = vadd.f32 %v525_v15, %v154_v22  ;;  %v838_v44 = vld [vmem:[#allocation2 + $0x120] sm:$0xff]  ;;  %1019 = vst.msk [vmem:[%s1984_s3 + $0x50] sm:$0xf] %vm998_vm2, %v954_v48  ;;  %v692_v9 = vadd.f32 %v1671_v16, %v170_v62  ;;  %v187_v15 = vld [vmem:[#allocation2 + $0x138] sm:$0xff] }
  0xc0   :  { %772 = vst.msk [vmem:[#allocation2 + $0x128] sm:$0xff] %vm19_vm1, %v707_v23  ;;  %v906_v46 = vadd.f32 %v1557_v41, %v838_v44  ;;  %v854_v47 = vld [vmem:[#allocation2 + $0x1a0] sm:$0xff] }
  0xc1   :  { %788 = vst.msk [vmem:[#allocation2 + $0x1a8] sm:$0xff] %vm19_vm1, %v723_v24  ;;  %v922_v49 = vadd.f32 %v1557_v41, %v854_v47  ;;  %v807_v50 = vld [vmem:[#allocation2 + $0x28] sm:$0xff]  ;;  %v172_v23 = vld [vmem:[#allocation2 + $0xc0] sm:$0xff] }
  0xc2   :  { %741 = vst.msk [vmem:[#allocation2 + $0x30] sm:$0xff] %vm19_vm1, %v676_v26  ;;  %v970_v51 = vpack.c.bf16 %v906_v46, %v906_v46  ;;  %v875_v52 = vadd.f32 %v1557_v41, %v807_v50  ;;  %v823_v53 = vld [vmem:[#allocation2 + $0xa8] sm:$0xff] }
  0xc3   :  { %v986_v54 = vpack.c.bf16 %v922_v49, %v922_v49  ;;  %v891_v55 = vadd.f32 %v1557_v41, %v823_v53  ;;  %757 = vst.msk [vmem:[#allocation2 + $0xb0] sm:$0xff] %vm19_vm1, %v692_v9 }
  0xc4   :  { %1035 = vst.msk [vmem:[%s1984_s3 + $0x90] sm:$0xf] %vm998_vm2, %v970_v51  ;;  %v939_v59 = vpack.c.bf16 %v875_v52, %v875_v52 }
  0xc5   :  { %v605_v29 = vpop.f32.mrf.mxu2  ;;  %v645_v30 = vpop.f32.mrf.mxu3  ;;  %1051 = vst.msk [vmem:[%s1984_s3 + $0xd0] sm:$0xf] %vm998_vm2, %v986_v54  ;;  %v955_v1 = vpack.c.bf16 %v891_v55, %v891_v55 }
  0xc6   :  { %v527_v33 = vpop.f32.mrf.mxu0  ;;  %v567_v34 = vpop.f32.mrf.mxu1  ;;  %1004 = vst.msk [vmem:[%s1984_s3 + $0x14] sm:$0xf] %vm998_vm2, %v939_v59  ;;  %v708_v12 = vadd.f32 %v605_v29, %v186_v4  ;;  %v724_v14 = vadd.f32 %v645_v30, %v202_v7  ;;  %v204_v29 = vld [vmem:[#allocation2 + $0x1c0] sm:$0xff]  ;;  %v173_v7 = vld [vmem:[#allocation2 + $0xc8] sm:$0xff] }
  0xc7   :  { %v839_v56 = vld [vmem:[#allocation2 + $0x128] sm:$0xff]  ;;  %1020 = vst.msk [vmem:[%s1984_s3 + $0x54] sm:$0xf] %vm998_vm2, %v955_v1  ;;  %v677_v16 = vadd.f32 %v527_v33, %v155_v10  ;;  %v693_v18 = vadd.f32 %v567_v34, %v171_v13 }
  0xc8   :  { %v907_v60 = vadd.f32 %v1557_v41, %v839_v56  ;;  %v855_v61 = vld [vmem:[#allocation2 + $0x1a8] sm:$0xff]  ;;  %773 = vst.msk [vmem:[#allocation2 + $0x130] sm:$0xff] %vm19_vm1, %v708_v12 }
  0xc9   :  { %v923_v2 = vadd.f32 %v1557_v41, %v855_v61  ;;  %v808_v3 = vld [vmem:[#allocation2 + $0x30] sm:$0xff]  ;;  %789 = vst.msk [vmem:[#allocation2 + $0x1b0] sm:$0xff] %vm19_vm1, %v724_v14  ;;  %v189_v12 = vld [vmem:[#allocation2 + $0x148] sm:$0xff] }
  0xca   :  { %v971_v5 = vpack.c.bf16 %v907_v60, %v907_v60  ;;  %v876_v6 = vadd.f32 %v1557_v41, %v808_v3  ;;  %742 = vst.msk [vmem:[#allocation2 + $0x38] sm:$0xff] %vm19_vm1, %v677_v16  ;;  %v824_v34 = vld [vmem:[#allocation2 + $0xb0] sm:$0xff] }
  0xcb   :  { %v987_v8 = vpack.c.bf16 %v923_v2, %v923_v2  ;;  %758 = vst.msk [vmem:[#allocation2 + $0xb8] sm:$0xff] %vm19_vm1, %v693_v18  ;;  %v892_v36 = vadd.f32 %v1557_v41, %v824_v34  ;;  %v158_v18 = vld [vmem:[#allocation2 + $0x50] sm:$0xff] }
  0xcc   :  { %1036 = vst.msk [vmem:[%s1984_s3 + $0x94] sm:$0xf] %vm998_vm2, %v971_v5  ;;  %v940_v11 = vpack.c.bf16 %v876_v6, %v876_v6 }
  0xcd   :  { %v607_v57 = vpop.f32.mrf.mxu2  ;;  %v647_v58 = vpop.f32.mrf.mxu3  ;;  %1052 = vst.msk [vmem:[%s1984_s3 + $0xd4] sm:$0xf] %vm998_vm2, %v987_v8  ;;  %v956_v44 = vpack.c.bf16 %v892_v36, %v892_v36 }
  0xce   :  { %v530_v63 = vpop.f32.mrf.mxu0  ;;  %v570_v0 = vpop.f32.mrf.mxu1  ;;  %1005 = vst.msk [vmem:[%s1984_s3 + $0x18] sm:$0xf] %vm998_vm2, %v940_v11  ;;  %v709_v22 = vadd.f32 %v607_v57, %v187_v15  ;;  %v725_v26 = vadd.f32 %v647_v58, %v203_v17  ;;  %v205_v15 = vld [vmem:[#allocation2 + $0x1c8] sm:$0xff] }
  0xcf   :  { %v678_v28 = vadd.f32 %v530_v63, %v156_v19  ;;  %v694_v30 = vadd.f32 %v570_v0, %v172_v23  ;;  %v840_v37 = vld [vmem:[#allocation2 + $0x130] sm:$0xff]  ;;  %1021 = vst.msk [vmem:[%s1984_s3 + $0x58] sm:$0xf] %vm998_vm2, %v956_v44 }
  0xd0   :  { %774 = vst.msk [vmem:[#allocation2 + $0x138] sm:$0xff] %vm19_vm1, %v709_v22  ;;  %v908_v40 = vadd.f32 %v1557_v41, %v840_v37  ;;  %v856_v42 = vld [vmem:[#allocation2 + $0x1b0] sm:$0xff]  ;;  %v207_v37 = vld [vmem:[#allocation2 + $0x1d8] sm:$0xff] }
  0xd1   :  { %790 = vst.msk [vmem:[#allocation2 + $0x1b8] sm:$0xff] %vm19_vm1, %v725_v26  ;;  %v924_v45 = vadd.f32 %v1557_v41, %v856_v42  ;;  %v809_v46 = vld [vmem:[#allocation2 + $0x38] sm:$0xff]  ;;  %v206_v26 = vld [vmem:[#allocation2 + $0x1d0] sm:$0xff] }
  0xd2   :  { %743 = vst.msk [vmem:[#allocation2 + $0x40] sm:$0xff] %vm19_vm1, %v678_v28  ;;  %v972_v47 = vpack.c.bf16 %v908_v40, %v908_v40  ;;  %v877_v48 = vadd.f32 %v1557_v41, %v809_v46  ;;  %v825_v49 = vld [vmem:[#allocation2 + $0xb8] sm:$0xff] }
  0xd3   :  { %759 = vst.msk [vmem:[#allocation2 + $0xc0] sm:$0xff] %vm19_vm1, %v694_v30  ;;  %v988_v51 = vpack.c.bf16 %v924_v45, %v924_v45  ;;  %v893_v52 = vadd.f32 %v1557_v41, %v825_v49  ;;  %v159_v28 = vld [vmem:[#allocation2 + $0x58] sm:$0xff] }
  0xd4   :  { %1037 = vst.msk [vmem:[%s1984_s3 + $0x98] sm:$0xf] %vm998_vm2, %v972_v47  ;;  %v941_v54 = vpack.c.bf16 %v877_v48, %v877_v48 }
  0xd5   :  { %v610_v20 = vpop.f32.mrf.mxu2  ;;  %v650_v21 = vpop.f32.mrf.mxu3  ;;  %1053 = vst.msk [vmem:[%s1984_s3 + $0xd8] sm:$0xf] %vm998_vm2, %v988_v51  ;;  %v957_v57 = vpack.c.bf16 %v893_v52, %v893_v52 }
  0xd6   :  { %v532_v24 = vpop.f32.mrf.mxu0  ;;  %v1746_v25 = vpop.f32.mrf.mxu1  ;;  %v710_v32 = vadd.f32 %v610_v20, %v188_v27  ;;  %v726_v33 = vadd.f32 %v650_v21, %v204_v29  ;;  %1006 = vst.msk [vmem:[%s1984_s3 + $0x1c] sm:$0xf] %vm998_vm2, %v941_v54  ;;  %v174_v21 = vld [vmem:[#allocation2 + $0xd0] sm:$0xff] }
  0xd7   :  { %v679_v35 = vadd.f32 %v532_v24, %v157_v31  ;;  %v841_v53 = vld [vmem:[#allocation2 + $0x138] sm:$0xff]  ;;  %1022 = vst.msk [vmem:[%s1984_s3 + $0x5c] sm:$0xf] %vm998_vm2, %v957_v57  ;;  %v695_v17 = vadd.f32 %v1746_v25, %v173_v7  ;;  %v190_v24 = vld [vmem:[#allocation2 + $0x150] sm:$0xff] }
  0xd8   :  { %775 = vst.msk [vmem:[#allocation2 + $0x140] sm:$0xff] %vm19_vm1, %v710_v32  ;;  %v909_v55 = vadd.f32 %v1557_v41, %v841_v53  ;;  %v857_v56 = vld [vmem:[#allocation2 + $0x1b8] sm:$0xff] }
  0xd9   :  { %791 = vst.msk [vmem:[#allocation2 + $0x1c0] sm:$0xff] %vm19_vm1, %v726_v33  ;;  %v925_v58 = vadd.f32 %v1557_v41, %v857_v56  ;;  %v810_v59 = vld [vmem:[#allocation2 + $0x40] sm:$0xff]  ;;  %v175_v32 = vld [vmem:[#allocation2 + $0xd8] sm:$0xff] }
  0xda   :  { %744 = vst.msk [vmem:[#allocation2 + $0x48] sm:$0xff] %vm19_vm1, %v679_v35  ;;  %v973_v60 = vpack.c.bf16 %v909_v55, %v909_v55  ;;  %v878_v61 = vadd.f32 %v1557_v41, %v810_v59  ;;  %v826_v62 = vld [vmem:[#allocation2 + $0xc0] sm:$0xff]  ;;  %v191_v35 = vld [vmem:[#allocation2 + $0x158] sm:$0xff] }
  0xdb   :  { %v989_v63 = vpack.c.bf16 %v925_v58, %v925_v58  ;;  %v894_v0 = vadd.f32 %v1557_v41, %v826_v62  ;;  %760 = vst.msk [vmem:[#allocation2 + $0xc8] sm:$0xff] %vm19_vm1, %v695_v17 }
  0xdc   :  { %1038 = vst.msk [vmem:[%s1984_s3 + $0x9c] sm:$0xf] %vm998_vm2, %v973_v60  ;;  %v942_v4 = vpack.c.bf16 %v878_v61, %v878_v61 }
  0xdd   :  { %v612_v38 = vpop.f32.mrf.mxu2  ;;  %v652_v39 = vpop.f32.mrf.mxu3  ;;  %1054 = vst.msk [vmem:[%s1984_s3 + $0xdc] sm:$0xf] %vm998_vm2, %v989_v63  ;;  %v958_v9 = vpack.c.bf16 %v894_v0, %v894_v0 }
  0xde   :  { %v535_v43 = vpop.f32.mrf.mxu0  ;;  %v575_v50 = vpop.f32.mrf.mxu1  ;;  %1007 = vst.msk [vmem:[%s1984_s3 + $0x20] sm:$0xf] %vm998_vm2, %v942_v4  ;;  %v711_v20 = vadd.f32 %v612_v38, %v189_v12  ;;  %v727_v23 = vadd.f32 %v652_v39, %v205_v15  ;;  %v160_v39 = vld [vmem:[#allocation2 + $0x60] sm:$0xff] }
  0xdf   :  { %v842_v1 = vld [vmem:[#allocation2 + $0x140] sm:$0xff]  ;;  %1023 = vst.msk [vmem:[%s1984_s3 + $0x60] sm:$0xf] %vm998_vm2, %v958_v9  ;;  %v680_v25 = vadd.f32 %v535_v43, %v158_v18  ;;  %v696_v27 = vadd.f32 %v575_v50, %v174_v21 }
  0xe0   :  { %v910_v5 = vadd.f32 %v1557_v41, %v842_v1  ;;  %v858_v6 = vld [vmem:[#allocation2 + $0x1c0] sm:$0xff]  ;;  %776 = vst.msk [vmem:[#allocation2 + $0x148] sm:$0xff] %vm19_vm1, %v711_v20 }
  0xe1   :  { %v926_v10 = vadd.f32 %v1557_v41, %v858_v6  ;;  %v811_v11 = vld [vmem:[#allocation2 + $0x48] sm:$0xff]  ;;  %792 = vst.msk [vmem:[#allocation2 + $0x1c8] sm:$0xff] %vm19_vm1, %v727_v23  ;;  %v192_v20 = vld [vmem:[#allocation2 + $0x160] sm:$0xff] }
  0xe2   :  { %v974_v13 = vpack.c.bf16 %v910_v5, %v910_v5  ;;  %v879_v14 = vadd.f32 %v1557_v41, %v811_v11  ;;  %745 = vst.msk [vmem:[#allocation2 + $0x50] sm:$0xff] %vm19_vm1, %v680_v25  ;;  %v827_v43 = vld [vmem:[#allocation2 + $0xc8] sm:$0xff] }
  0xe3   :  { %v990_v16 = vpack.c.bf16 %v926_v10, %v926_v10  ;;  %761 = vst.msk [vmem:[#allocation2 + $0xd0] sm:$0xff] %vm19_vm1, %v696_v27  ;;  %v895_v46 = vadd.f32 %v1557_v41, %v827_v43  ;;  %v161_v27 = vld [vmem:[#allocation2 + $0x68] sm:$0xff] }
  0xe4   :  { %1039 = vst.msk [vmem:[%s1984_s3 + $0xa0] sm:$0xf] %vm998_vm2, %v974_v13  ;;  %v943_v19 = vpack.c.bf16 %v879_v14, %v879_v14  ;;  %v176_v14 = vld [vmem:[#allocation2 + $0xe0] sm:$0xff] }
  0xe5   :  { %v615_v2 = vpop.f32.mrf.mxu2  ;;  %v655_v3 = vpop.f32.mrf.mxu3  ;;  %1055 = vst.msk [vmem:[%s1984_s3 + $0xe0] sm:$0xf] %vm998_vm2, %v990_v16  ;;  %v959_v53 = vpack.c.bf16 %v895_v46, %v895_v46 }
  0xe6   :  { %v537_v8 = vpop.f32.mrf.mxu0  ;;  %v577_v22 = vpop.f32.mrf.mxu1  ;;  %1008 = vst.msk [vmem:[%s1984_s3 + $0x24] sm:$0xf] %vm998_vm2, %v943_v19  ;;  %v712_v31 = vadd.f32 %v615_v2, %v190_v24  ;;  %v728_v34 = vadd.f32 %v655_v3, %v206_v26  ;;  %v208_v24 = vld [vmem:[#allocation2 + $0x1e0] sm:$0xff] }
  0xe7   :  { %v681_v36 = vadd.f32 %v537_v8, %v159_v28  ;;  %v697_v38 = vadd.f32 %v577_v22, %v175_v32  ;;  %v843_v47 = vld [vmem:[#allocation2 + $0x148] sm:$0xff]  ;;  %1024 = vst.msk [vmem:[%s1984_s3 + $0x64] sm:$0xf] %vm998_vm2, %v959_v53 }
  0xe8   :  { %777 = vst.msk [vmem:[#allocation2 + $0x150] sm:$0xff] %vm19_vm1, %v712_v31  ;;  %v911_v50 = vadd.f32 %v1557_v41, %v843_v47  ;;  %v859_v51 = vld [vmem:[#allocation2 + $0x1c8] sm:$0xff] }
  0xe9   :  { %793 = vst.msk [vmem:[#allocation2 + $0x1d0] sm:$0xff] %vm19_vm1, %v728_v34  ;;  %v927_v54 = vadd.f32 %v1557_v41, %v859_v51  ;;  %v812_v55 = vld [vmem:[#allocation2 + $0x50] sm:$0xff]  ;;  %v193_v32 = vld [vmem:[#allocation2 + $0x168] sm:$0xff] }
  0xea   :  { %746 = vst.msk [vmem:[#allocation2 + $0x58] sm:$0xff] %vm19_vm1, %v681_v36  ;;  %v975_v56 = vpack.c.bf16 %v911_v50, %v911_v50  ;;  %v880_v57 = vadd.f32 %v1557_v41, %v812_v55  ;;  %v828_v58 = vld [vmem:[#allocation2 + $0xd0] sm:$0xff]  ;;  %v209_v34 = vld [vmem:[#allocation2 + $0x1e8] sm:$0xff] }
  0xeb   :  { %762 = vst.msk [vmem:[#allocation2 + $0xd8] sm:$0xff] %vm19_vm1, %v697_v38  ;;  %v991_v59 = vpack.c.bf16 %v927_v54, %v927_v54  ;;  %v896_v60 = vadd.f32 %v1557_v41, %v828_v58  ;;  %v162_v36 = vld [vmem:[#allocation2 + $0x70] sm:$0xff] }
  0xec   :  { %1040 = vst.msk [vmem:[%s1984_s3 + $0xa4] sm:$0xf] %vm998_vm2, %v975_v56  ;;  %v944_v62 = vpack.c.bf16 %v880_v57, %v880_v57  ;;  %v178_v38 = vld [vmem:[#allocation2 + $0xf0] sm:$0xff] }
  0xed   :  { %v617_v29 = vpop.f32.mrf.mxu2  ;;  %v657_v30 = vpop.f32.mrf.mxu3  ;;  %1056 = vst.msk [vmem:[%s1984_s3 + $0xe4] sm:$0xf] %vm998_vm2, %v991_v59  ;;  %v960_v1 = vpack.c.bf16 %v896_v60, %v896_v60 }
  0xee   :  { %v540_v33 = vpop.f32.mrf.mxu0  ;;  %v713_v40 = vadd.f32 %v617_v29, %v191_v35  ;;  %v729_v42 = vadd.f32 %v657_v30, %v207_v37  ;;  %v580_v45 = vpop.f32.mrf.mxu1  ;;  %1009 = vst.msk [vmem:[%s1984_s3 + $0x28] sm:$0xf] %vm998_vm2, %v944_v62  ;;  %v177_v30 = vld [vmem:[#allocation2 + $0xe8] sm:$0xff] }
  0xef   :  { %v682_v44 = vadd.f32 %v540_v33, %v160_v39  ;;  %v844_v61 = vld [vmem:[#allocation2 + $0x150] sm:$0xff]  ;;  %1025 = vst.msk [vmem:[%s1984_s3 + $0x68] sm:$0xf] %vm998_vm2, %v960_v1  ;;  %v698_v26 = vadd.f32 %v580_v45, %v176_v14 }
  0xf0   :  { %778 = vst.msk [vmem:[#allocation2 + $0x158] sm:$0xff] %vm19_vm1, %v713_v40  ;;  %v912_v63 = vadd.f32 %v1557_v41, %v844_v61  ;;  %v860_v0 = vld [vmem:[#allocation2 + $0x1d0] sm:$0xff] }
  0xf1   :  { %794 = vst.msk [vmem:[#allocation2 + $0x1d8] sm:$0xff] %vm19_vm1, %v729_v42  ;;  %v928_v2 = vadd.f32 %v1557_v41, %v860_v0  ;;  %v813_v3 = vld [vmem:[#allocation2 + $0x58] sm:$0xff]  ;;  %v194_v40 = vld [vmem:[#allocation2 + $0x170] sm:$0xff] }
  0xf2   :  { %747 = vst.msk [vmem:[#allocation2 + $0x60] sm:$0xff] %vm19_vm1, %v682_v44  ;;  %v976_v4 = vpack.c.bf16 %v912_v63, %v912_v63  ;;  %v881_v5 = vadd.f32 %v1557_v41, %v813_v3  ;;  %v829_v6 = vld [vmem:[#allocation2 + $0xd8] sm:$0xff]  ;;  %v210_v45 = vld [vmem:[#allocation2 + $0x1f0] sm:$0xff] }
  0xf3   :  { %v992_v7 = vpack.c.bf16 %v928_v2, %v928_v2  ;;  %v897_v8 = vadd.f32 %v1557_v41, %v829_v6  ;;  %763 = vst.msk [vmem:[#allocation2 + $0xe0] sm:$0xff] %vm19_vm1, %v698_v26 }
  0xf4   :  { %1041 = vst.msk [vmem:[%s1984_s3 + $0xa8] sm:$0xf] %vm998_vm2, %v976_v4  ;;  %v945_v11 = vpack.c.bf16 %v881_v5, %v881_v5 }
  0xf5   :  { %v620_v48 = vpop.f32.mrf.mxu2  ;;  %v660_v49 = vpop.f32.mrf.mxu3  ;;  %1057 = vst.msk [vmem:[%s1984_s3 + $0xe8] sm:$0xf] %vm998_vm2, %v992_v7  ;;  %v961_v17 = vpack.c.bf16 %v897_v8, %v897_v8 }
  0xf6   :  { %v542_v52 = vpop.f32.mrf.mxu0  ;;  %v582_v15 = vpop.f32.mrf.mxu1  ;;  %1010 = vst.msk [vmem:[%s1984_s3 + $0x2c] sm:$0xf] %vm998_vm2, %v945_v11  ;;  %v714_v29 = vadd.f32 %v620_v48, %v192_v20  ;;  %v730_v31 = vadd.f32 %v660_v49, %v208_v24  ;;  %v163_v48 = vld [vmem:[#allocation2 + $0x78] sm:$0xff] }
  0xf7   :  { %v845_v9 = vld [vmem:[#allocation2 + $0x158] sm:$0xff]  ;;  %1026 = vst.msk [vmem:[%s1984_s3 + $0x6c] sm:$0xf] %vm998_vm2, %v961_v17  ;;  %v683_v33 = vadd.f32 %v542_v52, %v161_v27  ;;  %v699_v35 = vadd.f32 %v582_v15, %v177_v30 }
  0xf8   :  { %v913_v12 = vadd.f32 %v1557_v41, %v845_v9  ;;  %v861_v13 = vld [vmem:[#allocation2 + $0x1d8] sm:$0xff]  ;;  %779 = vst.msk [vmem:[#allocation2 + $0x160] sm:$0xff] %vm19_vm1, %v714_v29 }
  0xf9   :  { %v929_v18 = vadd.f32 %v1557_v41, %v861_v13  ;;  %v814_v19 = vld [vmem:[#allocation2 + $0x60] sm:$0xff]  ;;  %795 = vst.msk [vmem:[#allocation2 + $0x1e0] sm:$0xff] %vm19_vm1, %v730_v31  ;;  %v211_v27 = vld [vmem:[#allocation2 + $0x1f8] sm:$0xff] }
  0xfa   :  { %v977_v22 = vpack.c.bf16 %v913_v12, %v913_v12  ;;  %v882_v23 = vadd.f32 %v1557_v41, %v814_v19  ;;  %748 = vst.msk [vmem:[#allocation2 + $0x68] sm:$0xff] %vm19_vm1, %v683_v33  ;;  %v830_v52 = vld [vmem:[#allocation2 + $0xe0] sm:$0xff] }
  0xfb   :  { %v993_v25 = vpack.c.bf16 %v929_v18, %v929_v18  ;;  %764 = vst.msk [vmem:[#allocation2 + $0xe8] sm:$0xff] %vm19_vm1, %v699_v35  ;;  %v898_v54 = vadd.f32 %v1557_v41, %v830_v52  ;;  %v179_v18 = vld [vmem:[#allocation2 + $0xf8] sm:$0xff] }
  0xfc   :  { %1042 = vst.msk [vmem:[%s1984_s3 + $0xac] sm:$0xf] %vm998_vm2, %v977_v22  ;;  %v946_v28 = vpack.c.bf16 %v882_v23, %v882_v23  ;;  %v195_v23 = vld [vmem:[#allocation2 + $0x178] sm:$0xff] }
  0xfd   :  { %v622_v10 = vpop.f32.mrf.mxu2  ;;  %v662_v16 = vpop.f32.mrf.mxu3  ;;  %1058 = vst.msk [vmem:[%s1984_s3 + $0xec] sm:$0xf] %vm998_vm2, %v993_v25  ;;  %v962_v58 = vpack.c.bf16 %v898_v54, %v898_v54 }
  0xfe   :  { %v545_v21 = vpop.f32.mrf.mxu0  ;;  %1011 = vst.msk [vmem:[%s1984_s3 + $0x30] sm:$0xf] %vm998_vm2, %v946_v28  ;;  %v715_v37 = vadd.f32 %v622_v10, %v193_v32  ;;  %v731_v39 = vadd.f32 %v662_v16, %v209_v34  ;;  %v585_v44 = vpop.f32.mrf.mxu1  ;;  %v1293_v34 = vld [vmem:[%s1982_s2] ss:$0 sm:$0xff] }
  0xff   :  { %v684_v43 = vadd.f32 %v545_v21, %v162_v36  ;;  %v700_v47 = vadd.f32 %v585_v44, %v178_v38  ;;  %v846_v55 = vld [vmem:[#allocation2 + $0x160] sm:$0xff]  ;;  %1027 = vst.msk [vmem:[%s1984_s3 + $0x70] sm:$0xf] %vm998_vm2, %v962_v58 }
 0x100   :  { %780 = vst.msk [vmem:[#allocation2 + $0x168] sm:$0xff] %vm19_vm1, %v715_v37  ;;  %v914_v56 = vadd.f32 %v1557_v41, %v846_v55  ;;  %v862_v57 = vld [vmem:[#allocation2 + $0x1e0] sm:$0xff] }
 0x101   :  { %796 = vst.msk [vmem:[#allocation2 + $0x1e8] sm:$0xff] %vm19_vm1, %v731_v39  ;;  %v930_v59 = vadd.f32 %v1557_v41, %v862_v57  ;;  %v815_v60 = vld [vmem:[#allocation2 + $0x68] sm:$0xff] }
 0x102   :  { %749 = vst.msk [vmem:[#allocation2 + $0x70] sm:$0xff] %vm19_vm1, %v684_v43  ;;  %v978_v61 = vpack.c.bf16 %v914_v56, %v914_v56  ;;  %v883_v62 = vadd.f32 %v1557_v41, %v815_v60  ;;  %v831_v63 = vld [vmem:[#allocation2 + $0xe8] sm:$0xff] }
 0x103   :  { %765 = vst.msk [vmem:[#allocation2 + $0xf0] sm:$0xff] %vm19_vm1, %v700_v47  ;;  %v994_v0 = vpack.c.bf16 %v930_v59, %v930_v59  ;;  %v899_v1 = vadd.f32 %v1557_v41, %v831_v63 }
 0x104   :  { %1043 = vst.msk [vmem:[%s1984_s3 + $0xb0] sm:$0xf] %vm998_vm2, %v978_v61  ;;  %v947_v3 = vpack.c.bf16 %v883_v62, %v883_v62 }
 0x105   :  { %v625_v42 = vpop.f32.mrf.mxu2  ;;  %v665_v46 = vpop.f32.mrf.mxu3  ;;  %1059 = vst.msk [vmem:[%s1984_s3 + $0xf0] sm:$0xf] %vm998_vm2, %v994_v0  ;;  %v963_v6 = vpack.c.bf16 %v899_v1, %v899_v1 }
 0x106   :  { %v547_v49 = vpop.f32.mrf.mxu0  ;;  %v716_v50 = vadd.f32 %v625_v42, %v194_v40  ;;  %v732_v51 = vadd.f32 %v665_v46, %v210_v45  ;;  %1012 = vst.msk [vmem:[%s1984_s3 + $0x34] sm:$0xf] %vm998_vm2, %v947_v3  ;;  %v587_v19 = vpop.f32.mrf.mxu1 }
 0x107   :  { %v685_v53 = vadd.f32 %v547_v49, %v163_v48  ;;  %v847_v2 = vld [vmem:[#allocation2 + $0x168] sm:$0xff]  ;;  %1028 = vst.msk [vmem:[%s1984_s3 + $0x74] sm:$0xf] %vm998_vm2, %v963_v6  ;;  %v701_v30 = vadd.f32 %v587_v19, %v179_v18 }
 0x108   :  { %781 = vst.msk [vmem:[#allocation2 + $0x170] sm:$0xff] %vm19_vm1, %v716_v50  ;;  %v915_v4 = vadd.f32 %v1557_v41, %v847_v2  ;;  %v863_v5 = vld [vmem:[#allocation2 + $0x1e8] sm:$0xff] }
 0x109   :  { %797 = vst.msk [vmem:[#allocation2 + $0x1f0] sm:$0xff] %vm19_vm1, %v732_v51  ;;  %v931_v7 = vadd.f32 %v1557_v41, %v863_v5  ;;  %v816_v8 = vld [vmem:[#allocation2 + $0x70] sm:$0xff] }
 0x10a   :  { %750 = vst.msk [vmem:[#allocation2 + $0x78] sm:$0xff] %vm19_vm1, %v685_v53  ;;  %v979_v9 = vpack.c.bf16 %v915_v4, %v915_v4  ;;  %v884_v10 = vadd.f32 %v1557_v41, %v816_v8  ;;  %v832_v11 = vld [vmem:[#allocation2 + $0xf0] sm:$0xff] }
 0x10b   :  { %v995_v12 = vpack.c.bf16 %v931_v7, %v931_v7  ;;  %v900_v13 = vadd.f32 %v1557_v41, %v832_v11  ;;  %766 = vst.msk [vmem:[#allocation2 + $0xf8] sm:$0xff] %vm19_vm1, %v701_v30 }
 0x10c   :  { %1044 = vst.msk [vmem:[%s1984_s3 + $0xb4] sm:$0xf] %vm998_vm2, %v979_v9  ;;  %v948_v15 = vpack.c.bf16 %v884_v10, %v884_v10 }
 0x10d   :  { %1060 = vst.msk [vmem:[%s1984_s3 + $0xf4] sm:$0xf] %vm998_vm2, %v995_v12  ;;  %v964_v20 = vpack.c.bf16 %v900_v13, %v900_v13  ;;  %v627_v24 = vpop.f32.mrf.mxu2  ;;  %v667_v28 = vpop.f32.mrf.mxu3 }
 0x10e   :  { %1013 = vst.msk [vmem:[%s1984_s3 + $0x38] sm:$0xf] %vm998_vm2, %v948_v15  ;;  %v717_v32 = vadd.f32 %v627_v24, %v195_v23 }
 0x10f   :  { %v848_v14 = vld [vmem:[#allocation2 + $0x170] sm:$0xff]  ;;  %1029 = vst.msk [vmem:[%s1984_s3 + $0x78] sm:$0xf] %vm998_vm2, %v964_v20 }
 0x110   :  { %v916_v16 = vadd.f32 %v1557_v41, %v848_v14  ;;  %v864_v17 = vld [vmem:[#allocation2 + $0x1f0] sm:$0xff]  ;;  %782 = vst.msk [vmem:[#allocation2 + $0x178] sm:$0xff] %vm19_vm1, %v717_v32 }
 0x111   :  { %v932_v21 = vadd.f32 %v1557_v41, %v864_v17  ;;  %v817_v22 = vld [vmem:[#allocation2 + $0x78] sm:$0xff] }
 0x112   :  { %v980_v25 = vpack.c.bf16 %v916_v16, %v916_v16  ;;  %v885_v26 = vadd.f32 %v1557_v41, %v817_v22  ;;  %v733_v41 = vadd.f32 %v667_v28, %v211_v27  ;;  %v833_v33 = vld [vmem:[#allocation2 + $0xf8] sm:$0xff] }
 0x113   :  { %v996_v29 = vpack.c.bf16 %v932_v21, %v932_v21  ;;  %v901_v35 = vadd.f32 %v1293_v34, %v833_v33 }
 0x114   :  { %1045 = vst.msk [vmem:[%s1984_s3 + $0xb8] sm:$0xf] %vm998_vm2, %v980_v25  ;;  %v949_v31 = vpack.c.bf16 %v885_v26, %v885_v26 }
 0x115   :  { %1061 = vst.msk [vmem:[%s1984_s3 + $0xf8] sm:$0xf] %vm998_vm2, %v996_v29  ;;  %v965_v39 = vpack.c.bf16 %v901_v35, %v901_v35 }
 0x116   :  { %1014 = vst.msk [vmem:[%s1984_s3 + $0x3c] sm:$0xf] %vm998_vm2, %v949_v31 }
 0x117   :  { %798 = vst.msk [vmem:[#allocation2 + $0x1f8] sm:$0xff] %vm19_vm1, %v733_v41  ;;  %v849_v36 = vld [vmem:[#allocation2 + $0x178] sm:$0xff] }
 0x118   :  { %v917_v37 = vadd.f32 %v1293_v34, %v849_v36  ;;  %1030 = vst.msk [vmem:[%s1984_s3 + $0x7c] sm:$0xf] %vm998_vm2, %v965_v39 }
 0x11a   :  { %v981_v42 = vpack.c.bf16 %v917_v37, %v917_v37 }
 0x11c   :  { %1046 = vst.msk [vmem:[%s1984_s3 + $0xbc] sm:$0xf] %vm998_vm2, %v981_v42 }
 0x11e   :  { %v865_v38 = vld [vmem:[#allocation2 + $0x1f8] sm:$0xff] }
 0x11f   :  { %v933_v40 = vadd.f32 %v1293_v34, %v865_v38 }
 0x121   :  { %v997_v43 = vpack.c.bf16 %v933_v40, %v933_v40 }
 0x123   :  { %1062 = vst.msk [vmem:[%s1984_s3 + $0xfc] sm:$0xf] %vm998_vm2, %v997_v43 }

// kernel: unet_generator_forward.18
= control target key start
LH: loop header
LB: loop body
LE: loop exit
PB: predicated region body
PF: predicated region fallthrough
CT: control target
= control target key end

     0   :  { %s1189_s1 = inlined_call_operand.vmem [shape: bf16[1,128,16], index: 1, kind: input, shape index: {}]   ;;  %s1190_s0 = inlined_call_operand.vmem [shape: bf16[1,128,128], index: 0, kind: input, shape index: {}]   ;;  %s1191_s2 = inlined_call_operand.vmem [shape: f32[1,16], index: 2, kind: input, shape index: {}]   ;;  %s1192_s3 = inlined_call_operand.vmem [shape: bf16[1,128,16], index: 3, kind: output, shape index: {0}]   ;;  %s1193_s4 = inlined_call_operand.vmem [shape: f32[1,1,8,16], index: 4, kind: output, shape index: {1}]   ;;  %s1194_s5 = inlined_call_operand.vmem [shape: f32[1,1,8,16], index: 5, kind: output, shape index: {2}]  }
   0x1   :  { %v575_v0 = vld [vmem:[%s1189_s1 + $0x38] sm:$0xff]  ;;  %v574_v1 = vld [vmem:[%s1189_s1 + $0x30] sm:$0xff]  ;;  %v642_v2 = vld [vmem:[%s1190_s0] sm:$0xf] }
   0x2   :  { %278 = vmatpush.bf16.msra.mxu0 %v575_v0  ;;  %576 = vmatpush.bf16.msra.mxu1 %v575_v0  ;;  %v647_v3 = vld [vmem:[%s1190_s0 + $0x4] sm:$0xf]  ;;  %v652_v4 = vld [vmem:[%s1190_s0 + $0x10] sm:$0xf]  ;;  %v657_v5 = vld [vmem:[%s1190_s0 + $0x14] sm:$0xf]  ;;  %v54_v7 = vunpack.c.l.bf16 %v642_v2 }
   0x3   :  { %577 = vmatpush.bf16.msra.mxu2 %v575_v0  ;;  %578 = vmatpush.bf16.msra.mxu3 %v575_v0  ;;  %v573_v6 = vld [vmem:[%s1189_s1 + $0x28] sm:$0xff]  ;;  %v55_v8 = vunpack.c.l.bf16 %v647_v3  ;;  %v667_v9 = vld [vmem:[%s1190_s0 + $0x20] sm:$0xf]  ;;  %v672_v10 = vld [vmem:[%s1190_s0 + $0x24] sm:$0xf]  ;;  %v58_v11 = vunpack.c.l.bf16 %v652_v4  ;;  %v59_v12 = vunpack.c.l.bf16 %v657_v5 }
   0x4   :  { %v679_v13 = vld [vmem:[%s1190_s0 + $0x30] sm:$0xf]  ;;  %v684_v14 = vld [vmem:[%s1190_s0 + $0x34] sm:$0xf]  ;;  %v62_v15 = vunpack.c.l.bf16 %v667_v9  ;;  %v63_v16 = vunpack.c.l.bf16 %v672_v10  ;;  %v572_v17 = vld [vmem:[%s1189_s1 + $0x20] sm:$0xff]  ;;  %vm691_vm0 = vcmp.ge.f32.partialorder %v54_v7, 0.0 }
   0x5   :  { %v86_v19 = vmul.f32 0.20019531, %v54_v7  ;;  %v87_v20 = vmul.f32 0.20019531, %v55_v8  ;;  %vm695_vm1 = vcmp.ge.f32.partialorder %v55_v8, 0.0  ;;  %v66_v22 = vunpack.c.l.bf16 %v679_v13  ;;  %vm118_vm3 = vmpackc.low %vm691_vm0, %vm691_vm0  ;;  %v571_v30 = vld [vmem:[%s1189_s1 + $0x18] sm:$0xff]  ;;  %v570_v43 = vld [vmem:[%s1189_s1 + $0x10] sm:$0xff] }
   0x6   :  { %279 = vmatpush.bf16.msra.mxu0 %v574_v1  ;;  %579 = vmatpush.bf16.msra.mxu1 %v574_v1  ;;  %v67_v23 = vunpack.c.l.bf16 %v684_v14  ;;  %vm701_vm2 = vcmp.ge.f32.partialorder %v58_v11, 0.0  ;;  %v90_v25 = vmul.f32 0.20019531, %v58_v11  ;;  %v91_v26 = vmul.f32 0.20019531, %v59_v12  ;;  %vm119_vm5 = vmpackc.low %vm695_vm1, %vm695_vm1  ;;  %v569_v50 = vld [vmem:[%s1189_s1 + $0x8] sm:$0xff]  ;;  %v802_v57 = vld [vmem:[%s1190_s0 + $0x18] sm:$0xf] }
   0x7   :  { %580 = vmatpush.bf16.msra.mxu2 %v574_v1  ;;  %581 = vmatpush.bf16.msra.mxu3 %v574_v1  ;;  %vm708_vm4 = vcmp.ge.f32.partialorder %v59_v12, 0.0  ;;  %v94_v28 = vmul.f32 0.20019531, %v62_v15  ;;  %v95_v29 = vmul.f32 0.20019531, %v63_v16  ;;  %v102_v31 = vpack.c.bf16 %v86_v19, %v86_v19  ;;  %vm122_vm7 = vmpackc.low %vm701_vm2, %vm701_vm2  ;;  %v792_v55 = vld [vmem:[%s1190_s0 + $0x8] sm:$0xf]  ;;  %v568_v11 = vld [vmem:[%s1189_s1] sm:$0xff] }
   0x8   :  { %v103_v32 = vpack.c.bf16 %v87_v20, %v87_v20  ;;  %vm718_vm6 = vcmp.ge.f32.partialorder %v62_v15, 0.0  ;;  %vm725_vm8 = vcmp.ge.f32.partialorder %v63_v16, 0.0  ;;  %v98_v35 = vmul.f32 0.20019531, %v66_v22  ;;  %vm123_vm9 = vmpackc.low %vm708_vm4, %vm708_vm4  ;;  %v797_v56 = vld [vmem:[%s1190_s0 + $0xc] sm:$0xf] }
   0x9   :  { %v99_v36 = vmul.f32 0.20019531, %v67_v23  ;;  %v106_v37 = vpack.c.bf16 %v90_v25, %v90_v25  ;;  %v107_v38 = vpack.c.bf16 %v91_v26, %v91_v26  ;;  %vm732_vm10 = vcmp.ge.f32.partialorder %v66_v22, 0.0  ;;  %vm126_vm11 = vmpackc.low %vm718_vm6, %vm718_vm6  ;;  %v807_v58 = vld [vmem:[%s1190_s0 + $0x1c] sm:$0xf]  ;;  %v812_v59 = vld [vmem:[%s1190_s0 + $0x28] sm:$0xf] }
   0xa   :  { %280 = vmatpush.bf16.msra.mxu0 %v573_v6  ;;  %582 = vmatpush.bf16.msra.mxu1 %v573_v6  ;;  %v110_v40 = vpack.c.bf16 %v94_v28, %v94_v28  ;;  %v111_v41 = vpack.c.bf16 %v95_v29, %v95_v29  ;;  %vm739_vm12 = vcmp.ge.f32.partialorder %v67_v23, 0.0  ;;  %v134_v44 = vsel %vm118_vm3, %v642_v2, %v102_v31  ;;  %vm127_vm13 = vmpackc.low %vm725_vm8, %vm725_vm8 }
   0xb   :  { %583 = vmatpush.bf16.msra.mxu2 %v573_v6  ;;  %584 = vmatpush.bf16.msra.mxu3 %v573_v6  ;;  %v135_v45 = vsel %vm119_vm5, %v647_v3, %v103_v32  ;;  %v114_v46 = vpack.c.bf16 %v98_v35, %v98_v35  ;;  %v115_v47 = vpack.c.bf16 %v99_v36, %v99_v36  ;;  %vm130_vm14 = vmpackc.low %vm732_vm10, %vm732_vm10  ;;  %v198_v51 = vunpack.c.l.b16 %v134_v44  ;;  %v841_v6 = vld [vmem:[%s1190_s0 + $0x3c] sm:$0xf] }
   0xc   :  { %v138_v48 = vsel %vm122_vm7, %v652_v4, %v106_v37  ;;  %v139_v49 = vsel %vm123_vm9, %v657_v5, %v107_v38  ;;  %vm131_vm15 = vmpackc.low %vm739_vm12, %vm739_vm12  ;;  %v199_v52 = vunpack.c.l.b16 %v135_v45  ;;  %v142_v53 = vsel %vm126_vm11, %v667_v9, %v110_v40  ;;  %v831_v4 = vld [vmem:[%s1190_s0 + $0x2c] sm:$0xf]  ;;  %v836_v5 = vld [vmem:[%s1190_s0 + $0x38] sm:$0xf] }
   0xd   :  { %v143_v54 = vsel %vm127_vm13, %v672_v10, %v111_v41  ;;  %v202_v60 = vunpack.c.l.b16 %v138_v48  ;;  %v203_v61 = vunpack.c.l.b16 %v139_v49  ;;  %v146_v62 = vsel %vm130_vm14, %v679_v13, %v114_v46 }
   0xe   :  { %281 = vmatpush.bf16.msra.mxu0 %v572_v17  ;;  %585 = vmatpush.bf16.msra.mxu1 %v572_v17  ;;  %v147_v63 = vsel %vm131_vm15, %v684_v14, %v115_v47  ;;  %v206_v0 = vunpack.c.l.b16 %v142_v53  ;;  %v207_v1 = vunpack.c.l.b16 %v143_v54  ;;  %v56_v2 = vunpack.c.l.bf16 %v792_v55 }
   0xf   :  { %586 = vmatpush.bf16.msra.mxu2 %v572_v17  ;;  %587 = vmatpush.bf16.msra.mxu3 %v572_v17  ;;  %v57_v3 = vunpack.c.l.bf16 %v797_v56  ;;  %v214_v7 = vpack.c.b16 %v199_v52, %v198_v51  ;;  %v60_v8 = vunpack.c.l.bf16 %v802_v57  ;;  %v61_v9 = vunpack.c.l.bf16 %v807_v58 }
  0x10   :  { %v64_v10 = vunpack.c.l.bf16 %v812_v59  ;;  %v210_v12 = vunpack.c.l.b16 %v146_v62  ;;  %v211_v13 = vunpack.c.l.b16 %v147_v63  ;;  %vm849_vm0 = vcmp.ge.f32.partialorder %v56_v2, 0.0 }
  0x11   :  { %vm853_vm1 = vcmp.ge.f32.partialorder %v57_v3, 0.0  ;;  %v65_v16 = vunpack.c.l.bf16 %v831_v4  ;;  %v68_v17 = vunpack.c.l.bf16 %v836_v5  ;;  %v69_v18 = vunpack.c.l.bf16 %v841_v6  ;;  %vm120_vm4 = vmpackc.low %vm849_vm0, %vm849_vm0 }
  0x12   :  { %282 = vmatpush.bf16.msra.mxu0 %v571_v30  ;;  %588 = vmatpush.bf16.msra.mxu1 %v571_v30  ;;  %vm21_vm2 = vcmask 130048   ;;  %v216_v19 = vpack.c.b16 %v203_v61, %v202_v60  ;;  %v218_v20 = vpack.c.b16 %v207_v1, %v206_v0  ;;  %vm860_vm3 = vcmp.ge.f32.partialorder %v60_v8, 0.0  ;;  %vm121_vm6 = vmpackc.low %vm853_vm1, %vm853_vm1 }
  0x13   :  { %589 = vmatpush.bf16.msra.mxu2 %v571_v30  ;;  %590 = vmatpush.bf16.msra.mxu3 %v571_v30  ;;  %v88_v22 = vmul.f32 0.20019531, %v56_v2  ;;  %v89_v23 = vmul.f32 0.20019531, %v57_v3  ;;  %vm867_vm5 = vcmp.ge.f32.partialorder %v61_v9, 0.0  ;;  %v92_v25 = vmul.f32 0.20019531, %v60_v8  ;;  %vm124_vm8 = vmpackc.low %vm860_vm3, %vm860_vm3 }
  0x14   :  { %v602_v26 = vmov 0.0   ;;  %v220_v27 = vpack.c.b16 %v211_v13, %v210_v12  ;;  %v93_v28 = vmul.f32 0.20019531, %v61_v9  ;;  %vm876_vm7 = vcmp.ge.f32.partialorder %v64_v10, 0.0  ;;  %vm125_vm10 = vmpackc.low %vm867_vm5, %vm867_vm5 }
  0x15   :  { %22 = vst.msk [vmem:[#allocation2] sm:$0xff] %vm21_vm2, %v602_v26  ;;  %v96_v30 = vmul.f32 0.20019531, %v64_v10  ;;  %vm885_vm9 = vcmp.ge.f32.partialorder %v65_v16, 0.0  ;;  %v97_v32 = vmul.f32 0.20019531, %v65_v16  ;;  %v100_v33 = vmul.f32 0.20019531, %v68_v17  ;;  %vm1227_vm0 = vmpackc.low %vm876_vm7, %vm876_vm7 }
  0x16   :  { %283 = vmatpush.bf16.msra.mxu0 %v570_v43  ;;  %591 = vmatpush.bf16.msra.mxu1 %v570_v43  ;;  %23 = vst.msk [vmem:[#allocation2 + $0x8] sm:$0xff] %vm21_vm2, %v602_v26  ;;  %v101_v34 = vmul.f32 0.20019531, %v69_v18  ;;  %vm894_vm11 = vcmp.ge.f32.partialorder %v68_v17, 0.0  ;;  %v104_v36 = vpack.c.bf16 %v88_v22, %v88_v22  ;;  %vm903_vm13 = vcmp.ge.f32.partialorder %v69_v18, 0.0  ;;  %vm129_vm14 = vmpackc.low %vm885_vm9, %vm885_vm9 }
  0x17   :  { %592 = vmatpush.bf16.msra.mxu2 %v570_v43  ;;  %593 = vmatpush.bf16.msra.mxu3 %v570_v43  ;;  %24 = vst.msk [vmem:[#allocation2 + $0x10] sm:$0xff] %vm21_vm2, %v602_v26  ;;  %v105_v38 = vpack.c.bf16 %v89_v23, %v89_v23  ;;  %v108_v39 = vpack.c.bf16 %v92_v25, %v92_v25  ;;  %vm132_vm15 = vmpackc.low %vm894_vm11, %vm894_vm11  ;;  %vm415_vm1 = vcmask 125952  }
  0x18   :  { %25 = vst.msk [vmem:[#allocation2 + $0x18] sm:$0xff] %vm21_vm2, %v602_v26  ;;  %v109_v40 = vpack.c.bf16 %v93_v28, %v93_v28  ;;  %v112_v41 = vpack.c.bf16 %v96_v30, %v96_v30  ;;  %v113_v42 = vpack.c.bf16 %v97_v32, %v97_v32  ;;  %v116_v43 = vpack.c.bf16 %v100_v33, %v100_v33  ;;  %vm133_vm12 = vmpackc.low %vm903_vm13, %vm903_vm13 }
  0x19   :  { %26 = vst.msk [vmem:[#allocation2 + $0x20] sm:$0xff] %vm21_vm2, %v602_v26  ;;  %v117_v44 = vpack.c.bf16 %v101_v34, %v101_v34  ;;  %v136_v45 = vsel %vm120_vm4, %v792_v55, %v104_v36  ;;  %v137_v46 = vsel %vm121_vm6, %v797_v56, %v105_v38  ;;  %v140_v47 = vsel %vm124_vm8, %v802_v57, %v108_v39 }
  0x1a   :  { %284 = vmatpush.bf16.msra.mxu0 %v569_v50  ;;  %594 = vmatpush.bf16.msra.mxu1 %v569_v50  ;;  %27 = vst.msk [vmem:[#allocation2 + $0x28] sm:$0xff] %vm21_vm2, %v602_v26  ;;  %v141_v48 = vsel %vm125_vm10, %v807_v58, %v109_v40  ;;  %v144_v49 = vsel %vm1227_vm0, %v812_v59, %v112_v41  ;;  %v200_v53 = vunpack.c.l.b16 %v136_v45  ;;  %v201_v54 = vunpack.c.l.b16 %v137_v46 }
  0x1b   :  { %595 = vmatpush.bf16.msra.mxu2 %v569_v50  ;;  %596 = vmatpush.bf16.msra.mxu3 %v569_v50  ;;  %28 = vst.msk [vmem:[#allocation2 + $0x30] sm:$0xff] %vm21_vm2, %v602_v26  ;;  %v145_v50 = vsel %vm129_vm14, %v831_v4, %v113_v42  ;;  %v148_v51 = vsel %vm132_vm15, %v836_v5, %v116_v43  ;;  %v204_v55 = vunpack.c.l.b16 %v140_v47  ;;  %v205_v56 = vunpack.c.l.b16 %v141_v48 }
  0x1c   :  { %29 = vst.msk [vmem:[#allocation2 + $0x38] sm:$0xff] %vm21_vm2, %v602_v26  ;;  %v149_v52 = vsel %vm133_vm12, %v841_v6, %v117_v44  ;;  %v208_v57 = vunpack.c.l.b16 %v144_v49  ;;  %v209_v58 = vunpack.c.l.b16 %v145_v50  ;;  %v212_v59 = vunpack.c.l.b16 %v148_v51  ;;  %v150_v1 = vld [vmem:[#allocation2] sm:$0xff] }
  0x1d   :  { %30 = vst.msk [vmem:[#allocation2 + $0x40] sm:$0xff] %vm21_vm2, %v602_v26  ;;  %v213_v60 = vunpack.c.l.b16 %v149_v52  ;;  %v215_v61 = vpack.c.b16 %v201_v54, %v200_v53  ;;  %v217_v62 = vpack.c.b16 %v205_v56, %v204_v55  ;;  %v151_v8 = vld [vmem:[#allocation2 + $0x8] sm:$0xff] }
  0x1e   :  { %285 = vmatpush.bf16.msra.mxu0 %v568_v11  ;;  %597 = vmatpush.bf16.msra.mxu1 %v568_v11  ;;  %31 = vst.msk [vmem:[#allocation2 + $0x48] sm:$0xff] %vm21_vm2, %v602_v26  ;;  %v219_v63 = vpack.c.b16 %v209_v58, %v208_v57 }
  0x1f   :  { %598 = vmatpush.bf16.msra.mxu2 %v568_v11  ;;  %599 = vmatpush.bf16.msra.mxu3 %v568_v11  ;;  %32 = vst.msk [vmem:[#allocation2 + $0x50] sm:$0xff] %vm21_vm2, %v602_v26  ;;  %v221_v0 = vpack.c.b16 %v213_v60, %v212_v59  ;;  %v983_v11 = vld [vmem:[%s1191_s2] ss:$0 sm:$0xff]  ;;  %v153_v50 = vld [vmem:[#allocation2 + $0x18] sm:$0xff] }
  0x20   :  { %33 = vst.msk [vmem:[#allocation2 + $0x58] sm:$0xff] %vm21_vm2, %v602_v26  ;;  %v154_v2 = vld [vmem:[#allocation2 + $0x20] sm:$0xff] }
  0x21   :  { %286 = vmatmul.bf16.vlgmr.msra.gmra.mxu0 %v214_v7  ;;  %296 = vmatmul.bf16.vlgmr.msra.gmra.mxu1 %v216_v19  ;;  %34 = vst.msk [vmem:[#allocation2 + $0x60] sm:$0xff] %vm21_vm2, %v602_v26  ;;  %v155_v9 = vld [vmem:[#allocation2 + $0x28] sm:$0xff] }
  0x22   :  { %306 = vmatmul.bf16.vlgmr.msra.gmra.mxu2 %v218_v20  ;;  %316 = vmatmul.bf16.vlgmr.msra.gmra.mxu3 %v220_v27  ;;  %35 = vst.msk [vmem:[#allocation2 + $0x68] sm:$0xff] %vm21_vm2, %v602_v26  ;;  %v152_v27 = vld [vmem:[#allocation2 + $0x10] sm:$0xff] }
  0x23   :  { %36 = vst.msk [vmem:[#allocation2 + $0x70] sm:$0xff] %vm21_vm2, %v602_v26  ;;  %v156_v28 = vld [vmem:[#allocation2 + $0x30] sm:$0xff]  ;;  %v157_v51 = vld [vmem:[#allocation2 + $0x38] sm:$0xff] }
  0x24   :  { %37 = vst.msk [vmem:[#allocation2 + $0x78] sm:$0xff] %vm21_vm2, %v602_v26  ;;  %v158_v7 = vld [vmem:[#allocation2 + $0x40] sm:$0xff] }
  0x25   :  { %v159_v25 = vld [vmem:[#allocation2 + $0x48] sm:$0xff] }
  0x26   :  { %v160_v48 = vld [vmem:[#allocation2 + $0x50] sm:$0xff] }
  0x28   :  { %v162_v10 = vld [vmem:[#allocation2 + $0x60] sm:$0xff] }
  0x29   :  { %v163_v29 = vld [vmem:[#allocation2 + $0x68] sm:$0xff] }
  0x2a   :  { %v164_v52 = vld [vmem:[#allocation2 + $0x70] sm:$0xff] }
  0x31   :  { %291 = vmatmul.bf16.gmra.mxu0 %v215_v61  ;;  %301 = vmatmul.bf16.gmra.mxu1 %v217_v62 }
  0x32   :  { %311 = vmatmul.bf16.gmra.mxu2 %v219_v63  ;;  %321 = vmatmul.bf16.gmra.mxu3 %v221_v0 }
  0x9e   :  { %v287_v3 = vpop.f32.mrf.mxu0  ;;  %v297_v4 = vpop.f32.mrf.mxu1 }
  0x9f   :  { %v327_v5 = vadd.f32 %v287_v3, %v150_v1  ;;  %v331_v6 = vadd.f32 %v297_v4, %v154_v2 }
  0xa1   :  { %344 = vst.msk [vmem:[#allocation2] sm:$0xff] %vm21_vm2, %v327_v5 }
  0xa2   :  { %348 = vst.msk [vmem:[#allocation2 + $0x20] sm:$0xff] %vm21_vm2, %v331_v6 }
  0xa5   :  { %v307_v12 = vpop.f32.mrf.mxu2  ;;  %v317_v13 = vpop.f32.mrf.mxu3 }
  0xa6   :  { %v289_v14 = vpop.f32.mrf.mxu0  ;;  %v299_v15 = vpop.f32.mrf.mxu1  ;;  %v335_v16 = vadd.f32 %v307_v12, %v158_v7  ;;  %v339_v19 = vadd.f32 %v317_v13, %v162_v10  ;;  %v165_v12 = vld [vmem:[#allocation2 + $0x78] sm:$0xff] }
  0xa7   :  { %v328_v17 = vadd.f32 %v289_v14, %v151_v8  ;;  %v332_v18 = vadd.f32 %v299_v15, %v155_v9  ;;  %v161_v9 = vld [vmem:[#allocation2 + $0x58] sm:$0xff] }
  0xa8   :  { %v363_v20 = vld [vmem:[#allocation2] sm:$0xff]  ;;  %352 = vst.msk [vmem:[#allocation2 + $0x40] sm:$0xff] %vm21_vm2, %v335_v16 }
  0xa9   :  { %v987_v21 = vadd.f32 %v983_v11, %v363_v20  ;;  %v367_v22 = vld [vmem:[#allocation2 + $0x20] sm:$0xff]  ;;  %345 = vst.msk [vmem:[#allocation2 + $0x8] sm:$0xff] %vm21_vm2, %v328_v17 }
  0xaa   :  { %v991_v23 = vadd.f32 %v983_v11, %v367_v22  ;;  %349 = vst.msk [vmem:[#allocation2 + $0x28] sm:$0xff] %vm21_vm2, %v332_v18 }
  0xab   :  { %v399_v24 = vpack.c.bf16 %v987_v21, %v987_v21  ;;  %356 = vst.msk [vmem:[#allocation2 + $0x60] sm:$0xff] %vm21_vm2, %v339_v19  ;;  %v469_v13 = vmul.f32 %v987_v21, %v987_v21  ;;  %v432_v20 = vsel %vm21_vm2, %v987_v21, 0.0 }
  0xac   :  { %v403_v26 = vpack.c.bf16 %v991_v23, %v991_v23 }
  0xad   :  { %416 = vst.msk [vmem:[%s1192_s3] sm:$0xf] %vm415_vm1, %v399_v24  ;;  %v309_v30 = vpop.f32.mrf.mxu2  ;;  %v319_v31 = vpop.f32.mrf.mxu3  ;;  %v485_v21 = vsel %vm21_vm2, %v469_v13, 0.0 }
  0xae   :  { %420 = vst.msk [vmem:[%s1192_s3 + $0x10] sm:$0xf] %vm415_vm1, %v403_v26  ;;  %v292_v32 = vpop.f32.mrf.mxu0  ;;  %v302_v33 = vpop.f32.mrf.mxu1  ;;  %v336_v34 = vadd.f32 %v309_v30, %v159_v25  ;;  %v340_v38 = vadd.f32 %v319_v31, %v163_v29  ;;  %v473_v30 = vmul.f32 %v991_v23, %v991_v23 }
  0xaf   :  { %v371_v35 = vld [vmem:[#allocation2 + $0x40] sm:$0xff]  ;;  %v329_v36 = vadd.f32 %v292_v32, %v152_v27  ;;  %v333_v37 = vadd.f32 %v302_v33, %v156_v28 }
  0xb0   :  { %v364_v39 = vld [vmem:[#allocation2 + $0x8] sm:$0xff]  ;;  %v1008_v40 = vadd.f32 %v983_v11, %v371_v35  ;;  %353 = vst.msk [vmem:[#allocation2 + $0x48] sm:$0xff] %vm21_vm2, %v336_v34 }
  0xb1   :  { %v384_v41 = vadd.f32 %v983_v11, %v364_v39  ;;  %v368_v42 = vld [vmem:[#allocation2 + $0x28] sm:$0xff]  ;;  %346 = vst.msk [vmem:[#allocation2 + $0x10] sm:$0xff] %vm21_vm2, %v329_v36 }
  0xb2   :  { %v1014_v43 = vadd.f32 %v983_v11, %v368_v42  ;;  %v407_v44 = vpack.c.bf16 %v1008_v40, %v1008_v40  ;;  %350 = vst.msk [vmem:[#allocation2 + $0x30] sm:$0xff] %vm21_vm2, %v333_v37  ;;  %v375_v45 = vld [vmem:[#allocation2 + $0x60] sm:$0xff] }
  0xb3   :  { %v400_v46 = vpack.c.bf16 %v384_v41, %v384_v41  ;;  %v1020_v47 = vadd.f32 %v983_v11, %v375_v45  ;;  %357 = vst.msk [vmem:[#allocation2 + $0x68] sm:$0xff] %vm21_vm2, %v340_v38  ;;  %v470_v6 = vmul.f32 %v384_v41, %v384_v41  ;;  %v433_v14 = vsel %vm21_vm2, %v384_v41, 0.0 }
  0xb4   :  { %v404_v49 = vpack.c.bf16 %v1014_v43, %v1014_v43  ;;  %424 = vst.msk [vmem:[%s1192_s3 + $0x20] sm:$0xf] %vm415_vm1, %v407_v44  ;;  %v434_v27 = vadd.f32 %v433_v14, %v432_v20 }
  0xb5   :  { %417 = vst.msk [vmem:[%s1192_s3 + $0x4] sm:$0xf] %vm415_vm1, %v400_v46  ;;  %v411_v53 = vpack.c.bf16 %v1020_v47, %v1020_v47  ;;  %v312_v54 = vpop.f32.mrf.mxu2  ;;  %v322_v55 = vpop.f32.mrf.mxu3  ;;  %v486_v22 = vsel %vm21_vm2, %v470_v6, 0.0  ;;  %v477_v6 = vmul.f32 %v1008_v40, %v1008_v40 }
  0xb6   :  { %421 = vst.msk [vmem:[%s1192_s3 + $0x14] sm:$0xf] %vm415_vm1, %v404_v49  ;;  %v294_v56 = vpop.f32.mrf.mxu0  ;;  %v304_v57 = vpop.f32.mrf.mxu1  ;;  %v337_v58 = vadd.f32 %v312_v54, %v160_v48  ;;  %v341_v62 = vadd.f32 %v322_v55, %v164_v52  ;;  %v487_v34 = vadd.f32 %v486_v22, %v485_v21  ;;  %v439_v49 = vsel %vm21_vm2, %v991_v23, 0.0 }
  0xb7   :  { %v372_v59 = vld [vmem:[#allocation2 + $0x48] sm:$0xff]  ;;  %428 = vst.msk [vmem:[%s1192_s3 + $0x30] sm:$0xf] %vm415_vm1, %v411_v53  ;;  %v330_v60 = vadd.f32 %v294_v56, %v153_v50  ;;  %v334_v61 = vadd.f32 %v304_v57, %v157_v51  ;;  %v474_v50 = vmul.f32 %v1014_v43, %v1014_v43  ;;  %v492_v23 = vsel %vm21_vm2, %v473_v30, 0.0 }
  0xb8   :  { %v365_v63 = vld [vmem:[#allocation2 + $0x10] sm:$0xff]  ;;  %v1044_v0 = vadd.f32 %v983_v11, %v372_v59  ;;  %354 = vst.msk [vmem:[#allocation2 + $0x50] sm:$0xff] %vm21_vm2, %v337_v58  ;;  %v441_v55 = vsel %vm21_vm2, %v1014_v43, 0.0 }
  0xb9   :  { %v385_v1 = vadd.f32 %v983_v11, %v365_v63  ;;  %v369_v2 = vld [vmem:[#allocation2 + $0x30] sm:$0xff]  ;;  %347 = vst.msk [vmem:[#allocation2 + $0x18] sm:$0xff] %vm21_vm2, %v330_v60 }
  0xba   :  { %v1050_v3 = vadd.f32 %v983_v11, %v369_v2  ;;  %v408_v4 = vpack.c.bf16 %v1044_v0, %v1044_v0  ;;  %351 = vst.msk [vmem:[#allocation2 + $0x38] sm:$0xff] %vm21_vm2, %v334_v61  ;;  %v376_v5 = vld [vmem:[#allocation2 + $0x68] sm:$0xff] }
  0xbb   :  { %v401_v7 = vpack.c.bf16 %v385_v1, %v385_v1  ;;  %v1056_v8 = vadd.f32 %v983_v11, %v376_v5  ;;  %358 = vst.msk [vmem:[#allocation2 + $0x70] sm:$0xff] %vm21_vm2, %v341_v62  ;;  %v471_v15 = vmul.f32 %v385_v1, %v385_v1  ;;  %v435_v24 = vsel %vm21_vm2, %v385_v1, 0.0 }
  0xbc   :  { %v405_v10 = vpack.c.bf16 %v1050_v3, %v1050_v3  ;;  %425 = vst.msk [vmem:[%s1192_s3 + $0x24] sm:$0xf] %vm415_vm1, %v408_v4  ;;  %v436_v35 = vadd.f32 %v435_v24, %v434_v27  ;;  %v475_v56 = vmul.f32 %v1050_v3, %v1050_v3  ;;  %v494_v62 = vsel %vm21_vm2, %v474_v50, 0.0 }
  0xbd   :  { %418 = vst.msk [vmem:[%s1192_s3 + $0x8] sm:$0xf] %vm415_vm1, %v401_v7  ;;  %v412_v16 = vpack.c.bf16 %v1056_v8, %v1056_v8  ;;  %v314_v17 = vpop.f32.mrf.mxu2  ;;  %v324_v18 = vpop.f32.mrf.mxu3  ;;  %v488_v31 = vsel %vm21_vm2, %v471_v15, 0.0  ;;  %v443_v63 = vsel %vm21_vm2, %v1050_v3, 0.0  ;;  %v478_v3 = vmul.f32 %v1044_v0, %v1044_v0 }
  0xbe   :  { %422 = vst.msk [vmem:[%s1192_s3 + $0x18] sm:$0xf] %vm415_vm1, %v405_v10  ;;  %v338_v19 = vadd.f32 %v314_v17, %v161_v9  ;;  %v342_v26 = vadd.f32 %v324_v18, %v165_v12  ;;  %v489_v45 = vadd.f32 %v488_v31, %v487_v34  ;;  %v496_v7 = vsel %vm21_vm2, %v475_v56, 0.0 }
  0xbf   :  { %v373_v25 = vld [vmem:[#allocation2 + $0x50] sm:$0xff]  ;;  %429 = vst.msk [vmem:[%s1192_s3 + $0x34] sm:$0xf] %vm415_vm1, %v412_v16  ;;  %v500_v17 = vsel %vm21_vm2, %v477_v6, 0.0  ;;  %v449_v18 = vsel %vm21_vm2, %v1044_v0, 0.0  ;;  %v502_v22 = vsel %vm21_vm2, %v478_v3, 0.0 }
  0xc0   :  { %v366_v28 = vld [vmem:[#allocation2 + $0x18] sm:$0xff]  ;;  %v1087_v29 = vadd.f32 %v983_v11, %v373_v25  ;;  %355 = vst.msk [vmem:[#allocation2 + $0x58] sm:$0xff] %vm21_vm2, %v338_v19 }
  0xc1   :  { %v386_v32 = vadd.f32 %v983_v11, %v366_v28  ;;  %v370_v33 = vld [vmem:[#allocation2 + $0x38] sm:$0xff]  ;;  %359 = vst.msk [vmem:[#allocation2 + $0x78] sm:$0xff] %vm21_vm2, %v342_v26  ;;  %v481_v28 = vmul.f32 %v1020_v47, %v1020_v47 }
  0xc2   :  { %v390_v36 = vadd.f32 %v983_v11, %v370_v33  ;;  %v409_v37 = vpack.c.bf16 %v1087_v29, %v1087_v29  ;;  %v377_v38 = vld [vmem:[#allocation2 + $0x70] sm:$0xff]  ;;  %v451_v24 = vsel %vm21_vm2, %v1087_v29, 0.0  ;;  %v482_v33 = vmul.f32 %v1056_v8, %v1056_v8 }
  0xc3   :  { %v402_v39 = vpack.c.bf16 %v386_v32, %v386_v32  ;;  %v437_v41 = vsel %vm21_vm2, %v386_v32, 0.0  ;;  %v472_v42 = vmul.f32 %v386_v32, %v386_v32  ;;  %v1101_v44 = vadd.f32 %v983_v11, %v377_v38 }
  0xc4   :  { %v438_v46 = vadd.f32 %v437_v41, %v436_v35  ;;  %v406_v48 = vpack.c.bf16 %v390_v36, %v390_v36  ;;  %426 = vst.msk [vmem:[%s1192_s3 + $0x28] sm:$0xf] %vm415_vm1, %v409_v37  ;;  %v476_v43 = vmul.f32 %v390_v36, %v390_v36  ;;  %v445_v9 = vsel %vm21_vm2, %v390_v36, 0.0 }
  0xc5   :  { %419 = vst.msk [vmem:[%s1192_s3 + $0xc] sm:$0xf] %vm415_vm1, %v402_v39  ;;  %v490_v51 = vsel %vm21_vm2, %v472_v42, 0.0  ;;  %v413_v52 = vpack.c.bf16 %v1101_v44, %v1101_v44  ;;  %v455_v32 = vsel %vm21_vm2, %v1020_v47, 0.0  ;;  %v508_v36 = vsel %vm21_vm2, %v481_v28, 0.0 }
  0xc6   :  { %v440_v53 = vadd.f32 %v439_v49, %v438_v46  ;;  %v491_v54 = vadd.f32 %v490_v51, %v489_v45  ;;  %423 = vst.msk [vmem:[%s1192_s3 + $0x1c] sm:$0xf] %vm415_vm1, %v406_v48  ;;  %v498_v14 = vsel %vm21_vm2, %v476_v43, 0.0  ;;  %v457_v37 = vsel %vm21_vm2, %v1056_v8, 0.0 }
  0xc7   :  { %v374_v57 = vld [vmem:[#allocation2 + $0x58] sm:$0xff]  ;;  %430 = vst.msk [vmem:[%s1192_s3 + $0x38] sm:$0xf] %vm415_vm1, %v413_v52  ;;  %v483_v38 = vmul.f32 %v1101_v44, %v1101_v44  ;;  %v510_v42 = vsel %vm21_vm2, %v482_v33, 0.0  ;;  %v459_v47 = vsel %vm21_vm2, %v1101_v44, 0.0 }
  0xc8   :  { %v493_v58 = vadd.f32 %v492_v23, %v491_v54  ;;  %v442_v59 = vadd.f32 %v441_v55, %v440_v53  ;;  %v394_v60 = vadd.f32 %v983_v11, %v374_v57  ;;  %v378_v61 = vld [vmem:[#allocation2 + $0x78] sm:$0xff] }
  0xc9   :  { %v398_v1 = vadd.f32 %v983_v11, %v378_v61  ;;  %v447_v11 = vsel %vm21_vm2, %v1008_v40, 0.0  ;;  %v479_v40 = vmul.f32 %v1087_v29, %v1087_v29  ;;  %v512_v49 = vsel %vm21_vm2, %v483_v38, 0.0 }
  0xca   :  { %v444_v2 = vadd.f32 %v443_v63, %v442_v59  ;;  %v495_v4 = vadd.f32 %v494_v62, %v493_v58  ;;  %v410_v5 = vpack.c.bf16 %v394_v60, %v394_v60  ;;  %v480_v25 = vmul.f32 %v394_v60, %v394_v60 }
  0xcb   :  { %v414_v10 = vpack.c.bf16 %v398_v1, %v398_v1  ;;  %v504_v21 = vsel %vm21_vm2, %v479_v40, 0.0  ;;  %v453_v0 = vsel %vm21_vm2, %v394_v60, 0.0  ;;  %v484_v45 = vmul.f32 %v398_v1, %v398_v1 }
  0xcc   :  { %v446_v12 = vadd.f32 %v445_v9, %v444_v2  ;;  %v497_v13 = vadd.f32 %v496_v7, %v495_v4  ;;  %427 = vst.msk [vmem:[%s1192_s3 + $0x2c] sm:$0xf] %vm415_vm1, %v410_v5  ;;  %v506_v29 = vsel %vm21_vm2, %v480_v25, 0.0  ;;  %v461_v50 = vsel %vm21_vm2, %v398_v1, 0.0 }
  0xcd   :  { %431 = vst.msk [vmem:[%s1192_s3 + $0x3c] sm:$0xf] %vm415_vm1, %v414_v10  ;;  %v514_v8 = vsel %vm21_vm2, %v484_v45, 0.0 }
  0xce   :  { %v448_v15 = vadd.f32 %v447_v11, %v446_v12  ;;  %v499_v16 = vadd.f32 %v498_v14, %v497_v13 }
  0xd0   :  { %v501_v19 = vadd.f32 %v500_v17, %v499_v16  ;;  %v450_v20 = vadd.f32 %v449_v18, %v448_v15 }
  0xd2   :  { %v452_v26 = vadd.f32 %v451_v24, %v450_v20  ;;  %v503_v27 = vadd.f32 %v502_v22, %v501_v19 }
  0xd4   :  { %v505_v30 = vadd.f32 %v504_v21, %v503_v27  ;;  %v454_v31 = vadd.f32 %v453_v0, %v452_v26 }
  0xd6   :  { %v456_v34 = vadd.f32 %v455_v32, %v454_v31  ;;  %v507_v35 = vadd.f32 %v506_v29, %v505_v30 }
  0xd8   :  { %v509_v39 = vadd.f32 %v508_v36, %v507_v35  ;;  %v458_v41 = vadd.f32 %v457_v37, %v456_v34 }
  0xda   :  { %v460_v46 = vadd.f32 %v459_v47, %v458_v41  ;;  %v511_v48 = vadd.f32 %v510_v42, %v509_v39 }
  0xdc   :  { %v513_v51 = vadd.f32 %v512_v49, %v511_v48  ;;  %v462_v52 = vadd.f32 %v461_v50, %v460_v46 }
  0xde   :  { %v463_v53 = vrot.slane %v462_v52, 4  ;;  %v515_v54 = vadd.f32 %v514_v8, %v513_v51 }
  0xe0   :  { %v464_v23 = vadd.f32 %v463_v53, %v462_v52  ;;  %v516_v55 = vrot.slane %v515_v54, 4 }
  0xe2   :  { %v465_v56 = vrot.slane %v464_v23, 2  ;;  %v517_v57 = vadd.f32 %v516_v55, %v515_v54 }
  0xe4   :  { %v466_v58 = vadd.f32 %v465_v56, %v464_v23  ;;  %v518_v59 = vrot.slane %v517_v57, 2 }
  0xe6   :  { %v467_v44 = vrot.slane %v466_v58, 1  ;;  %v519_v60 = vadd.f32 %v518_v59, %v517_v57 }
  0xe8   :  { %v468_v61 = vadd.f32 %v467_v44, %v466_v58  ;;  %v520_v62 = vrot.slane %v519_v60, 1 }
  0xea   :  { %v521_v63 = vadd.f32 %v520_v62, %v519_v60  ;;  %522 = vst.msk [vmem:[%s1193_s4] sm:$0xff] %vm21_vm2, %v468_v61 }
  0xec   :  { %523 = vst.msk [vmem:[%s1194_s5] sm:$0xff] %vm21_vm2, %v521_v63 }

// kernel: unet_generator_forward.19
= control target key start
LH: loop header
LB: loop body
LE: loop exit
PB: predicated region body
PF: predicated region fallthrough
CT: control target
= control target key end

     0   :  { %vm102_vm0 = vcmask 125952   ;;  %s314_s0 = inlined_call_operand.vmem [shape: bf16[128,16], index: 0, kind: input, shape index: {}]   ;;  %s315_s1 = inlined_call_operand.vmem [shape: f32[1,16], index: 1, kind: input, shape index: {}]   ;;  %s316_s2 = inlined_call_operand.vmem [shape: f32[1,16], index: 2, kind: input, shape index: {}]   ;;  %s317_s3 = inlined_call_operand.vmem [shape: bf16[128,16], index: 3, kind: output, shape index: {}]  }
   0x1   :  { %v124_v0 = vld [vmem:[%s314_s0] sm:$0xff]   ;;  %v155_v5 = vld [vmem:[%s314_s0 + $0x8] sm:$0xff]   ;;  %v156_v8 = vld [vmem:[%s314_s0 + $0x10] sm:$0xff]  }
   0x2   :  { %v190_v1 = vld [vmem:[%s315_s1] ss:$0 sm:$0xff]  ;;  %v125_v2 = vunpack.c.l.bf16 %v124_v0  ;;  %v126_v4 = vunpack.c.h.bf16 %v124_v0  ;;  %v129_v6 = vunpack.c.l.bf16 %v155_v5  ;;  %v130_v7 = vunpack.c.h.bf16 %v155_v5  ;;  %v157_v9 = vld [vmem:[%s314_s0 + $0x18] sm:$0xff]   ;;  %v159_v31 = vld [vmem:[%s314_s0 + $0x28] sm:$0xff]  }
   0x3   :  { %v195_v3 = vld [vmem:[%s316_s2] ss:$0 sm:$0xff]  ;;  %v133_v12 = vunpack.c.l.bf16 %v156_v8  ;;  %v134_v13 = vunpack.c.h.bf16 %v156_v8  ;;  %v137_v16 = vunpack.c.l.bf16 %v157_v9  ;;  %v138_v17 = vunpack.c.h.bf16 %v157_v9  ;;  %v160_v36 = vld [vmem:[%s314_s0 + $0x30] sm:$0xff]   ;;  %v161_v41 = vld [vmem:[%s314_s0 + $0x38] sm:$0xff]  }
   0x4   :  { %v50_v10 = vmul.f32 %v190_v1, %v125_v2  ;;  %v51_v11 = vmul.f32 %v190_v1, %v126_v4  ;;  %v52_v14 = vmul.f32 %v190_v1, %v129_v6  ;;  %v53_v15 = vmul.f32 %v190_v1, %v130_v7  ;;  %v158_v26 = vld [vmem:[%s314_s0 + $0x20] sm:$0xff]  }
   0x5   :  { %v54_v20 = vmul.f32 %v190_v1, %v133_v12  ;;  %v55_v21 = vmul.f32 %v190_v1, %v134_v13  ;;  %v56_v24 = vmul.f32 %v190_v1, %v137_v16  ;;  %v57_v25 = vmul.f32 %v190_v1, %v138_v17 }
   0x6   :  { %v70_v18 = vadd.f32 %v195_v3, %v50_v10  ;;  %v71_v19 = vadd.f32 %v195_v3, %v51_v11  ;;  %v72_v22 = vadd.f32 %v195_v3, %v52_v14  ;;  %v73_v23 = vadd.f32 %v195_v3, %v53_v15 }
   0x7   :  { %v74_v29 = vadd.f32 %v195_v3, %v54_v20  ;;  %v75_v30 = vadd.f32 %v195_v3, %v55_v21  ;;  %v76_v34 = vadd.f32 %v195_v3, %v56_v24  ;;  %v77_v35 = vadd.f32 %v195_v3, %v57_v25 }
   0x8   :  { %v86_v27 = vpack.c.bf16 %v70_v18, %v70_v18  ;;  %v87_v28 = vpack.c.bf16 %v71_v19, %v71_v19  ;;  %v88_v32 = vpack.c.bf16 %v72_v22, %v72_v22  ;;  %v89_v33 = vpack.c.bf16 %v73_v23, %v73_v23 }
   0x9   :  { %v90_v37 = vpack.c.bf16 %v74_v29, %v74_v29  ;;  %v91_v38 = vpack.c.bf16 %v75_v30, %v75_v30  ;;  %v141_v39 = vunpack.c.l.bf16 %v158_v26  ;;  %v142_v40 = vunpack.c.h.bf16 %v158_v26 }
   0xa   :  { %103 = vst.msk [vmem:[%s317_s3] sm:$0xf] %vm102_vm0, %v86_v27  ;;  %v92_v42 = vpack.c.bf16 %v76_v34, %v76_v34  ;;  %v93_v43 = vpack.c.bf16 %v77_v35, %v77_v35  ;;  %v145_v44 = vunpack.c.l.bf16 %v159_v31  ;;  %v146_v45 = vunpack.c.h.bf16 %v159_v31 }
   0xb   :  { %104 = vst.msk [vmem:[%s317_s3 + $0x4] sm:$0xf] %vm102_vm0, %v87_v28  ;;  %v58_v46 = vmul.f32 %v190_v1, %v141_v39  ;;  %v59_v47 = vmul.f32 %v190_v1, %v142_v40  ;;  %v149_v48 = vunpack.c.l.bf16 %v160_v36  ;;  %v150_v49 = vunpack.c.h.bf16 %v160_v36 }
   0xc   :  { %105 = vst.msk [vmem:[%s317_s3 + $0x8] sm:$0xf] %vm102_vm0, %v88_v32  ;;  %v60_v50 = vmul.f32 %v190_v1, %v145_v44  ;;  %v61_v51 = vmul.f32 %v190_v1, %v146_v45  ;;  %v153_v52 = vunpack.c.l.bf16 %v161_v41  ;;  %v154_v53 = vunpack.c.h.bf16 %v161_v41 }
   0xd   :  { %106 = vst.msk [vmem:[%s317_s3 + $0xc] sm:$0xf] %vm102_vm0, %v89_v33  ;;  %v78_v54 = vadd.f32 %v195_v3, %v58_v46  ;;  %v79_v55 = vadd.f32 %v195_v3, %v59_v47  ;;  %v62_v56 = vmul.f32 %v190_v1, %v149_v48  ;;  %v63_v57 = vmul.f32 %v190_v1, %v150_v49 }
   0xe   :  { %107 = vst.msk [vmem:[%s317_s3 + $0x10] sm:$0xf] %vm102_vm0, %v90_v37  ;;  %v80_v58 = vadd.f32 %v195_v3, %v60_v50  ;;  %v81_v59 = vadd.f32 %v195_v3, %v61_v51  ;;  %v64_v60 = vmul.f32 %v190_v1, %v153_v52  ;;  %v65_v61 = vmul.f32 %v190_v1, %v154_v53 }
   0xf   :  { %108 = vst.msk [vmem:[%s317_s3 + $0x14] sm:$0xf] %vm102_vm0, %v91_v38  ;;  %v94_v62 = vpack.c.bf16 %v78_v54, %v78_v54  ;;  %v95_v63 = vpack.c.bf16 %v79_v55, %v79_v55  ;;  %v82_v0 = vadd.f32 %v195_v3, %v62_v56  ;;  %v83_v2 = vadd.f32 %v195_v3, %v63_v57 }
  0x10   :  { %109 = vst.msk [vmem:[%s317_s3 + $0x18] sm:$0xf] %vm102_vm0, %v92_v42  ;;  %v96_v4 = vpack.c.bf16 %v80_v58, %v80_v58  ;;  %v97_v5 = vpack.c.bf16 %v81_v59, %v81_v59  ;;  %v84_v1 = vadd.f32 %v195_v3, %v64_v60  ;;  %v85_v6 = vadd.f32 %v195_v3, %v65_v61 }
  0x11   :  { %110 = vst.msk [vmem:[%s317_s3 + $0x1c] sm:$0xf] %vm102_vm0, %v93_v43  ;;  %v98_v7 = vpack.c.bf16 %v82_v0, %v82_v0  ;;  %v99_v8 = vpack.c.bf16 %v83_v2, %v83_v2 }
  0x12   :  { %111 = vst.msk [vmem:[%s317_s3 + $0x20] sm:$0xf] %vm102_vm0, %v94_v62  ;;  %v100_v9 = vpack.c.bf16 %v84_v1, %v84_v1  ;;  %v101_v3 = vpack.c.bf16 %v85_v6, %v85_v6 }
  0x13   :  { %112 = vst.msk [vmem:[%s317_s3 + $0x24] sm:$0xf] %vm102_vm0, %v95_v63 }
  0x14   :  { %113 = vst.msk [vmem:[%s317_s3 + $0x28] sm:$0xf] %vm102_vm0, %v96_v4 }
  0x15   :  { %114 = vst.msk [vmem:[%s317_s3 + $0x2c] sm:$0xf] %vm102_vm0, %v97_v5 }
  0x16   :  { %115 = vst.msk [vmem:[%s317_s3 + $0x30] sm:$0xf] %vm102_vm0, %v98_v7 }
  0x17   :  { %116 = vst.msk [vmem:[%s317_s3 + $0x34] sm:$0xf] %vm102_vm0, %v99_v8 }
  0x18   :  { %117 = vst.msk [vmem:[%s317_s3 + $0x38] sm:$0xf] %vm102_vm0, %v100_v9 }
  0x19   :  { %118 = vst.msk [vmem:[%s317_s3 + $0x3c] sm:$0xf] %vm102_vm0, %v101_v3 }

// kernel: unet_generator_forward.21
= control target key start
LH: loop header
LB: loop body
LE: loop exit
PB: predicated region body
PF: predicated region fallthrough
CT: control target
= control target key end

     0   :  { %vm42_vm0 = vcmask 257024   ;;  %s106_s0 = inlined_call_operand.vmem [shape: bf16[32,32], index: 0, kind: input, shape index: {}]   ;;  %s107_s1 = inlined_call_operand.vmem [shape: f32[1,32], index: 1, kind: input, shape index: {}]   ;;  %s108_s2 = inlined_call_operand.vmem [shape: f32[1,32], index: 2, kind: input, shape index: {}]   ;;  %s109_s3 = inlined_call_operand.vmem [shape: bf16[32,32], index: 3, kind: output, shape index: {}]  }
   0x1   :  { %v52_v0 = vld [vmem:[%s106_s0] sm:$0xff]   ;;  %v59_v5 = vld [vmem:[%s106_s0 + $0x8] sm:$0xff]  }
   0x2   :  { %v60_v1 = vld [vmem:[%s107_s1] ss:$0 sm:$0xff]  ;;  %v53_v2 = vunpack.c.l.bf16 %v52_v0  ;;  %v54_v4 = vunpack.c.h.bf16 %v52_v0  ;;  %v57_v6 = vunpack.c.l.bf16 %v59_v5  ;;  %v58_v7 = vunpack.c.h.bf16 %v59_v5 }
   0x3   :  { %v61_v3 = vld [vmem:[%s108_s2] ss:$0 sm:$0xff] }
   0x4   :  { %v26_v8 = vmul.f32 %v60_v1, %v53_v2  ;;  %v27_v9 = vmul.f32 %v60_v1, %v54_v4  ;;  %v28_v10 = vmul.f32 %v60_v1, %v57_v6  ;;  %v29_v11 = vmul.f32 %v60_v1, %v58_v7 }
   0x6   :  { %v34_v12 = vadd.f32 %v61_v3, %v26_v8  ;;  %v35_v13 = vadd.f32 %v61_v3, %v27_v9  ;;  %v36_v14 = vadd.f32 %v61_v3, %v28_v10  ;;  %v37_v15 = vadd.f32 %v61_v3, %v29_v11 }
   0x8   :  { %v38_v16 = vpack.c.bf16 %v34_v12, %v34_v12  ;;  %v39_v17 = vpack.c.bf16 %v35_v13, %v35_v13  ;;  %v40_v18 = vpack.c.bf16 %v36_v14, %v36_v14  ;;  %v41_v19 = vpack.c.bf16 %v37_v15, %v37_v15 }
   0xa   :  { %43 = vst.msk [vmem:[%s109_s3] sm:$0xf] %vm42_vm0, %v38_v16 }
   0xb   :  { %44 = vst.msk [vmem:[%s109_s3 + $0x4] sm:$0xf] %vm42_vm0, %v39_v17 }
   0xc   :  { %45 = vst.msk [vmem:[%s109_s3 + $0x8] sm:$0xf] %vm42_vm0, %v40_v18 }
   0xd   :  { %46 = vst.msk [vmem:[%s109_s3 + $0xc] sm:$0xf] %vm42_vm0, %v41_v19 }

// kernel: unet_generator_forward.20
= control target key start
LH: loop header
LB: loop body
LE: loop exit
PB: predicated region body
PF: predicated region fallthrough
CT: control target
= control target key end

     0   :  { %vm21_vm12 = vcmask 261120   ;;  %vm284_vm13 = vcmask 257024   ;;  %s623_s1 = inlined_call_operand.vmem [shape: bf16[1,256,32], index: 1, kind: input, shape index: {}]   ;;  %s624_s0 = inlined_call_operand.vmem [shape: bf16[1,32,256], index: 0, kind: input, shape index: {}]   ;;  %s625_s2 = inlined_call_operand.vmem [shape: f32[1,32], index: 2, kind: input, shape index: {}]   ;;  %s626_s3 = inlined_call_operand.vmem [shape: bf16[1,32,32], index: 3, kind: output, shape index: {0}]   ;;  %s627_s4 = inlined_call_operand.vmem [shape: f32[1,1,8,32], index: 4, kind: output, shape index: {1}]   ;;  %s628_s5 = inlined_call_operand.vmem [shape: f32[1,1,8,32], index: 5, kind: output, shape index: {2}]  }
   0x1   :  { %v404_v0 = vld [vmem:[%s623_s1 + $0x38] sm:$0xff]  ;;  %v403_v2 = vld [vmem:[%s623_s1 + $0x30] sm:$0xff]  ;;  %v402_v4 = vld [vmem:[%s623_s1 + $0x28] sm:$0xff] }
   0x2   :  { %v412_v1 = vld [vmem:[%s623_s1 + $0x78] sm:$0xff]  ;;  %218 = vmatpush.bf16.msra.mxu0 %v404_v0  ;;  %413 = vmatpush.bf16.msra.mxu2 %v404_v0  ;;  %v411_v3 = vld [vmem:[%s623_s1 + $0x70] sm:$0xff]  ;;  %v26_v5 = vld [vmem:[%s624_s0] sm:$0xff]  ;;  %v431_v0 = vmov 0.0  }
   0x3   :  { %237 = vmatpush.bf16.msra.mxu1 %v412_v1  ;;  %421 = vmatpush.bf16.msra.mxu3 %v412_v1  ;;  %v27_v6 = vld [vmem:[%s624_s0 + $0x8] sm:$0xff]  ;;  %v28_v8 = vld [vmem:[%s624_s0 + $0x10] sm:$0xff]  ;;  %v29_v9 = vld [vmem:[%s624_s0 + $0x18] sm:$0xff]  ;;  %v30_v10 = vunpack.c.l.bf16 %v26_v5  ;;  %v31_v11 = vunpack.c.h.bf16 %v26_v5  ;;  %22 = vst.msk [vmem:[#allocation2] sm:$0xff] %vm21_vm12, %v431_v0 }
   0x4   :  { %v410_v7 = vld [vmem:[%s623_s1 + $0x68] sm:$0xff]  ;;  %v32_v12 = vunpack.c.l.bf16 %v27_v6  ;;  %v33_v13 = vunpack.c.h.bf16 %v27_v6  ;;  %v401_v14 = vld [vmem:[%s623_s1 + $0x20] sm:$0xff]  ;;  %v34_v15 = vunpack.c.l.bf16 %v28_v8  ;;  %v35_v16 = vunpack.c.h.bf16 %v28_v8  ;;  %v400_v28 = vld [vmem:[%s623_s1 + $0x18] sm:$0xff]  ;;  %23 = vst.msk [vmem:[#allocation2 + $0x8] sm:$0xff] %vm21_vm12, %v431_v0 }
   0x5   :  { %v36_v17 = vunpack.c.l.bf16 %v29_v9  ;;  %v37_v18 = vunpack.c.h.bf16 %v29_v9  ;;  %v409_v19 = vld [vmem:[%s623_s1 + $0x60] sm:$0xff]  ;;  %vm498_vm0 = vcmp.ge.f32.partialorder %v30_v10, 0.0  ;;  %vm502_vm1 = vcmp.ge.f32.partialorder %v31_v11, 0.0  ;;  %v408_v33 = vld [vmem:[%s623_s1 + $0x58] sm:$0xff]  ;;  %v399_v39 = vld [vmem:[%s623_s1 + $0x10] sm:$0xff]  ;;  %24 = vst.msk [vmem:[#allocation2 + $0x10] sm:$0xff] %vm21_vm12, %v431_v0 }
   0x6   :  { %219 = vmatpush.bf16.msra.mxu0 %v403_v2  ;;  %414 = vmatpush.bf16.msra.mxu2 %v403_v2  ;;  %vm506_vm2 = vcmp.ge.f32.partialorder %v32_v12, 0.0  ;;  %vm510_vm3 = vcmp.ge.f32.partialorder %v33_v13, 0.0  ;;  %v46_v24 = vmul.f32 0.20019531, %v30_v10  ;;  %v47_v25 = vmul.f32 0.20019531, %v31_v11  ;;  %vm58_vm6 = vmpackc.low %vm502_vm1, %vm498_vm0  ;;  %v407_v43 = vld [vmem:[%s623_s1 + $0x50] sm:$0xff]  ;;  %v398_v45 = vld [vmem:[%s623_s1 + $0x8] sm:$0xff] }
   0x7   :  { %238 = vmatpush.bf16.msra.mxu1 %v411_v3  ;;  %422 = vmatpush.bf16.msra.mxu3 %v411_v3  ;;  %v48_v26 = vmul.f32 0.20019531, %v32_v12  ;;  %v49_v27 = vmul.f32 0.20019531, %v33_v13  ;;  %v50_v29 = vmul.f32 0.20019531, %v34_v15  ;;  %v51_v30 = vmul.f32 0.20019531, %v35_v16  ;;  %vm59_vm9 = vmpackc.low %vm510_vm3, %vm506_vm2  ;;  %v406_v49 = vld [vmem:[%s623_s1 + $0x48] sm:$0xff]  ;;  %v397_v54 = vld [vmem:[%s623_s1] sm:$0xff] }
   0x8   :  { %v52_v31 = vmul.f32 0.20019531, %v36_v17  ;;  %v53_v32 = vmul.f32 0.20019531, %v37_v18  ;;  %vm520_vm4 = vcmp.ge.f32.partialorder %v34_v15, 0.0  ;;  %vm524_vm5 = vcmp.ge.f32.partialorder %v35_v16, 0.0  ;;  %v405_v59 = vld [vmem:[%s623_s1 + $0x40] sm:$0xff]  ;;  %25 = vst.msk [vmem:[#allocation2 + $0x18] sm:$0xff] %vm21_vm12, %v431_v0 }
   0x9   :  { %vm532_vm7 = vcmp.ge.f32.partialorder %v36_v17, 0.0  ;;  %vm536_vm8 = vcmp.ge.f32.partialorder %v37_v18, 0.0  ;;  %v54_v38 = vpack.c.bf16 %v47_v25, %v46_v24  ;;  %v55_v40 = vpack.c.bf16 %v49_v27, %v48_v26  ;;  %vm60_vm10 = vmpackc.low %vm524_vm5, %vm520_vm4  ;;  %v430_v13 = vld [vmem:[%s625_s2] ss:$0 sm:$0xff] }
   0xa   :  { %220 = vmatpush.bf16.msra.mxu0 %v402_v4  ;;  %415 = vmatpush.bf16.msra.mxu2 %v402_v4  ;;  %v56_v41 = vpack.c.bf16 %v51_v30, %v50_v29  ;;  %v57_v42 = vpack.c.bf16 %v53_v32, %v52_v31  ;;  %vm61_vm11 = vmpackc.low %vm536_vm8, %vm532_vm7  ;;  %v66_v2 = vld [vmem:[#allocation2] sm:$0xff] }
   0xb   :  { %239 = vmatpush.bf16.msra.mxu1 %v410_v7  ;;  %423 = vmatpush.bf16.msra.mxu3 %v410_v7  ;;  %v62_v44 = vsel %vm58_vm6, %v26_v5, %v54_v38  ;;  %v63_v46 = vsel %vm59_vm9, %v27_v6, %v55_v40  ;;  %v67_v11 = vld [vmem:[#allocation2 + $0x8] sm:$0xff] }
   0xc   :  { %v64_v47 = vsel %vm60_vm10, %v28_v8, %v56_v41  ;;  %v65_v48 = vsel %vm61_vm11, %v29_v9, %v57_v42  ;;  %v106_v50 = vunpack.c.l.b16 %v62_v44  ;;  %v108_v51 = vunpack.c.l.b16 %v63_v46  ;;  %v68_v7 = vld [vmem:[#allocation2 + $0x10] sm:$0xff] }
   0xd   :  { %v110_v52 = vunpack.c.l.b16 %v64_v47  ;;  %v112_v53 = vunpack.c.l.b16 %v65_v48  ;;  %v107_v55 = vunpack.c.h.b16 %v62_v44  ;;  %v109_v56 = vunpack.c.h.b16 %v63_v46 }
   0xe   :  { %221 = vmatpush.bf16.msra.mxu0 %v401_v14  ;;  %416 = vmatpush.bf16.msra.mxu2 %v401_v14  ;;  %v111_v57 = vunpack.c.h.b16 %v64_v47  ;;  %v113_v58 = vunpack.c.h.b16 %v65_v48  ;;  %v114_v60 = vpack.c.b16 %v108_v51, %v106_v50 }
   0xf   :  { %240 = vmatpush.bf16.msra.mxu1 %v409_v19  ;;  %424 = vmatpush.bf16.msra.mxu3 %v409_v19  ;;  %v116_v61 = vpack.c.b16 %v112_v53, %v110_v52  ;;  %v115_v62 = vpack.c.b16 %v109_v56, %v107_v55  ;;  %v69_v20 = vld [vmem:[#allocation2 + $0x18] sm:$0xff] }
  0x10   :  { %v117_v63 = vpack.c.b16 %v113_v58, %v111_v57 }
  0x12   :  { %222 = vmatpush.bf16.msra.mxu0 %v400_v28  ;;  %417 = vmatpush.bf16.msra.mxu2 %v400_v28 }
  0x13   :  { %241 = vmatpush.bf16.msra.mxu1 %v408_v33  ;;  %425 = vmatpush.bf16.msra.mxu3 %v408_v33 }
  0x16   :  { %223 = vmatpush.bf16.msra.mxu0 %v399_v39  ;;  %418 = vmatpush.bf16.msra.mxu2 %v399_v39 }
  0x17   :  { %242 = vmatpush.bf16.msra.mxu1 %v407_v43  ;;  %426 = vmatpush.bf16.msra.mxu3 %v407_v43 }
  0x1a   :  { %224 = vmatpush.bf16.msra.mxu0 %v398_v45  ;;  %419 = vmatpush.bf16.msra.mxu2 %v398_v45 }
  0x1b   :  { %243 = vmatpush.bf16.msra.mxu1 %v406_v49  ;;  %427 = vmatpush.bf16.msra.mxu3 %v406_v49 }
  0x1e   :  { %225 = vmatpush.bf16.msra.mxu0 %v397_v54  ;;  %420 = vmatpush.bf16.msra.mxu2 %v397_v54 }
  0x1f   :  { %244 = vmatpush.bf16.msra.mxu1 %v405_v59  ;;  %428 = vmatpush.bf16.msra.mxu3 %v405_v59 }
  0x21   :  { %226 = vmatmul.bf16.vlgmr.msra.gmra.mxu0 %v114_v60  ;;  %231 = vmatmul.bf16.vlgmr.msra.gmra.mxu2 %v116_v61 }
  0x22   :  { %245 = vmatmul.bf16.vlgmr.msra.gmra.mxu1 %v115_v62  ;;  %250 = vmatmul.bf16.vlgmr.msra.gmra.mxu3 %v117_v63 }
  0x9e   :  { %v227_v1 = vpop.f32.mrf.mxu0 }
  0x9f   :  { %v246_v3 = vpop.f32.mrf.mxu1 }
  0xa0   :  { %v247_v4 = vadd.f32 %v246_v3, %v227_v1 }
  0xa2   :  { %v256_v5 = vadd.f32 %v247_v4, %v66_v2 }
  0xa4   :  { %261 = vst.msk [vmem:[#allocation2] sm:$0xff] %vm21_vm12, %v256_v5  ;;  %v232_v6 = vpop.f32.mrf.mxu2 }
  0xa5   :  { %v251_v8 = vpop.f32.mrf.mxu3 }
  0xa6   :  { %v252_v9 = vadd.f32 %v251_v8, %v232_v6  ;;  %v229_v10 = vpop.f32.mrf.mxu0 }
  0xa7   :  { %v248_v12 = vpop.f32.mrf.mxu1 }
  0xa8   :  { %v258_v14 = vadd.f32 %v252_v9, %v68_v7  ;;  %v249_v15 = vadd.f32 %v248_v12, %v229_v10 }
  0xaa   :  { %263 = vst.msk [vmem:[#allocation2 + $0x10] sm:$0xff] %vm21_vm12, %v258_v14  ;;  %v257_v16 = vadd.f32 %v249_v15, %v67_v11 }
  0xab   :  { %v268_v17 = vld [vmem:[#allocation2] sm:$0xff] }
  0xac   :  { %v276_v18 = vadd.f32 %v430_v13, %v268_v17  ;;  %262 = vst.msk [vmem:[#allocation2 + $0x8] sm:$0xff] %vm21_vm12, %v257_v16  ;;  %v234_v19 = vpop.f32.mrf.mxu2 }
  0xad   :  { %v253_v21 = vpop.f32.mrf.mxu3 }
  0xae   :  { %v280_v22 = vpack.c.bf16 %v276_v18, %v276_v18  ;;  %v254_v23 = vadd.f32 %v253_v21, %v234_v19  ;;  %v302_v28 = vmul.f32 %v276_v18, %v276_v18  ;;  %v289_v31 = vsel %vm21_vm12, %v276_v18, 0.0 }
  0xb0   :  { %285 = vst.msk [vmem:[%s626_s3] sm:$0xf] %vm284_vm13, %v280_v22  ;;  %v259_v24 = vadd.f32 %v254_v23, %v69_v20  ;;  %v306_v36 = vsel %vm21_vm12, %v302_v28, 0.0 }
  0xb1   :  { %v270_v25 = vld [vmem:[#allocation2 + $0x10] sm:$0xff] }
  0xb2   :  { %v278_v26 = vadd.f32 %v430_v13, %v270_v25  ;;  %264 = vst.msk [vmem:[#allocation2 + $0x18] sm:$0xff] %vm21_vm12, %v259_v24 }
  0xb3   :  { %v269_v27 = vld [vmem:[#allocation2 + $0x8] sm:$0xff] }
  0xb4   :  { %v282_v29 = vpack.c.bf16 %v278_v26, %v278_v26  ;;  %v277_v30 = vadd.f32 %v430_v13, %v269_v27  ;;  %v304_v37 = vmul.f32 %v278_v26, %v278_v26  ;;  %v292_v41 = vsel %vm21_vm12, %v278_v26, 0.0 }
  0xb6   :  { %287 = vst.msk [vmem:[%s626_s3 + $0x8] sm:$0xf] %vm284_vm13, %v282_v29  ;;  %v281_v32 = vpack.c.bf16 %v277_v30, %v277_v30  ;;  %v290_v33 = vsel %vm21_vm12, %v277_v30, 0.0  ;;  %v303_v34 = vmul.f32 %v277_v30, %v277_v30  ;;  %v309_v44 = vsel %vm21_vm12, %v304_v37, 0.0 }
  0xb7   :  { %v291_v35 = vadd.f32 %v290_v33, %v289_v31 }
  0xb8   :  { %286 = vst.msk [vmem:[%s626_s3 + $0x4] sm:$0xf] %vm284_vm13, %v281_v32  ;;  %v307_v38 = vsel %vm21_vm12, %v303_v34, 0.0 }
  0xb9   :  { %v308_v39 = vadd.f32 %v307_v38, %v306_v36  ;;  %v271_v40 = vld [vmem:[#allocation2 + $0x18] sm:$0xff]  ;;  %v293_v43 = vadd.f32 %v292_v41, %v291_v35 }
  0xba   :  { %v279_v42 = vadd.f32 %v430_v13, %v271_v40 }
  0xbb   :  { %v310_v49 = vadd.f32 %v309_v44, %v308_v39 }
  0xbc   :  { %v283_v45 = vpack.c.bf16 %v279_v42, %v279_v42  ;;  %v294_v46 = vsel %vm21_vm12, %v279_v42, 0.0  ;;  %v305_v47 = vmul.f32 %v279_v42, %v279_v42 }
  0xbd   :  { %v295_v48 = vadd.f32 %v294_v46, %v293_v43 }
  0xbe   :  { %288 = vst.msk [vmem:[%s626_s3 + $0xc] sm:$0xf] %vm284_vm13, %v283_v45  ;;  %v311_v50 = vsel %vm21_vm12, %v305_v47, 0.0 }
  0xbf   :  { %v296_v51 = vrot.slane %v295_v48, 4  ;;  %v312_v52 = vadd.f32 %v311_v50, %v310_v49 }
  0xc1   :  { %v297_v53 = vadd.f32 %v296_v51, %v295_v48  ;;  %v313_v54 = vrot.slane %v312_v52, 4 }
  0xc3   :  { %v298_v55 = vrot.slane %v297_v53, 2  ;;  %v314_v56 = vadd.f32 %v313_v54, %v312_v52 }
  0xc5   :  { %v299_v57 = vadd.f32 %v298_v55, %v297_v53  ;;  %v315_v58 = vrot.slane %v314_v56, 2 }
  0xc7   :  { %v300_v59 = vrot.slane %v299_v57, 1  ;;  %v316_v60 = vadd.f32 %v315_v58, %v314_v56 }
  0xc9   :  { %v301_v61 = vadd.f32 %v300_v59, %v299_v57  ;;  %v317_v62 = vrot.slane %v316_v60, 1 }
  0xcb   :  { %v318_v63 = vadd.f32 %v317_v62, %v316_v60  ;;  %319 = vst.msk [vmem:[%s627_s4] sm:$0xff] %vm21_vm12, %v301_v61 }
  0xcd   :  { %320 = vst.msk [vmem:[%s628_s5] sm:$0xff] %vm21_vm12, %v318_v63 }

// kernel: unet_generator_forward.23
= control target key start
LH: loop header
LB: loop body
LE: loop exit
PB: predicated region body
PF: predicated region fallthrough
CT: control target
= control target key end

     0   :  { %vm27_vm0 = vcmask 519168   ;;  %s67_s0 = inlined_call_operand.vmem [shape: bf16[8,64], index: 0, kind: input, shape index: {}]   ;;  %s68_s1 = inlined_call_operand.vmem [shape: f32[1,64], index: 1, kind: input, shape index: {}]   ;;  %s69_s2 = inlined_call_operand.vmem [shape: f32[1,64], index: 2, kind: input, shape index: {}]   ;;  %s70_s3 = inlined_call_operand.vmem [shape: bf16[8,64], index: 3, kind: output, shape index: {}]  }
   0x1   :  { %v14_v0 = vld [vmem:[%s67_s0] sm:$0xf] }
   0x2   :  { %v33_v1 = vld [vmem:[%s68_s1] ss:$0 sm:$0xff]  ;;  %v15_v2 = vunpack.c.l.bf16 %v14_v0 }
   0x3   :  { %v34_v3 = vld [vmem:[%s69_s2] ss:$0 sm:$0xff] }
   0x4   :  { %v20_v4 = vmul.f32 %v33_v1, %v15_v2 }
   0x6   :  { %v25_v5 = vadd.f32 %v34_v3, %v20_v4 }
   0x8   :  { %v26_v6 = vpack.c.bf16 %v25_v5, %v25_v5 }
   0xa   :  { %28 = vst.msk [vmem:[%s70_s3] sm:$0xf] %vm27_vm0, %v26_v6 }

// kernel: unet_generator_forward.22
= control target key start
LH: loop header
LB: loop body
LE: loop exit
PB: predicated region body
PF: predicated region fallthrough
CT: control target
= control target key end

     0   :  { %vm21_vm6 = vcmask 523264   ;;  %v572_v58 = vmov 0.0   ;;  %vm379_vm7 = vcmask 519168   ;;  %s747_s1 = inlined_call_operand.vmem [shape: bf16[1,512,64], index: 1, kind: input, shape index: {}]   ;;  %s748_s0 = inlined_call_operand.vmem [shape: bf16[1,8,512], index: 0, kind: input, shape index: {}]   ;;  %s749_s2 = inlined_call_operand.vmem [shape: f32[1,64], index: 2, kind: input, shape index: {}]   ;;  %s750_s3 = inlined_call_operand.vmem [shape: bf16[1,8,64], index: 3, kind: output, shape index: {0}]   ;;  %s751_s4 = inlined_call_operand.vmem [shape: f32[1,1,8,64], index: 4, kind: output, shape index: {1}]   ;;  %s752_s5 = inlined_call_operand.vmem [shape: f32[1,1,8,64], index: 5, kind: output, shape index: {2}]  }
   0x1   :  { %v545_v0 = vld [vmem:[%s747_s1 + $0x38] sm:$0xff]  ;;  %v544_v4 = vld [vmem:[%s747_s1 + $0x30] sm:$0xff]  ;;  %v543_v8 = vld [vmem:[%s747_s1 + $0x28] sm:$0xff]  ;;  %22 = vst.msk [vmem:[#allocation2] sm:$0xff] %vm21_vm6, %v572_v58 }
   0x2   :  { %v553_v1 = vld [vmem:[%s747_s1 + $0x78] sm:$0xff]  ;;  %314 = vmatpush.bf16.msra.mxu0 %v545_v0  ;;  %v552_v5 = vld [vmem:[%s747_s1 + $0x70] sm:$0xff]  ;;  %v551_v9 = vld [vmem:[%s747_s1 + $0x68] sm:$0xff] }
   0x3   :  { %v561_v2 = vld [vmem:[%s747_s1 + $0xb8] sm:$0xff]  ;;  %327 = vmatpush.bf16.msra.mxu1 %v553_v1  ;;  %v560_v6 = vld [vmem:[%s747_s1 + $0xb0] sm:$0xff]  ;;  %v559_v10 = vld [vmem:[%s747_s1 + $0xa8] sm:$0xff] }
   0x4   :  { %v569_v3 = vld [vmem:[%s747_s1 + $0xf8] sm:$0xff]  ;;  %340 = vmatpush.bf16.msra.mxu2 %v561_v2  ;;  %v568_v7 = vld [vmem:[%s747_s1 + $0xf0] sm:$0xff]  ;;  %v567_v11 = vld [vmem:[%s747_s1 + $0xe8] sm:$0xff] }
   0x5   :  { %353 = vmatpush.bf16.msra.mxu3 %v569_v3  ;;  %v542_v12 = vld [vmem:[%s747_s1 + $0x20] sm:$0xff]  ;;  %v24_v19 = vld [vmem:[%s748_s0 + $0x8] sm:$0xff]  ;;  %v541_v22 = vld [vmem:[%s747_s1 + $0x18] sm:$0xff] }
   0x6   :  { %315 = vmatpush.bf16.msra.mxu0 %v544_v4  ;;  %v550_v13 = vld [vmem:[%s747_s1 + $0x60] sm:$0xff]  ;;  %v27_v20 = vunpack.c.l.bf16 %v24_v19  ;;  %v28_v21 = vunpack.c.h.bf16 %v24_v19  ;;  %v549_v23 = vld [vmem:[%s747_s1 + $0x58] sm:$0xff]  ;;  %v540_v34 = vld [vmem:[%s747_s1 + $0x10] sm:$0xff] }
   0x7   :  { %328 = vmatpush.bf16.msra.mxu1 %v552_v5  ;;  %v23_v14 = vld [vmem:[%s748_s0] sm:$0xff]  ;;  %v557_v26 = vld [vmem:[%s747_s1 + $0x98] sm:$0xff]  ;;  %v548_v35 = vld [vmem:[%s747_s1 + $0x50] sm:$0xff] }
   0x8   :  { %341 = vmatpush.bf16.msra.mxu2 %v560_v6  ;;  %v558_v15 = vld [vmem:[%s747_s1 + $0xa0] sm:$0xff]  ;;  %v25_v17 = vunpack.c.l.bf16 %v23_v14  ;;  %v26_v18 = vunpack.c.h.bf16 %v23_v14  ;;  %v565_v27 = vld [vmem:[%s747_s1 + $0xd8] sm:$0xff]  ;;  %v35_v28 = vmul.f32 0.20019531, %v27_v20  ;;  %v36_v29 = vmul.f32 0.20019531, %v28_v21  ;;  %v556_v37 = vld [vmem:[%s747_s1 + $0x90] sm:$0xff] }
   0x9   :  { %354 = vmatpush.bf16.msra.mxu3 %v568_v7  ;;  %v566_v16 = vld [vmem:[%s747_s1 + $0xe0] sm:$0xff]  ;;  %vm677_vm2 = vcmp.ge.f32.partialorder %v27_v20, 0.0  ;;  %vm681_vm3 = vcmp.ge.f32.partialorder %v28_v21, 0.0  ;;  %v564_v38 = vld [vmem:[%s747_s1 + $0xd0] sm:$0xff]  ;;  %v539_v40 = vld [vmem:[%s747_s1 + $0x8] sm:$0xff] }
   0xa   :  { %316 = vmatpush.bf16.msra.mxu0 %v543_v8  ;;  %v33_v24 = vmul.f32 0.20019531, %v25_v17  ;;  %v34_v25 = vmul.f32 0.20019531, %v26_v18  ;;  %vm669_vm0 = vcmp.ge.f32.partialorder %v25_v17, 0.0  ;;  %vm673_vm1 = vcmp.ge.f32.partialorder %v26_v18, 0.0  ;;  %vm40_vm5 = vmpackc.low %vm681_vm3, %vm677_vm2  ;;  %v547_v41 = vld [vmem:[%s747_s1 + $0x48] sm:$0xff]  ;;  %v538_v48 = vld [vmem:[%s747_s1] sm:$0xff] }
   0xb   :  { %329 = vmatpush.bf16.msra.mxu1 %v551_v9  ;;  %vm39_vm4 = vmpackc.low %vm673_vm1, %vm669_vm0  ;;  %v38_v39 = vpack.c.bf16 %v36_v29, %v35_v28  ;;  %v555_v43 = vld [vmem:[%s747_s1 + $0x88] sm:$0xff]  ;;  %v546_v49 = vld [vmem:[%s747_s1 + $0x40] sm:$0xff] }
   0xc   :  { %342 = vmatpush.bf16.msra.mxu2 %v559_v10  ;;  %v37_v36 = vpack.c.bf16 %v34_v25, %v33_v24  ;;  %v563_v44 = vld [vmem:[%s747_s1 + $0xc8] sm:$0xff]  ;;  %v554_v52 = vld [vmem:[%s747_s1 + $0x80] sm:$0xff] }
   0xd   :  { %355 = vmatpush.bf16.msra.mxu3 %v567_v11  ;;  %v42_v45 = vsel %vm40_vm5, %v24_v19, %v38_v39  ;;  %v562_v53 = vld [vmem:[%s747_s1 + $0xc0] sm:$0xff] }
   0xe   :  { %317 = vmatpush.bf16.msra.mxu0 %v542_v12  ;;  %v41_v42 = vsel %vm39_vm4, %v23_v14, %v37_v36  ;;  %v112_v50 = vunpack.c.l.b16 %v42_v45  ;;  %v113_v51 = vunpack.c.h.b16 %v42_v45  ;;  %v43_v3 = vld [vmem:[#allocation2] sm:$0xff] }
   0xf   :  { %330 = vmatpush.bf16.msra.mxu1 %v550_v13  ;;  %v110_v46 = vunpack.c.l.b16 %v41_v42  ;;  %v111_v47 = vunpack.c.h.b16 %v41_v42  ;;  %v571_v8 = vld [vmem:[%s749_s2] ss:$0 sm:$0xff] }
  0x10   :  { %343 = vmatpush.bf16.msra.mxu2 %v558_v15  ;;  %v116_v56 = vpack.c.b16 %v112_v50, %v112_v50  ;;  %v117_v57 = vpack.c.b16 %v113_v51, %v113_v51 }
  0x11   :  { %356 = vmatpush.bf16.msra.mxu3 %v566_v16  ;;  %v114_v54 = vpack.c.b16 %v110_v46, %v110_v46  ;;  %v115_v55 = vpack.c.b16 %v111_v47, %v111_v47 }
  0x12   :  { %318 = vmatpush.bf16.msra.mxu0 %v541_v22 }
  0x13   :  { %331 = vmatpush.bf16.msra.mxu1 %v549_v23 }
  0x14   :  { %344 = vmatpush.bf16.msra.mxu2 %v557_v26 }
  0x15   :  { %357 = vmatpush.bf16.msra.mxu3 %v565_v27 }
  0x16   :  { %319 = vmatpush.bf16.msra.mxu0 %v540_v34 }
  0x17   :  { %332 = vmatpush.bf16.msra.mxu1 %v548_v35 }
  0x18   :  { %345 = vmatpush.bf16.msra.mxu2 %v556_v37 }
  0x19   :  { %358 = vmatpush.bf16.msra.mxu3 %v564_v38 }
  0x1a   :  { %320 = vmatpush.bf16.msra.mxu0 %v539_v40 }
  0x1b   :  { %333 = vmatpush.bf16.msra.mxu1 %v547_v41 }
  0x1c   :  { %346 = vmatpush.bf16.msra.mxu2 %v555_v43 }
  0x1d   :  { %359 = vmatpush.bf16.msra.mxu3 %v563_v44 }
  0x1e   :  { %321 = vmatpush.bf16.msra.mxu0 %v538_v48 }
  0x1f   :  { %334 = vmatpush.bf16.msra.mxu1 %v546_v49 }
  0x20   :  { %347 = vmatpush.bf16.msra.mxu2 %v554_v52 }
  0x21   :  { %360 = vmatpush.bf16.msra.mxu3 %v562_v53  ;;  %322 = vmatmul.bf16.vlgmr.msra.gmra.mxu0 %v114_v54 }
  0x22   :  { %335 = vmatmul.bf16.vlgmr.msra.gmra.mxu1 %v115_v55 }
  0x23   :  { %348 = vmatmul.bf16.vlgmr.msra.gmra.mxu2 %v116_v56 }
  0x24   :  { %361 = vmatmul.bf16.vlgmr.msra.gmra.mxu3 %v117_v57 }
  0x9e   :  { %v323_v59 = vpop.f32.mrf.mxu0 }
  0x9f   :  { %v336_v60 = vpop.f32.mrf.mxu1 }
  0xa0   :  { %v337_v61 = vadd.f32 %v336_v60, %v323_v59 }
  0xa6   :  { %v349_v62 = vpop.f32.mrf.mxu2  ;;  %v325_v1 = vpop.f32.mrf.mxu0 }
  0xa7   :  { %v362_v63 = vpop.f32.mrf.mxu3  ;;  %v350_v0 = vadd.f32 %v349_v62, %v337_v61  ;;  %v338_v2 = vpop.f32.mrf.mxu1 }
  0xa9   :  { %v363_v4 = vadd.f32 %v362_v63, %v350_v0 }
  0xab   :  { %v366_v5 = vadd.f32 %v363_v4, %v43_v3 }
  0xad   :  { %368 = vst.msk [vmem:[#allocation2] sm:$0xff] %vm21_vm6, %v366_v5 }
  0xae   :  { %v351_v6 = vpop.f32.mrf.mxu2 }
  0xaf   :  { %v364_v7 = vpop.f32.mrf.mxu3 }
  0xb4   :  { %v372_v9 = vld [vmem:[#allocation2] sm:$0xff] }
  0xb5   :  { %v377_v10 = vadd.f32 %v571_v8, %v372_v9 }
  0xb7   :  { %v378_v11 = vpack.c.bf16 %v377_v10, %v377_v10  ;;  %v381_v12 = vsel %vm21_vm6, %v377_v10, 0.0  ;;  %v388_v13 = vmul.f32 %v377_v10, %v377_v10 }
  0xb8   :  { %v382_v14 = vrot.slane %v381_v12, 4 }
  0xb9   :  { %380 = vst.msk [vmem:[%s750_s3] sm:$0xf] %vm379_vm7, %v378_v11  ;;  %v389_v15 = vsel %vm21_vm6, %v388_v13, 0.0 }
  0xba   :  { %v383_v16 = vadd.f32 %v382_v14, %v381_v12  ;;  %v390_v17 = vrot.slane %v389_v15, 4 }
  0xbc   :  { %v384_v18 = vrot.slane %v383_v16, 2  ;;  %v391_v19 = vadd.f32 %v390_v17, %v389_v15 }
  0xbe   :  { %v385_v20 = vadd.f32 %v384_v18, %v383_v16  ;;  %v392_v21 = vrot.slane %v391_v19, 2 }
  0xc0   :  { %v386_v22 = vrot.slane %v385_v20, 1  ;;  %v393_v23 = vadd.f32 %v392_v21, %v391_v19 }
  0xc2   :  { %v387_v24 = vadd.f32 %v386_v22, %v385_v20  ;;  %v394_v25 = vrot.slane %v393_v23, 1 }
  0xc4   :  { %v395_v26 = vadd.f32 %v394_v25, %v393_v23  ;;  %396 = vst.msk [vmem:[%s751_s4] sm:$0xff] %vm21_vm6, %v387_v24 }
  0xc6   :  { %397 = vst.msk [vmem:[%s752_s5] sm:$0xff] %vm21_vm6, %v395_v26 }

// kernel: unet_generator_forward.25
= control target key start
LH: loop header
LB: loop body
LE: loop exit
PB: predicated region body
PF: predicated region fallthrough
CT: control target
= control target key end

     0   :  { %s1023_s18 = smov 0   ;;  %s1025_s19 = smov 0   ;;  %s1102_s0 = inlined_call_operand.vmem [shape: bf16[4,8,256], index: 0, kind: input, shape index: {}]   ;;  %s1103_s1 = inlined_call_operand.vmem [shape: bf16[4,256,64], index: 1, kind: input, shape index: {}]   ;;  %s1104_s2 = inlined_call_operand.vmem [shape: f32[1,64], index: 2, kind: input, shape index: {}]   ;;  %s1105_s3 = inlined_call_operand.vmem [shape: bf16[4,8,64], index: 3, kind: output, shape index: {0}]   ;;  %s1106_s4 = inlined_call_operand.vmem [shape: f32[4,1,8,64], index: 4, kind: output, shape index: {1}]   ;;  %s1107_s5 = inlined_call_operand.vmem [shape: f32[4,1,8,64], index: 5, kind: output, shape index: {2}]  }
   0x1   :  { %s1027_s20 = smov 0  }
   0x2 LB: > { %s42_s21 = sadd.s32 1, %s986_s19  ;;  %p850_p0 = scmp.ge.s32.totalorder %s990_s20, 1  ;;  %s990_s20 = sphi %s1027_s20, %s16_s20   ;;  %s986_s19 = sphi %s1025_s19, %s1109_s19   ;;  %s982_s18 = sphi %s1023_s18, %s1108_s18  }
   0x3   : > { %p44_p1 = scmp.ge.s32.totalorder %s42_s21, 4  ;;  %p273_p2 = scmp.lt.s32.totalorder %s990_s20, 5 }
   0x5   : > { %s1111_s21 = smov (%p44_p1, %s42_s21), 0  ;;  %p274_p3 = pnand %p850_p0, %p273_p2 }
   0x6   : > { %p350_p4 = scmp.lt.s32.totalorder (!%p274_p3), %s982_s18, 3 }
   0x7   : > { %277 = sbr.rel (%p274_p3) target bundleno = 204 (0xcc), region = 32 }
   0xc   : > { %s1113_s18 = smov (!%p350_p4, %s982_s18), 3  ;;  %vm413_vm0 = vcmask 523264   ;;  %v992_v21 = vmov 0.0   ;;  %v967_v29 = vld [vmem:[%s1104_s2] ss:$0 sm:$0xff]  ;;  %vm591_vm1 = vcmask 519168  }
   0xd   : > { %s925_s22 = sshll.u32 %s1113_s18, 7  ;;  %s1060_s26 = sshll.u32 %s1113_s18, 3  ;;  %414 = vst.msk [vmem:[#allocation2] sm:$0xff] %vm413_vm0, %v992_v21 }
   0xe   : > { %s1047_s25 = scalar_lea.vmem %s1103_s1, %s925_s22  ;;  %s361_s29 = scalar_lea.vmem %s1102_s0, %s1060_s26 }
   0xf   : > { %v933_v0 = vld [vmem:[%s1047_s25 + $0x38] sm:$0xff]  ;;  %v932_v2 = vld [vmem:[%s1047_s25 + $0x30] sm:$0xff]  ;;  %v931_v4 = vld [vmem:[%s1047_s25 + $0x28] sm:$0xff]  ;;  %s855_s7 = sshll.u32 %s1113_s18, 2  ;;  %s398_s13 = scalar_lea.vmem %s1106_s4, %s1060_s26 }
  0x10   : > { %v941_v1 = vld [vmem:[%s1047_s25 + $0x78] sm:$0xff]  ;;  %552 = vmatpush.bf16.msra.mxu0 %v933_v0  ;;  %v940_v3 = vld [vmem:[%s1047_s25 + $0x70] sm:$0xff]  ;;  %v939_v5 = vld [vmem:[%s1047_s25 + $0x68] sm:$0xff]  ;;  %s388_s10 = scalar_lea.vmem %s1105_s3, %s855_s7  ;;  %s408_s16 = scalar_lea.vmem %s1107_s5, %s1060_s26 }
  0x11   : > { %565 = vmatpush.bf16.msra.mxu1 %v941_v1  ;;  %v930_v6 = vld [vmem:[%s1047_s25 + $0x20] sm:$0xff]  ;;  %v929_v8 = vld [vmem:[%s1047_s25 + $0x18] sm:$0xff]  ;;  %v928_v10 = vld [vmem:[%s1047_s25 + $0x10] sm:$0xff] }
  0x12   : > { %v938_v7 = vld [vmem:[%s1047_s25 + $0x60] sm:$0xff]  ;;  %v937_v9 = vld [vmem:[%s1047_s25 + $0x58] sm:$0xff]  ;;  %v936_v11 = vld [vmem:[%s1047_s25 + $0x50] sm:$0xff] }
  0x13   : > { %v927_v12 = vld [vmem:[%s1047_s25 + $0x8] sm:$0xff]  ;;  %v415_v14 = vld [vmem:[%s361_s29] sm:$0xff] }
  0x14   : > { %553 = vmatpush.bf16.msra.mxu0 %v932_v2  ;;  %v935_v13 = vld [vmem:[%s1047_s25 + $0x48] sm:$0xff]  ;;  %v450_v15 = vunpack.c.l.b16 %v415_v14  ;;  %v451_v16 = vunpack.c.h.b16 %v415_v14  ;;  %v926_v17 = vld [vmem:[%s1047_s25] sm:$0xff] }
  0x15   : > { %566 = vmatpush.bf16.msra.mxu1 %v940_v3  ;;  %v934_v18 = vld [vmem:[%s1047_s25 + $0x40] sm:$0xff] }
  0x16   : > { %v452_v19 = vpack.c.b16 %v450_v15, %v450_v15  ;;  %v453_v20 = vpack.c.b16 %v451_v16, %v451_v16  ;;  %v416_v23 = vld [vmem:[#allocation2] sm:$0xff] }
  0x18   : > { %554 = vmatpush.bf16.msra.mxu0 %v931_v4 }
  0x19   : > { %567 = vmatpush.bf16.msra.mxu1 %v939_v5 }
  0x1c   : > { %555 = vmatpush.bf16.msra.mxu0 %v930_v6 }
  0x1d   : > { %568 = vmatpush.bf16.msra.mxu1 %v938_v7 }
  0x20   : > { %556 = vmatpush.bf16.msra.mxu0 %v929_v8 }
  0x21   : > { %569 = vmatpush.bf16.msra.mxu1 %v937_v9 }
  0x24   : > { %557 = vmatpush.bf16.msra.mxu0 %v928_v10 }
  0x25   : > { %570 = vmatpush.bf16.msra.mxu1 %v936_v11 }
  0x28   : > { %558 = vmatpush.bf16.msra.mxu0 %v927_v12 }
  0x29   : > { %571 = vmatpush.bf16.msra.mxu1 %v935_v13 }
  0x2c   : > { %559 = vmatpush.bf16.msra.mxu0 %v926_v17 }
  0x2d   : > { %572 = vmatpush.bf16.msra.mxu1 %v934_v18 }
  0x2f   : > { %560 = vmatmul.bf16.vlgmr.msra.gmra.mxu0 %v452_v19 }
  0x30   : > { %573 = vmatmul.bf16.vlgmr.msra.gmra.mxu1 %v453_v20 }
  0xac   : > { %v561_v22 = vpop.f32.mrf.mxu0 }
  0xad   : > { %v574_v24 = vpop.f32.mrf.mxu1 }
  0xae   : > { %v575_v25 = vadd.f32 %v574_v24, %v561_v22 }
  0xb0   : > { %v578_v26 = vadd.f32 %v575_v25, %v416_v23 }
  0xb2   : > { %580 = vst.msk [vmem:[#allocation2] sm:$0xff] %vm413_vm0, %v578_v26 }
  0xb4   : > { %v563_v27 = vpop.f32.mrf.mxu0 }
  0xb5   : > { %v576_v28 = vpop.f32.mrf.mxu1 }
  0xb9   : > { %v584_v30 = vld [vmem:[#allocation2] sm:$0xff] }
  0xba   : > { %v589_v31 = vadd.f32 %v967_v29, %v584_v30 }
  0xbc   : > { %v590_v32 = vpack.c.bf16 %v589_v31, %v589_v31  ;;  %v593_v33 = vsel %vm413_vm0, %v589_v31, 0.0  ;;  %v600_v34 = vmul.f32 %v589_v31, %v589_v31 }
  0xbd   : > { %v594_v35 = vrot.slane %v593_v33, 4 }
  0xbe   : > { %592 = vst.msk [vmem:[%s388_s10] sm:$0xf] %vm591_vm1, %v590_v32  ;;  %v601_v36 = vsel %vm413_vm0, %v600_v34, 0.0 }
  0xbf   : > { %v595_v37 = vadd.f32 %v594_v35, %v593_v33  ;;  %v602_v38 = vrot.slane %v601_v36, 4 }
  0xc1   : > { %v596_v39 = vrot.slane %v595_v37, 2  ;;  %v603_v40 = vadd.f32 %v602_v38, %v601_v36 }
  0xc3   : > { %v597_v41 = vadd.f32 %v596_v39, %v595_v37  ;;  %v604_v42 = vrot.slane %v603_v40, 2 }
  0xc5   : > { %v598_v43 = vrot.slane %v597_v41, 1  ;;  %v605_v44 = vadd.f32 %v604_v42, %v603_v40 }
  0xc7   : > { %v599_v45 = vadd.f32 %v598_v43, %v597_v41  ;;  %v606_v46 = vrot.slane %v605_v44, 1 }
  0xc9   : > { %v607_v47 = vadd.f32 %v606_v46, %v605_v44  ;;  %608 = vst.msk [vmem:[%s398_s13] sm:$0xff] %vm413_vm0, %v599_v45 }
  0xcb   : > { %609 = vst.msk [vmem:[%s408_s16] sm:$0xff] %vm413_vm0, %v607_v47 }
  0xcc PF: > { %s16_s20 = sadd.s32 1, %s990_s20   ;;  %s1108_s18 = smov %s986_s19 }
  0xcd   : > { %p13_p5 = scmp.ge.s32.totalorder %s16_s20, 6   ;;  %s1109_s19 = smov %s1111_s21 }
  0xcf   :  { %15 = sbr.rel (!%p13_p5) target bundleno = 2 (0x2), region = 100 }

// kernel: unet_generator_forward.24
= control target key start
LH: loop header
LB: loop body
LE: loop exit
PB: predicated region body
PF: predicated region fallthrough
CT: control target
= control target key end

     0   :  { %vm18_vm12 = vcmask 523264   ;;  %vm719_vm13 = vcmask 519168   ;;  %s1322_s1 = inlined_call_operand.vmem [shape: bf16[1,1024,64], index: 1, kind: input, shape index: {}]   ;;  %s1323_s0 = inlined_call_operand.vmem [shape: bf16[1,8,1024], index: 0, kind: input, shape index: {}]   ;;  %s1324_s2 = inlined_call_operand.vmem [shape: f32[1,64], index: 2, kind: input, shape index: {}]   ;;  %s1325_s3 = inlined_call_operand.vmem [shape: bf16[1,8,64], index: 3, kind: output, shape index: {}]  }
   0x1   :  { %v988_v0 = vld [vmem:[%s1322_s1 + $0x38] sm:$0xff]  ;;  %v987_v4 = vld [vmem:[%s1322_s1 + $0x30] sm:$0xff]  ;;  %v986_v8 = vld [vmem:[%s1322_s1 + $0x28] sm:$0xff] }
   0x2   :  { %v996_v1 = vld [vmem:[%s1322_s1 + $0x78] sm:$0xff]  ;;  %601 = vmatpush.bf16.msra.mxu0 %v988_v0  ;;  %v995_v5 = vld [vmem:[%s1322_s1 + $0x70] sm:$0xff]  ;;  %v994_v9 = vld [vmem:[%s1322_s1 + $0x68] sm:$0xff] }
   0x3   :  { %v1004_v2 = vld [vmem:[%s1322_s1 + $0xb8] sm:$0xff]  ;;  %614 = vmatpush.bf16.msra.mxu1 %v996_v1  ;;  %v1003_v6 = vld [vmem:[%s1322_s1 + $0xb0] sm:$0xff]  ;;  %v1002_v10 = vld [vmem:[%s1322_s1 + $0xa8] sm:$0xff] }
   0x4   :  { %v1012_v3 = vld [vmem:[%s1322_s1 + $0xf8] sm:$0xff]  ;;  %627 = vmatpush.bf16.msra.mxu2 %v1004_v2  ;;  %v1011_v7 = vld [vmem:[%s1322_s1 + $0xf0] sm:$0xff]  ;;  %v1010_v11 = vld [vmem:[%s1322_s1 + $0xe8] sm:$0xff] }
   0x5   :  { %640 = vmatpush.bf16.msra.mxu3 %v1012_v3  ;;  %v985_v12 = vld [vmem:[%s1322_s1 + $0x20] sm:$0xff]  ;;  %v21_v16 = vld [vmem:[%s1323_s0 + $0x8] sm:$0xff]  ;;  %v984_v17 = vld [vmem:[%s1322_s1 + $0x18] sm:$0xff] }
   0x6   :  { %602 = vmatpush.bf16.msra.mxu0 %v987_v4  ;;  %v993_v13 = vld [vmem:[%s1322_s1 + $0x60] sm:$0xff]  ;;  %v992_v18 = vld [vmem:[%s1322_s1 + $0x58] sm:$0xff]  ;;  %v26_v19 = vunpack.c.l.bf16 %v21_v16  ;;  %v27_v20 = vunpack.c.h.bf16 %v21_v16  ;;  %v983_v30 = vld [vmem:[%s1322_s1 + $0x10] sm:$0xff] }
   0x7   :  { %615 = vmatpush.bf16.msra.mxu1 %v995_v5  ;;  %v1001_v14 = vld [vmem:[%s1322_s1 + $0xa0] sm:$0xff]  ;;  %v1000_v21 = vld [vmem:[%s1322_s1 + $0x98] sm:$0xff]  ;;  %v991_v31 = vld [vmem:[%s1322_s1 + $0x50] sm:$0xff] }
   0x8   :  { %628 = vmatpush.bf16.msra.mxu2 %v1003_v6  ;;  %v1009_v15 = vld [vmem:[%s1322_s1 + $0xe0] sm:$0xff]  ;;  %v1008_v22 = vld [vmem:[%s1322_s1 + $0xd8] sm:$0xff]  ;;  %vm1134_vm0 = vcmp.ge.f32.partialorder %v26_v19, 0.0  ;;  %vm1138_vm1 = vcmp.ge.f32.partialorder %v27_v20, 0.0  ;;  %v42_v26 = vmul.f32 0.20019531, %v26_v19  ;;  %v43_v27 = vmul.f32 0.20019531, %v27_v20 }
   0x9   :  { %641 = vmatpush.bf16.msra.mxu3 %v1011_v7  ;;  %v20_v23 = vld [vmem:[%s1323_s0] sm:$0xff]  ;;  %v999_v33 = vld [vmem:[%s1322_s1 + $0x90] sm:$0xff]  ;;  %vm53_vm2 = vmpackc.low %vm1138_vm1, %vm1134_vm0 }
   0xa   :  { %603 = vmatpush.bf16.msra.mxu0 %v986_v8  ;;  %v24_v28 = vunpack.c.l.bf16 %v20_v23  ;;  %v25_v29 = vunpack.c.h.bf16 %v20_v23  ;;  %v49_v32 = vpack.c.bf16 %v43_v27, %v42_v26  ;;  %v1007_v34 = vld [vmem:[%s1322_s1 + $0xd0] sm:$0xff]  ;;  %v982_v39 = vld [vmem:[%s1322_s1 + $0x8] sm:$0xff]  ;;  %v981_v45 = vld [vmem:[%s1322_s1] sm:$0xff] }
   0xb   :  { %616 = vmatpush.bf16.msra.mxu1 %v994_v9  ;;  %v990_v40 = vld [vmem:[%s1322_s1 + $0x48] sm:$0xff]  ;;  %v989_v46 = vld [vmem:[%s1322_s1 + $0x40] sm:$0xff]  ;;  %v1020_v53 = vld [vmem:[%s1322_s1 + $0x138] sm:$0xff] }
   0xc   :  { %629 = vmatpush.bf16.msra.mxu2 %v1002_v10  ;;  %vm1158_vm3 = vcmp.ge.f32.partialorder %v24_v28, 0.0  ;;  %vm33_vm4 = vcmp.ge.f32.partialorder %v25_v29, 0.0  ;;  %v40_v36 = vmul.f32 0.20019531, %v24_v28  ;;  %v41_v37 = vmul.f32 0.20019531, %v25_v29  ;;  %v998_v41 = vld [vmem:[%s1322_s1 + $0x88] sm:$0xff]  ;;  %v997_v49 = vld [vmem:[%s1322_s1 + $0x80] sm:$0xff] }
   0xd   :  { %642 = vmatpush.bf16.msra.mxu3 %v1010_v11  ;;  %vm52_vm5 = vmpackc.low %vm33_vm4, %vm1158_vm3  ;;  %v1006_v42 = vld [vmem:[%s1322_s1 + $0xc8] sm:$0xff]  ;;  %v57_v43 = vsel %vm53_vm2, %v21_v16, %v49_v32  ;;  %v1005_v50 = vld [vmem:[%s1322_s1 + $0xc0] sm:$0xff] }
   0xe   :  { %604 = vmatpush.bf16.msra.mxu0 %v985_v12  ;;  %v48_v38 = vpack.c.bf16 %v41_v37, %v40_v36  ;;  %v195_v47 = vunpack.c.l.b16 %v57_v43  ;;  %v196_v51 = vunpack.c.h.b16 %v57_v43  ;;  %v1028_v54 = vld [vmem:[%s1322_s1 + $0x178] sm:$0xff]  ;;  %v1019_v61 = vld [vmem:[%s1322_s1 + $0x130] sm:$0xff]  ;;  %v1018_v1 = vld [vmem:[%s1322_s1 + $0x128] sm:$0xff] }
   0xf   :  { %617 = vmatpush.bf16.msra.mxu1 %v993_v13  ;;  %v1036_v55 = vld [vmem:[%s1322_s1 + $0x1b8] sm:$0xff]  ;;  %v1027_v62 = vld [vmem:[%s1322_s1 + $0x170] sm:$0xff]  ;;  %v1026_v2 = vld [vmem:[%s1322_s1 + $0x168] sm:$0xff] }
  0x10   :  { %630 = vmatpush.bf16.msra.mxu2 %v1001_v14  ;;  %v56_v44 = vsel %vm52_vm5, %v20_v23, %v48_v38  ;;  %v1044_v56 = vld [vmem:[%s1322_s1 + $0x1f8] sm:$0xff]  ;;  %v203_v57 = vpack.c.b16 %v195_v47, %v195_v47  ;;  %v204_v59 = vpack.c.b16 %v196_v51, %v196_v51  ;;  %v1035_v63 = vld [vmem:[%s1322_s1 + $0x1b0] sm:$0xff]  ;;  %v1034_v3 = vld [vmem:[%s1322_s1 + $0x1a8] sm:$0xff] }
  0x11   :  { %643 = vmatpush.bf16.msra.mxu3 %v1009_v15  ;;  %v193_v48 = vunpack.c.l.b16 %v56_v44  ;;  %v194_v52 = vunpack.c.h.b16 %v56_v44  ;;  %v1043_v0 = vld [vmem:[%s1322_s1 + $0x1f0] sm:$0xff]  ;;  %v1042_v4 = vld [vmem:[%s1322_s1 + $0x1e8] sm:$0xff]  ;;  %v23_v6 = vld [vmem:[%s1323_s0 + $0x18] sm:$0xff] }
  0x12   :  { %605 = vmatpush.bf16.msra.mxu0 %v984_v17  ;;  %v22_v5 = vld [vmem:[%s1323_s0 + $0x10] sm:$0xff]  ;;  %v1017_v7 = vld [vmem:[%s1322_s1 + $0x120] sm:$0xff]  ;;  %v30_v13 = vunpack.c.l.bf16 %v23_v6  ;;  %v31_v14 = vunpack.c.h.bf16 %v23_v6  ;;  %v1016_v15 = vld [vmem:[%s1322_s1 + $0x118] sm:$0xff] }
  0x13   :  { %618 = vmatpush.bf16.msra.mxu1 %v992_v18  ;;  %v201_v58 = vpack.c.b16 %v193_v48, %v193_v48  ;;  %v202_v60 = vpack.c.b16 %v194_v52, %v194_v52  ;;  %v1025_v8 = vld [vmem:[%s1322_s1 + $0x160] sm:$0xff]  ;;  %v28_v9 = vunpack.c.l.bf16 %v22_v5  ;;  %v29_v10 = vunpack.c.h.bf16 %v22_v5  ;;  %v1024_v16 = vld [vmem:[%s1322_s1 + $0x158] sm:$0xff]  ;;  %v1015_v27 = vld [vmem:[%s1322_s1 + $0x110] sm:$0xff] }
  0x14   :  { %631 = vmatpush.bf16.msra.mxu2 %v1000_v21  ;;  %v1033_v11 = vld [vmem:[%s1322_s1 + $0x1a0] sm:$0xff]  ;;  %v1032_v19 = vld [vmem:[%s1322_s1 + $0x198] sm:$0xff]  ;;  %v46_v21 = vmul.f32 0.20019531, %v30_v13  ;;  %vm1262_vm8 = vcmp.ge.f32.partialorder %v30_v13, 0.0  ;;  %vm1266_vm9 = vcmp.ge.f32.partialorder %v31_v14, 0.0  ;;  %v1023_v28 = vld [vmem:[%s1322_s1 + $0x150] sm:$0xff] }
  0x15   :  { %644 = vmatpush.bf16.msra.mxu3 %v1008_v22  ;;  %v1041_v12 = vld [vmem:[%s1322_s1 + $0x1e0] sm:$0xff]  ;;  %v44_v17 = vmul.f32 0.20019531, %v28_v9  ;;  %v45_v18 = vmul.f32 0.20019531, %v29_v10  ;;  %v1040_v20 = vld [vmem:[%s1322_s1 + $0x1d8] sm:$0xff]  ;;  %v47_v22 = vmul.f32 0.20019531, %v31_v14  ;;  %vm1254_vm6 = vcmp.ge.f32.partialorder %v28_v9, 0.0  ;;  %vm55_vm11 = vmpackc.low %vm1266_vm9, %vm1262_vm8 }
  0x16   :  { %606 = vmatpush.bf16.msra.mxu0 %v983_v30  ;;  %vm1258_vm7 = vcmp.ge.f32.partialorder %v29_v10, 0.0  ;;  %v1031_v30 = vld [vmem:[%s1322_s1 + $0x190] sm:$0xff]  ;;  %v1030_v36 = vld [vmem:[%s1322_s1 + $0x188] sm:$0xff]  ;;  %v1046_v13 = vld [vmem:[%s1324_s2] ss:$0 sm:$0xff] }
  0x17   :  { %619 = vmatpush.bf16.msra.mxu1 %v991_v31  ;;  %v50_v29 = vpack.c.bf16 %v45_v18, %v44_v17  ;;  %v1039_v31 = vld [vmem:[%s1322_s1 + $0x1d0] sm:$0xff]  ;;  %vm54_vm10 = vmpackc.low %vm1258_vm7, %vm1254_vm6  ;;  %v51_v32 = vpack.c.bf16 %v47_v22, %v46_v21  ;;  %v1038_v37 = vld [vmem:[%s1322_s1 + $0x1c8] sm:$0xff] }
  0x18   :  { %632 = vmatpush.bf16.msra.mxu2 %v999_v33  ;;  %v1014_v33 = vld [vmem:[%s1322_s1 + $0x108] sm:$0xff] }
  0x19   :  { %645 = vmatpush.bf16.msra.mxu3 %v1007_v34  ;;  %v1022_v34 = vld [vmem:[%s1322_s1 + $0x148] sm:$0xff]  ;;  %v58_v35 = vsel %vm54_vm10, %v22_v5, %v50_v29  ;;  %v59_v38 = vsel %vm55_vm11, %v23_v6, %v51_v32 }
  0x1a   :  { %607 = vmatpush.bf16.msra.mxu0 %v982_v39  ;;  %v197_v39 = vunpack.c.l.b16 %v58_v35  ;;  %v199_v43 = vunpack.c.l.b16 %v59_v38  ;;  %v200_v44 = vunpack.c.h.b16 %v59_v38 }
  0x1b   :  { %620 = vmatpush.bf16.msra.mxu1 %v990_v40  ;;  %v198_v40 = vunpack.c.h.b16 %v58_v35 }
  0x1c   :  { %633 = vmatpush.bf16.msra.mxu2 %v998_v41  ;;  %v1013_v41 = vld [vmem:[%s1322_s1 + $0x100] sm:$0xff]  ;;  %v205_v47 = vpack.c.b16 %v197_v39, %v197_v39 }
  0x1d   :  { %646 = vmatpush.bf16.msra.mxu3 %v1006_v42  ;;  %v1021_v42 = vld [vmem:[%s1322_s1 + $0x140] sm:$0xff]  ;;  %v206_v48 = vpack.c.b16 %v198_v40, %v198_v40 }
  0x1e   :  { %608 = vmatpush.bf16.msra.mxu0 %v981_v45  ;;  %v1029_v45 = vld [vmem:[%s1322_s1 + $0x180] sm:$0xff] }
  0x1f   :  { %621 = vmatpush.bf16.msra.mxu1 %v989_v46  ;;  %v1037_v46 = vld [vmem:[%s1322_s1 + $0x1c0] sm:$0xff] }
  0x20   :  { %634 = vmatpush.bf16.msra.mxu2 %v997_v49  ;;  %v207_v49 = vpack.c.b16 %v199_v43, %v199_v43 }
  0x21   :  { %647 = vmatpush.bf16.msra.mxu3 %v1005_v50  ;;  %609 = vmatmul.bf16.vlgmr.msra.gmra.mxu0 %v201_v58  ;;  %v208_v50 = vpack.c.b16 %v200_v44, %v200_v44 }
  0x22   :  { %653 = vmatpush.bf16.msrb.mxu0 %v1020_v53  ;;  %622 = vmatmul.bf16.vlgmr.msra.gmra.mxu1 %v202_v60  ;;  %v1047_v53 = vmov 0.0  }
  0x23   :  { %666 = vmatpush.bf16.msrb.mxu1 %v1028_v54  ;;  %635 = vmatmul.bf16.vlgmr.msra.gmra.mxu2 %v203_v57  ;;  %19 = vst.msk [vmem:[#allocation2] sm:$0xff] %vm18_vm12, %v1047_v53 }
  0x24   :  { %679 = vmatpush.bf16.msrb.mxu2 %v1036_v55  ;;  %648 = vmatmul.bf16.vlgmr.msra.gmra.mxu3 %v204_v59 }
  0x25   :  { %692 = vmatpush.bf16.msrb.mxu3 %v1044_v56 }
  0x26   :  { %654 = vmatpush.bf16.msrb.mxu0 %v1019_v61 }
  0x27   :  { %667 = vmatpush.bf16.msrb.mxu1 %v1027_v62 }
  0x28   :  { %680 = vmatpush.bf16.msrb.mxu2 %v1035_v63 }
  0x29   :  { %693 = vmatpush.bf16.msrb.mxu3 %v1043_v0 }
  0x2a   :  { %655 = vmatpush.bf16.msrb.mxu0 %v1018_v1 }
  0x2b   :  { %668 = vmatpush.bf16.msrb.mxu1 %v1026_v2 }
  0x2c   :  { %681 = vmatpush.bf16.msrb.mxu2 %v1034_v3 }
  0x2d   :  { %694 = vmatpush.bf16.msrb.mxu3 %v1042_v4 }
  0x2e   :  { %656 = vmatpush.bf16.msrb.mxu0 %v1017_v7 }
  0x2f   :  { %669 = vmatpush.bf16.msrb.mxu1 %v1025_v8  ;;  %v60_v8 = vld [vmem:[#allocation2] sm:$0xff] }
  0x30   :  { %682 = vmatpush.bf16.msrb.mxu2 %v1033_v11 }
  0x31   :  { %695 = vmatpush.bf16.msrb.mxu3 %v1041_v12 }
  0x32   :  { %657 = vmatpush.bf16.msrb.mxu0 %v1016_v15 }
  0x33   :  { %670 = vmatpush.bf16.msrb.mxu1 %v1024_v16 }
  0x34   :  { %683 = vmatpush.bf16.msrb.mxu2 %v1032_v19 }
  0x35   :  { %696 = vmatpush.bf16.msrb.mxu3 %v1040_v20 }
  0x36   :  { %658 = vmatpush.bf16.msrb.mxu0 %v1015_v27 }
  0x37   :  { %671 = vmatpush.bf16.msrb.mxu1 %v1023_v28 }
  0x38   :  { %684 = vmatpush.bf16.msrb.mxu2 %v1031_v30 }
  0x39   :  { %697 = vmatpush.bf16.msrb.mxu3 %v1039_v31 }
  0x3a   :  { %659 = vmatpush.bf16.msrb.mxu0 %v1014_v33 }
  0x3b   :  { %672 = vmatpush.bf16.msrb.mxu1 %v1022_v34 }
  0x3c   :  { %685 = vmatpush.bf16.msrb.mxu2 %v1030_v36 }
  0x3d   :  { %698 = vmatpush.bf16.msrb.mxu3 %v1038_v37 }
  0x3e   :  { %660 = vmatpush.bf16.msrb.mxu0 %v1013_v41 }
  0x3f   :  { %673 = vmatpush.bf16.msrb.mxu1 %v1021_v42 }
  0x40   :  { %686 = vmatpush.bf16.msrb.mxu2 %v1029_v45 }
  0x41   :  { %699 = vmatpush.bf16.msrb.mxu3 %v1037_v46  ;;  %661 = vmatmul.bf16.vlgmr.msrb.gmra.mxu0 %v205_v47 }
  0x42   :  { %674 = vmatmul.bf16.vlgmr.msrb.gmra.mxu1 %v206_v48 }
  0x43   :  { %687 = vmatmul.bf16.vlgmr.msrb.gmra.mxu2 %v207_v49 }
  0x44   :  { %700 = vmatmul.bf16.vlgmr.msrb.gmra.mxu3 %v208_v50 }
  0x9e   :  { %v610_v51 = vpop.f32.mrf.mxu0 }
  0x9f   :  { %v623_v52 = vpop.f32.mrf.mxu1 }
  0xa0   :  { %v624_v60 = vadd.f32 %v623_v52, %v610_v51 }
  0xa6   :  { %v636_v54 = vpop.f32.mrf.mxu2  ;;  %v612_v56 = vpop.f32.mrf.mxu0 }
  0xa7   :  { %v649_v55 = vpop.f32.mrf.mxu3  ;;  %v625_v57 = vpop.f32.mrf.mxu1  ;;  %v637_v61 = vadd.f32 %v636_v54, %v624_v60 }
  0xa9   :  { %v650_v62 = vadd.f32 %v649_v55, %v637_v61 }
  0xae   :  { %v638_v58 = vpop.f32.mrf.mxu2 }
  0xaf   :  { %v651_v59 = vpop.f32.mrf.mxu3 }
  0xbe   :  { %v662_v63 = vpop.f32.mrf.mxu0 }
  0xbf   :  { %v675_v0 = vpop.f32.mrf.mxu1  ;;  %v663_v1 = vadd.f32 %v662_v63, %v650_v62 }
  0xc1   :  { %v676_v2 = vadd.f32 %v675_v0, %v663_v1 }
  0xc6   :  { %v688_v3 = vpop.f32.mrf.mxu2  ;;  %v664_v6 = vpop.f32.mrf.mxu0 }
  0xc7   :  { %v701_v4 = vpop.f32.mrf.mxu3  ;;  %v689_v5 = vadd.f32 %v688_v3, %v676_v2  ;;  %v677_v7 = vpop.f32.mrf.mxu1 }
  0xc9   :  { %v702_v9 = vadd.f32 %v701_v4, %v689_v5 }
  0xcb   :  { %v705_v10 = vadd.f32 %v702_v9, %v60_v8 }
  0xcd   :  { %707 = vst.msk [vmem:[#allocation2] sm:$0xff] %vm18_vm12, %v705_v10 }
  0xce   :  { %v690_v11 = vpop.f32.mrf.mxu2 }
  0xcf   :  { %v703_v12 = vpop.f32.mrf.mxu3 }
  0xd4   :  { %v711_v14 = vld [vmem:[#allocation2] sm:$0xff] }
  0xd5   :  { %v716_v15 = vadd.f32 %v1046_v13, %v711_v14 }
  0xd7   :  { %v717_v16 = vmax.f32 %v716_v15, 0.0 }
  0xd9   :  { %v718_v17 = vpack.c.bf16 %v717_v16, %v717_v16 }
  0xdb   :  { %720 = vst.msk [vmem:[%s1325_s3] sm:$0xf] %vm719_vm13, %v718_v17 }

// kernel: unet_generator_forward.27
= control target key start
LH: loop header
LB: loop body
LE: loop exit
PB: predicated region body
PF: predicated region fallthrough
CT: control target
= control target key end

     0   :  { %s1263_s18 = smov 0   ;;  %s1265_s19 = smov 0   ;;  %s1354_s0 = inlined_call_operand.vmem [shape: bf16[4,8,512], index: 0, kind: input, shape index: {}]   ;;  %s1355_s1 = inlined_call_operand.vmem [shape: bf16[4,512,32], index: 1, kind: input, shape index: {}]   ;;  %s1356_s2 = inlined_call_operand.vmem [shape: f32[1,32], index: 2, kind: input, shape index: {}]   ;;  %s1357_s3 = inlined_call_operand.vmem [shape: bf16[4,8,32], index: 3, kind: output, shape index: {0}]   ;;  %s1358_s4 = inlined_call_operand.vmem [shape: f32[4,1,8,32], index: 4, kind: output, shape index: {1}]   ;;  %s1359_s5 = inlined_call_operand.vmem [shape: f32[4,1,8,32], index: 5, kind: output, shape index: {2}]  }
   0x1   :  { %s1267_s20 = smov 0  }
   0x2 LB: > { %s42_s21 = sadd.s32 1, %s1226_s19  ;;  %p1010_p0 = scmp.ge.s32.totalorder %s1230_s20, 1  ;;  %s1230_s20 = sphi %s1267_s20, %s16_s20   ;;  %s1226_s19 = sphi %s1265_s19, %s1361_s19   ;;  %s1222_s18 = sphi %s1263_s18, %s1360_s18  }
   0x3   : > { %p44_p1 = scmp.ge.s32.totalorder %s42_s21, 4  ;;  %p273_p2 = scmp.lt.s32.totalorder %s1230_s20, 5 }
   0x5   : > { %s1363_s21 = smov (%p44_p1, %s42_s21), 0  ;;  %p274_p3 = pnand %p1010_p0, %p273_p2 }
   0x6   : > { %p350_p4 = scmp.lt.s32.totalorder (!%p274_p3), %s1222_s18, 3 }
   0x7   : > { %277 = sbr.rel (%p274_p3) target bundleno = 213 (0xd5), region = 32 }
   0xc   : > { %s1365_s18 = smov (!%p350_p4, %s1222_s18), 3  ;;  %vm413_vm0 = vcmask 261120   ;;  %v1232_v46 = vmov 0.0   ;;  %v1207_v60 = vld [vmem:[%s1356_s2] ss:$0 sm:$0xff]  ;;  %vm751_vm1 = vcmask 257024  }
   0xd   : > { %s1149_s22 = sshll.u32 %s1365_s18, 8  ;;  %s1148_s26 = sshll.u32 %s1365_s18, 4  ;;  %414 = vst.msk [vmem:[#allocation2] sm:$0xff] %vm413_vm0, %v1232_v46 }
   0xe   : > { %s1287_s25 = scalar_lea.vmem %s1355_s1, %s1149_s22  ;;  %s361_s29 = scalar_lea.vmem %s1354_s0, %s1148_s26 }
   0xf   : > { %v1157_v0 = vld [vmem:[%s1287_s25 + $0x38] sm:$0xff]  ;;  %v1156_v4 = vld [vmem:[%s1287_s25 + $0x30] sm:$0xff]  ;;  %v1155_v8 = vld [vmem:[%s1287_s25 + $0x28] sm:$0xff]  ;;  %s1015_s7 = sshll.u32 %s1365_s18, 2  ;;  %s1016_s11 = sshll.u32 %s1365_s18, 3 }
  0x10   : > { %v1165_v1 = vld [vmem:[%s1287_s25 + $0x78] sm:$0xff]  ;;  %686 = vmatpush.bf16.msra.mxu0 %v1157_v0  ;;  %v1164_v5 = vld [vmem:[%s1287_s25 + $0x70] sm:$0xff]  ;;  %v1163_v9 = vld [vmem:[%s1287_s25 + $0x68] sm:$0xff]  ;;  %s388_s10 = scalar_lea.vmem %s1357_s3, %s1015_s7  ;;  %s398_s14 = scalar_lea.vmem %s1358_s4, %s1016_s11 }
  0x11   : > { %v1173_v2 = vld [vmem:[%s1287_s25 + $0xb8] sm:$0xff]  ;;  %699 = vmatpush.bf16.msra.mxu1 %v1165_v1  ;;  %v1172_v6 = vld [vmem:[%s1287_s25 + $0xb0] sm:$0xff]  ;;  %v1171_v10 = vld [vmem:[%s1287_s25 + $0xa8] sm:$0xff]  ;;  %s408_s17 = scalar_lea.vmem %s1359_s5, %s1016_s11 }
  0x12   : > { %v1181_v3 = vld [vmem:[%s1287_s25 + $0xf8] sm:$0xff]  ;;  %712 = vmatpush.bf16.msra.mxu2 %v1173_v2  ;;  %v1180_v7 = vld [vmem:[%s1287_s25 + $0xf0] sm:$0xff]  ;;  %v1179_v11 = vld [vmem:[%s1287_s25 + $0xe8] sm:$0xff] }
  0x13   : > { %725 = vmatpush.bf16.msra.mxu3 %v1181_v3  ;;  %v1154_v12 = vld [vmem:[%s1287_s25 + $0x20] sm:$0xff]  ;;  %v1153_v16 = vld [vmem:[%s1287_s25 + $0x18] sm:$0xff]  ;;  %v1152_v20 = vld [vmem:[%s1287_s25 + $0x10] sm:$0xff] }
  0x14   : > { %687 = vmatpush.bf16.msra.mxu0 %v1156_v4  ;;  %v1162_v13 = vld [vmem:[%s1287_s25 + $0x60] sm:$0xff]  ;;  %v1161_v17 = vld [vmem:[%s1287_s25 + $0x58] sm:$0xff]  ;;  %v1160_v21 = vld [vmem:[%s1287_s25 + $0x50] sm:$0xff] }
  0x15   : > { %700 = vmatpush.bf16.msra.mxu1 %v1164_v5  ;;  %v1170_v14 = vld [vmem:[%s1287_s25 + $0xa0] sm:$0xff]  ;;  %v1169_v18 = vld [vmem:[%s1287_s25 + $0x98] sm:$0xff]  ;;  %v1168_v23 = vld [vmem:[%s1287_s25 + $0x90] sm:$0xff] }
  0x16   : > { %713 = vmatpush.bf16.msra.mxu2 %v1172_v6  ;;  %v1178_v15 = vld [vmem:[%s1287_s25 + $0xe0] sm:$0xff]  ;;  %v1177_v19 = vld [vmem:[%s1287_s25 + $0xd8] sm:$0xff]  ;;  %v1176_v24 = vld [vmem:[%s1287_s25 + $0xd0] sm:$0xff] }
  0x17   : > { %726 = vmatpush.bf16.msra.mxu3 %v1180_v7  ;;  %v415_v22 = vld [vmem:[%s361_s29] sm:$0xff]  ;;  %v416_v25 = vld [vmem:[%s361_s29 + $0x8] sm:$0xff] }
  0x18   : > { %688 = vmatpush.bf16.msra.mxu0 %v1155_v8  ;;  %v417_v26 = vunpack.c.l.bf16 %v415_v22  ;;  %v418_v27 = vunpack.c.h.bf16 %v415_v22  ;;  %v1151_v28 = vld [vmem:[%s1287_s25 + $0x8] sm:$0xff]  ;;  %v419_v30 = vunpack.c.l.bf16 %v416_v25  ;;  %v420_v31 = vunpack.c.h.bf16 %v416_v25  ;;  %v1150_v36 = vld [vmem:[%s1287_s25] sm:$0xff] }
  0x19   : > { %701 = vmatpush.bf16.msra.mxu1 %v1163_v9  ;;  %v1159_v29 = vld [vmem:[%s1287_s25 + $0x48] sm:$0xff]  ;;  %v1158_v37 = vld [vmem:[%s1287_s25 + $0x40] sm:$0xff] }
  0x1a   : > { %714 = vmatpush.bf16.msra.mxu2 %v1171_v10  ;;  %v1167_v32 = vld [vmem:[%s1287_s25 + $0x88] sm:$0xff]  ;;  %v421_v34 = vmax.f32 %v417_v26, 0.0  ;;  %v422_v35 = vmax.f32 %v418_v27, 0.0  ;;  %v423_v38 = vmax.f32 %v419_v30, 0.0  ;;  %v424_v39 = vmax.f32 %v420_v31, 0.0  ;;  %v1166_v40 = vld [vmem:[%s1287_s25 + $0x80] sm:$0xff] }
  0x1b   : > { %727 = vmatpush.bf16.msra.mxu3 %v1179_v11  ;;  %v1175_v33 = vld [vmem:[%s1287_s25 + $0xc8] sm:$0xff]  ;;  %v1174_v41 = vld [vmem:[%s1287_s25 + $0xc0] sm:$0xff] }
  0x1c   : > { %689 = vmatpush.bf16.msra.mxu0 %v1154_v12  ;;  %v425_v42 = vpack.c.bf16 %v421_v34, %v421_v34  ;;  %v426_v43 = vpack.c.bf16 %v422_v35, %v422_v35  ;;  %v427_v44 = vpack.c.bf16 %v423_v38, %v423_v38  ;;  %v428_v45 = vpack.c.bf16 %v424_v39, %v424_v39  ;;  %v429_v55 = vld [vmem:[#allocation2] sm:$0xff] }
  0x1d   : > { %702 = vmatpush.bf16.msra.mxu1 %v1162_v13 }
  0x1e   : > { %715 = vmatpush.bf16.msra.mxu2 %v1170_v14 }
  0x1f   : > { %728 = vmatpush.bf16.msra.mxu3 %v1178_v15 }
  0x20   : > { %690 = vmatpush.bf16.msra.mxu0 %v1153_v16 }
  0x21   : > { %703 = vmatpush.bf16.msra.mxu1 %v1161_v17 }
  0x22   : > { %716 = vmatpush.bf16.msra.mxu2 %v1169_v18 }
  0x23   : > { %729 = vmatpush.bf16.msra.mxu3 %v1177_v19 }
  0x24   : > { %691 = vmatpush.bf16.msra.mxu0 %v1152_v20 }
  0x25   : > { %704 = vmatpush.bf16.msra.mxu1 %v1160_v21 }
  0x26   : > { %717 = vmatpush.bf16.msra.mxu2 %v1168_v23 }
  0x27   : > { %730 = vmatpush.bf16.msra.mxu3 %v1176_v24 }
  0x28   : > { %692 = vmatpush.bf16.msra.mxu0 %v1151_v28 }
  0x29   : > { %705 = vmatpush.bf16.msra.mxu1 %v1159_v29 }
  0x2a   : > { %718 = vmatpush.bf16.msra.mxu2 %v1167_v32 }
  0x2b   : > { %731 = vmatpush.bf16.msra.mxu3 %v1175_v33 }
  0x2c   : > { %693 = vmatpush.bf16.msra.mxu0 %v1150_v36 }
  0x2d   : > { %706 = vmatpush.bf16.msra.mxu1 %v1158_v37 }
  0x2e   : > { %719 = vmatpush.bf16.msra.mxu2 %v1166_v40 }
  0x2f   : > { %732 = vmatpush.bf16.msra.mxu3 %v1174_v41  ;;  %694 = vmatmul.bf16.vlgmr.msra.gmra.mxu0 %v425_v42 }
  0x30   : > { %707 = vmatmul.bf16.vlgmr.msra.gmra.mxu1 %v426_v43 }
  0x31   : > { %720 = vmatmul.bf16.vlgmr.msra.gmra.mxu2 %v427_v44 }
  0x32   : > { %733 = vmatmul.bf16.vlgmr.msra.gmra.mxu3 %v428_v45 }
  0xac   : > { %v695_v47 = vpop.f32.mrf.mxu0 }
  0xad   : > { %v708_v48 = vpop.f32.mrf.mxu1 }
  0xae   : > { %v709_v49 = vadd.f32 %v708_v48, %v695_v47 }
  0xb4   : > { %v721_v50 = vpop.f32.mrf.mxu2  ;;  %v697_v53 = vpop.f32.mrf.mxu0 }
  0xb5   : > { %v734_v51 = vpop.f32.mrf.mxu3  ;;  %v722_v52 = vadd.f32 %v721_v50, %v709_v49  ;;  %v710_v54 = vpop.f32.mrf.mxu1 }
  0xb7   : > { %v735_v56 = vadd.f32 %v734_v51, %v722_v52 }
  0xb9   : > { %v738_v57 = vadd.f32 %v735_v56, %v429_v55 }
  0xbb   : > { %740 = vst.msk [vmem:[#allocation2] sm:$0xff] %vm413_vm0, %v738_v57 }
  0xbc   : > { %v723_v58 = vpop.f32.mrf.mxu2 }
  0xbd   : > { %v736_v59 = vpop.f32.mrf.mxu3 }
  0xc2   : > { %v744_v61 = vld [vmem:[#allocation2] sm:$0xff] }
  0xc3   : > { %v749_v62 = vadd.f32 %v1207_v60, %v744_v61 }
  0xc5   : > { %v750_v63 = vpack.c.bf16 %v749_v62, %v749_v62  ;;  %v753_v0 = vsel %vm413_vm0, %v749_v62, 0.0  ;;  %v760_v1 = vmul.f32 %v749_v62, %v749_v62 }
  0xc6   : > { %v754_v2 = vrot.slane %v753_v0, 4 }
  0xc7   : > { %752 = vst.msk [vmem:[%s388_s10] sm:$0xf] %vm751_vm1, %v750_v63  ;;  %v761_v3 = vsel %vm413_vm0, %v760_v1, 0.0 }
  0xc8   : > { %v755_v4 = vadd.f32 %v754_v2, %v753_v0  ;;  %v762_v5 = vrot.slane %v761_v3, 4 }
  0xca   : > { %v756_v6 = vrot.slane %v755_v4, 2  ;;  %v763_v7 = vadd.f32 %v762_v5, %v761_v3 }
  0xcc   : > { %v757_v8 = vadd.f32 %v756_v6, %v755_v4  ;;  %v764_v9 = vrot.slane %v763_v7, 2 }
  0xce   : > { %v758_v10 = vrot.slane %v757_v8, 1  ;;  %v765_v11 = vadd.f32 %v764_v9, %v763_v7 }
  0xd0   : > { %v759_v12 = vadd.f32 %v758_v10, %v757_v8  ;;  %v766_v13 = vrot.slane %v765_v11, 1 }
  0xd2   : > { %v767_v14 = vadd.f32 %v766_v13, %v765_v11  ;;  %768 = vst.msk [vmem:[%s398_s14] sm:$0xff] %vm413_vm0, %v759_v12 }
  0xd4   : > { %769 = vst.msk [vmem:[%s408_s17] sm:$0xff] %vm413_vm0, %v767_v14 }
  0xd5 PF: > { %s16_s20 = sadd.s32 1, %s1230_s20   ;;  %s1360_s18 = smov %s1226_s19 }
  0xd6   : > { %p13_p5 = scmp.ge.s32.totalorder %s16_s20, 6   ;;  %s1361_s19 = smov %s1363_s21 }
  0xd8   :  { %15 = sbr.rel (!%p13_p5) target bundleno = 2 (0x2), region = 100 }

// kernel: unet_generator_forward.29
= control target key start
LH: loop header
LB: loop body
LE: loop exit
PB: predicated region body
PF: predicated region fallthrough
CT: control target
= control target key end

     0   :  { %s1127_s18 = smov 0   ;;  %s1129_s19 = smov 0   ;;  %s1224_s0 = inlined_call_operand.vmem [shape: bf16[4,32,256], index: 0, kind: input, shape index: {}]   ;;  %s1225_s1 = inlined_call_operand.vmem [shape: bf16[4,256,16], index: 1, kind: input, shape index: {}]   ;;  %s1226_s2 = inlined_call_operand.vmem [shape: f32[1,16], index: 2, kind: input, shape index: {}]   ;;  %s1227_s3 = inlined_call_operand.vmem [shape: bf16[4,32,16], index: 3, kind: output, shape index: {0}]   ;;  %s1228_s4 = inlined_call_operand.vmem [shape: f32[4,1,8,16], index: 4, kind: output, shape index: {1}]   ;;  %s1229_s5 = inlined_call_operand.vmem [shape: f32[4,1,8,16], index: 5, kind: output, shape index: {2}]  }
   0x1   :  { %s1131_s20 = smov 0  }
   0x2 LB: > { %s42_s21 = sadd.s32 1, %s1090_s19  ;;  %p936_p0 = scmp.ge.s32.totalorder %s1094_s20, 1  ;;  %s1094_s20 = sphi %s1131_s20, %s16_s20   ;;  %s1090_s19 = sphi %s1129_s19, %s1231_s19   ;;  %s1086_s18 = sphi %s1127_s18, %s1230_s18  }
   0x3   : > { %p44_p1 = scmp.ge.s32.totalorder %s42_s21, 4  ;;  %p275_p2 = scmp.lt.s32.totalorder %s1094_s20, 5 }
   0x5   : > { %s1233_s21 = smov (%p44_p1, %s42_s21), 0  ;;  %p276_p3 = pnand %p936_p0, %p275_p2 }
   0x6   : > { %p356_p4 = scmp.lt.s32.totalorder (!%p276_p3), %s1086_s18, 3 }
   0x7   : > { %279 = sbr.rel (%p276_p3) target bundleno = 220 (0xdc), region = 32 }
   0xc   : > { %s1235_s18 = smov (!%p356_p4, %s1086_s18), 3  ;;  %vm423_vm0 = vcmask 130048   ;;  %v1096_v40 = vmov 0.0   ;;  %v1071_v53 = vld [vmem:[%s1226_s2] ss:$0 sm:$0xff]  ;;  %vm650_vm1 = vcmask 125952  }
   0xd   : > { %s1012_s22 = sshll.u32 %s1235_s18, 7  ;;  %s1011_s26 = sshll.u32 %s1235_s18, 5  ;;  %424 = vst.msk [vmem:[#allocation2] sm:$0xff] %vm423_vm0, %v1096_v40 }
   0xe   : > { %s1151_s25 = scalar_lea.vmem %s1225_s1, %s1012_s22  ;;  %s367_s29 = scalar_lea.vmem %s1224_s0, %s1011_s26  ;;  %425 = vst.msk [vmem:[#allocation2 + $0x8] sm:$0xff] %vm423_vm0, %v1096_v40 }
   0xf   : > { %v1021_v0 = vld [vmem:[%s1151_s25 + $0x38] sm:$0xff]  ;;  %v1020_v2 = vld [vmem:[%s1151_s25 + $0x30] sm:$0xff]  ;;  %v1019_v4 = vld [vmem:[%s1151_s25 + $0x28] sm:$0xff]  ;;  %426 = vst.msk [vmem:[#allocation2 + $0x10] sm:$0xff] %vm423_vm0, %v1096_v40  ;;  %s1013_s7 = sshll.u32 %s1235_s18, 4  ;;  %s943_s11 = sshll.u32 %s1235_s18, 3 }
  0x10   : > { %v1029_v1 = vld [vmem:[%s1151_s25 + $0x78] sm:$0xff]  ;;  %584 = vmatpush.bf16.msra.mxu0 %v1021_v0  ;;  %1030 = vmatpush.bf16.msra.mxu2 %v1021_v0  ;;  %v1028_v3 = vld [vmem:[%s1151_s25 + $0x70] sm:$0xff]  ;;  %v1027_v5 = vld [vmem:[%s1151_s25 + $0x68] sm:$0xff]  ;;  %427 = vst.msk [vmem:[#allocation2 + $0x18] sm:$0xff] %vm423_vm0, %v1096_v40  ;;  %s1187_s10 = scalar_lea.vmem %s1227_s3, %s1013_s7  ;;  %s408_s14 = scalar_lea.vmem %s1228_s4, %s943_s11 }
  0x11   : > { %603 = vmatpush.bf16.msra.mxu1 %v1029_v1  ;;  %1038 = vmatpush.bf16.msra.mxu3 %v1029_v1  ;;  %v1018_v6 = vld [vmem:[%s1151_s25 + $0x20] sm:$0xff]  ;;  %v1017_v8 = vld [vmem:[%s1151_s25 + $0x18] sm:$0xff]  ;;  %v1016_v10 = vld [vmem:[%s1151_s25 + $0x10] sm:$0xff]  ;;  %s418_s17 = scalar_lea.vmem %s1229_s5, %s943_s11 }
  0x12   : > { %v1026_v7 = vld [vmem:[%s1151_s25 + $0x60] sm:$0xff]  ;;  %v1025_v9 = vld [vmem:[%s1151_s25 + $0x58] sm:$0xff]  ;;  %v429_v12 = vld [vmem:[%s367_s29 + $0x8] sm:$0xff] }
  0x13   : > { %v428_v11 = vld [vmem:[%s367_s29] sm:$0xff]  ;;  %v430_v13 = vld [vmem:[%s367_s29 + $0x10] sm:$0xff]  ;;  %v431_v14 = vld [vmem:[%s367_s29 + $0x18] sm:$0xff]  ;;  %v434_v17 = vunpack.c.l.bf16 %v429_v12  ;;  %v435_v22 = vunpack.c.h.bf16 %v429_v12 }
  0x14   : > { %585 = vmatpush.bf16.msra.mxu0 %v1020_v2  ;;  %1031 = vmatpush.bf16.msra.mxu2 %v1020_v2  ;;  %v1024_v15 = vld [vmem:[%s1151_s25 + $0x50] sm:$0xff]  ;;  %v432_v16 = vunpack.c.l.bf16 %v428_v11  ;;  %v436_v18 = vunpack.c.l.bf16 %v430_v13  ;;  %v438_v19 = vunpack.c.l.bf16 %v431_v14  ;;  %v1015_v20 = vld [vmem:[%s1151_s25 + $0x8] sm:$0xff]  ;;  %v433_v21 = vunpack.c.h.bf16 %v428_v11  ;;  %v1014_v30 = vld [vmem:[%s1151_s25] sm:$0xff] }
  0x15   : > { %604 = vmatpush.bf16.msra.mxu1 %v1028_v3  ;;  %1039 = vmatpush.bf16.msra.mxu3 %v1028_v3  ;;  %v437_v23 = vunpack.c.h.bf16 %v430_v13  ;;  %v439_v24 = vunpack.c.h.bf16 %v431_v14  ;;  %v1023_v25 = vld [vmem:[%s1151_s25 + $0x48] sm:$0xff]  ;;  %v442_v27 = vmax.f32 %v434_v17, 0.0  ;;  %v443_v32 = vmax.f32 %v435_v22, 0.0  ;;  %v1022_v35 = vld [vmem:[%s1151_s25 + $0x40] sm:$0xff] }
  0x16   : > { %v440_v26 = vmax.f32 %v432_v16, 0.0  ;;  %v444_v28 = vmax.f32 %v436_v18, 0.0  ;;  %v446_v29 = vmax.f32 %v438_v19, 0.0  ;;  %v441_v31 = vmax.f32 %v433_v21, 0.0  ;;  %v452_v42 = vld [vmem:[#allocation2] sm:$0xff]  ;;  %v454_v47 = vld [vmem:[#allocation2 + $0x10] sm:$0xff] }
  0x17   : > { %v445_v33 = vmax.f32 %v437_v23, 0.0  ;;  %v447_v34 = vmax.f32 %v439_v24, 0.0  ;;  %v453_v51 = vld [vmem:[#allocation2 + $0x8] sm:$0xff]  ;;  %v455_v60 = vld [vmem:[#allocation2 + $0x18] sm:$0xff] }
  0x18   : > { %586 = vmatpush.bf16.msra.mxu0 %v1019_v4  ;;  %1032 = vmatpush.bf16.msra.mxu2 %v1019_v4  ;;  %v448_v36 = vpack.c.bf16 %v442_v27, %v440_v26  ;;  %v450_v37 = vpack.c.bf16 %v446_v29, %v444_v28  ;;  %v449_v38 = vpack.c.bf16 %v443_v32, %v441_v31 }
  0x19   : > { %605 = vmatpush.bf16.msra.mxu1 %v1027_v5  ;;  %1040 = vmatpush.bf16.msra.mxu3 %v1027_v5  ;;  %v451_v39 = vpack.c.bf16 %v447_v34, %v445_v33 }
  0x1c   : > { %587 = vmatpush.bf16.msra.mxu0 %v1018_v6  ;;  %1033 = vmatpush.bf16.msra.mxu2 %v1018_v6 }
  0x1d   : > { %606 = vmatpush.bf16.msra.mxu1 %v1026_v7  ;;  %1041 = vmatpush.bf16.msra.mxu3 %v1026_v7 }
  0x20   : > { %588 = vmatpush.bf16.msra.mxu0 %v1017_v8  ;;  %1034 = vmatpush.bf16.msra.mxu2 %v1017_v8 }
  0x21   : > { %607 = vmatpush.bf16.msra.mxu1 %v1025_v9  ;;  %1042 = vmatpush.bf16.msra.mxu3 %v1025_v9 }
  0x24   : > { %589 = vmatpush.bf16.msra.mxu0 %v1016_v10  ;;  %1035 = vmatpush.bf16.msra.mxu2 %v1016_v10 }
  0x25   : > { %608 = vmatpush.bf16.msra.mxu1 %v1024_v15  ;;  %1043 = vmatpush.bf16.msra.mxu3 %v1024_v15 }
  0x28   : > { %590 = vmatpush.bf16.msra.mxu0 %v1015_v20  ;;  %1036 = vmatpush.bf16.msra.mxu2 %v1015_v20 }
  0x29   : > { %609 = vmatpush.bf16.msra.mxu1 %v1023_v25  ;;  %1044 = vmatpush.bf16.msra.mxu3 %v1023_v25 }
  0x2c   : > { %591 = vmatpush.bf16.msra.mxu0 %v1014_v30  ;;  %1037 = vmatpush.bf16.msra.mxu2 %v1014_v30 }
  0x2d   : > { %610 = vmatpush.bf16.msra.mxu1 %v1022_v35  ;;  %1045 = vmatpush.bf16.msra.mxu3 %v1022_v35 }
  0x2f   : > { %592 = vmatmul.bf16.vlgmr.msra.gmra.mxu0 %v448_v36  ;;  %597 = vmatmul.bf16.vlgmr.msra.gmra.mxu2 %v450_v37 }
  0x30   : > { %611 = vmatmul.bf16.vlgmr.msra.gmra.mxu1 %v449_v38  ;;  %616 = vmatmul.bf16.vlgmr.msra.gmra.mxu3 %v451_v39 }
  0xac   : > { %v593_v41 = vpop.f32.mrf.mxu0 }
  0xad   : > { %v612_v43 = vpop.f32.mrf.mxu1 }
  0xae   : > { %v613_v44 = vadd.f32 %v612_v43, %v593_v41 }
  0xb0   : > { %v622_v45 = vadd.f32 %v613_v44, %v452_v42 }
  0xb2   : > { %627 = vst.msk [vmem:[#allocation2] sm:$0xff] %vm423_vm0, %v622_v45  ;;  %v598_v46 = vpop.f32.mrf.mxu2 }
  0xb3   : > { %v617_v48 = vpop.f32.mrf.mxu3 }
  0xb4   : > { %v618_v49 = vadd.f32 %v617_v48, %v598_v46  ;;  %v595_v50 = vpop.f32.mrf.mxu0 }
  0xb5   : > { %v614_v52 = vpop.f32.mrf.mxu1 }
  0xb6   : > { %v624_v54 = vadd.f32 %v618_v49, %v454_v47  ;;  %v615_v55 = vadd.f32 %v614_v52, %v595_v50 }
  0xb8   : > { %629 = vst.msk [vmem:[#allocation2 + $0x10] sm:$0xff] %vm423_vm0, %v624_v54  ;;  %v623_v56 = vadd.f32 %v615_v55, %v453_v51 }
  0xb9   : > { %v634_v57 = vld [vmem:[#allocation2] sm:$0xff] }
  0xba   : > { %v642_v58 = vadd.f32 %v1071_v53, %v634_v57  ;;  %628 = vst.msk [vmem:[#allocation2 + $0x8] sm:$0xff] %vm423_vm0, %v623_v56  ;;  %v600_v59 = vpop.f32.mrf.mxu2 }
  0xbb   : > { %v619_v61 = vpop.f32.mrf.mxu3 }
  0xbc   : > { %v646_v62 = vpack.c.bf16 %v642_v58, %v642_v58  ;;  %v620_v63 = vadd.f32 %v619_v61, %v600_v59  ;;  %v668_v4 = vmul.f32 %v642_v58, %v642_v58  ;;  %v655_v7 = vsel %vm423_vm0, %v642_v58, 0.0 }
  0xbe   : > { %651 = vst.msk [vmem:[%s1187_s10] sm:$0xf] %vm650_vm1, %v646_v62  ;;  %v625_v0 = vadd.f32 %v620_v63, %v455_v60  ;;  %v672_v12 = vsel %vm423_vm0, %v668_v4, 0.0 }
  0xbf   : > { %v636_v1 = vld [vmem:[#allocation2 + $0x10] sm:$0xff] }
  0xc0   : > { %v644_v2 = vadd.f32 %v1071_v53, %v636_v1  ;;  %630 = vst.msk [vmem:[#allocation2 + $0x18] sm:$0xff] %vm423_vm0, %v625_v0 }
  0xc1   : > { %v635_v3 = vld [vmem:[#allocation2 + $0x8] sm:$0xff] }
  0xc2   : > { %v648_v5 = vpack.c.bf16 %v644_v2, %v644_v2  ;;  %v643_v6 = vadd.f32 %v1071_v53, %v635_v3  ;;  %v670_v13 = vmul.f32 %v644_v2, %v644_v2  ;;  %v658_v17 = vsel %vm423_vm0, %v644_v2, 0.0 }
  0xc4   : > { %653 = vst.msk [vmem:[%s1187_s10 + $0x8] sm:$0xf] %vm650_vm1, %v648_v5  ;;  %v647_v8 = vpack.c.bf16 %v643_v6, %v643_v6  ;;  %v656_v9 = vsel %vm423_vm0, %v643_v6, 0.0  ;;  %v669_v10 = vmul.f32 %v643_v6, %v643_v6  ;;  %v675_v20 = vsel %vm423_vm0, %v670_v13, 0.0 }
  0xc5   : > { %v657_v11 = vadd.f32 %v656_v9, %v655_v7 }
  0xc6   : > { %652 = vst.msk [vmem:[%s1187_s10 + $0x4] sm:$0xf] %vm650_vm1, %v647_v8  ;;  %v673_v14 = vsel %vm423_vm0, %v669_v10, 0.0 }
  0xc7   : > { %v674_v15 = vadd.f32 %v673_v14, %v672_v12  ;;  %v637_v16 = vld [vmem:[#allocation2 + $0x18] sm:$0xff]  ;;  %v659_v19 = vadd.f32 %v658_v17, %v657_v11 }
  0xc8   : > { %v645_v18 = vadd.f32 %v1071_v53, %v637_v16 }
  0xc9   : > { %v676_v25 = vadd.f32 %v675_v20, %v674_v15 }
  0xca   : > { %v649_v21 = vpack.c.bf16 %v645_v18, %v645_v18  ;;  %v660_v22 = vsel %vm423_vm0, %v645_v18, 0.0  ;;  %v671_v23 = vmul.f32 %v645_v18, %v645_v18 }
  0xcb   : > { %v661_v24 = vadd.f32 %v660_v22, %v659_v19 }
  0xcc   : > { %654 = vst.msk [vmem:[%s1187_s10 + $0xc] sm:$0xf] %vm650_vm1, %v649_v21  ;;  %v677_v26 = vsel %vm423_vm0, %v671_v23, 0.0 }
  0xcd   : > { %v662_v27 = vrot.slane %v661_v24, 4  ;;  %v678_v28 = vadd.f32 %v677_v26, %v676_v25 }
  0xcf   : > { %v663_v29 = vadd.f32 %v662_v27, %v661_v24  ;;  %v679_v30 = vrot.slane %v678_v28, 4 }
  0xd1   : > { %v664_v31 = vrot.slane %v663_v29, 2  ;;  %v680_v32 = vadd.f32 %v679_v30, %v678_v28 }
  0xd3   : > { %v665_v33 = vadd.f32 %v664_v31, %v663_v29  ;;  %v681_v34 = vrot.slane %v680_v32, 2 }
  0xd5   : > { %v666_v35 = vrot.slane %v665_v33, 1  ;;  %v682_v36 = vadd.f32 %v681_v34, %v680_v32 }
  0xd7   : > { %v667_v37 = vadd.f32 %v666_v35, %v665_v33  ;;  %v683_v38 = vrot.slane %v682_v36, 1 }
  0xd9   : > { %v684_v39 = vadd.f32 %v683_v38, %v682_v36  ;;  %685 = vst.msk [vmem:[%s408_s14] sm:$0xff] %vm423_vm0, %v667_v37 }
  0xdb   : > { %686 = vst.msk [vmem:[%s418_s17] sm:$0xff] %vm423_vm0, %v684_v39 }
  0xdc PF: > { %s16_s20 = sadd.s32 1, %s1094_s20   ;;  %s1230_s18 = smov %s1090_s19 }
  0xdd   : > { %p13_p5 = scmp.ge.s32.totalorder %s16_s20, 6   ;;  %s1231_s19 = smov %s1233_s21 }
  0xdf   :  { %15 = sbr.rel (!%p13_p5) target bundleno = 2 (0x2), region = 100 }

// kernel: unet_generator_forward.31
= control target key start
LH: loop header
LB: loop body
LE: loop exit
PB: predicated region body
PF: predicated region fallthrough
CT: control target
= control target key end

     0   :  { %s1258_s18 = smov 0   ;;  %s1260_s19 = smov 0   ;;  %s1520_s0 = inlined_call_operand.vmem [shape: bf16[4,128,128], index: 0, kind: input, shape index: {}]   ;;  %s1521_s1 = inlined_call_operand.vmem [shape: bf16[4,128,8], index: 1, kind: input, shape index: {}]   ;;  %s1522_s2 = inlined_call_operand.vmem [shape: f32[1,8], index: 2, kind: input, shape index: {}]   ;;  %s1523_s3 = inlined_call_operand.vmem [shape: bf16[4,128,8], index: 3, kind: output, shape index: {0}]   ;;  %s1524_s4 = inlined_call_operand.vmem [shape: f32[4,1,8,8], index: 4, kind: output, shape index: {1}]   ;;  %s1525_s5 = inlined_call_operand.vmem [shape: f32[4,1,8,8], index: 5, kind: output, shape index: {2}]  }
   0x1   :  { %s1262_s20 = smov 0  }
   0x2 LB: > { %s42_s21 = sadd.s32 1, %s1221_s19  ;;  %p1060_p0 = scmp.ge.s32.totalorder %s1225_s20, 1  ;;  %s1225_s20 = sphi %s1262_s20, %s16_s20   ;;  %s1221_s19 = sphi %s1260_s19, %s1527_s19   ;;  %s1217_s18 = sphi %s1258_s18, %s1526_s18  }
   0x3   : > { %p44_p1 = scmp.ge.s32.totalorder %s42_s21, 4  ;;  %p272_p2 = scmp.lt.s32.totalorder %s1225_s20, 5 }
   0x5   : > { %s1529_s21 = smov (%p44_p1, %s42_s21), 0  ;;  %p273_p3 = pnand %p1060_p0, %p272_p2 }
   0x6   : > { %p350_p4 = scmp.lt.s32.totalorder (!%p273_p3), %s1217_s18, 3 }
   0x7   : > { %276 = sbr.rel (%p273_p3) target bundleno = 251 (0xfb), region = 32 }
   0xc   : > { %s1531_s18 = smov (!%p350_p4, %s1217_s18), 3  ;;  %vm415_vm0 = vcmask 64512   ;;  %v1227_v10 = vmov 0.0   ;;  %vm705_vm1 = vcmask 60416  }
   0xd   : > { %s1279_s22 = sshll.u32 %s1531_s18, 6  ;;  %416 = vst.msk [vmem:[#allocation2] sm:$0xff] %vm415_vm0, %v1227_v10  ;;  %s1067_s9 = sshll.u32 %s1531_s18, 3 }
   0xe   : > { %s1285_s25 = scalar_lea.vmem %s1521_s1, %s1279_s22  ;;  %s1296_s28 = scalar_lea.vmem %s1520_s0, %s1279_s22  ;;  %417 = vst.msk [vmem:[#allocation2 + $0x8] sm:$0xff] %vm415_vm0, %v1227_v10 }
   0xf   : > { %v1113_v0 = vld [vmem:[%s1285_s25 + $0x38] sm:$0xff]  ;;  %v1112_v1 = vld [vmem:[%s1285_s25 + $0x30] sm:$0xff]  ;;  %v1111_v2 = vld [vmem:[%s1285_s25 + $0x28] sm:$0xff]  ;;  %418 = vst.msk [vmem:[#allocation2 + $0x10] sm:$0xff] %vm415_vm0, %v1227_v10  ;;  %s1341_s8 = scalar_lea.vmem %s1523_s3, %s1279_s22  ;;  %s400_s12 = scalar_lea.vmem %s1524_s4, %s1067_s9 }
  0x10   : > { %568 = vmatpush.bf16.msra.mxu0 %v1113_v0  ;;  %1153 = vmatpush.bf16.msra.mxu1 %v1113_v0  ;;  %v1110_v3 = vld [vmem:[%s1285_s25 + $0x20] sm:$0xff]  ;;  %v1109_v4 = vld [vmem:[%s1285_s25 + $0x18] sm:$0xff]  ;;  %v1108_v5 = vld [vmem:[%s1285_s25 + $0x10] sm:$0xff]  ;;  %419 = vst.msk [vmem:[#allocation2 + $0x18] sm:$0xff] %vm415_vm0, %v1227_v10  ;;  %s410_s15 = scalar_lea.vmem %s1525_s5, %s1067_s9 }
  0x11   : > { %1154 = vmatpush.bf16.msra.mxu2 %v1113_v0  ;;  %1155 = vmatpush.bf16.msra.mxu3 %v1113_v0  ;;  %v1115_v6 = vld [vmem:[%s1296_s28] sm:$0xff]   ;;  %v1147_v7 = vld [vmem:[%s1296_s28 + $0x10] sm:$0xff]   ;;  %v1107_v15 = vld [vmem:[%s1285_s25 + $0x8] sm:$0xff]  ;;  %420 = vst.msk [vmem:[#allocation2 + $0x20] sm:$0xff] %vm415_vm0, %v1227_v10 }
  0x12   : > { %v1149_v8 = vld [vmem:[%s1296_s28 + $0x20] sm:$0xff]   ;;  %v1151_v9 = vld [vmem:[%s1296_s28 + $0x30] sm:$0xff]   ;;  %v1116_v11 = vunpack.c.l.bf16 %v1115_v6  ;;  %v1117_v12 = vunpack.c.h.bf16 %v1115_v6  ;;  %v1124_v13 = vunpack.c.l.bf16 %v1147_v7  ;;  %v1125_v14 = vunpack.c.h.bf16 %v1147_v7  ;;  %421 = vst.msk [vmem:[#allocation2 + $0x28] sm:$0xff] %vm415_vm0, %v1227_v10  ;;  %v1146_v33 = vld [vmem:[%s1296_s28 + $0x8] sm:$0xff]  }
  0x13   : > { %v1132_v16 = vunpack.c.l.bf16 %v1149_v8  ;;  %v1133_v17 = vunpack.c.h.bf16 %v1149_v8  ;;  %v1140_v18 = vunpack.c.l.bf16 %v1151_v9  ;;  %v1141_v19 = vunpack.c.h.bf16 %v1151_v9  ;;  %422 = vst.msk [vmem:[#allocation2 + $0x30] sm:$0xff] %vm415_vm0, %v1227_v10  ;;  %v1106_v24 = vld [vmem:[%s1285_s25] sm:$0xff]  ;;  %v1148_v34 = vld [vmem:[%s1296_s28 + $0x18] sm:$0xff]   ;;  %v1150_v35 = vld [vmem:[%s1296_s28 + $0x28] sm:$0xff]  }
  0x14   : > { %569 = vmatpush.bf16.msra.mxu0 %v1112_v1  ;;  %1156 = vmatpush.bf16.msra.mxu1 %v1112_v1  ;;  %v464_v20 = vmax.f32 %v1116_v11, 0.0  ;;  %v465_v21 = vmax.f32 %v1117_v12, 0.0  ;;  %v468_v22 = vmax.f32 %v1124_v13, 0.0  ;;  %v469_v23 = vmax.f32 %v1125_v14, 0.0  ;;  %423 = vst.msk [vmem:[#allocation2 + $0x38] sm:$0xff] %vm415_vm0, %v1227_v10  ;;  %v1152_v36 = vld [vmem:[%s1296_s28 + $0x38] sm:$0xff]  }
  0x15   : > { %1157 = vmatpush.bf16.msra.mxu2 %v1112_v1  ;;  %1158 = vmatpush.bf16.msra.mxu3 %v1112_v1  ;;  %v472_v25 = vmax.f32 %v1132_v16, 0.0  ;;  %v473_v26 = vmax.f32 %v1133_v17, 0.0  ;;  %v476_v27 = vmax.f32 %v1140_v18, 0.0  ;;  %v477_v28 = vmax.f32 %v1141_v19, 0.0  ;;  %424 = vst.msk [vmem:[#allocation2 + $0x40] sm:$0xff] %vm415_vm0, %v1227_v10  ;;  %v488_v57 = vld [vmem:[#allocation2] sm:$0xff] }
  0x16   : > { %425 = vst.msk [vmem:[#allocation2 + $0x48] sm:$0xff] %vm415_vm0, %v1227_v10  ;;  %v480_v29 = vpack.c.bf16 %v465_v21, %v464_v20  ;;  %v482_v30 = vpack.c.bf16 %v469_v23, %v468_v22  ;;  %v1120_v37 = vunpack.c.l.bf16 %v1146_v33  ;;  %v1121_v38 = vunpack.c.h.bf16 %v1146_v33  ;;  %v489_v0 = vld [vmem:[#allocation2 + $0x8] sm:$0xff]  ;;  %v490_v19 = vld [vmem:[#allocation2 + $0x10] sm:$0xff] }
  0x17   : > { %426 = vst.msk [vmem:[#allocation2 + $0x50] sm:$0xff] %vm415_vm0, %v1227_v10  ;;  %v484_v31 = vpack.c.bf16 %v473_v26, %v472_v25  ;;  %v486_v32 = vpack.c.bf16 %v477_v28, %v476_v27  ;;  %v1128_v39 = vunpack.c.l.bf16 %v1148_v34  ;;  %v1129_v40 = vunpack.c.h.bf16 %v1148_v34 }
  0x18   : > { %570 = vmatpush.bf16.msra.mxu0 %v1111_v2  ;;  %1159 = vmatpush.bf16.msra.mxu1 %v1111_v2  ;;  %427 = vst.msk [vmem:[#allocation2 + $0x58] sm:$0xff] %vm415_vm0, %v1227_v10  ;;  %v1136_v41 = vunpack.c.l.bf16 %v1150_v35  ;;  %v1137_v42 = vunpack.c.h.bf16 %v1150_v35  ;;  %v1144_v43 = vunpack.c.l.bf16 %v1152_v36  ;;  %v1145_v44 = vunpack.c.h.bf16 %v1152_v36  ;;  %v492_v58 = vld [vmem:[#allocation2 + $0x20] sm:$0xff] }
  0x19   : > { %1160 = vmatpush.bf16.msra.mxu2 %v1111_v2  ;;  %1161 = vmatpush.bf16.msra.mxu3 %v1111_v2  ;;  %428 = vst.msk [vmem:[#allocation2 + $0x60] sm:$0xff] %vm415_vm0, %v1227_v10  ;;  %v466_v45 = vmax.f32 %v1120_v37, 0.0  ;;  %v467_v46 = vmax.f32 %v1121_v38, 0.0  ;;  %v470_v47 = vmax.f32 %v1128_v39, 0.0  ;;  %v471_v48 = vmax.f32 %v1129_v40, 0.0  ;;  %v493_v1 = vld [vmem:[#allocation2 + $0x28] sm:$0xff] }
  0x1a   : > { %429 = vst.msk [vmem:[#allocation2 + $0x68] sm:$0xff] %vm415_vm0, %v1227_v10  ;;  %v474_v49 = vmax.f32 %v1136_v41, 0.0  ;;  %v475_v50 = vmax.f32 %v1137_v42, 0.0  ;;  %v478_v51 = vmax.f32 %v1144_v43, 0.0  ;;  %v479_v52 = vmax.f32 %v1145_v44, 0.0  ;;  %v494_v20 = vld [vmem:[#allocation2 + $0x30] sm:$0xff] }
  0x1b   : > { %430 = vst.msk [vmem:[#allocation2 + $0x70] sm:$0xff] %vm415_vm0, %v1227_v10  ;;  %v481_v53 = vpack.c.bf16 %v467_v46, %v466_v45  ;;  %v483_v54 = vpack.c.bf16 %v471_v48, %v470_v47  ;;  %v491_v42 = vld [vmem:[#allocation2 + $0x18] sm:$0xff] }
  0x1c   : > { %571 = vmatpush.bf16.msra.mxu0 %v1110_v3  ;;  %1162 = vmatpush.bf16.msra.mxu1 %v1110_v3  ;;  %431 = vst.msk [vmem:[#allocation2 + $0x78] sm:$0xff] %vm415_vm0, %v1227_v10  ;;  %v485_v55 = vpack.c.bf16 %v475_v50, %v474_v49  ;;  %v487_v56 = vpack.c.bf16 %v479_v52, %v478_v51  ;;  %v496_v63 = vld [vmem:[#allocation2 + $0x40] sm:$0xff]  ;;  %v495_v43 = vld [vmem:[#allocation2 + $0x38] sm:$0xff] }
  0x1d   : > { %1163 = vmatpush.bf16.msra.mxu2 %v1110_v3  ;;  %1164 = vmatpush.bf16.msra.mxu3 %v1110_v3  ;;  %v1330_v3 = vld [vmem:[%s1522_s2] ss:$0 sm:$0xff]  ;;  %v497_v17 = vld [vmem:[#allocation2 + $0x48] sm:$0xff] }
  0x1e   : > { %v498_v40 = vld [vmem:[#allocation2 + $0x50] sm:$0xff] }
  0x20   : > { %572 = vmatpush.bf16.msra.mxu0 %v1109_v4  ;;  %1165 = vmatpush.bf16.msra.mxu1 %v1109_v4  ;;  %v500_v2 = vld [vmem:[#allocation2 + $0x60] sm:$0xff] }
  0x21   : > { %1166 = vmatpush.bf16.msra.mxu2 %v1109_v4  ;;  %1167 = vmatpush.bf16.msra.mxu3 %v1109_v4  ;;  %v501_v21 = vld [vmem:[#allocation2 + $0x68] sm:$0xff] }
  0x22   : > { %v502_v44 = vld [vmem:[#allocation2 + $0x70] sm:$0xff] }
  0x24   : > { %573 = vmatpush.bf16.msra.mxu0 %v1108_v5  ;;  %1168 = vmatpush.bf16.msra.mxu1 %v1108_v5 }
  0x25   : > { %1169 = vmatpush.bf16.msra.mxu2 %v1108_v5  ;;  %1170 = vmatpush.bf16.msra.mxu3 %v1108_v5 }
  0x28   : > { %574 = vmatpush.bf16.msra.mxu0 %v1107_v15  ;;  %1171 = vmatpush.bf16.msra.mxu1 %v1107_v15 }
  0x29   : > { %1172 = vmatpush.bf16.msra.mxu2 %v1107_v15  ;;  %1173 = vmatpush.bf16.msra.mxu3 %v1107_v15 }
  0x2c   : > { %575 = vmatpush.bf16.msra.mxu0 %v1106_v24  ;;  %1174 = vmatpush.bf16.msra.mxu1 %v1106_v24 }
  0x2d   : > { %1175 = vmatpush.bf16.msra.mxu2 %v1106_v24  ;;  %1176 = vmatpush.bf16.msra.mxu3 %v1106_v24 }
  0x2f   : > { %576 = vmatmul.bf16.vlgmr.msra.gmra.mxu0 %v480_v29  ;;  %586 = vmatmul.bf16.vlgmr.msra.gmra.mxu1 %v482_v30 }
  0x30   : > { %596 = vmatmul.bf16.vlgmr.msra.gmra.mxu2 %v484_v31  ;;  %606 = vmatmul.bf16.vlgmr.msra.gmra.mxu3 %v486_v32 }
  0x3f   : > { %581 = vmatmul.bf16.gmra.mxu0 %v481_v53  ;;  %591 = vmatmul.bf16.gmra.mxu1 %v483_v54 }
  0x40   : > { %601 = vmatmul.bf16.gmra.mxu2 %v485_v55  ;;  %611 = vmatmul.bf16.gmra.mxu3 %v487_v56 }
  0xac   : > { %v577_v59 = vpop.f32.mrf.mxu0  ;;  %v587_v60 = vpop.f32.mrf.mxu1 }
  0xad   : > { %v617_v61 = vadd.f32 %v577_v59, %v488_v57  ;;  %v621_v62 = vadd.f32 %v587_v60, %v492_v58 }
  0xaf   : > { %634 = vst.msk [vmem:[#allocation2] sm:$0xff] %vm415_vm0, %v617_v61 }
  0xb0   : > { %638 = vst.msk [vmem:[#allocation2 + $0x20] sm:$0xff] %vm415_vm0, %v621_v62 }
  0xb3   : > { %v597_v4 = vpop.f32.mrf.mxu2  ;;  %v607_v5 = vpop.f32.mrf.mxu3 }
  0xb4   : > { %v579_v6 = vpop.f32.mrf.mxu0  ;;  %v589_v7 = vpop.f32.mrf.mxu1  ;;  %v625_v8 = vadd.f32 %v597_v4, %v496_v63  ;;  %v629_v11 = vadd.f32 %v607_v5, %v500_v2  ;;  %v503_v4 = vld [vmem:[#allocation2 + $0x78] sm:$0xff] }
  0xb5   : > { %v618_v9 = vadd.f32 %v579_v6, %v489_v0  ;;  %v622_v10 = vadd.f32 %v589_v7, %v493_v1  ;;  %v499_v1 = vld [vmem:[#allocation2 + $0x58] sm:$0xff] }
  0xb6   : > { %v653_v12 = vld [vmem:[#allocation2] sm:$0xff]  ;;  %642 = vst.msk [vmem:[#allocation2 + $0x40] sm:$0xff] %vm415_vm0, %v625_v8 }
  0xb7   : > { %v1334_v13 = vadd.f32 %v1330_v3, %v653_v12  ;;  %v657_v14 = vld [vmem:[#allocation2 + $0x20] sm:$0xff]  ;;  %635 = vst.msk [vmem:[#allocation2 + $0x8] sm:$0xff] %vm415_vm0, %v618_v9 }
  0xb8   : > { %v1344_v15 = vadd.f32 %v1330_v3, %v657_v14  ;;  %639 = vst.msk [vmem:[#allocation2 + $0x28] sm:$0xff] %vm415_vm0, %v622_v10 }
  0xb9   : > { %v689_v16 = vpack.c.bf16 %v1334_v13, %v1334_v13  ;;  %646 = vst.msk [vmem:[#allocation2 + $0x60] sm:$0xff] %vm415_vm0, %v629_v11  ;;  %v759_v5 = vmul.f32 %v1334_v13, %v1334_v13  ;;  %v722_v12 = vsel %vm415_vm0, %v1334_v13, 0.0 }
  0xba   : > { %v693_v18 = vpack.c.bf16 %v1344_v15, %v1344_v15  ;;  %v763_v13 = vmul.f32 %v1344_v15, %v1344_v15 }
  0xbb   : > { %706 = vst.msk [vmem:[%s1341_s8] sm:$0xf] %vm705_vm1, %v689_v16  ;;  %v599_v22 = vpop.f32.mrf.mxu2  ;;  %v609_v23 = vpop.f32.mrf.mxu3 }
  0xbc   : > { %710 = vst.msk [vmem:[%s1341_s8 + $0x10] sm:$0xf] %vm705_vm1, %v693_v18  ;;  %v582_v24 = vpop.f32.mrf.mxu0  ;;  %v592_v25 = vpop.f32.mrf.mxu1  ;;  %v626_v26 = vadd.f32 %v599_v22, %v497_v17  ;;  %v630_v30 = vadd.f32 %v609_v23, %v501_v21  ;;  %v775_v22 = vsel %vm415_vm0, %v759_v5, 0.0 }
  0xbd   : > { %v661_v27 = vld [vmem:[#allocation2 + $0x40] sm:$0xff]  ;;  %v619_v28 = vadd.f32 %v582_v24, %v490_v19  ;;  %v623_v29 = vadd.f32 %v592_v25, %v494_v20 }
  0xbe   : > { %v654_v31 = vld [vmem:[#allocation2 + $0x8] sm:$0xff]  ;;  %v1357_v32 = vadd.f32 %v1330_v3, %v661_v27  ;;  %643 = vst.msk [vmem:[#allocation2 + $0x48] sm:$0xff] %vm415_vm0, %v626_v26 }
  0xbf   : > { %v674_v33 = vadd.f32 %v1330_v3, %v654_v31  ;;  %v658_v34 = vld [vmem:[#allocation2 + $0x28] sm:$0xff]  ;;  %636 = vst.msk [vmem:[#allocation2 + $0x10] sm:$0xff] %vm415_vm0, %v619_v28 }
  0xc0   : > { %v1363_v35 = vadd.f32 %v1330_v3, %v658_v34  ;;  %v697_v36 = vpack.c.bf16 %v1357_v32, %v1357_v32  ;;  %640 = vst.msk [vmem:[#allocation2 + $0x30] sm:$0xff] %vm415_vm0, %v623_v29  ;;  %v665_v37 = vld [vmem:[#allocation2 + $0x60] sm:$0xff] }
  0xc1   : > { %v690_v38 = vpack.c.bf16 %v674_v33, %v674_v33  ;;  %v1369_v39 = vadd.f32 %v1330_v3, %v665_v37  ;;  %647 = vst.msk [vmem:[#allocation2 + $0x68] sm:$0xff] %vm415_vm0, %v630_v30  ;;  %v760_v62 = vmul.f32 %v674_v33, %v674_v33  ;;  %v723_v6 = vsel %vm415_vm0, %v674_v33, 0.0 }
  0xc2   : > { %v694_v41 = vpack.c.bf16 %v1363_v35, %v1363_v35  ;;  %714 = vst.msk [vmem:[%s1341_s8 + $0x20] sm:$0xf] %vm705_vm1, %v697_v36  ;;  %v724_v19 = vadd.f32 %v723_v6, %v722_v12 }
  0xc3   : > { %707 = vst.msk [vmem:[%s1341_s8 + $0x4] sm:$0xf] %vm705_vm1, %v690_v38  ;;  %v701_v45 = vpack.c.bf16 %v1369_v39, %v1369_v39  ;;  %v602_v46 = vpop.f32.mrf.mxu2  ;;  %v612_v47 = vpop.f32.mrf.mxu3  ;;  %v776_v14 = vsel %vm415_vm0, %v760_v62, 0.0  ;;  %v767_v62 = vmul.f32 %v1357_v32, %v1357_v32 }
  0xc4   : > { %711 = vst.msk [vmem:[%s1341_s8 + $0x14] sm:$0xf] %vm705_vm1, %v694_v41  ;;  %v584_v48 = vpop.f32.mrf.mxu0  ;;  %v594_v49 = vpop.f32.mrf.mxu1  ;;  %v627_v50 = vadd.f32 %v602_v46, %v498_v40  ;;  %v631_v54 = vadd.f32 %v612_v47, %v502_v44  ;;  %v777_v26 = vadd.f32 %v776_v14, %v775_v22  ;;  %v729_v41 = vsel %vm415_vm0, %v1344_v15, 0.0 }
  0xc5   : > { %v662_v51 = vld [vmem:[#allocation2 + $0x48] sm:$0xff]  ;;  %718 = vst.msk [vmem:[%s1341_s8 + $0x30] sm:$0xf] %vm705_vm1, %v701_v45  ;;  %v620_v52 = vadd.f32 %v584_v48, %v491_v42  ;;  %v624_v53 = vadd.f32 %v594_v49, %v495_v43  ;;  %v764_v42 = vmul.f32 %v1363_v35, %v1363_v35  ;;  %v782_v47 = vsel %vm415_vm0, %v763_v13, 0.0 }
  0xc6   : > { %v655_v55 = vld [vmem:[#allocation2 + $0x10] sm:$0xff]  ;;  %v1385_v56 = vadd.f32 %v1330_v3, %v662_v51  ;;  %644 = vst.msk [vmem:[#allocation2 + $0x50] sm:$0xff] %vm415_vm0, %v627_v50  ;;  %v731_v48 = vsel %vm415_vm0, %v1363_v35, 0.0 }
  0xc7   : > { %v675_v57 = vadd.f32 %v1330_v3, %v655_v55  ;;  %v659_v58 = vld [vmem:[#allocation2 + $0x30] sm:$0xff]  ;;  %637 = vst.msk [vmem:[#allocation2 + $0x18] sm:$0xff] %vm415_vm0, %v620_v52 }
  0xc8   : > { %v1391_v59 = vadd.f32 %v1330_v3, %v659_v58  ;;  %v698_v60 = vpack.c.bf16 %v1385_v56, %v1385_v56  ;;  %641 = vst.msk [vmem:[#allocation2 + $0x38] sm:$0xff] %vm415_vm0, %v624_v53  ;;  %v666_v61 = vld [vmem:[#allocation2 + $0x68] sm:$0xff] }
  0xc9   : > { %v691_v63 = vpack.c.bf16 %v675_v57, %v675_v57  ;;  %v1397_v0 = vadd.f32 %v1330_v3, %v666_v61  ;;  %648 = vst.msk [vmem:[#allocation2 + $0x70] sm:$0xff] %vm415_vm0, %v631_v54  ;;  %v761_v7 = vmul.f32 %v675_v57, %v675_v57  ;;  %v725_v16 = vsel %vm415_vm0, %v675_v57, 0.0 }
  0xca   : > { %v695_v2 = vpack.c.bf16 %v1391_v59, %v1391_v59  ;;  %715 = vst.msk [vmem:[%s1341_s8 + $0x24] sm:$0xf] %vm705_vm1, %v698_v60  ;;  %v726_v27 = vadd.f32 %v725_v16, %v724_v19  ;;  %v765_v15 = vmul.f32 %v1391_v59, %v1391_v59  ;;  %v784_v54 = vsel %vm415_vm0, %v764_v42, 0.0 }
  0xcb   : > { %708 = vst.msk [vmem:[%s1341_s8 + $0x8] sm:$0xf] %vm705_vm1, %v691_v63  ;;  %v702_v8 = vpack.c.bf16 %v1397_v0, %v1397_v0  ;;  %v604_v9 = vpop.f32.mrf.mxu2  ;;  %v614_v10 = vpop.f32.mrf.mxu3  ;;  %v778_v23 = vsel %vm415_vm0, %v761_v7, 0.0  ;;  %v733_v55 = vsel %vm415_vm0, %v1391_v59, 0.0  ;;  %v737_v59 = vsel %vm415_vm0, %v1357_v32, 0.0 }
  0xcc   : > { %712 = vst.msk [vmem:[%s1341_s8 + $0x18] sm:$0xf] %vm705_vm1, %v695_v2  ;;  %v628_v11 = vadd.f32 %v604_v9, %v499_v1  ;;  %v632_v18 = vadd.f32 %v614_v10, %v503_v4  ;;  %v779_v37 = vadd.f32 %v778_v23, %v777_v26  ;;  %v786_v63 = vsel %vm415_vm0, %v765_v15, 0.0 }
  0xcd   : > { %v663_v17 = vld [vmem:[#allocation2 + $0x50] sm:$0xff]  ;;  %719 = vst.msk [vmem:[%s1341_s8 + $0x34] sm:$0xf] %vm705_vm1, %v702_v8  ;;  %v790_v9 = vsel %vm415_vm0, %v767_v62, 0.0  ;;  %v739_v10 = vsel %vm415_vm0, %v1385_v56, 0.0 }
  0xce   : > { %v656_v20 = vld [vmem:[#allocation2 + $0x18] sm:$0xff]  ;;  %v1420_v21 = vadd.f32 %v1330_v3, %v663_v17  ;;  %645 = vst.msk [vmem:[#allocation2 + $0x58] sm:$0xff] %vm415_vm0, %v628_v11 }
  0xcf   : > { %v676_v24 = vadd.f32 %v1330_v3, %v656_v20  ;;  %v660_v25 = vld [vmem:[#allocation2 + $0x38] sm:$0xff]  ;;  %649 = vst.msk [vmem:[#allocation2 + $0x78] sm:$0xff] %vm415_vm0, %v632_v18  ;;  %v771_v20 = vmul.f32 %v1369_v39, %v1369_v39 }
  0xd0   : > { %v680_v28 = vadd.f32 %v1330_v3, %v660_v25  ;;  %v699_v29 = vpack.c.bf16 %v1420_v21, %v1420_v21  ;;  %v667_v30 = vld [vmem:[#allocation2 + $0x70] sm:$0xff]  ;;  %v769_v11 = vmul.f32 %v1420_v21, %v1420_v21  ;;  %v741_v16 = vsel %vm415_vm0, %v1420_v21, 0.0 }
  0xd1   : > { %v692_v31 = vpack.c.bf16 %v676_v24, %v676_v24  ;;  %v727_v33 = vsel %vm415_vm0, %v676_v24, 0.0  ;;  %v762_v34 = vmul.f32 %v676_v24, %v676_v24  ;;  %v1434_v36 = vadd.f32 %v1330_v3, %v667_v30 }
  0xd2   : > { %v728_v38 = vadd.f32 %v727_v33, %v726_v27  ;;  %v696_v40 = vpack.c.bf16 %v680_v28, %v680_v28  ;;  %716 = vst.msk [vmem:[%s1341_s8 + $0x28] sm:$0xf] %vm705_vm1, %v699_v29  ;;  %v766_v57 = vmul.f32 %v680_v28, %v680_v28  ;;  %v735_v1 = vsel %vm415_vm0, %v680_v28, 0.0 }
  0xd3   : > { %709 = vst.msk [vmem:[%s1341_s8 + $0xc] sm:$0xf] %vm705_vm1, %v692_v31  ;;  %v780_v43 = vsel %vm415_vm0, %v762_v34, 0.0  ;;  %v703_v44 = vpack.c.bf16 %v1434_v36, %v1434_v36  ;;  %v794_v22 = vsel %vm415_vm0, %v769_v11, 0.0  ;;  %v745_v24 = vsel %vm415_vm0, %v1369_v39, 0.0 }
  0xd4   : > { %v730_v45 = vadd.f32 %v729_v41, %v728_v38  ;;  %v781_v46 = vadd.f32 %v780_v43, %v779_v37  ;;  %713 = vst.msk [vmem:[%s1341_s8 + $0x1c] sm:$0xf] %vm705_vm1, %v696_v40  ;;  %v788_v6 = vsel %vm415_vm0, %v766_v57, 0.0  ;;  %v772_v25 = vmul.f32 %v1397_v0, %v1397_v0 }
  0xd5   : > { %v664_v49 = vld [vmem:[#allocation2 + $0x58] sm:$0xff]  ;;  %720 = vst.msk [vmem:[%s1341_s8 + $0x38] sm:$0xf] %vm705_vm1, %v703_v44  ;;  %v798_v28 = vsel %vm415_vm0, %v771_v20, 0.0  ;;  %v747_v29 = vsel %vm415_vm0, %v1397_v0, 0.0  ;;  %v773_v30 = vmul.f32 %v1434_v36, %v1434_v36  ;;  %v749_v39 = vsel %vm415_vm0, %v1434_v36, 0.0 }
  0xd6   : > { %v783_v50 = vadd.f32 %v782_v47, %v781_v46  ;;  %v732_v51 = vadd.f32 %v731_v48, %v730_v45  ;;  %v684_v52 = vadd.f32 %v1330_v3, %v664_v49  ;;  %v668_v53 = vld [vmem:[#allocation2 + $0x78] sm:$0xff]  ;;  %v800_v34 = vsel %vm415_vm0, %v772_v25, 0.0 }
  0xd7   : > { %v688_v35 = vadd.f32 %v1330_v3, %v668_v53  ;;  %v768_v3 = vmul.f32 %v1385_v56, %v1385_v56  ;;  %v802_v41 = vsel %vm415_vm0, %v773_v30, 0.0 }
  0xd8   : > { %v734_v58 = vadd.f32 %v733_v55, %v732_v51  ;;  %v785_v60 = vadd.f32 %v784_v54, %v783_v50  ;;  %v700_v61 = vpack.c.bf16 %v684_v52, %v684_v52  ;;  %v770_v17 = vmul.f32 %v684_v52, %v684_v52 }
  0xd9   : > { %v704_v2 = vpack.c.bf16 %v688_v35, %v688_v35  ;;  %v792_v32 = vsel %vm415_vm0, %v768_v3, 0.0  ;;  %v743_v56 = vsel %vm415_vm0, %v684_v52, 0.0  ;;  %v774_v37 = vmul.f32 %v688_v35, %v688_v35 }
  0xda   : > { %v736_v4 = vadd.f32 %v735_v1, %v734_v58  ;;  %v787_v5 = vadd.f32 %v786_v63, %v785_v60  ;;  %717 = vst.msk [vmem:[%s1341_s8 + $0x2c] sm:$0xf] %vm705_vm1, %v700_v61  ;;  %v796_v21 = vsel %vm415_vm0, %v770_v17, 0.0  ;;  %v751_v42 = vsel %vm415_vm0, %v688_v35, 0.0 }
  0xdb   : > { %721 = vst.msk [vmem:[%s1341_s8 + $0x3c] sm:$0xf] %vm705_vm1, %v704_v2  ;;  %v804_v44 = vsel %vm415_vm0, %v774_v37, 0.0 }
  0xdc   : > { %v738_v7 = vadd.f32 %v737_v59, %v736_v4  ;;  %v789_v8 = vadd.f32 %v788_v6, %v787_v5 }
  0xde   : > { %v791_v12 = vadd.f32 %v790_v9, %v789_v8  ;;  %v740_v14 = vadd.f32 %v739_v10, %v738_v7 }
  0xe0   : > { %v742_v18 = vadd.f32 %v741_v16, %v740_v14  ;;  %v793_v19 = vadd.f32 %v792_v32, %v791_v12 }
  0xe2   : > { %v795_v13 = vadd.f32 %v794_v22, %v793_v19  ;;  %v744_v23 = vadd.f32 %v743_v56, %v742_v18 }
  0xe4   : > { %v746_v26 = vadd.f32 %v745_v24, %v744_v23  ;;  %v797_v27 = vadd.f32 %v796_v21, %v795_v13 }
  0xe6   : > { %v799_v31 = vadd.f32 %v798_v28, %v797_v27  ;;  %v748_v33 = vadd.f32 %v747_v29, %v746_v26 }
  0xe8   : > { %v750_v38 = vadd.f32 %v749_v39, %v748_v33  ;;  %v801_v40 = vadd.f32 %v800_v34, %v799_v31 }
  0xea   : > { %v803_v43 = vadd.f32 %v802_v41, %v801_v40  ;;  %v752_v0 = vadd.f32 %v751_v42, %v750_v38 }
  0xec   : > { %v753_v45 = vrot.slane %v752_v0, 4  ;;  %v805_v46 = vadd.f32 %v804_v44, %v803_v43 }
  0xee   : > { %v754_v47 = vadd.f32 %v753_v45, %v752_v0  ;;  %v806_v48 = vrot.slane %v805_v46, 4 }
  0xf0   : > { %v755_v15 = vrot.slane %v754_v47, 2  ;;  %v807_v49 = vadd.f32 %v806_v48, %v805_v46 }
  0xf2   : > { %v756_v50 = vadd.f32 %v755_v15, %v754_v47  ;;  %v808_v36 = vrot.slane %v807_v49, 2 }
  0xf4   : > { %v757_v51 = vrot.slane %v756_v50, 1  ;;  %v809_v52 = vadd.f32 %v808_v36, %v807_v49 }
  0xf6   : > { %v758_v53 = vadd.f32 %v757_v51, %v756_v50  ;;  %v810_v54 = vrot.slane %v809_v52, 1 }
  0xf8   : > { %v811_v55 = vadd.f32 %v810_v54, %v809_v52  ;;  %812 = vst.msk [vmem:[%s400_s12] sm:$0xff] %vm415_vm0, %v758_v53 }
  0xfa   : > { %813 = vst.msk [vmem:[%s410_s15] sm:$0xff] %vm415_vm0, %v811_v55 }
  0xfb PF: > { %s16_s20 = sadd.s32 1, %s1225_s20   ;;  %s1526_s18 = smov %s1221_s19 }
  0xfc   : > { %p13_p5 = scmp.ge.s32.totalorder %s16_s20, 6   ;;  %s1527_s19 = smov %s1529_s21 }
  0xfe   :  { %15 = sbr.rel (!%p13_p5) target bundleno = 2 (0x2), region = 100 }

// kernel: unet_generator_forward.32
= control target key start
LH: loop header
LB: loop body
LE: loop exit
PB: predicated region body
PF: predicated region fallthrough
CT: control target
= control target key end

     0   :  { %vm342_vm0 = vcmask 60416   ;;  %s1082_s0 = inlined_call_operand.vmem [shape: bf16[512,8], index: 0, kind: input, shape index: {}]   ;;  %s1083_s1 = inlined_call_operand.vmem [shape: f32[1,8], index: 1, kind: input, shape index: {}]   ;;  %s1084_s2 = inlined_call_operand.vmem [shape: f32[1,8], index: 2, kind: input, shape index: {}]   ;;  %s1085_s3 = inlined_call_operand.vmem [shape: bf16[512,8], index: 3, kind: output, shape index: {}]  }
   0x1   :  { %v412_v0 = vld [vmem:[%s1082_s0] sm:$0xff]   ;;  %v539_v5 = vld [vmem:[%s1082_s0 + $0x8] sm:$0xff]   ;;  %v540_v8 = vld [vmem:[%s1082_s0 + $0x10] sm:$0xff]  }
   0x2   :  { %v598_v1 = vld [vmem:[%s1083_s1] ss:$0 sm:$0xff]  ;;  %v413_v2 = vunpack.c.l.bf16 %v412_v0  ;;  %v414_v4 = vunpack.c.h.bf16 %v412_v0  ;;  %v417_v6 = vunpack.c.l.bf16 %v539_v5  ;;  %v418_v7 = vunpack.c.h.bf16 %v539_v5  ;;  %v541_v9 = vld [vmem:[%s1082_s0 + $0x18] sm:$0xff]   ;;  %v543_v31 = vld [vmem:[%s1082_s0 + $0x28] sm:$0xff]  }
   0x3   :  { %v603_v3 = vld [vmem:[%s1084_s2] ss:$0 sm:$0xff]  ;;  %v421_v12 = vunpack.c.l.bf16 %v540_v8  ;;  %v422_v13 = vunpack.c.h.bf16 %v540_v8  ;;  %v425_v16 = vunpack.c.l.bf16 %v541_v9  ;;  %v426_v17 = vunpack.c.h.bf16 %v541_v9  ;;  %v544_v36 = vld [vmem:[%s1082_s0 + $0x30] sm:$0xff]   ;;  %v545_v41 = vld [vmem:[%s1082_s0 + $0x38] sm:$0xff]  }
   0x4   :  { %v146_v10 = vmul.f32 %v598_v1, %v413_v2  ;;  %v147_v11 = vmul.f32 %v598_v1, %v414_v4  ;;  %v148_v14 = vmul.f32 %v598_v1, %v417_v6  ;;  %v149_v15 = vmul.f32 %v598_v1, %v418_v7  ;;  %v542_v26 = vld [vmem:[%s1082_s0 + $0x20] sm:$0xff]   ;;  %v547_v5 = vld [vmem:[%s1082_s0 + $0x48] sm:$0xff]  }
   0x5   :  { %v150_v20 = vmul.f32 %v598_v1, %v421_v12  ;;  %v151_v21 = vmul.f32 %v598_v1, %v422_v13  ;;  %v152_v24 = vmul.f32 %v598_v1, %v425_v16  ;;  %v153_v25 = vmul.f32 %v598_v1, %v426_v17  ;;  %v546_v62 = vld [vmem:[%s1082_s0 + $0x40] sm:$0xff]  }
   0x6   :  { %v214_v18 = vadd.f32 %v603_v3, %v146_v10  ;;  %v215_v19 = vadd.f32 %v603_v3, %v147_v11  ;;  %v216_v22 = vadd.f32 %v603_v3, %v148_v14  ;;  %v217_v23 = vadd.f32 %v603_v3, %v149_v15  ;;  %v548_v10 = vld [vmem:[%s1082_s0 + $0x50] sm:$0xff]   ;;  %v549_v15 = vld [vmem:[%s1082_s0 + $0x58] sm:$0xff]  }
   0x7   :  { %v218_v29 = vadd.f32 %v603_v3, %v150_v20  ;;  %v219_v30 = vadd.f32 %v603_v3, %v151_v21  ;;  %v220_v34 = vadd.f32 %v603_v3, %v152_v24  ;;  %v221_v35 = vadd.f32 %v603_v3, %v153_v25 }
   0x8   :  { %v278_v27 = vpack.c.bf16 %v214_v18, %v214_v18  ;;  %v279_v28 = vpack.c.bf16 %v215_v19, %v215_v19  ;;  %v280_v32 = vpack.c.bf16 %v216_v22, %v216_v22  ;;  %v281_v33 = vpack.c.bf16 %v217_v23, %v217_v23 }
   0x9   :  { %v282_v37 = vpack.c.bf16 %v218_v29, %v218_v29  ;;  %v283_v38 = vpack.c.bf16 %v219_v30, %v219_v30  ;;  %v429_v39 = vunpack.c.l.bf16 %v542_v26  ;;  %v430_v40 = vunpack.c.h.bf16 %v542_v26 }
   0xa   :  { %343 = vst.msk [vmem:[%s1085_s3] sm:$0xf] %vm342_vm0, %v278_v27  ;;  %v284_v42 = vpack.c.bf16 %v220_v34, %v220_v34  ;;  %v285_v43 = vpack.c.bf16 %v221_v35, %v221_v35  ;;  %v433_v44 = vunpack.c.l.bf16 %v543_v31  ;;  %v434_v45 = vunpack.c.h.bf16 %v543_v31 }
   0xb   :  { %344 = vst.msk [vmem:[%s1085_s3 + $0x4] sm:$0xf] %vm342_vm0, %v279_v28  ;;  %v154_v46 = vmul.f32 %v598_v1, %v429_v39  ;;  %v155_v47 = vmul.f32 %v598_v1, %v430_v40  ;;  %v437_v48 = vunpack.c.l.bf16 %v544_v36  ;;  %v438_v49 = vunpack.c.h.bf16 %v544_v36  ;;  %v550_v36 = vld [vmem:[%s1082_s0 + $0x60] sm:$0xff]  }
   0xc   :  { %345 = vst.msk [vmem:[%s1085_s3 + $0x8] sm:$0xf] %vm342_vm0, %v280_v32  ;;  %v156_v50 = vmul.f32 %v598_v1, %v433_v44  ;;  %v157_v51 = vmul.f32 %v598_v1, %v434_v45  ;;  %v441_v52 = vunpack.c.l.bf16 %v545_v41  ;;  %v442_v53 = vunpack.c.h.bf16 %v545_v41  ;;  %v551_v41 = vld [vmem:[%s1082_s0 + $0x68] sm:$0xff]  }
   0xd   :  { %346 = vst.msk [vmem:[%s1085_s3 + $0xc] sm:$0xf] %vm342_vm0, %v281_v33  ;;  %v222_v54 = vadd.f32 %v603_v3, %v154_v46  ;;  %v223_v55 = vadd.f32 %v603_v3, %v155_v47  ;;  %v158_v56 = vmul.f32 %v598_v1, %v437_v48  ;;  %v159_v57 = vmul.f32 %v598_v1, %v438_v49  ;;  %v552_v46 = vld [vmem:[%s1082_s0 + $0x70] sm:$0xff]  }
   0xe   :  { %347 = vst.msk [vmem:[%s1085_s3 + $0x10] sm:$0xf] %vm342_vm0, %v282_v37  ;;  %v224_v58 = vadd.f32 %v603_v3, %v156_v50  ;;  %v225_v59 = vadd.f32 %v603_v3, %v157_v51  ;;  %v160_v60 = vmul.f32 %v598_v1, %v441_v52  ;;  %v161_v61 = vmul.f32 %v598_v1, %v442_v53  ;;  %v553_v51 = vld [vmem:[%s1082_s0 + $0x78] sm:$0xff]  }
   0xf   :  { %348 = vst.msk [vmem:[%s1085_s3 + $0x14] sm:$0xf] %vm342_vm0, %v283_v38  ;;  %v286_v63 = vpack.c.bf16 %v222_v54, %v222_v54  ;;  %v287_v0 = vpack.c.bf16 %v223_v55, %v223_v55  ;;  %v226_v2 = vadd.f32 %v603_v3, %v158_v56  ;;  %v227_v4 = vadd.f32 %v603_v3, %v159_v57 }
  0x10   :  { %349 = vst.msk [vmem:[%s1085_s3 + $0x18] sm:$0xf] %vm342_vm0, %v284_v42  ;;  %v288_v6 = vpack.c.bf16 %v224_v58, %v224_v58  ;;  %v289_v7 = vpack.c.bf16 %v225_v59, %v225_v59  ;;  %v228_v8 = vadd.f32 %v603_v3, %v160_v60  ;;  %v229_v9 = vadd.f32 %v603_v3, %v161_v61 }
  0x11   :  { %350 = vst.msk [vmem:[%s1085_s3 + $0x1c] sm:$0xf] %vm342_vm0, %v285_v43  ;;  %v290_v11 = vpack.c.bf16 %v226_v2, %v226_v2  ;;  %v291_v12 = vpack.c.bf16 %v227_v4, %v227_v4  ;;  %v445_v13 = vunpack.c.l.bf16 %v546_v62  ;;  %v446_v14 = vunpack.c.h.bf16 %v546_v62 }
  0x12   :  { %351 = vst.msk [vmem:[%s1085_s3 + $0x20] sm:$0xf] %vm342_vm0, %v286_v63  ;;  %v292_v16 = vpack.c.bf16 %v228_v8, %v228_v8  ;;  %v293_v17 = vpack.c.bf16 %v229_v9, %v229_v9  ;;  %v449_v18 = vunpack.c.l.bf16 %v547_v5  ;;  %v450_v19 = vunpack.c.h.bf16 %v547_v5 }
  0x13   :  { %352 = vst.msk [vmem:[%s1085_s3 + $0x24] sm:$0xf] %vm342_vm0, %v287_v0  ;;  %v162_v20 = vmul.f32 %v598_v1, %v445_v13  ;;  %v163_v21 = vmul.f32 %v598_v1, %v446_v14  ;;  %v453_v22 = vunpack.c.l.bf16 %v548_v10  ;;  %v454_v23 = vunpack.c.h.bf16 %v548_v10  ;;  %v554_v10 = vld [vmem:[%s1082_s0 + $0x80] sm:$0xff]  }
  0x14   :  { %353 = vst.msk [vmem:[%s1085_s3 + $0x28] sm:$0xf] %vm342_vm0, %v288_v6  ;;  %v164_v24 = vmul.f32 %v598_v1, %v449_v18  ;;  %v165_v25 = vmul.f32 %v598_v1, %v450_v19  ;;  %v457_v26 = vunpack.c.l.bf16 %v549_v15  ;;  %v458_v27 = vunpack.c.h.bf16 %v549_v15  ;;  %v555_v15 = vld [vmem:[%s1082_s0 + $0x88] sm:$0xff]  }
  0x15   :  { %354 = vst.msk [vmem:[%s1085_s3 + $0x2c] sm:$0xf] %vm342_vm0, %v289_v7  ;;  %v230_v28 = vadd.f32 %v603_v3, %v162_v20  ;;  %v231_v29 = vadd.f32 %v603_v3, %v163_v21  ;;  %v166_v30 = vmul.f32 %v598_v1, %v453_v22  ;;  %v167_v31 = vmul.f32 %v598_v1, %v454_v23  ;;  %v556_v20 = vld [vmem:[%s1082_s0 + $0x90] sm:$0xff]  }
  0x16   :  { %355 = vst.msk [vmem:[%s1085_s3 + $0x30] sm:$0xf] %vm342_vm0, %v290_v11  ;;  %v232_v32 = vadd.f32 %v603_v3, %v164_v24  ;;  %v233_v33 = vadd.f32 %v603_v3, %v165_v25  ;;  %v168_v34 = vmul.f32 %v598_v1, %v457_v26  ;;  %v169_v35 = vmul.f32 %v598_v1, %v458_v27  ;;  %v557_v25 = vld [vmem:[%s1082_s0 + $0x98] sm:$0xff]  }
  0x17   :  { %356 = vst.msk [vmem:[%s1085_s3 + $0x34] sm:$0xf] %vm342_vm0, %v291_v12  ;;  %v294_v37 = vpack.c.bf16 %v230_v28, %v230_v28  ;;  %v295_v38 = vpack.c.bf16 %v231_v29, %v231_v29  ;;  %v234_v39 = vadd.f32 %v603_v3, %v166_v30  ;;  %v235_v40 = vadd.f32 %v603_v3, %v167_v31 }
  0x18   :  { %357 = vst.msk [vmem:[%s1085_s3 + $0x38] sm:$0xf] %vm342_vm0, %v292_v16  ;;  %v296_v42 = vpack.c.bf16 %v232_v32, %v232_v32  ;;  %v297_v43 = vpack.c.bf16 %v233_v33, %v233_v33  ;;  %v236_v44 = vadd.f32 %v603_v3, %v168_v34  ;;  %v237_v45 = vadd.f32 %v603_v3, %v169_v35 }
  0x19   :  { %358 = vst.msk [vmem:[%s1085_s3 + $0x3c] sm:$0xf] %vm342_vm0, %v293_v17  ;;  %v298_v47 = vpack.c.bf16 %v234_v39, %v234_v39  ;;  %v299_v48 = vpack.c.bf16 %v235_v40, %v235_v40  ;;  %v461_v49 = vunpack.c.l.bf16 %v550_v36  ;;  %v462_v50 = vunpack.c.h.bf16 %v550_v36 }
  0x1a   :  { %359 = vst.msk [vmem:[%s1085_s3 + $0x40] sm:$0xf] %vm342_vm0, %v294_v37  ;;  %v300_v52 = vpack.c.bf16 %v236_v44, %v236_v44  ;;  %v301_v53 = vpack.c.bf16 %v237_v45, %v237_v45  ;;  %v465_v54 = vunpack.c.l.bf16 %v551_v41  ;;  %v466_v55 = vunpack.c.h.bf16 %v551_v41 }
  0x1b   :  { %360 = vst.msk [vmem:[%s1085_s3 + $0x44] sm:$0xf] %vm342_vm0, %v295_v38  ;;  %v170_v56 = vmul.f32 %v598_v1, %v461_v49  ;;  %v171_v57 = vmul.f32 %v598_v1, %v462_v50  ;;  %v469_v58 = vunpack.c.l.bf16 %v552_v46  ;;  %v470_v59 = vunpack.c.h.bf16 %v552_v46  ;;  %v558_v46 = vld [vmem:[%s1082_s0 + $0xa0] sm:$0xff]  }
  0x1c   :  { %361 = vst.msk [vmem:[%s1085_s3 + $0x48] sm:$0xf] %vm342_vm0, %v296_v42  ;;  %v172_v60 = vmul.f32 %v598_v1, %v465_v54  ;;  %v173_v61 = vmul.f32 %v598_v1, %v466_v55  ;;  %v473_v62 = vunpack.c.l.bf16 %v553_v51  ;;  %v474_v63 = vunpack.c.h.bf16 %v553_v51  ;;  %v559_v51 = vld [vmem:[%s1082_s0 + $0xa8] sm:$0xff]  }
  0x1d   :  { %362 = vst.msk [vmem:[%s1085_s3 + $0x4c] sm:$0xf] %vm342_vm0, %v297_v43  ;;  %v238_v0 = vadd.f32 %v603_v3, %v170_v56  ;;  %v239_v2 = vadd.f32 %v603_v3, %v171_v57  ;;  %v174_v4 = vmul.f32 %v598_v1, %v469_v58  ;;  %v175_v5 = vmul.f32 %v598_v1, %v470_v59  ;;  %v560_v56 = vld [vmem:[%s1082_s0 + $0xb0] sm:$0xff]  }
  0x1e   :  { %363 = vst.msk [vmem:[%s1085_s3 + $0x50] sm:$0xf] %vm342_vm0, %v298_v47  ;;  %v240_v6 = vadd.f32 %v603_v3, %v172_v60  ;;  %v241_v7 = vadd.f32 %v603_v3, %v173_v61  ;;  %v176_v8 = vmul.f32 %v598_v1, %v473_v62  ;;  %v177_v9 = vmul.f32 %v598_v1, %v474_v63  ;;  %v561_v61 = vld [vmem:[%s1082_s0 + $0xb8] sm:$0xff]  }
  0x1f   :  { %364 = vst.msk [vmem:[%s1085_s3 + $0x54] sm:$0xf] %vm342_vm0, %v299_v48  ;;  %v302_v11 = vpack.c.bf16 %v238_v0, %v238_v0  ;;  %v303_v12 = vpack.c.bf16 %v239_v2, %v239_v2  ;;  %v242_v13 = vadd.f32 %v603_v3, %v174_v4  ;;  %v243_v14 = vadd.f32 %v603_v3, %v175_v5 }
  0x20   :  { %365 = vst.msk [vmem:[%s1085_s3 + $0x58] sm:$0xf] %vm342_vm0, %v300_v52  ;;  %v304_v16 = vpack.c.bf16 %v240_v6, %v240_v6  ;;  %v305_v17 = vpack.c.bf16 %v241_v7, %v241_v7  ;;  %v244_v18 = vadd.f32 %v603_v3, %v176_v8  ;;  %v245_v19 = vadd.f32 %v603_v3, %v177_v9 }
  0x21   :  { %366 = vst.msk [vmem:[%s1085_s3 + $0x5c] sm:$0xf] %vm342_vm0, %v301_v53  ;;  %v306_v21 = vpack.c.bf16 %v242_v13, %v242_v13  ;;  %v307_v22 = vpack.c.bf16 %v243_v14, %v243_v14  ;;  %v477_v23 = vunpack.c.l.bf16 %v554_v10  ;;  %v478_v24 = vunpack.c.h.bf16 %v554_v10 }
  0x22   :  { %367 = vst.msk [vmem:[%s1085_s3 + $0x60] sm:$0xf] %vm342_vm0, %v302_v11  ;;  %v308_v26 = vpack.c.bf16 %v244_v18, %v244_v18  ;;  %v309_v27 = vpack.c.bf16 %v245_v19, %v245_v19  ;;  %v481_v28 = vunpack.c.l.bf16 %v555_v15  ;;  %v482_v29 = vunpack.c.h.bf16 %v555_v15 }
  0x23   :  { %368 = vst.msk [vmem:[%s1085_s3 + $0x64] sm:$0xf] %vm342_vm0, %v303_v12  ;;  %v178_v30 = vmul.f32 %v598_v1, %v477_v23  ;;  %v179_v31 = vmul.f32 %v598_v1, %v478_v24  ;;  %v485_v32 = vunpack.c.l.bf16 %v556_v20  ;;  %v486_v33 = vunpack.c.h.bf16 %v556_v20  ;;  %v562_v20 = vld [vmem:[%s1082_s0 + $0xc0] sm:$0xff]  }
  0x24   :  { %369 = vst.msk [vmem:[%s1085_s3 + $0x68] sm:$0xf] %vm342_vm0, %v304_v16  ;;  %v180_v34 = vmul.f32 %v598_v1, %v481_v28  ;;  %v181_v35 = vmul.f32 %v598_v1, %v482_v29  ;;  %v489_v36 = vunpack.c.l.bf16 %v557_v25  ;;  %v490_v37 = vunpack.c.h.bf16 %v557_v25  ;;  %v563_v25 = vld [vmem:[%s1082_s0 + $0xc8] sm:$0xff]  }
  0x25   :  { %370 = vst.msk [vmem:[%s1085_s3 + $0x6c] sm:$0xf] %vm342_vm0, %v305_v17  ;;  %v246_v38 = vadd.f32 %v603_v3, %v178_v30  ;;  %v247_v39 = vadd.f32 %v603_v3, %v179_v31  ;;  %v182_v40 = vmul.f32 %v598_v1, %v485_v32  ;;  %v183_v41 = vmul.f32 %v598_v1, %v486_v33  ;;  %v564_v30 = vld [vmem:[%s1082_s0 + $0xd0] sm:$0xff]  }
  0x26   :  { %371 = vst.msk [vmem:[%s1085_s3 + $0x70] sm:$0xf] %vm342_vm0, %v306_v21  ;;  %v248_v42 = vadd.f32 %v603_v3, %v180_v34  ;;  %v249_v43 = vadd.f32 %v603_v3, %v181_v35  ;;  %v184_v44 = vmul.f32 %v598_v1, %v489_v36  ;;  %v185_v45 = vmul.f32 %v598_v1, %v490_v37  ;;  %v565_v35 = vld [vmem:[%s1082_s0 + $0xd8] sm:$0xff]  }
  0x27   :  { %372 = vst.msk [vmem:[%s1085_s3 + $0x74] sm:$0xf] %vm342_vm0, %v307_v22  ;;  %v310_v47 = vpack.c.bf16 %v246_v38, %v246_v38  ;;  %v311_v48 = vpack.c.bf16 %v247_v39, %v247_v39  ;;  %v250_v49 = vadd.f32 %v603_v3, %v182_v40  ;;  %v251_v50 = vadd.f32 %v603_v3, %v183_v41 }
  0x28   :  { %373 = vst.msk [vmem:[%s1085_s3 + $0x78] sm:$0xf] %vm342_vm0, %v308_v26  ;;  %v312_v52 = vpack.c.bf16 %v248_v42, %v248_v42  ;;  %v313_v53 = vpack.c.bf16 %v249_v43, %v249_v43  ;;  %v252_v54 = vadd.f32 %v603_v3, %v184_v44  ;;  %v253_v55 = vadd.f32 %v603_v3, %v185_v45 }
  0x29   :  { %374 = vst.msk [vmem:[%s1085_s3 + $0x7c] sm:$0xf] %vm342_vm0, %v309_v27  ;;  %v314_v57 = vpack.c.bf16 %v250_v49, %v250_v49  ;;  %v315_v58 = vpack.c.bf16 %v251_v50, %v251_v50  ;;  %v493_v59 = vunpack.c.l.bf16 %v558_v46  ;;  %v494_v60 = vunpack.c.h.bf16 %v558_v46 }
  0x2a   :  { %375 = vst.msk [vmem:[%s1085_s3 + $0x80] sm:$0xf] %vm342_vm0, %v310_v47  ;;  %v316_v62 = vpack.c.bf16 %v252_v54, %v252_v54  ;;  %v317_v63 = vpack.c.bf16 %v253_v55, %v253_v55  ;;  %v497_v0 = vunpack.c.l.bf16 %v559_v51  ;;  %v498_v2 = vunpack.c.h.bf16 %v559_v51 }
  0x2b   :  { %376 = vst.msk [vmem:[%s1085_s3 + $0x84] sm:$0xf] %vm342_vm0, %v311_v48  ;;  %v186_v4 = vmul.f32 %v598_v1, %v493_v59  ;;  %v187_v5 = vmul.f32 %v598_v1, %v494_v60  ;;  %v501_v6 = vunpack.c.l.bf16 %v560_v56  ;;  %v502_v7 = vunpack.c.h.bf16 %v560_v56  ;;  %v566_v56 = vld [vmem:[%s1082_s0 + $0xe0] sm:$0xff]  }
  0x2c   :  { %377 = vst.msk [vmem:[%s1085_s3 + $0x88] sm:$0xf] %vm342_vm0, %v312_v52  ;;  %v188_v8 = vmul.f32 %v598_v1, %v497_v0  ;;  %v189_v9 = vmul.f32 %v598_v1, %v498_v2  ;;  %v505_v10 = vunpack.c.l.bf16 %v561_v61  ;;  %v506_v11 = vunpack.c.h.bf16 %v561_v61  ;;  %v567_v61 = vld [vmem:[%s1082_s0 + $0xe8] sm:$0xff]  }
  0x2d   :  { %378 = vst.msk [vmem:[%s1085_s3 + $0x8c] sm:$0xf] %vm342_vm0, %v313_v53  ;;  %v254_v12 = vadd.f32 %v603_v3, %v186_v4  ;;  %v255_v13 = vadd.f32 %v603_v3, %v187_v5  ;;  %v190_v14 = vmul.f32 %v598_v1, %v501_v6  ;;  %v191_v15 = vmul.f32 %v598_v1, %v502_v7  ;;  %v568_v4 = vld [vmem:[%s1082_s0 + $0xf0] sm:$0xff]  }
  0x2e   :  { %379 = vst.msk [vmem:[%s1085_s3 + $0x90] sm:$0xf] %vm342_vm0, %v314_v57  ;;  %v256_v16 = vadd.f32 %v603_v3, %v188_v8  ;;  %v257_v17 = vadd.f32 %v603_v3, %v189_v9  ;;  %v192_v18 = vmul.f32 %v598_v1, %v505_v10  ;;  %v193_v19 = vmul.f32 %v598_v1, %v506_v11  ;;  %v569_v9 = vld [vmem:[%s1082_s0 + $0xf8] sm:$0xff]  }
  0x2f   :  { %380 = vst.msk [vmem:[%s1085_s3 + $0x94] sm:$0xf] %vm342_vm0, %v315_v58  ;;  %v318_v21 = vpack.c.bf16 %v254_v12, %v254_v12  ;;  %v319_v22 = vpack.c.bf16 %v255_v13, %v255_v13  ;;  %v258_v23 = vadd.f32 %v603_v3, %v190_v14  ;;  %v259_v24 = vadd.f32 %v603_v3, %v191_v15 }
  0x30   :  { %381 = vst.msk [vmem:[%s1085_s3 + $0x98] sm:$0xf] %vm342_vm0, %v316_v62  ;;  %v320_v26 = vpack.c.bf16 %v256_v16, %v256_v16  ;;  %v321_v27 = vpack.c.bf16 %v257_v17, %v257_v17  ;;  %v260_v28 = vadd.f32 %v603_v3, %v192_v18  ;;  %v261_v29 = vadd.f32 %v603_v3, %v193_v19 }
  0x31   :  { %382 = vst.msk [vmem:[%s1085_s3 + $0x9c] sm:$0xf] %vm342_vm0, %v317_v63  ;;  %v322_v31 = vpack.c.bf16 %v258_v23, %v258_v23  ;;  %v323_v32 = vpack.c.bf16 %v259_v24, %v259_v24  ;;  %v509_v33 = vunpack.c.l.bf16 %v562_v20  ;;  %v510_v34 = vunpack.c.h.bf16 %v562_v20 }
  0x32   :  { %383 = vst.msk [vmem:[%s1085_s3 + $0xa0] sm:$0xf] %vm342_vm0, %v318_v21  ;;  %v324_v36 = vpack.c.bf16 %v260_v28, %v260_v28  ;;  %v325_v37 = vpack.c.bf16 %v261_v29, %v261_v29  ;;  %v513_v38 = vunpack.c.l.bf16 %v563_v25  ;;  %v514_v39 = vunpack.c.h.bf16 %v563_v25 }
  0x33   :  { %384 = vst.msk [vmem:[%s1085_s3 + $0xa4] sm:$0xf] %vm342_vm0, %v319_v22  ;;  %v194_v40 = vmul.f32 %v598_v1, %v509_v33  ;;  %v195_v41 = vmul.f32 %v598_v1, %v510_v34  ;;  %v517_v42 = vunpack.c.l.bf16 %v564_v30  ;;  %v518_v43 = vunpack.c.h.bf16 %v564_v30 }
  0x34   :  { %385 = vst.msk [vmem:[%s1085_s3 + $0xa8] sm:$0xf] %vm342_vm0, %v320_v26  ;;  %v196_v44 = vmul.f32 %v598_v1, %v513_v38  ;;  %v197_v45 = vmul.f32 %v598_v1, %v514_v39  ;;  %v521_v46 = vunpack.c.l.bf16 %v565_v35  ;;  %v522_v47 = vunpack.c.h.bf16 %v565_v35 }
  0x35   :  { %386 = vst.msk [vmem:[%s1085_s3 + $0xac] sm:$0xf] %vm342_vm0, %v321_v27  ;;  %v262_v48 = vadd.f32 %v603_v3, %v194_v40  ;;  %v263_v49 = vadd.f32 %v603_v3, %v195_v41  ;;  %v198_v50 = vmul.f32 %v598_v1, %v517_v42  ;;  %v199_v51 = vmul.f32 %v598_v1, %v518_v43 }
  0x36   :  { %387 = vst.msk [vmem:[%s1085_s3 + $0xb0] sm:$0xf] %vm342_vm0, %v322_v31  ;;  %v264_v52 = vadd.f32 %v603_v3, %v196_v44  ;;  %v265_v53 = vadd.f32 %v603_v3, %v197_v45  ;;  %v200_v54 = vmul.f32 %v598_v1, %v521_v46  ;;  %v201_v55 = vmul.f32 %v598_v1, %v522_v47 }
  0x37   :  { %388 = vst.msk [vmem:[%s1085_s3 + $0xb4] sm:$0xf] %vm342_vm0, %v323_v32  ;;  %v326_v57 = vpack.c.bf16 %v262_v48, %v262_v48  ;;  %v327_v58 = vpack.c.bf16 %v263_v49, %v263_v49  ;;  %v266_v59 = vadd.f32 %v603_v3, %v198_v50  ;;  %v267_v60 = vadd.f32 %v603_v3, %v199_v51 }
  0x38   :  { %389 = vst.msk [vmem:[%s1085_s3 + $0xb8] sm:$0xf] %vm342_vm0, %v324_v36  ;;  %v328_v62 = vpack.c.bf16 %v264_v52, %v264_v52  ;;  %v329_v63 = vpack.c.bf16 %v265_v53, %v265_v53  ;;  %v268_v0 = vadd.f32 %v603_v3, %v200_v54  ;;  %v269_v2 = vadd.f32 %v603_v3, %v201_v55 }
  0x39   :  { %390 = vst.msk [vmem:[%s1085_s3 + $0xbc] sm:$0xf] %vm342_vm0, %v325_v37  ;;  %v330_v5 = vpack.c.bf16 %v266_v59, %v266_v59  ;;  %v331_v6 = vpack.c.bf16 %v267_v60, %v267_v60  ;;  %v525_v7 = vunpack.c.l.bf16 %v566_v56  ;;  %v526_v8 = vunpack.c.h.bf16 %v566_v56 }
  0x3a   :  { %391 = vst.msk [vmem:[%s1085_s3 + $0xc0] sm:$0xf] %vm342_vm0, %v326_v57  ;;  %v332_v10 = vpack.c.bf16 %v268_v0, %v268_v0  ;;  %v333_v11 = vpack.c.bf16 %v269_v2, %v269_v2  ;;  %v529_v12 = vunpack.c.l.bf16 %v567_v61  ;;  %v530_v13 = vunpack.c.h.bf16 %v567_v61 }
  0x3b   :  { %392 = vst.msk [vmem:[%s1085_s3 + $0xc4] sm:$0xf] %vm342_vm0, %v327_v58  ;;  %v202_v14 = vmul.f32 %v598_v1, %v525_v7  ;;  %v203_v15 = vmul.f32 %v598_v1, %v526_v8  ;;  %v533_v16 = vunpack.c.l.bf16 %v568_v4  ;;  %v534_v17 = vunpack.c.h.bf16 %v568_v4 }
  0x3c   :  { %393 = vst.msk [vmem:[%s1085_s3 + $0xc8] sm:$0xf] %vm342_vm0, %v328_v62  ;;  %v204_v18 = vmul.f32 %v598_v1, %v529_v12  ;;  %v205_v19 = vmul.f32 %v598_v1, %v530_v13  ;;  %v537_v20 = vunpack.c.l.bf16 %v569_v9  ;;  %v538_v21 = vunpack.c.h.bf16 %v569_v9 }
  0x3d   :  { %394 = vst.msk [vmem:[%s1085_s3 + $0xcc] sm:$0xf] %vm342_vm0, %v329_v63  ;;  %v270_v22 = vadd.f32 %v603_v3, %v202_v14  ;;  %v271_v23 = vadd.f32 %v603_v3, %v203_v15  ;;  %v206_v24 = vmul.f32 %v598_v1, %v533_v16  ;;  %v207_v25 = vmul.f32 %v598_v1, %v534_v17 }
  0x3e   :  { %395 = vst.msk [vmem:[%s1085_s3 + $0xd0] sm:$0xf] %vm342_vm0, %v330_v5  ;;  %v272_v26 = vadd.f32 %v603_v3, %v204_v18  ;;  %v273_v27 = vadd.f32 %v603_v3, %v205_v19  ;;  %v208_v28 = vmul.f32 %v598_v1, %v537_v20  ;;  %v209_v29 = vmul.f32 %v598_v1, %v538_v21 }
  0x3f   :  { %396 = vst.msk [vmem:[%s1085_s3 + $0xd4] sm:$0xf] %vm342_vm0, %v331_v6  ;;  %v334_v30 = vpack.c.bf16 %v270_v22, %v270_v22  ;;  %v335_v31 = vpack.c.bf16 %v271_v23, %v271_v23  ;;  %v274_v32 = vadd.f32 %v603_v3, %v206_v24  ;;  %v275_v33 = vadd.f32 %v603_v3, %v207_v25 }
  0x40   :  { %397 = vst.msk [vmem:[%s1085_s3 + $0xd8] sm:$0xf] %vm342_vm0, %v332_v10  ;;  %v336_v34 = vpack.c.bf16 %v272_v26, %v272_v26  ;;  %v337_v35 = vpack.c.bf16 %v273_v27, %v273_v27  ;;  %v276_v1 = vadd.f32 %v603_v3, %v208_v28  ;;  %v277_v36 = vadd.f32 %v603_v3, %v209_v29 }
  0x41   :  { %398 = vst.msk [vmem:[%s1085_s3 + $0xdc] sm:$0xf] %vm342_vm0, %v333_v11  ;;  %v338_v37 = vpack.c.bf16 %v274_v32, %v274_v32  ;;  %v339_v38 = vpack.c.bf16 %v275_v33, %v275_v33 }
  0x42   :  { %399 = vst.msk [vmem:[%s1085_s3 + $0xe0] sm:$0xf] %vm342_vm0, %v334_v30  ;;  %v340_v39 = vpack.c.bf16 %v276_v1, %v276_v1  ;;  %v341_v3 = vpack.c.bf16 %v277_v36, %v277_v36 }
  0x43   :  { %400 = vst.msk [vmem:[%s1085_s3 + $0xe4] sm:$0xf] %vm342_vm0, %v335_v31 }
  0x44   :  { %401 = vst.msk [vmem:[%s1085_s3 + $0xe8] sm:$0xf] %vm342_vm0, %v336_v34 }
  0x45   :  { %402 = vst.msk [vmem:[%s1085_s3 + $0xec] sm:$0xf] %vm342_vm0, %v337_v35 }
  0x46   :  { %403 = vst.msk [vmem:[%s1085_s3 + $0xf0] sm:$0xf] %vm342_vm0, %v338_v37 }
  0x47   :  { %404 = vst.msk [vmem:[%s1085_s3 + $0xf4] sm:$0xf] %vm342_vm0, %v339_v38 }
  0x48   :  { %405 = vst.msk [vmem:[%s1085_s3 + $0xf8] sm:$0xf] %vm342_vm0, %v340_v39 }
  0x49   :  { %406 = vst.msk [vmem:[%s1085_s3 + $0xfc] sm:$0xf] %vm342_vm0, %v341_v3 }

// kernel: unet_generator_forward.33
= control target key start
LH: loop header
LB: loop body
LE: loop exit
PB: predicated region body
PF: predicated region fallthrough
CT: control target
= control target key end

     0   :  { %s1996_s12 = smov 0   ;;  %s1998_s13 = smov 0   ;;  %s2529_s0 = inlined_call_operand.vmem [shape: bf16[4,512,64], index: 0, kind: input, shape index: {}]   ;;  %s2530_s1 = inlined_call_operand.vmem [shape: bf16[4,64,3], index: 1, kind: input, shape index: {}]   ;;  %s2531_s2 = inlined_call_operand.vmem [shape: f32[1,3], index: 2, kind: input, shape index: {}]   ;;  %s2532_s3 = inlined_call_operand.vmem [shape: bf16[4,512,3], index: 3, kind: output, shape index: {}]  }
   0x1   :  { %s2000_s14 = smov 0  }
   0x2 LB: > { %s39_s15 = sadd.s32 1, %s1969_s13  ;;  %p1561_p0 = scmp.ge.s32.totalorder %s1973_s14, 1  ;;  %s1973_s14 = sphi %s2000_s14, %s13_s14   ;;  %s1969_s13 = sphi %s1998_s13, %s2534_s13   ;;  %s1965_s12 = sphi %s1996_s12, %s2533_s12  }
   0x3   : > { %p41_p1 = scmp.ge.s32.totalorder %s39_s15, 4  ;;  %p209_p2 = scmp.lt.s32.totalorder %s1973_s14, 5 }
   0x5   : > { %s2536_s15 = smov (%p41_p1, %s39_s15), 0  ;;  %p210_p3 = pnand %p1561_p0, %p209_p2 }
   0x6   : > { %p263_p4 = scmp.lt.s32.totalorder (!%p210_p3), %s1965_s12, 3 }
   0x7   : > { %213 = sbr.rel (%p210_p3) target bundleno = 311 (0x137), region = 32 }
   0xc   : > { %s2538_s12 = smov (!%p263_p4, %s1965_s12), 3  ;;  %vm694_vm0 = vcmask 523264   ;;  %vm309_vm1 = vcmask 23552   ;;  %vm1352_vm2 = vcmask 19456  }
   0xd   : > { %s1618_s16 = sshll.u32 %s2538_s12, 8  ;;  %s1619_s17 = sshll.u32 %s2538_s12, 5 }
   0xe   : > { %s2023_s20 = scalar_lea.vmem %s2529_s0, %s1618_s16  ;;  %s286_s23 = scalar_lea.vmem %s2530_s1, %s1619_s17 }
   0xf   : > { %v1624_v0 = vld [vmem:[%s286_s23 + $0x18] sm:$0xff]  ;;  %v1623_v1 = vld [vmem:[%s286_s23 + $0x10] sm:$0xff]  ;;  %v1626_v2 = vld [vmem:[%s2023_s20] sm:$0xff]   ;;  %s2226_s28 = scalar_lea.vmem %s2532_s3, %s1618_s16 }
  0x10   : > { %795 = vmatpush.bf16.msra.mxu0 %v1624_v0  ;;  %1784 = vmatpush.bf16.msra.mxu1 %v1624_v0  ;;  %v1760_v3 = vld [vmem:[%s2023_s20 + $0x40] sm:$0xff]   ;;  %v1627_v6 = vunpack.c.l.bf16 %v1626_v2  ;;  %v1628_v7 = vunpack.c.h.bf16 %v1626_v2  ;;  %v1622_v10 = vld [vmem:[%s286_s23 + $0x8] sm:$0xff]  ;;  %v1754_v52 = vld [vmem:[%s2023_s20 + $0x10] sm:$0xff]  }
  0x11   : > { %1785 = vmatpush.bf16.msra.mxu2 %v1624_v0  ;;  %1786 = vmatpush.bf16.msra.mxu3 %v1624_v0  ;;  %v1768_v4 = vld [vmem:[%s2023_s20 + $0x80] sm:$0xff]   ;;  %v1659_v8 = vunpack.c.l.bf16 %v1760_v3  ;;  %v1660_v9 = vunpack.c.h.bf16 %v1760_v3  ;;  %v1753_v28 = vld [vmem:[%s2023_s20 + $0x8] sm:$0xff]   ;;  %v1762_v53 = vld [vmem:[%s2023_s20 + $0x50] sm:$0xff]   ;;  %v1635_v56 = vunpack.c.l.bf16 %v1754_v52  ;;  %v1636_v57 = vunpack.c.h.bf16 %v1754_v52 }
  0x12   : > { %v1776_v5 = vld [vmem:[%s2023_s20 + $0xc0] sm:$0xff]   ;;  %v1691_v11 = vunpack.c.l.bf16 %v1768_v4  ;;  %v1692_v12 = vunpack.c.h.bf16 %v1768_v4  ;;  %v502_v15 = vmax.f32 %v1627_v6, 0.0  ;;  %v503_v16 = vmax.f32 %v1628_v7, 0.0  ;;  %v1761_v29 = vld [vmem:[%s2023_s20 + $0x48] sm:$0xff]   ;;  %v1770_v54 = vld [vmem:[%s2023_s20 + $0x90] sm:$0xff]  }
  0x13   : > { %v1723_v13 = vunpack.c.l.bf16 %v1776_v5  ;;  %v1724_v14 = vunpack.c.h.bf16 %v1776_v5  ;;  %v518_v17 = vmax.f32 %v1659_v8, 0.0  ;;  %v519_v18 = vmax.f32 %v1660_v9, 0.0  ;;  %v1621_v19 = vld [vmem:[%s286_s23] sm:$0xff]  ;;  %v1769_v30 = vld [vmem:[%s2023_s20 + $0x88] sm:$0xff]   ;;  %v1778_v55 = vld [vmem:[%s2023_s20 + $0xd0] sm:$0xff]  }
  0x14   : > { %796 = vmatpush.bf16.msra.mxu0 %v1623_v1  ;;  %1787 = vmatpush.bf16.msra.mxu1 %v1623_v1  ;;  %v534_v20 = vmax.f32 %v1691_v11, 0.0  ;;  %v535_v21 = vmax.f32 %v1692_v12, 0.0  ;;  %v566_v24 = vpack.c.bf16 %v503_v16, %v502_v15  ;;  %v1777_v31 = vld [vmem:[%s2023_s20 + $0xc8] sm:$0xff]   ;;  %v1631_v32 = vunpack.c.l.bf16 %v1753_v28  ;;  %v1755_v12 = vld [vmem:[%s2023_s20 + $0x18] sm:$0xff]  }
  0x15   : > { %1788 = vmatpush.bf16.msra.mxu2 %v1623_v1  ;;  %1789 = vmatpush.bf16.msra.mxu3 %v1623_v1  ;;  %v550_v22 = vmax.f32 %v1723_v13, 0.0  ;;  %v551_v23 = vmax.f32 %v1724_v14, 0.0  ;;  %v574_v25 = vpack.c.bf16 %v519_v18, %v518_v17  ;;  %v1632_v33 = vunpack.c.h.bf16 %v1753_v28  ;;  %v1763_v13 = vld [vmem:[%s2023_s20 + $0x58] sm:$0xff]  }
  0x16   : > { %v582_v26 = vpack.c.bf16 %v535_v21, %v534_v20  ;;  %v1663_v34 = vunpack.c.l.bf16 %v1761_v29  ;;  %v1664_v35 = vunpack.c.h.bf16 %v1761_v29  ;;  %v1695_v36 = vunpack.c.l.bf16 %v1769_v30  ;;  %v1771_v14 = vld [vmem:[%s2023_s20 + $0x98] sm:$0xff]  }
  0x17   : > { %v590_v27 = vpack.c.bf16 %v551_v23, %v550_v22  ;;  %v1696_v37 = vunpack.c.h.bf16 %v1769_v30  ;;  %v1727_v38 = vunpack.c.l.bf16 %v1777_v31  ;;  %v1728_v39 = vunpack.c.h.bf16 %v1777_v31  ;;  %v1779_v15 = vld [vmem:[%s2023_s20 + $0xd8] sm:$0xff]  }
  0x18   : > { %797 = vmatpush.bf16.msra.mxu0 %v1622_v10  ;;  %1790 = vmatpush.bf16.msra.mxu1 %v1622_v10  ;;  %v504_v40 = vmax.f32 %v1631_v32, 0.0  ;;  %v505_v41 = vmax.f32 %v1632_v33, 0.0  ;;  %v520_v42 = vmax.f32 %v1663_v34, 0.0  ;;  %v521_v43 = vmax.f32 %v1664_v35, 0.0 }
  0x19   : > { %1791 = vmatpush.bf16.msra.mxu2 %v1622_v10  ;;  %1792 = vmatpush.bf16.msra.mxu3 %v1622_v10  ;;  %v536_v44 = vmax.f32 %v1695_v36, 0.0  ;;  %v537_v45 = vmax.f32 %v1696_v37, 0.0  ;;  %v552_v46 = vmax.f32 %v1727_v38, 0.0  ;;  %v553_v47 = vmax.f32 %v1728_v39, 0.0  ;;  %v1756_v36 = vld [vmem:[%s2023_s20 + $0x20] sm:$0xff]  }
  0x1a   : > { %v567_v48 = vpack.c.bf16 %v505_v41, %v504_v40  ;;  %v575_v49 = vpack.c.bf16 %v521_v43, %v520_v42  ;;  %v1667_v58 = vunpack.c.l.bf16 %v1762_v53  ;;  %v1668_v59 = vunpack.c.h.bf16 %v1762_v53  ;;  %v1764_v37 = vld [vmem:[%s2023_s20 + $0x60] sm:$0xff]  }
  0x1b   : > { %v583_v50 = vpack.c.bf16 %v537_v45, %v536_v44  ;;  %v591_v51 = vpack.c.bf16 %v553_v47, %v552_v46  ;;  %v1699_v60 = vunpack.c.l.bf16 %v1770_v54  ;;  %v1700_v61 = vunpack.c.h.bf16 %v1770_v54  ;;  %v1772_v38 = vld [vmem:[%s2023_s20 + $0xa0] sm:$0xff]  }
  0x1c   : > { %798 = vmatpush.bf16.msra.mxu0 %v1621_v19  ;;  %1793 = vmatpush.bf16.msra.mxu1 %v1621_v19  ;;  %v1731_v62 = vunpack.c.l.bf16 %v1778_v55  ;;  %v1732_v63 = vunpack.c.h.bf16 %v1778_v55  ;;  %v506_v0 = vmax.f32 %v1635_v56, 0.0  ;;  %v507_v1 = vmax.f32 %v1636_v57, 0.0  ;;  %v1780_v39 = vld [vmem:[%s2023_s20 + $0xe0] sm:$0xff]  }
  0x1d   : > { %1794 = vmatpush.bf16.msra.mxu2 %v1621_v19  ;;  %1795 = vmatpush.bf16.msra.mxu3 %v1621_v19  ;;  %v522_v2 = vmax.f32 %v1667_v58, 0.0  ;;  %v523_v3 = vmax.f32 %v1668_v59, 0.0  ;;  %v538_v4 = vmax.f32 %v1699_v60, 0.0  ;;  %v539_v5 = vmax.f32 %v1700_v61, 0.0  ;;  %v1757_v60 = vld [vmem:[%s2023_s20 + $0x28] sm:$0xff]  }
  0x1e   : > { %v554_v6 = vmax.f32 %v1731_v62, 0.0  ;;  %v555_v7 = vmax.f32 %v1732_v63, 0.0  ;;  %v568_v8 = vpack.c.bf16 %v507_v1, %v506_v0  ;;  %v1639_v16 = vunpack.c.l.bf16 %v1755_v12  ;;  %v1765_v61 = vld [vmem:[%s2023_s20 + $0x68] sm:$0xff]  }
  0x1f   : > { %1584 = vmatmul.msk.bf16.vlgmr.msra.gmra.mxu0 %vm694_vm0, %v566_v24  ;;  %1592 = vmatmul.msk.bf16.vlgmr.msra.gmra.mxu1 %vm694_vm0, %v574_v25  ;;  %v576_v9 = vpack.c.bf16 %v523_v3, %v522_v2  ;;  %v584_v10 = vpack.c.bf16 %v539_v5, %v538_v4  ;;  %v1640_v17 = vunpack.c.h.bf16 %v1755_v12  ;;  %v1671_v18 = vunpack.c.l.bf16 %v1763_v13  ;;  %v1773_v62 = vld [vmem:[%s2023_s20 + $0xa8] sm:$0xff]  }
  0x20   : > { %1600 = vmatmul.msk.bf16.vlgmr.msra.gmra.mxu2 %vm694_vm0, %v582_v26  ;;  %1608 = vmatmul.msk.bf16.vlgmr.msra.gmra.mxu3 %vm694_vm0, %v590_v27  ;;  %v592_v11 = vpack.c.bf16 %v555_v7, %v554_v6  ;;  %v1672_v19 = vunpack.c.h.bf16 %v1763_v13  ;;  %v1703_v20 = vunpack.c.l.bf16 %v1771_v14  ;;  %v1704_v21 = vunpack.c.h.bf16 %v1771_v14  ;;  %v1781_v63 = vld [vmem:[%s2023_s20 + $0xe8] sm:$0xff]  }
  0x21   : > { %v1735_v22 = vunpack.c.l.bf16 %v1779_v15  ;;  %v1736_v23 = vunpack.c.h.bf16 %v1779_v15  ;;  %v508_v24 = vmax.f32 %v1639_v16, 0.0  ;;  %v509_v25 = vmax.f32 %v1640_v17, 0.0 }
  0x22   : > { %v524_v26 = vmax.f32 %v1671_v18, 0.0  ;;  %v525_v27 = vmax.f32 %v1672_v19, 0.0  ;;  %v540_v28 = vmax.f32 %v1703_v20, 0.0  ;;  %v541_v29 = vmax.f32 %v1704_v21, 0.0  ;;  %v1758_v20 = vld [vmem:[%s2023_s20 + $0x30] sm:$0xff]  }
  0x23   : > { %v556_v30 = vmax.f32 %v1735_v22, 0.0  ;;  %v557_v31 = vmax.f32 %v1736_v23, 0.0  ;;  %v569_v32 = vpack.c.bf16 %v509_v25, %v508_v24  ;;  %v1643_v40 = vunpack.c.l.bf16 %v1756_v36  ;;  %v1766_v21 = vld [vmem:[%s2023_s20 + $0x70] sm:$0xff]  }
  0x24   : > { %v577_v33 = vpack.c.bf16 %v525_v27, %v524_v26  ;;  %v585_v34 = vpack.c.bf16 %v541_v29, %v540_v28  ;;  %v1644_v41 = vunpack.c.h.bf16 %v1756_v36  ;;  %v1675_v42 = vunpack.c.l.bf16 %v1764_v37  ;;  %v1774_v22 = vld [vmem:[%s2023_s20 + $0xb0] sm:$0xff]  }
  0x25   : > { %v593_v35 = vpack.c.bf16 %v557_v31, %v556_v30  ;;  %v1676_v43 = vunpack.c.h.bf16 %v1764_v37  ;;  %v1707_v44 = vunpack.c.l.bf16 %v1772_v38  ;;  %v1708_v45 = vunpack.c.h.bf16 %v1772_v38  ;;  %v1782_v23 = vld [vmem:[%s2023_s20 + $0xf0] sm:$0xff]  }
  0x26   : > { %v1739_v46 = vunpack.c.l.bf16 %v1780_v39  ;;  %v1740_v47 = vunpack.c.h.bf16 %v1780_v39  ;;  %v1647_v0 = vunpack.c.l.bf16 %v1757_v60  ;;  %v1648_v1 = vunpack.c.h.bf16 %v1757_v60 }
  0x27   : > { %v542_v52 = vmax.f32 %v1707_v44, 0.0  ;;  %v543_v53 = vmax.f32 %v1708_v45, 0.0  ;;  %v1679_v2 = vunpack.c.l.bf16 %v1765_v61  ;;  %v1680_v3 = vunpack.c.h.bf16 %v1765_v61  ;;  %v1759_v45 = vld [vmem:[%s2023_s20 + $0x38] sm:$0xff]  }
  0x28   : > { %v558_v54 = vmax.f32 %v1739_v46, 0.0  ;;  %v559_v55 = vmax.f32 %v1740_v47, 0.0  ;;  %v1711_v4 = vunpack.c.l.bf16 %v1773_v62  ;;  %v1712_v5 = vunpack.c.h.bf16 %v1773_v62  ;;  %v1767_v46 = vld [vmem:[%s2023_s20 + $0x78] sm:$0xff]  }
  0x29   : > { %v586_v58 = vpack.c.bf16 %v543_v53, %v542_v52  ;;  %v1743_v6 = vunpack.c.l.bf16 %v1781_v63  ;;  %v1744_v7 = vunpack.c.h.bf16 %v1781_v63  ;;  %v1975_v24 = vmov 0.0   ;;  %v1775_v47 = vld [vmem:[%s2023_s20 + $0xb8] sm:$0xff]  }
  0x2a   : > { %v594_v59 = vpack.c.bf16 %v559_v55, %v558_v54  ;;  %v544_v12 = vmax.f32 %v1711_v4, 0.0  ;;  %v545_v13 = vmax.f32 %v1712_v5, 0.0  ;;  %310 = vst.msk [vmem:[#allocation2] sm:$0xff] %vm309_vm1, %v1975_v24  ;;  %v1651_v25 = vunpack.c.l.bf16 %v1758_v20 }
  0x2b   : > { %v560_v14 = vmax.f32 %v1743_v6, 0.0  ;;  %v561_v15 = vmax.f32 %v1744_v7, 0.0  ;;  %311 = vst.msk [vmem:[#allocation2 + $0x8] sm:$0xff] %vm309_vm1, %v1975_v24  ;;  %v1652_v26 = vunpack.c.h.bf16 %v1758_v20  ;;  %v1683_v27 = vunpack.c.l.bf16 %v1766_v21 }
  0x2c   : > { %v587_v18 = vpack.c.bf16 %v545_v13, %v544_v12  ;;  %v1684_v28 = vunpack.c.h.bf16 %v1766_v21  ;;  %312 = vst.msk [vmem:[#allocation2 + $0x10] sm:$0xff] %vm309_vm1, %v1975_v24  ;;  %v1715_v29 = vunpack.c.l.bf16 %v1774_v22  ;;  %v1716_v30 = vunpack.c.h.bf16 %v1774_v22 }
  0x2d   : > { %v595_v19 = vpack.c.bf16 %v561_v15, %v560_v14  ;;  %v1747_v31 = vunpack.c.l.bf16 %v1782_v23  ;;  %313 = vst.msk [vmem:[#allocation2 + $0x18] sm:$0xff] %vm309_vm1, %v1975_v24  ;;  %v1688_v52 = vunpack.c.h.bf16 %v1767_v46  ;;  %v1719_v53 = vunpack.c.l.bf16 %v1775_v47 }
  0x2e   : > { %314 = vst.msk [vmem:[#allocation2 + $0x20] sm:$0xff] %vm309_vm1, %v1975_v24  ;;  %v531_v36 = vmax.f32 %v1684_v28, 0.0  ;;  %v546_v37 = vmax.f32 %v1715_v29, 0.0  ;;  %v547_v38 = vmax.f32 %v1716_v30, 0.0  ;;  %v1720_v54 = vunpack.c.h.bf16 %v1775_v47 }
  0x2f   : > { %1585 = vmatmul.msk.bf16.gmra.mxu0 %vm694_vm0, %v567_v48  ;;  %1593 = vmatmul.msk.bf16.gmra.mxu1 %vm694_vm0, %v575_v49  ;;  %v510_v48 = vmax.f32 %v1643_v40, 0.0  ;;  %v511_v49 = vmax.f32 %v1644_v41, 0.0  ;;  %315 = vst.msk [vmem:[#allocation2 + $0x28] sm:$0xff] %vm309_vm1, %v1975_v24  ;;  %v562_v39 = vmax.f32 %v1747_v31, 0.0  ;;  %v533_v60 = vmax.f32 %v1688_v52, 0.0 }
  0x30   : > { %1601 = vmatmul.msk.bf16.gmra.mxu2 %vm694_vm0, %v583_v50  ;;  %1609 = vmatmul.msk.bf16.gmra.mxu3 %vm694_vm0, %v591_v51  ;;  %v526_v50 = vmax.f32 %v1675_v42, 0.0  ;;  %v527_v51 = vmax.f32 %v1676_v43, 0.0  ;;  %316 = vst.msk [vmem:[#allocation2 + $0x30] sm:$0xff] %vm309_vm1, %v1975_v24  ;;  %v588_v43 = vpack.c.bf16 %v547_v38, %v546_v37  ;;  %v548_v61 = vmax.f32 %v1719_v53, 0.0 }
  0x31   : > { %v570_v56 = vpack.c.bf16 %v511_v49, %v510_v48  ;;  %317 = vst.msk [vmem:[#allocation2 + $0x38] sm:$0xff] %vm309_vm1, %v1975_v24  ;;  %v1783_v48 = vld [vmem:[%s2023_s20 + $0xf8] sm:$0xff]   ;;  %v1655_v49 = vunpack.c.l.bf16 %v1759_v45  ;;  %v549_v62 = vmax.f32 %v1720_v54, 0.0  ;;  %v598_v5 = vld [vmem:[#allocation2] sm:$0xff] }
  0x32   : > { %v578_v57 = vpack.c.bf16 %v527_v51, %v526_v50  ;;  %318 = vst.msk [vmem:[#allocation2 + $0x40] sm:$0xff] %vm309_vm1, %v1975_v24  ;;  %v1656_v50 = vunpack.c.h.bf16 %v1759_v45  ;;  %v1687_v51 = vunpack.c.l.bf16 %v1767_v46  ;;  %v1751_v55 = vunpack.c.l.bf16 %v1783_v48 }
  0x33   : > { %319 = vst.msk [vmem:[#allocation2 + $0x48] sm:$0xff] %vm309_vm1, %v1975_v24 }
  0x34   : > { %320 = vst.msk [vmem:[#allocation2 + $0x50] sm:$0xff] %vm309_vm1, %v1975_v24  ;;  %v564_v63 = vmax.f32 %v1751_v55, 0.0  ;;  %v601_v46 = vld [vmem:[#allocation2 + $0x18] sm:$0xff] }
  0x35   : > { %321 = vst.msk [vmem:[#allocation2 + $0x58] sm:$0xff] %vm309_vm1, %v1975_v24 }
  0x36   : > { %322 = vst.msk [vmem:[#allocation2 + $0x60] sm:$0xff] %vm309_vm1, %v1975_v24 }
  0x37   : > { %323 = vst.msk [vmem:[#allocation2 + $0x68] sm:$0xff] %vm309_vm1, %v1975_v24 }
  0x38   : > { %324 = vst.msk [vmem:[#allocation2 + $0x70] sm:$0xff] %vm309_vm1, %v1975_v24 }
  0x39   : > { %325 = vst.msk [vmem:[#allocation2 + $0x78] sm:$0xff] %vm309_vm1, %v1975_v24 }
  0x3a   : > { %326 = vst.msk [vmem:[#allocation2 + $0x80] sm:$0xff] %vm309_vm1, %v1975_v24 }
  0x3b   : > { %327 = vst.msk [vmem:[#allocation2 + $0x88] sm:$0xff] %vm309_vm1, %v1975_v24 }
  0x3c   : > { %328 = vst.msk [vmem:[#allocation2 + $0x90] sm:$0xff] %vm309_vm1, %v1975_v24 }
  0x3d   : > { %329 = vst.msk [vmem:[#allocation2 + $0x98] sm:$0xff] %vm309_vm1, %v1975_v24 }
  0x3e   : > { %330 = vst.msk [vmem:[#allocation2 + $0xa0] sm:$0xff] %vm309_vm1, %v1975_v24 }
  0x3f   : > { %1586 = vmatmul.msk.bf16.gmra.mxu0 %vm694_vm0, %v568_v8  ;;  %1594 = vmatmul.msk.bf16.gmra.mxu1 %vm694_vm0, %v576_v9  ;;  %v512_v8 = vmax.f32 %v1647_v0, 0.0  ;;  %v513_v9 = vmax.f32 %v1648_v1, 0.0  ;;  %331 = vst.msk [vmem:[#allocation2 + $0xa8] sm:$0xff] %vm309_vm1, %v1975_v24 }
  0x40   : > { %1602 = vmatmul.msk.bf16.gmra.mxu2 %vm694_vm0, %v584_v10  ;;  %1610 = vmatmul.msk.bf16.gmra.mxu3 %vm694_vm0, %v592_v11  ;;  %v528_v10 = vmax.f32 %v1679_v2, 0.0  ;;  %v529_v11 = vmax.f32 %v1680_v3, 0.0  ;;  %332 = vst.msk [vmem:[#allocation2 + $0xb0] sm:$0xff] %vm309_vm1, %v1975_v24  ;;  %v589_v3 = vpack.c.bf16 %v549_v62, %v548_v61 }
  0x41   : > { %v571_v16 = vpack.c.bf16 %v513_v9, %v512_v8  ;;  %333 = vst.msk [vmem:[#allocation2 + $0xb8] sm:$0xff] %vm309_vm1, %v1975_v24  ;;  %v2194_v9 = vld [vmem:[%s2531_s2] ss:$0 sm:$0xff] }
  0x42   : > { %v579_v17 = vpack.c.bf16 %v529_v11, %v528_v10  ;;  %334 = vst.msk [vmem:[#allocation2 + $0xc0] sm:$0xff] %vm309_vm1, %v1975_v24  ;;  %v615_v29 = vld [vmem:[#allocation2 + $0x88] sm:$0xff] }
  0x43   : > { %335 = vst.msk [vmem:[#allocation2 + $0xc8] sm:$0xff] %vm309_vm1, %v1975_v24 }
  0x44   : > { %336 = vst.msk [vmem:[#allocation2 + $0xd0] sm:$0xff] %vm309_vm1, %v1975_v24 }
  0x45   : > { %337 = vst.msk [vmem:[#allocation2 + $0xd8] sm:$0xff] %vm309_vm1, %v1975_v24 }
  0x46   : > { %338 = vst.msk [vmem:[#allocation2 + $0xe0] sm:$0xff] %vm309_vm1, %v1975_v24 }
  0x47   : > { %339 = vst.msk [vmem:[#allocation2 + $0xe8] sm:$0xff] %vm309_vm1, %v1975_v24 }
  0x48   : > { %340 = vst.msk [vmem:[#allocation2 + $0xf0] sm:$0xff] %vm309_vm1, %v1975_v24 }
  0x49   : > { %341 = vst.msk [vmem:[#allocation2 + $0xf8] sm:$0xff] %vm309_vm1, %v1975_v24 }
  0x4a   : > { %342 = vst.msk [vmem:[#allocation2 + $0x100] sm:$0xff] %vm309_vm1, %v1975_v24 }
  0x4b   : > { %343 = vst.msk [vmem:[#allocation2 + $0x108] sm:$0xff] %vm309_vm1, %v1975_v24 }
  0x4c   : > { %344 = vst.msk [vmem:[#allocation2 + $0x110] sm:$0xff] %vm309_vm1, %v1975_v24 }
  0x4d   : > { %345 = vst.msk [vmem:[#allocation2 + $0x118] sm:$0xff] %vm309_vm1, %v1975_v24 }
  0x4e   : > { %346 = vst.msk [vmem:[#allocation2 + $0x120] sm:$0xff] %vm309_vm1, %v1975_v24 }
  0x4f   : > { %1587 = vmatmul.msk.bf16.gmra.mxu0 %vm694_vm0, %v569_v32  ;;  %1595 = vmatmul.msk.bf16.gmra.mxu1 %vm694_vm0, %v577_v33  ;;  %v1748_v32 = vunpack.c.h.bf16 %v1782_v23  ;;  %v514_v33 = vmax.f32 %v1651_v25, 0.0  ;;  %347 = vst.msk [vmem:[#allocation2 + $0x128] sm:$0xff] %vm309_vm1, %v1975_v24 }
  0x50   : > { %1603 = vmatmul.msk.bf16.gmra.mxu2 %vm694_vm0, %v585_v34  ;;  %1611 = vmatmul.msk.bf16.gmra.mxu3 %vm694_vm0, %v593_v35  ;;  %v515_v34 = vmax.f32 %v1652_v26, 0.0  ;;  %v530_v35 = vmax.f32 %v1683_v27, 0.0  ;;  %348 = vst.msk [vmem:[#allocation2 + $0x130] sm:$0xff] %vm309_vm1, %v1975_v24  ;;  %v599_v26 = vld [vmem:[#allocation2 + $0x8] sm:$0xff] }
  0x51   : > { %v563_v40 = vmax.f32 %v1748_v32, 0.0  ;;  %349 = vst.msk [vmem:[#allocation2 + $0x138] sm:$0xff] %vm309_vm1, %v1975_v24  ;;  %v630_v21 = vld [vmem:[#allocation2 + $0x100] sm:$0xff] }
  0x52   : > { %v572_v41 = vpack.c.bf16 %v515_v34, %v514_v33  ;;  %v580_v42 = vpack.c.bf16 %v531_v36, %v530_v35  ;;  %350 = vst.msk [vmem:[#allocation2 + $0x140] sm:$0xff] %vm309_vm1, %v1975_v24  ;;  %v631_v31 = vld [vmem:[#allocation2 + $0x108] sm:$0xff]  ;;  %v600_v35 = vld [vmem:[#allocation2 + $0x10] sm:$0xff] }
  0x53   : > { %v596_v44 = vpack.c.bf16 %v563_v40, %v562_v39  ;;  %351 = vst.msk [vmem:[#allocation2 + $0x148] sm:$0xff] %vm309_vm1, %v1975_v24  ;;  %v616_v39 = vld [vmem:[#allocation2 + $0x90] sm:$0xff] }
  0x54   : > { %352 = vst.msk [vmem:[#allocation2 + $0x150] sm:$0xff] %vm309_vm1, %v1975_v24 }
  0x55   : > { %353 = vst.msk [vmem:[#allocation2 + $0x158] sm:$0xff] %vm309_vm1, %v1975_v24 }
  0x56   : > { %354 = vst.msk [vmem:[#allocation2 + $0x160] sm:$0xff] %vm309_vm1, %v1975_v24 }
  0x57   : > { %355 = vst.msk [vmem:[#allocation2 + $0x168] sm:$0xff] %vm309_vm1, %v1975_v24 }
  0x58   : > { %356 = vst.msk [vmem:[#allocation2 + $0x170] sm:$0xff] %vm309_vm1, %v1975_v24 }
  0x59   : > { %357 = vst.msk [vmem:[#allocation2 + $0x178] sm:$0xff] %vm309_vm1, %v1975_v24 }
  0x5a   : > { %358 = vst.msk [vmem:[#allocation2 + $0x180] sm:$0xff] %vm309_vm1, %v1975_v24 }
  0x5b   : > { %359 = vst.msk [vmem:[#allocation2 + $0x188] sm:$0xff] %vm309_vm1, %v1975_v24 }
  0x5c   : > { %360 = vst.msk [vmem:[#allocation2 + $0x190] sm:$0xff] %vm309_vm1, %v1975_v24 }
  0x5d   : > { %361 = vst.msk [vmem:[#allocation2 + $0x198] sm:$0xff] %vm309_vm1, %v1975_v24 }
  0x5e   : > { %362 = vst.msk [vmem:[#allocation2 + $0x1a0] sm:$0xff] %vm309_vm1, %v1975_v24 }
  0x5f   : > { %1588 = vmatmul.msk.bf16.gmra.mxu0 %vm694_vm0, %v570_v56  ;;  %1596 = vmatmul.msk.bf16.gmra.mxu1 %vm694_vm0, %v578_v57  ;;  %v1752_v56 = vunpack.c.h.bf16 %v1783_v48  ;;  %v516_v57 = vmax.f32 %v1655_v49, 0.0  ;;  %363 = vst.msk [vmem:[#allocation2 + $0x1a8] sm:$0xff] %vm309_vm1, %v1975_v24  ;;  %v617_v48 = vld [vmem:[#allocation2 + $0x98] sm:$0xff] }
  0x60   : > { %1604 = vmatmul.msk.bf16.gmra.mxu2 %vm694_vm0, %v586_v58  ;;  %1612 = vmatmul.msk.bf16.gmra.mxu3 %vm694_vm0, %v594_v59  ;;  %v517_v58 = vmax.f32 %v1656_v50, 0.0  ;;  %v532_v59 = vmax.f32 %v1687_v51, 0.0  ;;  %364 = vst.msk [vmem:[#allocation2 + $0x1b0] sm:$0xff] %vm309_vm1, %v1975_v24  ;;  %v633_v50 = vld [vmem:[#allocation2 + $0x118] sm:$0xff] }
  0x61   : > { %v565_v0 = vmax.f32 %v1752_v56, 0.0  ;;  %365 = vst.msk [vmem:[#allocation2 + $0x1b8] sm:$0xff] %vm309_vm1, %v1975_v24  ;;  %v646_v22 = vld [vmem:[#allocation2 + $0x180] sm:$0xff] }
  0x62   : > { %v573_v1 = vpack.c.bf16 %v517_v58, %v516_v57  ;;  %v581_v2 = vpack.c.bf16 %v533_v60, %v532_v59  ;;  %366 = vst.msk [vmem:[#allocation2 + $0x1c0] sm:$0xff] %vm309_vm1, %v1975_v24  ;;  %v647_v33 = vld [vmem:[#allocation2 + $0x188] sm:$0xff]  ;;  %v602_v59 = vld [vmem:[#allocation2 + $0x20] sm:$0xff] }
  0x63   : > { %v597_v4 = vpack.c.bf16 %v565_v0, %v564_v63  ;;  %367 = vst.msk [vmem:[#allocation2 + $0x1c8] sm:$0xff] %vm309_vm1, %v1975_v24  ;;  %v618_v0 = vld [vmem:[#allocation2 + $0xa0] sm:$0xff] }
  0x64   : > { %368 = vst.msk [vmem:[#allocation2 + $0x1d0] sm:$0xff] %vm309_vm1, %v1975_v24  ;;  %v649_v53 = vld [vmem:[#allocation2 + $0x198] sm:$0xff] }
  0x65   : > { %369 = vst.msk [vmem:[#allocation2 + $0x1d8] sm:$0xff] %vm309_vm1, %v1975_v24 }
  0x66   : > { %370 = vst.msk [vmem:[#allocation2 + $0x1e0] sm:$0xff] %vm309_vm1, %v1975_v24 }
  0x67   : > { %371 = vst.msk [vmem:[#allocation2 + $0x1e8] sm:$0xff] %vm309_vm1, %v1975_v24 }
  0x68   : > { %372 = vst.msk [vmem:[#allocation2 + $0x1f0] sm:$0xff] %vm309_vm1, %v1975_v24 }
  0x69   : > { %373 = vst.msk [vmem:[#allocation2 + $0x1f8] sm:$0xff] %vm309_vm1, %v1975_v24 }
  0x6f   : > { %1589 = vmatmul.msk.bf16.gmra.mxu0 %vm694_vm0, %v571_v16  ;;  %1597 = vmatmul.msk.bf16.gmra.mxu1 %vm694_vm0, %v579_v17 }
  0x70   : > { %1605 = vmatmul.msk.bf16.gmra.mxu2 %vm694_vm0, %v587_v18  ;;  %1613 = vmatmul.msk.bf16.gmra.mxu3 %vm694_vm0, %v595_v19  ;;  %v614_v18 = vld [vmem:[#allocation2 + $0x80] sm:$0xff] }
  0x7f   : > { %1590 = vmatmul.msk.bf16.gmra.mxu0 %vm694_vm0, %v572_v41  ;;  %1598 = vmatmul.msk.bf16.gmra.mxu1 %vm694_vm0, %v580_v42  ;;  %v632_v42 = vld [vmem:[#allocation2 + $0x110] sm:$0xff] }
  0x80   : > { %1606 = vmatmul.msk.bf16.gmra.mxu2 %vm694_vm0, %v588_v43  ;;  %1614 = vmatmul.msk.bf16.gmra.mxu3 %vm694_vm0, %v596_v44  ;;  %v648_v44 = vld [vmem:[#allocation2 + $0x190] sm:$0xff] }
  0x8f   : > { %1591 = vmatmul.msk.bf16.gmra.mxu0 %vm694_vm0, %v573_v1  ;;  %1599 = vmatmul.msk.bf16.gmra.mxu1 %vm694_vm0, %v581_v2 }
  0x90   : > { %1607 = vmatmul.msk.bf16.gmra.mxu2 %vm694_vm0, %v589_v3  ;;  %1615 = vmatmul.msk.bf16.gmra.mxu3 %vm694_vm0, %v597_v4 }
  0x9c   : > { %v800_v6 = vpop.f32.mrf.mxu0  ;;  %v840_v7 = vpop.f32.mrf.mxu1 }
  0x9d   : > { %v960_v8 = vadd.f32 %v800_v6, %v598_v5  ;;  %v976_v25 = vadd.f32 %v840_v7, %v614_v18 }
  0x9f   : > { %1025 = vst.msk [vmem:[#allocation2] sm:$0xff] %vm309_vm1, %v960_v8 }
  0xa0   : > { %1041 = vst.msk [vmem:[#allocation2 + $0x80] sm:$0xff] %vm309_vm1, %v976_v25 }
  0xa3   : > { %v880_v10 = vpop.f32.mrf.mxu2  ;;  %v920_v11 = vpop.f32.mrf.mxu3 }
  0xa4   : > { %v802_v12 = vpop.f32.mrf.mxu0  ;;  %v842_v13 = vpop.f32.mrf.mxu1  ;;  %v992_v28 = vadd.f32 %v880_v10, %v630_v21  ;;  %v1008_v30 = vadd.f32 %v920_v11, %v646_v22 }
  0xa5   : > { %v961_v32 = vadd.f32 %v802_v12, %v599_v26  ;;  %v977_v34 = vadd.f32 %v842_v13, %v615_v29 }
  0xa6   : > { %v1092_v14 = vld [vmem:[#allocation2] sm:$0xff]  ;;  %1057 = vst.msk [vmem:[#allocation2 + $0x100] sm:$0xff] %vm309_vm1, %v992_v28 }
  0xa7   : > { %v1160_v15 = vadd.f32 %v2194_v9, %v1092_v14  ;;  %1073 = vst.msk [vmem:[#allocation2 + $0x180] sm:$0xff] %vm309_vm1, %v1008_v30  ;;  %v1108_v51 = vld [vmem:[#allocation2 + $0x80] sm:$0xff] }
  0xa8   : > { %1026 = vst.msk [vmem:[#allocation2 + $0x8] sm:$0xff] %vm309_vm1, %v961_v32  ;;  %v1176_v54 = vadd.f32 %v2194_v9, %v1108_v51 }
  0xa9   : > { %1822 = vtanh.f32 %v1160_v15  ;;  %1042 = vst.msk [vmem:[#allocation2 + $0x88] sm:$0xff] %vm309_vm1, %v977_v34 }
  0xaa   : > { %1824 = vtanh.f32 %v1176_v54 }
  0xab   : > { %v882_v16 = vpop.f32.mrf.mxu2  ;;  %v922_v17 = vpop.f32.mrf.mxu3 }
  0xac   : > { %v805_v19 = vpop.f32.mrf.mxu0  ;;  %v845_v20 = vpop.f32.mrf.mxu1  ;;  %v993_v38 = vadd.f32 %v882_v16, %v631_v31  ;;  %v1009_v24 = vadd.f32 %v922_v17, %v647_v33 }
  0xad   : > { %v962_v43 = vadd.f32 %v805_v19, %v600_v35  ;;  %v978_v45 = vadd.f32 %v845_v20, %v616_v39  ;;  %v1124_v55 = vld [vmem:[#allocation2 + $0x100] sm:$0xff] }
  0xae   : > { %1058 = vst.msk [vmem:[#allocation2 + $0x108] sm:$0xff] %vm309_vm1, %v993_v38  ;;  %v1192_v60 = vadd.f32 %v2194_v9, %v1124_v55  ;;  %v1140_v61 = vld [vmem:[#allocation2 + $0x180] sm:$0xff] }
  0xaf   : > { %v1823_v23 = vpop.eup %1822  ;;  %1074 = vst.msk [vmem:[#allocation2 + $0x188] sm:$0xff] %vm309_vm1, %v1009_v24  ;;  %v1208_v2 = vadd.f32 %v2194_v9, %v1140_v61  ;;  %v1093_v3 = vld [vmem:[#allocation2 + $0x8] sm:$0xff] }
  0xb0   : > { %v1288_v27 = vpack.c.bf16 %v1823_v23, %v1823_v23  ;;  %1027 = vst.msk [vmem:[#allocation2 + $0x10] sm:$0xff] %vm309_vm1, %v962_v43  ;;  %1826 = vtanh.f32 %v1192_v60  ;;  %v1161_v5 = vadd.f32 %v2194_v9, %v1093_v3  ;;  %v1109_v6 = vld [vmem:[#allocation2 + $0x88] sm:$0xff]  ;;  %v1825_v18 = vpop.eup %1824 }
  0xb1   : > { %1043 = vst.msk [vmem:[#allocation2 + $0x90] sm:$0xff] %vm309_vm1, %v978_v45  ;;  %1828 = vtanh.f32 %v1208_v2  ;;  %v1177_v8 = vadd.f32 %v2194_v9, %v1109_v6  ;;  %v1304_v25 = vpack.c.bf16 %v1825_v18, %v1825_v18  ;;  %v634_v6 = vld [vmem:[#allocation2 + $0x120] sm:$0xff] }
  0xb2   : > { %1353 = vst.msk [vmem:[%s2226_s28] sm:$0xf] %vm1352_vm2, %v1288_v27  ;;  %1830 = vtanh.f32 %v1161_v5 }
  0xb3   : > { %v885_v36 = vpop.f32.mrf.mxu2  ;;  %v925_v37 = vpop.f32.mrf.mxu3  ;;  %1832 = vtanh.f32 %v1177_v8  ;;  %1369 = vst.msk [vmem:[%s2226_s28 + $0x40] sm:$0xf] %vm1352_vm2, %v1304_v25  ;;  %v635_v25 = vld [vmem:[#allocation2 + $0x128] sm:$0xff] }
  0xb4   : > { %v807_v40 = vpop.f32.mrf.mxu0  ;;  %v847_v41 = vpop.f32.mrf.mxu1  ;;  %v994_v47 = vadd.f32 %v885_v36, %v632_v42  ;;  %v1010_v49 = vadd.f32 %v925_v37, %v648_v44 }
  0xb5   : > { %v963_v52 = vadd.f32 %v807_v40, %v601_v46  ;;  %v979_v56 = vadd.f32 %v847_v41, %v617_v48  ;;  %v1125_v10 = vld [vmem:[#allocation2 + $0x108] sm:$0xff] }
  0xb6   : > { %1059 = vst.msk [vmem:[#allocation2 + $0x110] sm:$0xff] %vm309_vm1, %v994_v47  ;;  %v1193_v12 = vadd.f32 %v2194_v9, %v1125_v10  ;;  %v1141_v13 = vld [vmem:[#allocation2 + $0x188] sm:$0xff]  ;;  %v1827_v23 = vpop.eup %1826  ;;  %v650_v10 = vld [vmem:[#allocation2 + $0x1a0] sm:$0xff] }
  0xb7   : > { %1075 = vst.msk [vmem:[#allocation2 + $0x190] sm:$0xff] %vm309_vm1, %v1010_v49  ;;  %v1209_v14 = vadd.f32 %v2194_v9, %v1141_v13  ;;  %v1094_v15 = vld [vmem:[#allocation2 + $0x10] sm:$0xff]  ;;  %v1829_v30 = vpop.eup %1828  ;;  %v1320_v31 = vpack.c.bf16 %v1827_v23, %v1827_v23  ;;  %v603_v13 = vld [vmem:[#allocation2 + $0x28] sm:$0xff] }
  0xb8   : > { %1028 = vst.msk [vmem:[#allocation2 + $0x18] sm:$0xff] %vm309_vm1, %v963_v52  ;;  %1834 = vtanh.f32 %v1193_v12  ;;  %v1162_v16 = vadd.f32 %v2194_v9, %v1094_v15  ;;  %v1110_v17 = vld [vmem:[#allocation2 + $0x90] sm:$0xff]  ;;  %v1831_v34 = vpop.eup %1830  ;;  %v1336_v35 = vpack.c.bf16 %v1829_v30, %v1829_v30 }
  0xb9   : > { %1044 = vst.msk [vmem:[#allocation2 + $0x98] sm:$0xff] %vm309_vm1, %v979_v56  ;;  %1836 = vtanh.f32 %v1209_v14  ;;  %v1178_v19 = vadd.f32 %v2194_v9, %v1110_v17  ;;  %v1833_v38 = vpop.eup %1832  ;;  %v1289_v39 = vpack.c.bf16 %v1831_v34, %v1831_v34  ;;  %v619_v17 = vld [vmem:[#allocation2 + $0xa8] sm:$0xff]  ;;  %v620_v34 = vld [vmem:[#allocation2 + $0xb0] sm:$0xff] }
  0xba   : > { %1838 = vtanh.f32 %v1162_v16  ;;  %1385 = vst.msk [vmem:[%s2226_s28 + $0x80] sm:$0xf] %vm1352_vm2, %v1320_v31  ;;  %v1305_v42 = vpack.c.bf16 %v1833_v38, %v1833_v38  ;;  %v651_v31 = vld [vmem:[#allocation2 + $0x1a8] sm:$0xff]  ;;  %v605_v38 = vld [vmem:[#allocation2 + $0x38] sm:$0xff] }
  0xbb   : > { %v887_v57 = vpop.f32.mrf.mxu2  ;;  %v927_v58 = vpop.f32.mrf.mxu3  ;;  %1840 = vtanh.f32 %v1178_v19  ;;  %1401 = vst.msk [vmem:[%s2226_s28 + $0xc0] sm:$0xf] %vm1352_vm2, %v1336_v35  ;;  %v636_v35 = vld [vmem:[#allocation2 + $0x130] sm:$0xff] }
  0xbc   : > { %v995_v62 = vadd.f32 %v887_v57, %v633_v50  ;;  %v810_v63 = vpop.f32.mrf.mxu0  ;;  %v850_v1 = vpop.f32.mrf.mxu1  ;;  %v1011_v4 = vadd.f32 %v927_v58, %v649_v53  ;;  %1354 = vst.msk [vmem:[%s2226_s28 + $0x4] sm:$0xf] %vm1352_vm2, %v1289_v39  ;;  %v621_v39 = vld [vmem:[#allocation2 + $0xb8] sm:$0xff] }
  0xbd   : > { %v964_v7 = vadd.f32 %v810_v63, %v602_v59  ;;  %v980_v11 = vadd.f32 %v850_v1, %v618_v0  ;;  %v1126_v20 = vld [vmem:[#allocation2 + $0x110] sm:$0xff]  ;;  %1370 = vst.msk [vmem:[%s2226_s28 + $0x44] sm:$0xf] %vm1352_vm2, %v1305_v42  ;;  %v637_v42 = vld [vmem:[#allocation2 + $0x138] sm:$0xff] }
  0xbe   : > { %1060 = vst.msk [vmem:[#allocation2 + $0x118] sm:$0xff] %vm309_vm1, %v995_v62  ;;  %v1194_v26 = vadd.f32 %v2194_v9, %v1126_v20  ;;  %v1142_v27 = vld [vmem:[#allocation2 + $0x190] sm:$0xff]  ;;  %v1835_v24 = vpop.eup %1834 }
  0xbf   : > { %1076 = vst.msk [vmem:[#allocation2 + $0x198] sm:$0xff] %vm309_vm1, %v1011_v4  ;;  %v1210_v32 = vadd.f32 %v2194_v9, %v1142_v27  ;;  %v1095_v33 = vld [vmem:[#allocation2 + $0x18] sm:$0xff]  ;;  %v1837_v45 = vpop.eup %1836  ;;  %v1321_v46 = vpack.c.bf16 %v1835_v24, %v1835_v24 }
  0xc0   : > { %1029 = vst.msk [vmem:[#allocation2 + $0x20] sm:$0xff] %vm309_vm1, %v964_v7  ;;  %1842 = vtanh.f32 %v1194_v26  ;;  %v1163_v36 = vadd.f32 %v2194_v9, %v1095_v33  ;;  %v1111_v37 = vld [vmem:[#allocation2 + $0x98] sm:$0xff]  ;;  %v1839_v49 = vpop.eup %1838  ;;  %v1337_v50 = vpack.c.bf16 %v1837_v45, %v1837_v45 }
  0xc1   : > { %1045 = vst.msk [vmem:[#allocation2 + $0xa0] sm:$0xff] %vm309_vm1, %v980_v11  ;;  %1844 = vtanh.f32 %v1210_v32  ;;  %v1179_v40 = vadd.f32 %v2194_v9, %v1111_v37  ;;  %v1841_v53 = vpop.eup %1840  ;;  %v1290_v54 = vpack.c.bf16 %v1839_v49, %v1839_v49  ;;  %v604_v32 = vld [vmem:[#allocation2 + $0x30] sm:$0xff]  ;;  %v606_v49 = vld [vmem:[#allocation2 + $0x40] sm:$0xff] }
  0xc2   : > { %1846 = vtanh.f32 %v1163_v36  ;;  %1386 = vst.msk [vmem:[%s2226_s28 + $0x84] sm:$0xf] %vm1352_vm2, %v1321_v46  ;;  %v1306_v59 = vpack.c.bf16 %v1841_v53, %v1841_v53  ;;  %v652_v37 = vld [vmem:[#allocation2 + $0x1b0] sm:$0xff]  ;;  %v653_v46 = vld [vmem:[#allocation2 + $0x1b8] sm:$0xff]  ;;  %v622_v53 = vld [vmem:[#allocation2 + $0xc0] sm:$0xff] }
  0xc3   : > { %v2262_v21 = vpop.f32.mrf.mxu2  ;;  %v2264_v22 = vpop.f32.mrf.mxu3  ;;  %1848 = vtanh.f32 %v1179_v40  ;;  %1402 = vst.msk [vmem:[%s2226_s28 + $0xc4] sm:$0xf] %vm1352_vm2, %v1337_v50 }
  0xc4   : > { %v2267_v28 = vpop.f32.mrf.mxu0  ;;  %v2269_v29 = vpop.f32.mrf.mxu1  ;;  %1355 = vst.msk [vmem:[%s2226_s28 + $0x8] sm:$0xf] %vm1352_vm2, %v1290_v54  ;;  %v996_v16 = vadd.f32 %v2262_v21, %v634_v6  ;;  %v1012_v23 = vadd.f32 %v2264_v22, %v650_v10 }
  0xc5   : > { %v1127_v41 = vld [vmem:[#allocation2 + $0x118] sm:$0xff]  ;;  %1371 = vst.msk [vmem:[%s2226_s28 + $0x48] sm:$0xf] %vm1352_vm2, %v1306_v59  ;;  %v965_v30 = vadd.f32 %v2267_v28, %v603_v13  ;;  %v981_v21 = vadd.f32 %v2269_v29, %v619_v17 }
  0xc6   : > { %v1195_v43 = vadd.f32 %v2194_v9, %v1127_v41  ;;  %v1143_v44 = vld [vmem:[#allocation2 + $0x198] sm:$0xff]  ;;  %v1843_v58 = vpop.eup %1842  ;;  %1061 = vst.msk [vmem:[#allocation2 + $0x120] sm:$0xff] %vm309_vm1, %v996_v16 }
  0xc7   : > { %v1211_v47 = vadd.f32 %v2194_v9, %v1143_v44  ;;  %v1096_v48 = vld [vmem:[#allocation2 + $0x20] sm:$0xff]  ;;  %v1845_v62 = vpop.eup %1844  ;;  %v1322_v63 = vpack.c.bf16 %v1843_v58, %v1843_v58  ;;  %1077 = vst.msk [vmem:[#allocation2 + $0x1a0] sm:$0xff] %vm309_vm1, %v1012_v23 }
  0xc8   : > { %1850 = vtanh.f32 %v1195_v43  ;;  %v1164_v51 = vadd.f32 %v2194_v9, %v1096_v48  ;;  %v1112_v52 = vld [vmem:[#allocation2 + $0xa0] sm:$0xff]  ;;  %v1847_v0 = vpop.eup %1846  ;;  %v1338_v1 = vpack.c.bf16 %v1845_v62, %v1845_v62  ;;  %1030 = vst.msk [vmem:[#allocation2 + $0x28] sm:$0xff] %vm309_vm1, %v965_v30 }
  0xc9   : > { %1852 = vtanh.f32 %v1211_v47  ;;  %v1180_v55 = vadd.f32 %v2194_v9, %v1112_v52  ;;  %v1849_v2 = vpop.eup %1848  ;;  %1387 = vst.msk [vmem:[%s2226_s28 + $0x88] sm:$0xf] %vm1352_vm2, %v1322_v63  ;;  %v1291_v3 = vpack.c.bf16 %v1847_v0, %v1847_v0 }
  0xca   : > { %1854 = vtanh.f32 %v1164_v51  ;;  %1403 = vst.msk [vmem:[%s2226_s28 + $0xc8] sm:$0xf] %vm1352_vm2, %v1338_v1  ;;  %v1307_v5 = vpack.c.bf16 %v1849_v2, %v1849_v2  ;;  %v607_v1 = vld [vmem:[#allocation2 + $0x48] sm:$0xff] }
  0xcb   : > { %v892_v56 = vpop.f32.mrf.mxu2  ;;  %v932_v57 = vpop.f32.mrf.mxu3  ;;  %1856 = vtanh.f32 %v1180_v55  ;;  %1356 = vst.msk [vmem:[%s2226_s28 + $0xc] sm:$0xf] %vm1352_vm2, %v1291_v3 }
  0xcc   : > { %v815_v60 = vpop.f32.mrf.mxu0  ;;  %v855_v61 = vpop.f32.mrf.mxu1  ;;  %1372 = vst.msk [vmem:[%s2226_s28 + $0x4c] sm:$0xf] %vm1352_vm2, %v1307_v5  ;;  %v997_v33 = vadd.f32 %v892_v56, %v635_v25  ;;  %v1013_v22 = vadd.f32 %v932_v57, %v651_v31 }
  0xcd   : > { %v966_v36 = vadd.f32 %v815_v60, %v604_v32  ;;  %1046 = vst.msk [vmem:[#allocation2 + $0xa8] sm:$0xff] %vm309_vm1, %v981_v21  ;;  %v982_v28 = vadd.f32 %v855_v61, %v620_v34  ;;  %v1128_v47 = vld [vmem:[#allocation2 + $0x120] sm:$0xff] }
  0xce   : > { %v1851_v4 = vpop.eup %1850  ;;  %1062 = vst.msk [vmem:[#allocation2 + $0x128] sm:$0xff] %vm309_vm1, %v997_v33  ;;  %v1196_v50 = vadd.f32 %v2194_v9, %v1128_v47  ;;  %v1144_v51 = vld [vmem:[#allocation2 + $0x1a0] sm:$0xff] }
  0xcf   : > { %v1853_v7 = vpop.eup %1852  ;;  %v1323_v8 = vpack.c.bf16 %v1851_v4, %v1851_v4  ;;  %1078 = vst.msk [vmem:[#allocation2 + $0x1a8] sm:$0xff] %vm309_vm1, %v1013_v22  ;;  %v1212_v54 = vadd.f32 %v2194_v9, %v1144_v51  ;;  %v1097_v55 = vld [vmem:[#allocation2 + $0x28] sm:$0xff]  ;;  %v638_v60 = vld [vmem:[#allocation2 + $0x140] sm:$0xff] }
  0xd0   : > { %v1855_v11 = vpop.eup %1854  ;;  %v1339_v12 = vpack.c.bf16 %v1853_v7, %v1853_v7  ;;  %1031 = vst.msk [vmem:[#allocation2 + $0x30] sm:$0xff] %vm309_vm1, %v966_v36  ;;  %1858 = vtanh.f32 %v1196_v50  ;;  %v1165_v57 = vadd.f32 %v2194_v9, %v1097_v55  ;;  %v654_v61 = vld [vmem:[#allocation2 + $0x1c0] sm:$0xff] }
  0xd1   : > { %v1857_v14 = vpop.eup %1856  ;;  %1388 = vst.msk [vmem:[%s2226_s28 + $0x8c] sm:$0xf] %vm1352_vm2, %v1323_v8  ;;  %v1292_v15 = vpack.c.bf16 %v1855_v11, %v1855_v11  ;;  %1860 = vtanh.f32 %v1212_v54 }
  0xd2   : > { %1404 = vst.msk [vmem:[%s2226_s28 + $0xcc] sm:$0xf] %vm1352_vm2, %v1339_v12  ;;  %v1308_v20 = vpack.c.bf16 %v1857_v14, %v1857_v14  ;;  %1862 = vtanh.f32 %v1165_v57 }
  0xd3   : > { %v895_v18 = vpop.f32.mrf.mxu2  ;;  %v935_v19 = vpop.f32.mrf.mxu3  ;;  %1357 = vst.msk [vmem:[%s2226_s28 + $0x10] sm:$0xf] %vm1352_vm2, %v1292_v15 }
  0xd4   : > { %v817_v26 = vpop.f32.mrf.mxu0  ;;  %v857_v27 = vpop.f32.mrf.mxu1  ;;  %1373 = vst.msk [vmem:[%s2226_s28 + $0x50] sm:$0xf] %vm1352_vm2, %v1308_v20  ;;  %v998_v29 = vadd.f32 %v895_v18, %v636_v35  ;;  %v1014_v24 = vadd.f32 %v935_v19, %v652_v37  ;;  %v1113_v58 = vld [vmem:[#allocation2 + $0xa8] sm:$0xff] }
  0xd5   : > { %v967_v45 = vadd.f32 %v817_v26, %v605_v38  ;;  %1047 = vst.msk [vmem:[#allocation2 + $0xb0] sm:$0xff] %vm309_vm1, %v982_v28  ;;  %v983_v48 = vadd.f32 %v857_v27, %v621_v39  ;;  %v1181_v62 = vadd.f32 %v2194_v9, %v1113_v58  ;;  %v1129_v63 = vld [vmem:[#allocation2 + $0x128] sm:$0xff] }
  0xd6   : > { %1063 = vst.msk [vmem:[#allocation2 + $0x130] sm:$0xff] %vm309_vm1, %v998_v29  ;;  %v1197_v2 = vadd.f32 %v2194_v9, %v1129_v63  ;;  %v1145_v3 = vld [vmem:[#allocation2 + $0x1a8] sm:$0xff]  ;;  %v1859_v18 = vpop.eup %1858 }
  0xd7   : > { %1079 = vst.msk [vmem:[#allocation2 + $0x1b0] sm:$0xff] %vm309_vm1, %v1014_v24  ;;  %1864 = vtanh.f32 %v1181_v62  ;;  %v1213_v6 = vadd.f32 %v2194_v9, %v1145_v3  ;;  %v1098_v7 = vld [vmem:[#allocation2 + $0x30] sm:$0xff]  ;;  %v1861_v23 = vpop.eup %1860  ;;  %v1324_v25 = vpack.c.bf16 %v1859_v18, %v1859_v18 }
  0xd8   : > { %1032 = vst.msk [vmem:[#allocation2 + $0x38] sm:$0xff] %vm309_vm1, %v967_v45  ;;  %1866 = vtanh.f32 %v1197_v2  ;;  %v1166_v13 = vadd.f32 %v2194_v9, %v1098_v7  ;;  %v1863_v30 = vpop.eup %1862  ;;  %v1340_v31 = vpack.c.bf16 %v1861_v23, %v1861_v23 }
  0xd9   : > { %1048 = vst.msk [vmem:[#allocation2 + $0xb8] sm:$0xff] %vm309_vm1, %v983_v48  ;;  %1868 = vtanh.f32 %v1213_v6  ;;  %v1293_v34 = vpack.c.bf16 %v1863_v30, %v1863_v30 }
  0xda   : > { %1870 = vtanh.f32 %v1166_v13  ;;  %1389 = vst.msk [vmem:[%s2226_s28 + $0x90] sm:$0xf] %vm1352_vm2, %v1324_v25  ;;  %v655_v25 = vld [vmem:[#allocation2 + $0x1c8] sm:$0xff] }
  0xdb   : > { %v897_v40 = vpop.f32.mrf.mxu2  ;;  %v937_v41 = vpop.f32.mrf.mxu3  ;;  %1405 = vst.msk [vmem:[%s2226_s28 + $0xd0] sm:$0xf] %vm1352_vm2, %v1340_v31  ;;  %v608_v31 = vld [vmem:[#allocation2 + $0x50] sm:$0xff] }
  0xdc   : > { %v820_v43 = vpop.f32.mrf.mxu0  ;;  %v860_v44 = vpop.f32.mrf.mxu1  ;;  %v999_v52 = vadd.f32 %v897_v40, %v637_v42  ;;  %v1015_v56 = vadd.f32 %v937_v41, %v653_v46  ;;  %v1114_v14 = vld [vmem:[#allocation2 + $0xb0] sm:$0xff]  ;;  %1358 = vst.msk [vmem:[%s2226_s28 + $0x14] sm:$0xf] %vm1352_vm2, %v1293_v34 }
  0xdd   : > { %v968_v59 = vadd.f32 %v820_v43, %v606_v49  ;;  %v984_v0 = vadd.f32 %v860_v44, %v622_v53  ;;  %v1182_v16 = vadd.f32 %v2194_v9, %v1114_v14  ;;  %v1130_v17 = vld [vmem:[#allocation2 + $0x130] sm:$0xff]  ;;  %v1865_v33 = vpop.eup %1864 }
  0xde   : > { %1064 = vst.msk [vmem:[#allocation2 + $0x138] sm:$0xff] %vm309_vm1, %v999_v52  ;;  %v1198_v19 = vadd.f32 %v2194_v9, %v1130_v17  ;;  %v1146_v20 = vld [vmem:[#allocation2 + $0x1b0] sm:$0xff]  ;;  %v1867_v36 = vpop.eup %1866  ;;  %v1309_v37 = vpack.c.bf16 %v1865_v33, %v1865_v33 }
  0xdf   : > { %1080 = vst.msk [vmem:[#allocation2 + $0x1b8] sm:$0xff] %vm309_vm1, %v1015_v56  ;;  %1872 = vtanh.f32 %v1182_v16  ;;  %v1214_v26 = vadd.f32 %v2194_v9, %v1146_v20  ;;  %v1099_v27 = vld [vmem:[#allocation2 + $0x38] sm:$0xff]  ;;  %v1869_v40 = vpop.eup %1868  ;;  %v1325_v41 = vpack.c.bf16 %v1867_v36, %v1867_v36  ;;  %v623_v16 = vld [vmem:[#allocation2 + $0xc8] sm:$0xff]  ;;  %v624_v33 = vld [vmem:[#allocation2 + $0xd0] sm:$0xff] }
  0xe0   : > { %1033 = vst.msk [vmem:[#allocation2 + $0x40] sm:$0xff] %vm309_vm1, %v968_v59  ;;  %1874 = vtanh.f32 %v1198_v19  ;;  %v1167_v21 = vadd.f32 %v2194_v9, %v1099_v27  ;;  %v1115_v32 = vld [vmem:[#allocation2 + $0xb8] sm:$0xff]  ;;  %v1871_v45 = vpop.eup %1870  ;;  %v1341_v46 = vpack.c.bf16 %v1869_v40, %v1869_v40  ;;  %v639_v19 = vld [vmem:[#allocation2 + $0x148] sm:$0xff] }
  0xe1   : > { %1049 = vst.msk [vmem:[#allocation2 + $0xc0] sm:$0xff] %vm309_vm1, %v984_v0  ;;  %1876 = vtanh.f32 %v1214_v26  ;;  %v1183_v22 = vadd.f32 %v2194_v9, %v1115_v32  ;;  %v1294_v50 = vpack.c.bf16 %v1871_v45, %v1871_v45 }
  0xe2   : > { %1878 = vtanh.f32 %v1167_v21  ;;  %1374 = vst.msk [vmem:[%s2226_s28 + $0x54] sm:$0xf] %vm1352_vm2, %v1309_v37 }
  0xe3   : > { %v900_v4 = vpop.f32.mrf.mxu2  ;;  %v940_v5 = vpop.f32.mrf.mxu3  ;;  %1880 = vtanh.f32 %v1183_v22  ;;  %1390 = vst.msk [vmem:[%s2226_s28 + $0x94] sm:$0xf] %vm1352_vm2, %v1325_v41  ;;  %v640_v22 = vld [vmem:[#allocation2 + $0x150] sm:$0xff] }
  0xe4   : > { %v1000_v8 = vadd.f32 %v900_v4, %v638_v60  ;;  %v1016_v10 = vadd.f32 %v940_v5, %v654_v61  ;;  %v822_v11 = vpop.f32.mrf.mxu0  ;;  %v2336_v12 = vpop.f32.mrf.mxu1  ;;  %1406 = vst.msk [vmem:[%s2226_s28 + $0xd4] sm:$0xf] %vm1352_vm2, %v1341_v46 }
  0xe5   : > { %v969_v15 = vadd.f32 %v822_v11, %v607_v1  ;;  %v1131_v35 = vld [vmem:[#allocation2 + $0x138] sm:$0xff]  ;;  %v1873_v49 = vpop.eup %1872  ;;  %1359 = vst.msk [vmem:[%s2226_s28 + $0x18] sm:$0xf] %vm1352_vm2, %v1294_v50  ;;  %v985_v30 = vadd.f32 %v2336_v12, %v623_v16  ;;  %v642_v50 = vld [vmem:[#allocation2 + $0x160] sm:$0xff] }
  0xe6   : > { %1065 = vst.msk [vmem:[#allocation2 + $0x140] sm:$0xff] %vm309_vm1, %v1000_v8  ;;  %v1199_v28 = vadd.f32 %v2194_v9, %v1131_v35  ;;  %v1147_v38 = vld [vmem:[#allocation2 + $0x1b8] sm:$0xff]  ;;  %v1875_v53 = vpop.eup %1874  ;;  %v1310_v54 = vpack.c.bf16 %v1873_v49, %v1873_v49 }
  0xe7   : > { %1081 = vst.msk [vmem:[#allocation2 + $0x1c0] sm:$0xff] %vm309_vm1, %v1016_v10  ;;  %v1215_v24 = vadd.f32 %v2194_v9, %v1147_v38  ;;  %v1100_v42 = vld [vmem:[#allocation2 + $0x40] sm:$0xff]  ;;  %v1877_v57 = vpop.eup %1876  ;;  %v1326_v58 = vpack.c.bf16 %v1875_v53, %v1875_v53 }
  0xe8   : > { %1034 = vst.msk [vmem:[#allocation2 + $0x48] sm:$0xff] %vm309_vm1, %v969_v15  ;;  %1882 = vtanh.f32 %v1199_v28  ;;  %v1168_v47 = vadd.f32 %v2194_v9, %v1100_v42  ;;  %v1116_v48 = vld [vmem:[#allocation2 + $0xc0] sm:$0xff]  ;;  %v1879_v61 = vpop.eup %1878  ;;  %v1342_v62 = vpack.c.bf16 %v1877_v57, %v1877_v57  ;;  %v656_v28 = vld [vmem:[#allocation2 + $0x1d0] sm:$0xff]  ;;  %v641_v42 = vld [vmem:[#allocation2 + $0x158] sm:$0xff] }
  0xe9   : > { %1884 = vtanh.f32 %v1215_v24  ;;  %v1184_v51 = vadd.f32 %v2194_v9, %v1116_v48  ;;  %1375 = vst.msk [vmem:[%s2226_s28 + $0x58] sm:$0xf] %vm1352_vm2, %v1310_v54  ;;  %v1881_v0 = vpop.eup %1880  ;;  %v1295_v1 = vpack.c.bf16 %v1879_v61, %v1879_v61  ;;  %v625_v24 = vld [vmem:[#allocation2 + $0xd8] sm:$0xff]  ;;  %v626_v48 = vld [vmem:[#allocation2 + $0xe0] sm:$0xff] }
  0xea   : > { %1886 = vtanh.f32 %v1168_v47  ;;  %1391 = vst.msk [vmem:[%s2226_s28 + $0x98] sm:$0xf] %vm1352_vm2, %v1326_v58  ;;  %v1311_v3 = vpack.c.bf16 %v1881_v0, %v1881_v0  ;;  %v610_v47 = vld [vmem:[#allocation2 + $0x60] sm:$0xff]  ;;  %v627_v0 = vld [vmem:[#allocation2 + $0xe8] sm:$0xff] }
  0xeb   : > { %v2354_v29 = vpop.f32.mrf.mxu2  ;;  %v2356_v39 = vpop.f32.mrf.mxu3  ;;  %1888 = vtanh.f32 %v1184_v51  ;;  %1407 = vst.msk [vmem:[%s2226_s28 + $0xd8] sm:$0xf] %vm1352_vm2, %v1342_v62 }
  0xec   : > { %v2361_v43 = vpop.f32.mrf.mxu0  ;;  %v2363_v44 = vpop.f32.mrf.mxu1  ;;  %1360 = vst.msk [vmem:[%s2226_s28 + $0x1c] sm:$0xf] %vm1352_vm2, %v1295_v1  ;;  %v1001_v32 = vadd.f32 %v2354_v29, %v639_v19  ;;  %v1017_v34 = vadd.f32 %v2356_v39, %v655_v25  ;;  %v609_v29 = vld [vmem:[#allocation2 + $0x58] sm:$0xff] }
  0xed   : > { %v1132_v52 = vld [vmem:[#allocation2 + $0x140] sm:$0xff]  ;;  %1376 = vst.msk [vmem:[%s2226_s28 + $0x5c] sm:$0xf] %vm1352_vm2, %v1311_v3  ;;  %v970_v37 = vadd.f32 %v2361_v43, %v608_v31  ;;  %v986_v40 = vadd.f32 %v2363_v44, %v624_v33  ;;  %v657_v43 = vld [vmem:[#allocation2 + $0x1d8] sm:$0xff] }
  0xee   : > { %v1200_v55 = vadd.f32 %v2194_v9, %v1132_v52  ;;  %v1148_v56 = vld [vmem:[#allocation2 + $0x1c0] sm:$0xff]  ;;  %v1883_v2 = vpop.eup %1882  ;;  %1050 = vst.msk [vmem:[#allocation2 + $0xc8] sm:$0xff] %vm309_vm1, %v985_v30 }
  0xef   : > { %v1216_v59 = vadd.f32 %v2194_v9, %v1148_v56  ;;  %v1101_v60 = vld [vmem:[#allocation2 + $0x48] sm:$0xff]  ;;  %v1885_v6 = vpop.eup %1884  ;;  %v1327_v7 = vpack.c.bf16 %v1883_v2, %v1883_v2  ;;  %1066 = vst.msk [vmem:[#allocation2 + $0x148] sm:$0xff] %vm309_vm1, %v1001_v32 }
  0xf0   : > { %1890 = vtanh.f32 %v1200_v55  ;;  %v1169_v63 = vadd.f32 %v2194_v9, %v1101_v60  ;;  %v1887_v11 = vpop.eup %1886  ;;  %v1343_v13 = vpack.c.bf16 %v1885_v6, %v1885_v6  ;;  %1082 = vst.msk [vmem:[#allocation2 + $0x1c8] sm:$0xff] %vm309_vm1, %v1017_v34  ;;  %v658_v55 = vld [vmem:[#allocation2 + $0x1e0] sm:$0xff] }
  0xf1   : > { %1892 = vtanh.f32 %v1216_v59  ;;  %v1889_v14 = vpop.eup %1888  ;;  %1392 = vst.msk [vmem:[%s2226_s28 + $0x9c] sm:$0xf] %vm1352_vm2, %v1327_v7  ;;  %v1296_v15 = vpack.c.bf16 %v1887_v11, %v1887_v11  ;;  %v611_v59 = vld [vmem:[#allocation2 + $0x68] sm:$0xff] }
  0xf2   : > { %1894 = vtanh.f32 %v1169_v63  ;;  %1408 = vst.msk [vmem:[%s2226_s28 + $0xdc] sm:$0xf] %vm1352_vm2, %v1343_v13  ;;  %v1312_v18 = vpack.c.bf16 %v1889_v14, %v1889_v14  ;;  %v643_v13 = vld [vmem:[#allocation2 + $0x168] sm:$0xff] }
  0xf3   : > { %v905_v4 = vpop.f32.mrf.mxu2  ;;  %v945_v5 = vpop.f32.mrf.mxu3  ;;  %1361 = vst.msk [vmem:[%s2226_s28 + $0x20] sm:$0xf] %vm1352_vm2, %v1296_v15  ;;  %v659_v14 = vld [vmem:[#allocation2 + $0x1e8] sm:$0xff] }
  0xf4   : > { %v827_v8 = vpop.f32.mrf.mxu0  ;;  %v867_v10 = vpop.f32.mrf.mxu1  ;;  %1377 = vst.msk [vmem:[%s2226_s28 + $0x60] sm:$0xf] %vm1352_vm2, %v1312_v18  ;;  %v1002_v41 = vadd.f32 %v905_v4, %v640_v22  ;;  %v1018_v39 = vadd.f32 %v945_v5, %v656_v28 }
  0xf5   : > { %1035 = vst.msk [vmem:[#allocation2 + $0x50] sm:$0xff] %vm309_vm1, %v970_v37  ;;  %v971_v45 = vadd.f32 %v827_v8, %v609_v29  ;;  %v987_v46 = vadd.f32 %v867_v10, %v625_v24  ;;  %v1117_v53 = vld [vmem:[#allocation2 + $0xc8] sm:$0xff] }
  0xf6   : > { %v1891_v17 = vpop.eup %1890  ;;  %1051 = vst.msk [vmem:[#allocation2 + $0xd0] sm:$0xff] %vm309_vm1, %v986_v40  ;;  %v1185_v56 = vadd.f32 %v2194_v9, %v1117_v53  ;;  %v1133_v57 = vld [vmem:[#allocation2 + $0x148] sm:$0xff] }
  0xf7   : > { %v1893_v20 = vpop.eup %1892  ;;  %v1328_v23 = vpack.c.bf16 %v1891_v17, %v1891_v17  ;;  %1067 = vst.msk [vmem:[#allocation2 + $0x150] sm:$0xff] %vm309_vm1, %v1002_v41  ;;  %v1201_v61 = vadd.f32 %v2194_v9, %v1133_v57  ;;  %v1149_v62 = vld [vmem:[#allocation2 + $0x1c8] sm:$0xff] }
  0xf8   : > { %v1895_v26 = vpop.eup %1894  ;;  %v1344_v27 = vpack.c.bf16 %v1893_v20, %v1893_v20  ;;  %1083 = vst.msk [vmem:[#allocation2 + $0x1d0] sm:$0xff] %vm309_vm1, %v1018_v39  ;;  %1896 = vtanh.f32 %v1185_v56  ;;  %v1217_v2 = vadd.f32 %v2194_v9, %v1149_v62 }
  0xf9   : > { %1393 = vst.msk [vmem:[%s2226_s28 + $0xa0] sm:$0xf] %vm1352_vm2, %v1328_v23  ;;  %v1297_v21 = vpack.c.bf16 %v1895_v26, %v1895_v26  ;;  %1898 = vtanh.f32 %v1201_v61 }
  0xfa   : > { %1409 = vst.msk [vmem:[%s2226_s28 + $0xe0] sm:$0xf] %vm1352_vm2, %v1344_v27  ;;  %1900 = vtanh.f32 %v1217_v2 }
  0xfb   : > { %v907_v35 = vpop.f32.mrf.mxu2  ;;  %v947_v36 = vpop.f32.mrf.mxu3  ;;  %1362 = vst.msk [vmem:[%s2226_s28 + $0x24] sm:$0xf] %vm1352_vm2, %v1297_v21 }
  0xfc   : > { %v830_v12 = vpop.f32.mrf.mxu0  ;;  %v870_v38 = vpop.f32.mrf.mxu1  ;;  %v1003_v44 = vadd.f32 %v907_v35, %v641_v42  ;;  %v1019_v49 = vadd.f32 %v947_v36, %v657_v43  ;;  %1036 = vst.msk [vmem:[#allocation2 + $0x58] sm:$0xff] %vm309_vm1, %v971_v45  ;;  %v1102_v3 = vld [vmem:[#allocation2 + $0x50] sm:$0xff] }
  0xfd   : > { %v972_v54 = vadd.f32 %v830_v12, %v610_v47  ;;  %1052 = vst.msk [vmem:[#allocation2 + $0xd8] sm:$0xff] %vm309_vm1, %v987_v46  ;;  %v988_v58 = vadd.f32 %v870_v38, %v626_v48  ;;  %v1170_v5 = vadd.f32 %v2194_v9, %v1102_v3  ;;  %v1118_v6 = vld [vmem:[#allocation2 + $0xd0] sm:$0xff]  ;;  %v2448_v46 = vld [vmem:[%s2531_s2] ss:$0 sm:$0xff] }
  0xfe   : > { %1068 = vst.msk [vmem:[#allocation2 + $0x158] sm:$0xff] %vm309_vm1, %v1003_v44  ;;  %v1186_v8 = vadd.f32 %v2194_v9, %v1118_v6  ;;  %v1134_v10 = vld [vmem:[#allocation2 + $0x150] sm:$0xff]  ;;  %v1897_v30 = vpop.eup %1896 }
  0xff   : > { %1084 = vst.msk [vmem:[#allocation2 + $0x1d8] sm:$0xff] %vm309_vm1, %v1019_v49  ;;  %1902 = vtanh.f32 %v1170_v5  ;;  %v1202_v15 = vadd.f32 %v2194_v9, %v1134_v10  ;;  %v1150_v16 = vld [vmem:[#allocation2 + $0x1d0] sm:$0xff]  ;;  %v1899_v32 = vpop.eup %1898  ;;  %v1313_v33 = vpack.c.bf16 %v1897_v30, %v1897_v30 }
 0x100   : > { %1037 = vst.msk [vmem:[#allocation2 + $0x60] sm:$0xff] %vm309_vm1, %v972_v54  ;;  %1904 = vtanh.f32 %v1186_v8  ;;  %v1218_v17 = vadd.f32 %v2194_v9, %v1150_v16  ;;  %v1901_v35 = vpop.eup %1900  ;;  %v1329_v36 = vpack.c.bf16 %v1899_v32, %v1899_v32  ;;  %v660_v32 = vld [vmem:[#allocation2 + $0x1f0] sm:$0xff] }
 0x101   : > { %1053 = vst.msk [vmem:[#allocation2 + $0xe0] sm:$0xff] %vm309_vm1, %v988_v58  ;;  %1906 = vtanh.f32 %v1202_v15  ;;  %v1345_v38 = vpack.c.bf16 %v1901_v35, %v1901_v35 }
 0x102   : > { %1908 = vtanh.f32 %v1218_v17  ;;  %1378 = vst.msk [vmem:[%s2226_s28 + $0x64] sm:$0xf] %vm1352_vm2, %v1313_v33 }
 0x103   : > { %v910_v51 = vpop.f32.mrf.mxu2  ;;  %v950_v52 = vpop.f32.mrf.mxu3  ;;  %v1103_v18 = vld [vmem:[#allocation2 + $0x58] sm:$0xff]  ;;  %1394 = vst.msk [vmem:[%s2226_s28 + $0xa4] sm:$0xf] %vm1352_vm2, %v1329_v36 }
 0x104   : > { %v832_v60 = vpop.f32.mrf.mxu0  ;;  %v1004_v63 = vadd.f32 %v910_v51, %v642_v50  ;;  %v872_v1 = vpop.f32.mrf.mxu1  ;;  %v1020_v4 = vadd.f32 %v950_v52, %v658_v55  ;;  %v1171_v23 = vadd.f32 %v2194_v9, %v1103_v18  ;;  %v1119_v25 = vld [vmem:[#allocation2 + $0xd8] sm:$0xff]  ;;  %1410 = vst.msk [vmem:[%s2226_s28 + $0xe4] sm:$0xf] %vm1352_vm2, %v1345_v38  ;;  %v612_v18 = vld [vmem:[#allocation2 + $0x70] sm:$0xff] }
 0x105   : > { %v973_v7 = vadd.f32 %v832_v60, %v611_v59  ;;  %v989_v11 = vadd.f32 %v872_v1, %v627_v0  ;;  %v1187_v31 = vadd.f32 %v2194_v9, %v1119_v25  ;;  %v1135_v21 = vld [vmem:[#allocation2 + $0x158] sm:$0xff]  ;;  %v1903_v12 = vpop.eup %1902 }
 0x106   : > { %1069 = vst.msk [vmem:[#allocation2 + $0x160] sm:$0xff] %vm309_vm1, %v1004_v63  ;;  %1910 = vtanh.f32 %v1171_v23  ;;  %v1203_v34 = vadd.f32 %v2194_v9, %v1135_v21  ;;  %v1151_v22 = vld [vmem:[#allocation2 + $0x1d8] sm:$0xff]  ;;  %v1905_v41 = vpop.eup %1904  ;;  %v1298_v24 = vpack.c.bf16 %v1903_v12, %v1903_v12  ;;  %v628_v23 = vld [vmem:[#allocation2 + $0xf0] sm:$0xff] }
 0x107   : > { %1085 = vst.msk [vmem:[#allocation2 + $0x1e0] sm:$0xff] %vm309_vm1, %v1020_v4  ;;  %1912 = vtanh.f32 %v1187_v31  ;;  %v1219_v37 = vadd.f32 %v2194_v9, %v1151_v22  ;;  %v1104_v28 = vld [vmem:[#allocation2 + $0x60] sm:$0xff]  ;;  %v1907_v45 = vpop.eup %1906  ;;  %v1314_v43 = vpack.c.bf16 %v1905_v41, %v1905_v41  ;;  %v613_v22 = vld [vmem:[#allocation2 + $0x78] sm:$0xff] }
 0x108   : > { %1038 = vst.msk [vmem:[#allocation2 + $0x68] sm:$0xff] %vm309_vm1, %v973_v7  ;;  %1914 = vtanh.f32 %v1203_v34  ;;  %v1172_v40 = vadd.f32 %v2194_v9, %v1104_v28  ;;  %v1120_v29 = vld [vmem:[#allocation2 + $0xe0] sm:$0xff]  ;;  %v1909_v48 = vpop.eup %1908  ;;  %v645_v38 = vld [vmem:[#allocation2 + $0x178] sm:$0xff] }
 0x109   : > { %1054 = vst.msk [vmem:[#allocation2 + $0xe8] sm:$0xff] %vm309_vm1, %v989_v11  ;;  %1916 = vtanh.f32 %v1219_v37  ;;  %v1188_v39 = vadd.f32 %v2194_v9, %v1120_v29  ;;  %v1330_v9 = vpack.c.bf16 %v1907_v45, %v1907_v45  ;;  %v1346_v52 = vpack.c.bf16 %v1909_v48, %v1909_v48  ;;  %v629_v37 = vld [vmem:[#allocation2 + $0xf8] sm:$0xff] }
 0x10a   : > { %1918 = vtanh.f32 %v1172_v40  ;;  %1363 = vst.msk [vmem:[%s2226_s28 + $0x28] sm:$0xf] %vm1352_vm2, %v1298_v24  ;;  %v661_v41 = vld [vmem:[#allocation2 + $0x1f8] sm:$0xff] }
 0x10b   : > { %v912_v19 = vpop.f32.mrf.mxu2  ;;  %v952_v20 = vpop.f32.mrf.mxu3  ;;  %1920 = vtanh.f32 %v1188_v39  ;;  %1379 = vst.msk [vmem:[%s2226_s28 + $0x68] sm:$0xf] %vm1352_vm2, %v1314_v43 }
 0x10c   : > { %v1005_v26 = vadd.f32 %v912_v19, %v643_v13  ;;  %v1021_v27 = vadd.f32 %v952_v20, %v659_v14  ;;  %v1911_v51 = vpop.eup %1910  ;;  %1395 = vst.msk [vmem:[%s2226_s28 + $0xa8] sm:$0xf] %vm1352_vm2, %v1330_v9  ;;  %v835_v63 = vpop.f32.mrf.mxu0 }
 0x10d   : > { %v1136_v42 = vld [vmem:[#allocation2 + $0x160] sm:$0xff]  ;;  %v1913_v55 = vpop.eup %1912  ;;  %v1299_v56 = vpack.c.bf16 %v1911_v51, %v1911_v51  ;;  %1411 = vst.msk [vmem:[%s2226_s28 + $0xe8] sm:$0xf] %vm1352_vm2, %v1346_v52  ;;  %v875_v3 = vpop.f32.mrf.mxu1  ;;  %v974_v21 = vadd.f32 %v835_v63, %v612_v18 }
 0x10e   : > { %1070 = vst.msk [vmem:[#allocation2 + $0x168] sm:$0xff] %vm309_vm1, %v1005_v26  ;;  %v1204_v47 = vadd.f32 %v2448_v46, %v1136_v42  ;;  %v1152_v44 = vld [vmem:[#allocation2 + $0x1e0] sm:$0xff]  ;;  %v1915_v59 = vpop.eup %1914  ;;  %v1315_v60 = vpack.c.bf16 %v1913_v55, %v1913_v55  ;;  %v990_v34 = vadd.f32 %v875_v3, %v628_v23 }
 0x10f   : > { %1086 = vst.msk [vmem:[#allocation2 + $0x1e8] sm:$0xff] %vm309_vm1, %v1021_v27  ;;  %v1220_v49 = vadd.f32 %v2448_v46, %v1152_v44  ;;  %v1105_v50 = vld [vmem:[#allocation2 + $0x68] sm:$0xff]  ;;  %v1917_v0 = vpop.eup %1916  ;;  %v1331_v1 = vpack.c.bf16 %v1915_v59, %v1915_v59  ;;  %v644_v27 = vld [vmem:[#allocation2 + $0x170] sm:$0xff] }
 0x110   : > { %1922 = vtanh.f32 %v1204_v47  ;;  %v1173_v53 = vadd.f32 %v2448_v46, %v1105_v50  ;;  %v1121_v54 = vld [vmem:[#allocation2 + $0xe8] sm:$0xff]  ;;  %1364 = vst.msk [vmem:[%s2226_s28 + $0x2c] sm:$0xf] %vm1352_vm2, %v1299_v56  ;;  %v1919_v4 = vpop.eup %1918  ;;  %v1347_v5 = vpack.c.bf16 %v1917_v0, %v1917_v0 }
 0x111   : > { %1924 = vtanh.f32 %v1220_v49  ;;  %v1189_v57 = vadd.f32 %v2448_v46, %v1121_v54  ;;  %1380 = vst.msk [vmem:[%s2226_s28 + $0x6c] sm:$0xf] %vm1352_vm2, %v1315_v60  ;;  %v1921_v7 = vpop.eup %1920  ;;  %v1300_v8 = vpack.c.bf16 %v1919_v4, %v1919_v4 }
 0x112   : > { %1926 = vtanh.f32 %v1173_v53  ;;  %1396 = vst.msk [vmem:[%s2226_s28 + $0xac] sm:$0xf] %vm1352_vm2, %v1331_v1  ;;  %v1316_v13 = vpack.c.bf16 %v1921_v7, %v1921_v7 }
 0x113   : > { %1928 = vtanh.f32 %v1189_v57  ;;  %v915_v6 = vpop.f32.mrf.mxu2  ;;  %v955_v10 = vpop.f32.mrf.mxu3  ;;  %1412 = vst.msk [vmem:[%s2226_s28 + $0xec] sm:$0xf] %vm1352_vm2, %v1347_v5 }
 0x114   : > { %1365 = vst.msk [vmem:[%s2226_s28 + $0x30] sm:$0xf] %vm1352_vm2, %v1300_v8  ;;  %v837_v35 = vpop.f32.mrf.mxu0  ;;  %v1006_v36 = vadd.f32 %v915_v6, %v644_v27  ;;  %v1022_v12 = vadd.f32 %v955_v10, %v660_v32 }
 0x115   : > { %v1137_v58 = vld [vmem:[#allocation2 + $0x168] sm:$0xff]  ;;  %1381 = vst.msk [vmem:[%s2226_s28 + $0x70] sm:$0xf] %vm1352_vm2, %v1316_v13  ;;  %v877_v28 = vpop.f32.mrf.mxu1  ;;  %v975_v29 = vadd.f32 %v837_v35, %v613_v22 }
 0x116   : > { %v1205_v61 = vadd.f32 %v2448_v46, %v1137_v58  ;;  %v1153_v62 = vld [vmem:[#allocation2 + $0x1e8] sm:$0xff]  ;;  %v1923_v11 = vpop.eup %1922  ;;  %1039 = vst.msk [vmem:[#allocation2 + $0x70] sm:$0xff] %vm309_vm1, %v974_v21  ;;  %v991_v39 = vadd.f32 %v877_v28, %v629_v37 }
 0x117   : > { %v1221_v2 = vadd.f32 %v2448_v46, %v1153_v62  ;;  %v1925_v14 = vpop.eup %1924  ;;  %v1332_v15 = vpack.c.bf16 %v1923_v11, %v1923_v11  ;;  %1055 = vst.msk [vmem:[#allocation2 + $0xf0] sm:$0xff] %vm309_vm1, %v990_v34 }
 0x118   : > { %1930 = vtanh.f32 %v1205_v61  ;;  %v1927_v16 = vpop.eup %1926  ;;  %v1348_v17 = vpack.c.bf16 %v1925_v14, %v1925_v14  ;;  %1071 = vst.msk [vmem:[#allocation2 + $0x170] sm:$0xff] %vm309_vm1, %v1006_v36 }
 0x119   : > { %1932 = vtanh.f32 %v1221_v2  ;;  %v1929_v19 = vpop.eup %1928  ;;  %1397 = vst.msk [vmem:[%s2226_s28 + $0xb0] sm:$0xf] %vm1352_vm2, %v1332_v15  ;;  %v1301_v20 = vpack.c.bf16 %v1927_v16, %v1927_v16 }
 0x11a   : > { %1413 = vst.msk [vmem:[%s2226_s28 + $0xf0] sm:$0xf] %vm1352_vm2, %v1348_v17  ;;  %v1317_v26 = vpack.c.bf16 %v1929_v19, %v1929_v19 }
 0x11b   : > { %1366 = vst.msk [vmem:[%s2226_s28 + $0x34] sm:$0xf] %vm1352_vm2, %v1301_v20  ;;  %v917_v40 = vpop.f32.mrf.mxu2  ;;  %v957_v24 = vpop.f32.mrf.mxu3 }
 0x11c   : > { %1382 = vst.msk [vmem:[%s2226_s28 + $0x74] sm:$0xf] %vm1352_vm2, %v1317_v26  ;;  %v1007_v42 = vadd.f32 %v917_v40, %v645_v38  ;;  %v1023_v45 = vadd.f32 %v957_v24, %v661_v41 }
 0x11d   : > { %1087 = vst.msk [vmem:[#allocation2 + $0x1f0] sm:$0xff] %vm309_vm1, %v1022_v12  ;;  %v1106_v43 = vld [vmem:[#allocation2 + $0x70] sm:$0xff] }
 0x11e   : > { %v1931_v25 = vpop.eup %1930  ;;  %1040 = vst.msk [vmem:[#allocation2 + $0x78] sm:$0xff] %vm309_vm1, %v975_v29  ;;  %v1174_v47 = vadd.f32 %v2448_v46, %v1106_v43  ;;  %v1122_v44 = vld [vmem:[#allocation2 + $0xf0] sm:$0xff] }
 0x11f   : > { %v1933_v30 = vpop.eup %1932  ;;  %v1333_v31 = vpack.c.bf16 %v1931_v25, %v1931_v25  ;;  %1056 = vst.msk [vmem:[#allocation2 + $0xf8] sm:$0xff] %vm309_vm1, %v991_v39  ;;  %v1190_v48 = vadd.f32 %v2448_v46, %v1122_v44  ;;  %v1138_v9 = vld [vmem:[#allocation2 + $0x170] sm:$0xff] }
 0x120   : > { %v1349_v33 = vpack.c.bf16 %v1933_v30, %v1933_v30  ;;  %1072 = vst.msk [vmem:[#allocation2 + $0x178] sm:$0xff] %vm309_vm1, %v1007_v42  ;;  %1934 = vtanh.f32 %v1174_v47  ;;  %v1206_v49 = vadd.f32 %v2448_v46, %v1138_v9 }
 0x121   : > { %1398 = vst.msk [vmem:[%s2226_s28 + $0xb4] sm:$0xf] %vm1352_vm2, %v1333_v31  ;;  %1936 = vtanh.f32 %v1190_v48 }
 0x122   : > { %1414 = vst.msk [vmem:[%s2226_s28 + $0xf4] sm:$0xf] %vm1352_vm2, %v1349_v33  ;;  %1938 = vtanh.f32 %v1206_v49 }
 0x123   : > { %1088 = vst.msk [vmem:[#allocation2 + $0x1f8] sm:$0xff] %vm309_vm1, %v1023_v45 }
 0x124   : > { %v1154_v50 = vld [vmem:[#allocation2 + $0x1f0] sm:$0xff] }
 0x125   : > { %v1222_v51 = vadd.f32 %v2448_v46, %v1154_v50  ;;  %v1107_v52 = vld [vmem:[#allocation2 + $0x78] sm:$0xff] }
 0x126   : > { %v1175_v53 = vadd.f32 %v2448_v46, %v1107_v52  ;;  %v1123_v54 = vld [vmem:[#allocation2 + $0xf8] sm:$0xff]  ;;  %v1935_v60 = vpop.eup %1934 }
 0x127   : > { %1940 = vtanh.f32 %v1222_v51  ;;  %v1191_v55 = vadd.f32 %v2448_v46, %v1123_v54  ;;  %v1139_v56 = vld [vmem:[#allocation2 + $0x178] sm:$0xff]  ;;  %v1937_v61 = vpop.eup %1936  ;;  %v1302_v62 = vpack.c.bf16 %v1935_v60, %v1935_v60 }
 0x128   : > { %1942 = vtanh.f32 %v1175_v53  ;;  %v1207_v57 = vadd.f32 %v2448_v46, %v1139_v56  ;;  %v1939_v63 = vpop.eup %1938  ;;  %v1318_v0 = vpack.c.bf16 %v1937_v61, %v1937_v61 }
 0x129   : > { %1944 = vtanh.f32 %v1191_v55  ;;  %1367 = vst.msk [vmem:[%s2226_s28 + $0x38] sm:$0xf] %vm1352_vm2, %v1302_v62  ;;  %v1334_v2 = vpack.c.bf16 %v1939_v63, %v1939_v63 }
 0x12a   : > { %v1155_v58 = vld [vmem:[#allocation2 + $0x1f8] sm:$0xff]  ;;  %1946 = vtanh.f32 %v1207_v57  ;;  %1383 = vst.msk [vmem:[%s2226_s28 + $0x78] sm:$0xf] %vm1352_vm2, %v1318_v0 }
 0x12b   : > { %v1223_v59 = vadd.f32 %v2448_v46, %v1155_v58  ;;  %1399 = vst.msk [vmem:[%s2226_s28 + $0xb8] sm:$0xf] %vm1352_vm2, %v1334_v2 }
 0x12d   : > { %1948 = vtanh.f32 %v1223_v59  ;;  %v1941_v1 = vpop.eup %1940 }
 0x12e   : > { %v1943_v3 = vpop.eup %1942  ;;  %v1350_v46 = vpack.c.bf16 %v1941_v1, %v1941_v1 }
 0x12f   : > { %v1945_v4 = vpop.eup %1944  ;;  %v1303_v5 = vpack.c.bf16 %v1943_v3, %v1943_v3 }
 0x130   : > { %v1947_v6 = vpop.eup %1946  ;;  %1415 = vst.msk [vmem:[%s2226_s28 + $0xf8] sm:$0xf] %vm1352_vm2, %v1350_v46  ;;  %v1319_v7 = vpack.c.bf16 %v1945_v4, %v1945_v4 }
 0x131   : > { %1368 = vst.msk [vmem:[%s2226_s28 + $0x3c] sm:$0xf] %vm1352_vm2, %v1303_v5  ;;  %v1335_v10 = vpack.c.bf16 %v1947_v6, %v1947_v6 }
 0x132   : > { %1384 = vst.msk [vmem:[%s2226_s28 + $0x7c] sm:$0xf] %vm1352_vm2, %v1319_v7 }
 0x133   : > { %v1949_v8 = vpop.eup %1948  ;;  %1400 = vst.msk [vmem:[%s2226_s28 + $0xbc] sm:$0xf] %vm1352_vm2, %v1335_v10 }
 0x134   : > { %v1351_v11 = vpack.c.bf16 %v1949_v8, %v1949_v8 }
 0x136   : > { %1416 = vst.msk [vmem:[%s2226_s28 + $0xfc] sm:$0xf] %vm1352_vm2, %v1351_v11 }
 0x137 PF: > { %s13_s14 = sadd.s32 1, %s1973_s14   ;;  %s2533_s12 = smov %s1969_s13 }
 0x138   : > { %p10_p5 = scmp.ge.s32.totalorder %s13_s14, 6   ;;  %s2534_s13 = smov %s2536_s15 }
 0x13a   :  { %12 = sbr.rel (!%p10_p5) target bundleno = 2 (0x2), region = 76 }

</bundles_post_ra>
